<compile_context>
chip_gen: v5e
topology: v5e:2x2
jax: 0.10.0
libtpu: 0.0.40
codegen_flags: <defaults>
</compile_context>

<pallas_src>
import functools

import numpy as np

import jax
import jax.numpy as jnp
from jax.experimental import pallas as pl
from jax.experimental.pallas import tpu as pltpu


_VMEM_LIMIT = 32 * 1024 * 1024  # explicit scoped-VMEM budget (safe on v5e/v6e/v7x)


def _gelu(x):
    # tanh-approximate GELU: the transcendental goes to the EUP slot.
    c = 0.7978845608028654  # sqrt(2/pi)
    return 0.5 * x * (1.0 + jnp.tanh(c * (x + 0.044715 * (x * x * x))))


# ------------------------------ fused kernel --------------------------------
#
# "padded-flat" frame of an (hc, wc, C) image: wp = wc + 2 columns, hc + 3 rows
# (1 top pad, hc valid, 2 bottom pad), flattened row-major to ((hc+3)*wp, C).
# Pixel (r, c) lives at flat row (r+1)*wp + (c+1); every other row is zero.
# Each 3x3 tap of a "same" conv is then a contiguous window of the flat frame.

def _cnn_fused_kernel(
    x_ref,                          # (1, P1, Cin_pad) f32  zero-padded flat image
    lw_ref, lbm_ref,                # lifting: (Cin_pad, C1) bf16, (P1, C1) f32 masked bias
    w1_ref, b1_ref, ep1_ref,        # cov1  + pool-embed   (16x16 -> 8x8 frame)
    w2_ref, b2_ref, es2_ref,        # cov2  + straight-embed (8x8 frame)
    w3_ref, b3_ref, ep2_ref,        # cov3  + pool-embed   (8x8 -> 4x4 frame)
    w4_ref, b4_ref, es3_ref,        # cov4  + straight-embed (4x4 frame)
    w5_ref, b5_ref, ep3_ref,        # cov5  + pool-embed   (4x4 -> 2x2 frame)
    w6_ref, b6_ref, es4_ref,        # cov6  + straight-embed (2x2 frame)
    w7_ref, b7_ref, eprj_ref,       # cov7  + valid-pixel selection
    pw1_ref, pb1_ref, pw2_ref, pb2_ref,   # projection fc1 / fc2
    o_ref,                          # (1, Hout*Wout, out_c) f32
    *, H, W):

    bf16 = jnp.bfloat16
    f32 = jnp.float32

    def mm(lhs, w_ref, b_ref=None, act=False):
        acc = jnp.dot(lhs.astype(bf16), w_ref[...], preferred_element_type=f32)
        if b_ref is not None:
            acc = acc + b_ref[...]
        return _gelu(acc) if act else acc

    def conv3x3_gelu(hp, w_ref, b_ref, hc, wc):
        # hp: (P, Cin) zero-padded flat frame, P = (hc+3)*(wc+2).  The 9 taps
        # are contiguous shifted windows; lane-concat them into one (L, 9*Cin)
        # patch so the conv is a single MXU matmul (K = 9*Cin).
        wp = wc + 2
        L = hc * wp
        taps = [hp[kh * wp + kw: kh * wp + kw + L, :]
                for kh in range(3) for kw in range(3)]
        patch = jnp.concatenate(taps, axis=-1)
        return mm(patch, w_ref, b_ref, act=True)          # (L, Cout)

    def pool_max(cflat, hc, wc):
        # 2x2 / stride-2 max pool, still in flat coordinates: row p = r*wp + c,
        # hm[p] = max over the 2x2 block anchored at (r, c).
        wp = wc + 2
        L = hc * wp
        vm = jnp.maximum(cflat[:L - wp, :], cflat[wp:, :])
        return jnp.maximum(vm[:-1, :], vm[1:, :])

    def embed(e_ref, v):
        # 0/1 re-layout matmul: gathers the valid / pooled rows of a flat
        # activation and scatters them into the next stage's zero-padded flat
        # frame (no per-row masked stores, no HBM round trips).
        return jnp.dot(e_ref[...], v.astype(bf16), preferred_element_type=f32)

    hc, wc = H, W

    # Lifting (1x1 conv, no activation) computed directly in the padded-flat
    # frame; the bias is pre-masked so pad rows stay exactly zero.
    h = mm(x_ref[0], lw_ref) + lbm_ref[...]

    # gelu(cov1) -> pool
    c = conv3x3_gelu(h, w1_ref, b1_ref, hc, wc)
    h = embed(ep1_ref, pool_max(c, hc, wc))
    hc, wc = hc // 2, wc // 2

    # gelu(cov2) -> gelu(cov3) -> pool
    c = conv3x3_gelu(h, w2_ref, b2_ref, hc, wc)
    h = embed(es2_ref, c)
    c = conv3x3_gelu(h, w3_ref, b3_ref, hc, wc)
    h = embed(ep2_ref, pool_max(c, hc, wc))
    hc, wc = hc // 2, wc // 2

    # gelu(cov4) -> gelu(cov5) -> pool
    c = conv3x3_gelu(h, w4_ref, b4_ref, hc, wc)
    h = embed(es3_ref, c)
    c = conv3x3_gelu(h, w5_ref, b5_ref, hc, wc)
    h = embed(ep3_ref, pool_max(c, hc, wc))
    hc, wc = hc // 2, wc // 2

    # gelu(cov6) -> gelu(cov7)
    c = conv3x3_gelu(h, w6_ref, b6_ref, hc, wc)
    h = embed(es4_ref, c)
    c = conv3x3_gelu(h, w7_ref, b7_ref, hc, wc)

    # Projection head: select valid pixel rows, then fc1 -> gelu -> fc2.
    v = embed(eprj_ref, c)                                # (hc*wc, 8*hidden)
    v = mm(v, pw1_ref, pb1_ref, act=True)
    v = mm(v, pw2_ref, pb2_ref, act=False)
    o_ref[0] = v.astype(o_ref.dtype)


# --------------------- 0/1 re-layout ("embedding") matrices ------------------

def _valid_mask_flat(hc, wc):
    # 1.0 at the valid-pixel rows of the padded-flat frame, else 0.
    wp = wc + 2
    m = np.zeros(((hc + 3) * wp,), np.float32)
    for r in range(hc):
        m[(r + 1) * wp + 1: (r + 1) * wp + 1 + wc] = 1.0
    return m


def _straight_embed(hc, wc):
    # conv-output flat row r*wp + c  ->  next padded-flat row (r+1)*wp + (c+1)
    wp = wc + 2
    e = np.zeros(((hc + 3) * wp, hc * wp), np.float32)
    for r in range(hc):
        for c in range(wc):
            e[(r + 1) * wp + (c + 1), r * wp + c] = 1.0
    return e


def _pool_embed(hc, wc):
    # 2x2-max rows (anchored at even (r, c) in the hc x wc flat frame)
    #   ->  padded-flat frame of the pooled (hc/2, wc/2) image.
    wp = wc + 2
    hh, wh = hc // 2, wc // 2
    wpn = wh + 2
    e = np.zeros(((hh + 3) * wpn, hc * wp - wp - 1), np.float32)
    for i in range(hh):
        for j in range(wh):
            e[(i + 1) * wpn + (j + 1), (2 * i) * wp + (2 * j)] = 1.0
    return e


def _valid_select(hc, wc):
    # conv-output flat row r*wp + c  ->  dense row r*wc + c (drops pad columns)
    wp = wc + 2
    e = np.zeros((hc * wc, hc * wp), np.float32)
    for r in range(hc):
        for c in range(wc):
            e[r * wc + c, r * wp + c] = 1.0
    return e


# ------------------------- parameters & packing ------------------------------

def _conv_init(key, cout, cin, k):
    # Deterministic PyTorch-style uniform(-1/sqrt(fan_in), 1/sqrt(fan_in)) init.
    kw_, kb = jax.random.split(key)
    fan_in = cin * k * k
    bound = 1.0 / (fan_in ** 0.5)
    w = jax.random.uniform(kw_, (cout, cin, k, k), jnp.float32, -bound, bound)
    b = jax.random.uniform(kb, (cout,), jnp.float32, -bound, bound)
    return w, b


def init_cnn_params(key, in_channels, hidden, projection_channels, out_channels):
    keys = jax.random.split(key, 10)
    return {
        "lifting":  _conv_init(keys[0], hidden,        in_channels, 1),
        "cov1":     _conv_init(keys[1], hidden,        hidden,      3),
        "cov2":     _conv_init(keys[2], 2 * hidden,    hidden,      3),
        "cov3":     _conv_init(keys[3], 2 * hidden,    2 * hidden,  3),
        "cov4":     _conv_init(keys[4], 4 * hidden,    2 * hidden,  3),
        "cov5":     _conv_init(keys[5], 4 * hidden,    4 * hidden,  3),
        "cov6":     _conv_init(keys[6], 8 * hidden,    4 * hidden,  3),
        "cov7":     _conv_init(keys[7], 8 * hidden,    8 * hidden,  3),
        "proj_fc1": _conv_init(keys[8], projection_channels, 8 * hidden, 1),
        "proj_fc2": _conv_init(keys[9], out_channels,  projection_channels, 1),
    }


def prepare_params(raw, in_channels, H, W):
    """One-time packing of torch-layout (Cout,Cin,k,k) weights into the bf16
    matmul layouts + 0/1 re-layout matrices the fused kernel consumes."""

    def pack1x1(name):
        w, b = raw[name]
        cout, cin = w.shape[0], w.shape[1]
        return (w.reshape(cout, cin).T.astype(jnp.bfloat16),
                b.reshape(1, cout).astype(jnp.float32))

    def pack3x3(name):
        w, b = raw[name]
        cout, cin = w.shape[0], w.shape[1]
        wp = jnp.transpose(w, (2, 3, 1, 0)).reshape(9 * cin, cout)
        return wp.astype(jnp.bfloat16), b.reshape(1, cout).astype(jnp.float32)

    hid = raw["lifting"][0].shape[0]
    cin_pad = max(8, -(-in_channels // 8) * 8)

    # Lifting: pad Cin -> cin_pad (zero rows) and pre-mask its bias with the
    # valid-pixel mask so pad rows of the flat frame stay exactly zero.
    lw, lb = pack1x1("lifting")
    lw = jnp.pad(lw, ((0, cin_pad - in_channels), (0, 0)))
    mask = jnp.asarray(_valid_mask_flat(H, W))[:, None]           # (P1, 1)
    lbm = (mask * lb.astype(jnp.float32)).astype(jnp.float32)     # (P1, hid)

    w1, b1 = pack3x3("cov1"); w2, b2 = pack3x3("cov2")
    w3, b3 = pack3x3("cov3"); w4, b4 = pack3x3("cov4")
    w5, b5 = pack3x3("cov5"); w6, b6 = pack3x3("cov6")
    w7, b7 = pack3x3("cov7")
    pw1, pb1 = pack1x1("proj_fc1")
    pw2, pb2 = pack1x1("proj_fc2")

    bf = lambda a: jnp.asarray(a, jnp.bfloat16)
    ep1 = bf(_pool_embed(H, W))
    es2 = bf(_straight_embed(H // 2, W // 2))
    ep2 = bf(_pool_embed(H // 2, W // 2))
    es3 = bf(_straight_embed(H // 4, W // 4))
    ep3 = bf(_pool_embed(H // 4, W // 4))
    es4 = bf(_straight_embed(H // 8, W // 8))
    eprj = bf(_valid_select(H // 8, W // 8))

    args = (lw, lbm,
            w1, b1, ep1,
            w2, b2, es2,
            w3, b3, ep2,
            w4, b4, es3,
            w5, b5, ep3,
            w6, b6, es4,
            w7, b7, eprj,
            pw1, pb1, pw2, pb2)

    # Rough per-image cost (advisory only).
    p1 = (H + 3) * (W + 2)
    flops = 2 * p1 * cin_pad * hid
    trans = 0
    convs = [(w1, H, W), (w2, H // 2, W // 2), (w3, H // 2, W // 2),
             (w4, H // 4, W // 4), (w5, H // 4, W // 4),
             (w6, H // 8, W // 8), (w7, H // 8, W // 8)]
    for wk, hh, ww in convs:
        L = hh * (ww + 2)
        flops += 2 * L * wk.shape[0] * wk.shape[1]
        trans += L * wk.shape[1]
    for e in (ep1, es2, ep2, es3, ep3, es4, eprj):
        flops += 2 * e.shape[0] * e.shape[1] * (8 * hid)
    hw8 = (H // 8) * (W // 8)
    flops += 2 * hw8 * pw1.shape[0] * pw1.shape[1]
    flops += 2 * hw8 * pw2.shape[0] * pw2.shape[1]
    trans += hw8 * pw1.shape[1]
    weight_bytes = sum(int(np.prod(a.shape)) * a.dtype.itemsize for a in args)
    bytes_acc = p1 * cin_pad * 4 + weight_bytes + hw8 * pw2.shape[1] * 4

    return {"args": args, "cin_pad": cin_pad, "in_channels": in_channels,
            "hidden": hid,
            "cost_per_image": (int(flops), int(trans), int(bytes_acc))}


# ------------------------------ forward pass ---------------------------------

def cnn_forward(x_nchw, params):
    n, cin, h, w = x_nchw.shape
    assert h % 8 == 0 and w % 8 == 0, "three 2x2 pools need H, W divisible by 8"
    assert cin == params["in_channels"]
    cin_pad = params["cin_pad"]

    # NCHW -> NHWC, zero-pad channels to cin_pad and spatial by H:(1,2)/W:(1,1),
    # flatten spatial -> the zero-padded flat frame the kernel consumes.  This
    # is the only wrapper-side prep; everything else stays in VMEM.
    x = jnp.transpose(x_nchw, (0, 2, 3, 1)).astype(jnp.float32)
    x = jnp.pad(x, ((0, 0), (1, 2), (1, 1), (0, cin_pad - cin)))
    p1 = (h + 3) * (w + 2)
    x = x.reshape(n, p1, cin_pad)

    args = params["args"]
    out_c = args[-1].shape[1]                 # fc2 bias is (1, out_c)
    hw_out = (h // 8) * (w // 8)

    in_specs = [pl.BlockSpec((1, p1, cin_pad), lambda i: (i, 0, 0))]
    in_specs += [pl.BlockSpec(a.shape, lambda i: (0, 0)) for a in args]

    flops, trans, bytes_acc = params["cost_per_image"]
    out = pl.pallas_call(
        functools.partial(_cnn_fused_kernel, H=h, W=w),
        out_shape=jax.ShapeDtypeStruct((n, hw_out, out_c), jnp.float32),
        grid=(n,),
        in_specs=in_specs,
        out_specs=pl.BlockSpec((1, hw_out, out_c), lambda i: (i, 0, 0)),
        compiler_params=pltpu.CompilerParams(
            dimension_semantics=("parallel",),
            vmem_limit_bytes=_VMEM_LIMIT),
        cost_estimate=pl.CostEstimate(
            flops=n * flops,
            transcendentals=n * trans,
            bytes_accessed=n * bytes_acc),
    )(x, *args)

    out = out.reshape(n, h // 8, w // 8, out_c)
    return jnp.transpose(out, (0, 3, 1, 2))               # back to NCHW


# ---------------------------------- main -------------------------------------

if __name__ == "__main__":
    batch, in_channels, H, W = 2, 3, 16, 16
    hidden_channels = 8
    projection_channels = 32
    out_channels = 1

    key = jax.random.PRNGKey(0)
    kx, kp = jax.random.split(key)
    x = jax.random.normal(kx, (batch, in_channels, H, W), jnp.float32)
    raw = init_cnn_params(kp, in_channels, hidden_channels,
                          projection_channels, out_channels)
    params = prepare_params(raw, in_channels, H, W)

    fwd = jax.jit(lambda xx: cnn_forward(xx, params))
    out = fwd(x)
    jax.block_until_ready(out)

    expected_shape = (batch, out_channels, H // 8, W // 8)  # three 2x2 pools
    assert out.shape == expected_shape, (out.shape, expected_shape)
    assert bool(jnp.all(jnp.isfinite(out)))
    print("KERNEL_OK")
</pallas_src>

<mosaic_0001>
module attributes {stable_mosaic.version = 11 : i64} {
  func.func @_cnn_fused_kernel(%arg0: i32, %arg1: memref<1x342x8xf32, #tpu.memory_space<vmem>>, %arg2: memref<8x8xbf16, #tpu.memory_space<vmem>>, %arg3: memref<342x8xf32, #tpu.memory_space<vmem>>, %arg4: memref<72x8xbf16, #tpu.memory_space<vmem>>, %arg5: memref<1x8xf32, #tpu.memory_space<vmem>>, %arg6: memref<110x269xbf16, #tpu.memory_space<vmem>>, %arg7: memref<72x16xbf16, #tpu.memory_space<vmem>>, %arg8: memref<1x16xf32, #tpu.memory_space<vmem>>, %arg9: memref<110x80xbf16, #tpu.memory_space<vmem>>, %arg10: memref<144x16xbf16, #tpu.memory_space<vmem>>, %arg11: memref<1x16xf32, #tpu.memory_space<vmem>>, %arg12: memref<42x69xbf16, #tpu.memory_space<vmem>>, %arg13: memref<144x32xbf16, #tpu.memory_space<vmem>>, %arg14: memref<1x32xf32, #tpu.memory_space<vmem>>, %arg15: memref<42x24xbf16, #tpu.memory_space<vmem>>, %arg16: memref<288x32xbf16, #tpu.memory_space<vmem>>, %arg17: memref<1x32xf32, #tpu.memory_space<vmem>>, %arg18: memref<20x17xbf16, #tpu.memory_space<vmem>>, %arg19: memref<288x64xbf16, #tpu.memory_space<vmem>>, %arg20: memref<1x64xf32, #tpu.memory_space<vmem>>, %arg21: memref<20x8xbf16, #tpu.memory_space<vmem>>, %arg22: memref<576x64xbf16, #tpu.memory_space<vmem>>, %arg23: memref<1x64xf32, #tpu.memory_space<vmem>>, %arg24: memref<4x8xbf16, #tpu.memory_space<vmem>>, %arg25: memref<64x32xbf16, #tpu.memory_space<vmem>>, %arg26: memref<1x32xf32, #tpu.memory_space<vmem>>, %arg27: memref<32x1xbf16, #tpu.memory_space<vmem>>, %arg28: memref<1x1xf32, #tpu.memory_space<vmem>>, %arg29: memref<1x4x1xf32, #tpu.memory_space<vmem>>) attributes {dimension_semantics = [#tpu.dimension_semantics<parallel>], iteration_bounds = array<i64: 2>, scalar_prefetch = 0 : i64, scratch_operands = 0 : i64, tpu.core_type = #tpu.core_type<tc>, window_params = [{transform_indices = @transform_0, window_bounds = array<i64: 1, 342, 8>}, {pipeline_mode = #tpu.pipeline_mode<synchronous>, transform_indices = @transform_1, window_bounds = array<i64: 8, 8>}, {pipeline_mode = #tpu.pipeline_mode<synchronous>, transform_indices = @transform_2, window_bounds = array<i64: 342, 8>}, {pipeline_mode = #tpu.pipeline_mode<synchronous>, transform_indices = @transform_3, window_bounds = array<i64: 72, 8>}, {pipeline_mode = #tpu.pipeline_mode<synchronous>, transform_indices = @transform_4, window_bounds = array<i64: 1, 8>}, {pipeline_mode = #tpu.pipeline_mode<synchronous>, transform_indices = @transform_5, window_bounds = array<i64: 110, 269>}, {pipeline_mode = #tpu.pipeline_mode<synchronous>, transform_indices = @transform_6, window_bounds = array<i64: 72, 16>}, {pipeline_mode = #tpu.pipeline_mode<synchronous>, transform_indices = @transform_7, window_bounds = array<i64: 1, 16>}, {pipeline_mode = #tpu.pipeline_mode<synchronous>, transform_indices = @transform_8, window_bounds = array<i64: 110, 80>}, {pipeline_mode = #tpu.pipeline_mode<synchronous>, transform_indices = @transform_9, window_bounds = array<i64: 144, 16>}, {pipeline_mode = #tpu.pipeline_mode<synchronous>, transform_indices = @transform_10, window_bounds = array<i64: 1, 16>}, {pipeline_mode = #tpu.pipeline_mode<synchronous>, transform_indices = @transform_11, window_bounds = array<i64: 42, 69>}, {pipeline_mode = #tpu.pipeline_mode<synchronous>, transform_indices = @transform_12, window_bounds = array<i64: 144, 32>}, {pipeline_mode = #tpu.pipeline_mode<synchronous>, transform_indices = @transform_13, window_bounds = array<i64: 1, 32>}, {pipeline_mode = #tpu.pipeline_mode<synchronous>, transform_indices = @transform_14, window_bounds = array<i64: 42, 24>}, {pipeline_mode = #tpu.pipeline_mode<synchronous>, transform_indices = @transform_15, window_bounds = array<i64: 288, 32>}, {pipeline_mode = #tpu.pipeline_mode<synchronous>, transform_indices = @transform_16, window_bounds = array<i64: 1, 32>}, {pipeline_mode = #tpu.pipeline_mode<synchronous>, transform_indices = @transform_17, window_bounds = array<i64: 20, 17>}, {pipeline_mode = #tpu.pipeline_mode<synchronous>, transform_indices = @transform_18, window_bounds = array<i64: 288, 64>}, {pipeline_mode = #tpu.pipeline_mode<synchronous>, transform_indices = @transform_19, window_bounds = array<i64: 1, 64>}, {pipeline_mode = #tpu.pipeline_mode<synchronous>, transform_indices = @transform_20, window_bounds = array<i64: 20, 8>}, {pipeline_mode = #tpu.pipeline_mode<synchronous>, transform_indices = @transform_21, window_bounds = array<i64: 576, 64>}, {pipeline_mode = #tpu.pipeline_mode<synchronous>, transform_indices = @transform_22, window_bounds = array<i64: 1, 64>}, {pipeline_mode = #tpu.pipeline_mode<synchronous>, transform_indices = @transform_23, window_bounds = array<i64: 4, 8>}, {pipeline_mode = #tpu.pipeline_mode<synchronous>, transform_indices = @transform_24, window_bounds = array<i64: 64, 32>}, {pipeline_mode = #tpu.pipeline_mode<synchronous>, transform_indices = @transform_25, window_bounds = array<i64: 1, 32>}, {pipeline_mode = #tpu.pipeline_mode<synchronous>, transform_indices = @transform_26, window_bounds = array<i64: 32, 1>}, {pipeline_mode = #tpu.pipeline_mode<synchronous>, transform_indices = @transform_27, window_bounds = array<i64: 1, 1>}, {transform_indices = @transform_28, window_bounds = array<i64: 1, 4, 1>}]} {
    %c0 = arith.constant 0 : index
    %c0_0 = arith.constant 0 : index
    %c0_1 = arith.constant 0 : index
    %0 = vector.load %arg1[%c0, %c0_0, %c0_1] : memref<1x342x8xf32, #tpu.memory_space<vmem>>, vector<1x342x8xf32>
    %1 = vector.shape_cast %0 : vector<1x342x8xf32> to vector<342x8xf32>
    %2 = arith.truncf %1 : vector<342x8xf32> to vector<342x8xbf16>
    %c0_2 = arith.constant 0 : index
    %c0_3 = arith.constant 0 : index
    %3 = vector.load %arg2[%c0_2, %c0_3] : memref<8x8xbf16, #tpu.memory_space<vmem>>, vector<8x8xbf16>
    %cst = arith.constant dense<0.000000e+00> : vector<342x8xf32>
    %4 = tpu.matmul %2, %3, %cst {dimension_numbers = #tpu.dot_dimension_numbers<[1], [0], [0], [1], [0, 0, 1, 1], [], []>} : vector<342x8xbf16>, vector<8x8xbf16>, vector<342x8xf32> -> vector<342x8xf32>
    %c0_4 = arith.constant 0 : index
    %c0_5 = arith.constant 0 : index
    %5 = vector.load %arg3[%c0_4, %c0_5] : memref<342x8xf32, #tpu.memory_space<vmem>>, vector<342x8xf32>
    %6 = arith.addf %4, %5 : vector<342x8xf32>
    %7 = vector.extract_strided_slice %6 {offsets = [0, 0], sizes = [288, 8], strides = [1, 1]} : vector<342x8xf32> to vector<288x8xf32>
    %8 = vector.extract_strided_slice %6 {offsets = [1, 0], sizes = [288, 8], strides = [1, 1]} : vector<342x8xf32> to vector<288x8xf32>
    %9 = vector.extract_strided_slice %6 {offsets = [2, 0], sizes = [288, 8], strides = [1, 1]} : vector<342x8xf32> to vector<288x8xf32>
    %10 = vector.extract_strided_slice %6 {offsets = [18, 0], sizes = [288, 8], strides = [1, 1]} : vector<342x8xf32> to vector<288x8xf32>
    %11 = vector.extract_strided_slice %6 {offsets = [19, 0], sizes = [288, 8], strides = [1, 1]} : vector<342x8xf32> to vector<288x8xf32>
    %12 = vector.extract_strided_slice %6 {offsets = [20, 0], sizes = [288, 8], strides = [1, 1]} : vector<342x8xf32> to vector<288x8xf32>
    %13 = vector.extract_strided_slice %6 {offsets = [36, 0], sizes = [288, 8], strides = [1, 1]} : vector<342x8xf32> to vector<288x8xf32>
    %14 = vector.extract_strided_slice %6 {offsets = [37, 0], sizes = [288, 8], strides = [1, 1]} : vector<342x8xf32> to vector<288x8xf32>
    %15 = vector.extract_strided_slice %6 {offsets = [38, 0], sizes = [288, 8], strides = [1, 1]} : vector<342x8xf32> to vector<288x8xf32>
    %16 = tpu.concatenate %7, %8, %9, %10, %11, %12, %13, %14, %15 in 1 : vector<288x8xf32>, vector<288x8xf32>, vector<288x8xf32>, vector<288x8xf32>, vector<288x8xf32>, vector<288x8xf32>, vector<288x8xf32>, vector<288x8xf32>, vector<288x8xf32> -> vector<288x72xf32>
    %17 = arith.truncf %16 : vector<288x72xf32> to vector<288x72xbf16>
    %c0_6 = arith.constant 0 : index
    %c0_7 = arith.constant 0 : index
    %18 = vector.load %arg4[%c0_6, %c0_7] : memref<72x8xbf16, #tpu.memory_space<vmem>>, vector<72x8xbf16>
    %cst_8 = arith.constant dense<0.000000e+00> : vector<288x8xf32>
    %19 = tpu.matmul %17, %18, %cst_8 {dimension_numbers = #tpu.dot_dimension_numbers<[1], [0], [0], [1], [0, 0, 1, 1], [], []>} : vector<288x72xbf16>, vector<72x8xbf16>, vector<288x8xf32> -> vector<288x8xf32>
    %c0_9 = arith.constant 0 : index
    %c0_10 = arith.constant 0 : index
    %20 = vector.load %arg5[%c0_9, %c0_10] : memref<1x8xf32, #tpu.memory_space<vmem>>, vector<1x8xf32>
    %21 = vector.broadcast %20 : vector<1x8xf32> to vector<288x8xf32>
    %22 = arith.addf %19, %21 : vector<288x8xf32>
    %cst_11 = arith.constant 5.000000e-01 : f32
    %23 = vector.broadcast %cst_11 : f32 to vector<288x8xf32>
    %24 = arith.mulf %23, %22 : vector<288x8xf32>
    %25 = arith.mulf %22, %22 : vector<288x8xf32>
    %26 = arith.mulf %25, %22 : vector<288x8xf32>
    %cst_12 = arith.constant 4.471500e-02 : f32
    %27 = vector.broadcast %cst_12 : f32 to vector<288x8xf32>
    %28 = arith.mulf %27, %26 : vector<288x8xf32>
    %29 = arith.addf %22, %28 : vector<288x8xf32>
    %cst_13 = arith.constant 0.797884583 : f32
    %30 = vector.broadcast %cst_13 : f32 to vector<288x8xf32>
    %31 = arith.mulf %30, %29 : vector<288x8xf32>
    %32 = math.tanh %31 : vector<288x8xf32>
    %cst_14 = arith.constant 1.000000e+00 : f32
    %33 = vector.broadcast %cst_14 : f32 to vector<288x8xf32>
    %34 = arith.addf %33, %32 : vector<288x8xf32>
    %35 = arith.mulf %24, %34 : vector<288x8xf32>
    %36 = vector.extract_strided_slice %35 {offsets = [0, 0], sizes = [270, 8], strides = [1, 1]} : vector<288x8xf32> to vector<270x8xf32>
    %37 = vector.extract_strided_slice %35 {offsets = [18, 0], sizes = [270, 8], strides = [1, 1]} : vector<288x8xf32> to vector<270x8xf32>
    %38 = arith.maximumf %36, %37 : vector<270x8xf32>
    %39 = vector.extract_strided_slice %38 {offsets = [0, 0], sizes = [269, 8], strides = [1, 1]} : vector<270x8xf32> to vector<269x8xf32>
    %40 = vector.extract_strided_slice %38 {offsets = [1, 0], sizes = [269, 8], strides = [1, 1]} : vector<270x8xf32> to vector<269x8xf32>
    %41 = arith.maximumf %39, %40 : vector<269x8xf32>
    %c0_15 = arith.constant 0 : index
    %c0_16 = arith.constant 0 : index
    %42 = vector.load %arg6[%c0_15, %c0_16] : memref<110x269xbf16, #tpu.memory_space<vmem>>, vector<110x269xbf16>
    %43 = arith.truncf %41 : vector<269x8xf32> to vector<269x8xbf16>
    %cst_17 = arith.constant dense<0.000000e+00> : vector<110x8xf32>
    %44 = tpu.matmul %42, %43, %cst_17 {dimension_numbers = #tpu.dot_dimension_numbers<[1], [0], [0], [1], [0, 0, 1, 1], [], []>} : vector<110x269xbf16>, vector<269x8xbf16>, vector<110x8xf32> -> vector<110x8xf32>
    %45 = vector.extract_strided_slice %44 {offsets = [0, 0], sizes = [80, 8], strides = [1, 1]} : vector<110x8xf32> to vector<80x8xf32>
    %46 = vector.extract_strided_slice %44 {offsets = [1, 0], sizes = [80, 8], strides = [1, 1]} : vector<110x8xf32> to vector<80x8xf32>
    %47 = vector.extract_strided_slice %44 {offsets = [2, 0], sizes = [80, 8], strides = [1, 1]} : vector<110x8xf32> to vector<80x8xf32>
    %48 = vector.extract_strided_slice %44 {offsets = [10, 0], sizes = [80, 8], strides = [1, 1]} : vector<110x8xf32> to vector<80x8xf32>
    %49 = vector.extract_strided_slice %44 {offsets = [11, 0], sizes = [80, 8], strides = [1, 1]} : vector<110x8xf32> to vector<80x8xf32>
    %50 = vector.extract_strided_slice %44 {offsets = [12, 0], sizes = [80, 8], strides = [1, 1]} : vector<110x8xf32> to vector<80x8xf32>
    %51 = vector.extract_strided_slice %44 {offsets = [20, 0], sizes = [80, 8], strides = [1, 1]} : vector<110x8xf32> to vector<80x8xf32>
    %52 = vector.extract_strided_slice %44 {offsets = [21, 0], sizes = [80, 8], strides = [1, 1]} : vector<110x8xf32> to vector<80x8xf32>
    %53 = vector.extract_strided_slice %44 {offsets = [22, 0], sizes = [80, 8], strides = [1, 1]} : vector<110x8xf32> to vector<80x8xf32>
    %54 = tpu.concatenate %45, %46, %47, %48, %49, %50, %51, %52, %53 in 1 : vector<80x8xf32>, vector<80x8xf32>, vector<80x8xf32>, vector<80x8xf32>, vector<80x8xf32>, vector<80x8xf32>, vector<80x8xf32>, vector<80x8xf32>, vector<80x8xf32> -> vector<80x72xf32>
    %55 = arith.truncf %54 : vector<80x72xf32> to vector<80x72xbf16>
    %c0_18 = arith.constant 0 : index
    %c0_19 = arith.constant 0 : index
    %56 = vector.load %arg7[%c0_18, %c0_19] : memref<72x16xbf16, #tpu.memory_space<vmem>>, vector<72x16xbf16>
    %cst_20 = arith.constant dense<0.000000e+00> : vector<80x16xf32>
    %57 = tpu.matmul %55, %56, %cst_20 {dimension_numbers = #tpu.dot_dimension_numbers<[1], [0], [0], [1], [0, 0, 1, 1], [], []>} : vector<80x72xbf16>, vector<72x16xbf16>, vector<80x16xf32> -> vector<80x16xf32>
    %c0_21 = arith.constant 0 : index
    %c0_22 = arith.constant 0 : index
    %58 = vector.load %arg8[%c0_21, %c0_22] : memref<1x16xf32, #tpu.memory_space<vmem>>, vector<1x16xf32>
    %59 = vector.broadcast %58 : vector<1x16xf32> to vector<80x16xf32>
    %60 = arith.addf %57, %59 : vector<80x16xf32>
    %cst_23 = arith.constant 5.000000e-01 : f32
    %61 = vector.broadcast %cst_23 : f32 to vector<80x16xf32>
    %62 = arith.mulf %61, %60 : vector<80x16xf32>
    %63 = arith.mulf %60, %60 : vector<80x16xf32>
    %64 = arith.mulf %63, %60 : vector<80x16xf32>
    %cst_24 = arith.constant 4.471500e-02 : f32
    %65 = vector.broadcast %cst_24 : f32 to vector<80x16xf32>
    %66 = arith.mulf %65, %64 : vector<80x16xf32>
    %67 = arith.addf %60, %66 : vector<80x16xf32>
    %cst_25 = arith.constant 0.797884583 : f32
    %68 = vector.broadcast %cst_25 : f32 to vector<80x16xf32>
    %69 = arith.mulf %68, %67 : vector<80x16xf32>
    %70 = math.tanh %69 : vector<80x16xf32>
    %cst_26 = arith.constant 1.000000e+00 : f32
    %71 = vector.broadcast %cst_26 : f32 to vector<80x16xf32>
    %72 = arith.addf %71, %70 : vector<80x16xf32>
    %73 = arith.mulf %62, %72 : vector<80x16xf32>
    %c0_27 = arith.constant 0 : index
    %c0_28 = arith.constant 0 : index
    %74 = vector.load %arg9[%c0_27, %c0_28] : memref<110x80xbf16, #tpu.memory_space<vmem>>, vector<110x80xbf16>
    %75 = arith.truncf %73 : vector<80x16xf32> to vector<80x16xbf16>
    %cst_29 = arith.constant dense<0.000000e+00> : vector<110x16xf32>
    %76 = tpu.matmul %74, %75, %cst_29 {dimension_numbers = #tpu.dot_dimension_numbers<[1], [0], [0], [1], [0, 0, 1, 1], [], []>} : vector<110x80xbf16>, vector<80x16xbf16>, vector<110x16xf32> -> vector<110x16xf32>
    %77 = vector.extract_strided_slice %76 {offsets = [0, 0], sizes = [80, 16], strides = [1, 1]} : vector<110x16xf32> to vector<80x16xf32>
    %78 = vector.extract_strided_slice %76 {offsets = [1, 0], sizes = [80, 16], strides = [1, 1]} : vector<110x16xf32> to vector<80x16xf32>
    %79 = vector.extract_strided_slice %76 {offsets = [2, 0], sizes = [80, 16], strides = [1, 1]} : vector<110x16xf32> to vector<80x16xf32>
    %80 = vector.extract_strided_slice %76 {offsets = [10, 0], sizes = [80, 16], strides = [1, 1]} : vector<110x16xf32> to vector<80x16xf32>
    %81 = vector.extract_strided_slice %76 {offsets = [11, 0], sizes = [80, 16], strides = [1, 1]} : vector<110x16xf32> to vector<80x16xf32>
    %82 = vector.extract_strided_slice %76 {offsets = [12, 0], sizes = [80, 16], strides = [1, 1]} : vector<110x16xf32> to vector<80x16xf32>
    %83 = vector.extract_strided_slice %76 {offsets = [20, 0], sizes = [80, 16], strides = [1, 1]} : vector<110x16xf32> to vector<80x16xf32>
    %84 = vector.extract_strided_slice %76 {offsets = [21, 0], sizes = [80, 16], strides = [1, 1]} : vector<110x16xf32> to vector<80x16xf32>
    %85 = vector.extract_strided_slice %76 {offsets = [22, 0], sizes = [80, 16], strides = [1, 1]} : vector<110x16xf32> to vector<80x16xf32>
    %86 = tpu.concatenate %77, %78, %79, %80, %81, %82, %83, %84, %85 in 1 : vector<80x16xf32>, vector<80x16xf32>, vector<80x16xf32>, vector<80x16xf32>, vector<80x16xf32>, vector<80x16xf32>, vector<80x16xf32>, vector<80x16xf32>, vector<80x16xf32> -> vector<80x144xf32>
    %87 = arith.truncf %86 : vector<80x144xf32> to vector<80x144xbf16>
    %c0_30 = arith.constant 0 : index
    %c0_31 = arith.constant 0 : index
    %88 = vector.load %arg10[%c0_30, %c0_31] : memref<144x16xbf16, #tpu.memory_space<vmem>>, vector<144x16xbf16>
    %cst_32 = arith.constant dense<0.000000e+00> : vector<80x16xf32>
    %89 = tpu.matmul %87, %88, %cst_32 {dimension_numbers = #tpu.dot_dimension_numbers<[1], [0], [0], [1], [0, 0, 1, 1], [], []>} : vector<80x144xbf16>, vector<144x16xbf16>, vector<80x16xf32> -> vector<80x16xf32>
    %c0_33 = arith.constant 0 : index
    %c0_34 = arith.constant 0 : index
    %90 = vector.load %arg11[%c0_33, %c0_34] : memref<1x16xf32, #tpu.memory_space<vmem>>, vector<1x16xf32>
    %91 = vector.broadcast %90 : vector<1x16xf32> to vector<80x16xf32>
    %92 = arith.addf %89, %91 : vector<80x16xf32>
    %cst_35 = arith.constant 5.000000e-01 : f32
    %93 = vector.broadcast %cst_35 : f32 to vector<80x16xf32>
    %94 = arith.mulf %93, %92 : vector<80x16xf32>
    %95 = arith.mulf %92, %92 : vector<80x16xf32>
    %96 = arith.mulf %95, %92 : vector<80x16xf32>
    %cst_36 = arith.constant 4.471500e-02 : f32
    %97 = vector.broadcast %cst_36 : f32 to vector<80x16xf32>
    %98 = arith.mulf %97, %96 : vector<80x16xf32>
    %99 = arith.addf %92, %98 : vector<80x16xf32>
    %cst_37 = arith.constant 0.797884583 : f32
    %100 = vector.broadcast %cst_37 : f32 to vector<80x16xf32>
    %101 = arith.mulf %100, %99 : vector<80x16xf32>
    %102 = math.tanh %101 : vector<80x16xf32>
    %cst_38 = arith.constant 1.000000e+00 : f32
    %103 = vector.broadcast %cst_38 : f32 to vector<80x16xf32>
    %104 = arith.addf %103, %102 : vector<80x16xf32>
    %105 = arith.mulf %94, %104 : vector<80x16xf32>
    %106 = vector.extract_strided_slice %105 {offsets = [0, 0], sizes = [70, 16], strides = [1, 1]} : vector<80x16xf32> to vector<70x16xf32>
    %107 = vector.extract_strided_slice %105 {offsets = [10, 0], sizes = [70, 16], strides = [1, 1]} : vector<80x16xf32> to vector<70x16xf32>
    %108 = arith.maximumf %106, %107 : vector<70x16xf32>
    %109 = vector.extract_strided_slice %108 {offsets = [0, 0], sizes = [69, 16], strides = [1, 1]} : vector<70x16xf32> to vector<69x16xf32>
    %110 = vector.extract_strided_slice %108 {offsets = [1, 0], sizes = [69, 16], strides = [1, 1]} : vector<70x16xf32> to vector<69x16xf32>
    %111 = arith.maximumf %109, %110 : vector<69x16xf32>
    %c0_39 = arith.constant 0 : index
    %c0_40 = arith.constant 0 : index
    %112 = vector.load %arg12[%c0_39, %c0_40] : memref<42x69xbf16, #tpu.memory_space<vmem>>, vector<42x69xbf16>
    %113 = arith.truncf %111 : vector<69x16xf32> to vector<69x16xbf16>
    %cst_41 = arith.constant dense<0.000000e+00> : vector<42x16xf32>
    %114 = tpu.matmul %112, %113, %cst_41 {dimension_numbers = #tpu.dot_dimension_numbers<[1], [0], [0], [1], [0, 0, 1, 1], [], []>} : vector<42x69xbf16>, vector<69x16xbf16>, vector<42x16xf32> -> vector<42x16xf32>
    %115 = vector.extract_strided_slice %114 {offsets = [0, 0], sizes = [24, 16], strides = [1, 1]} : vector<42x16xf32> to vector<24x16xf32>
    %116 = vector.extract_strided_slice %114 {offsets = [1, 0], sizes = [24, 16], strides = [1, 1]} : vector<42x16xf32> to vector<24x16xf32>
    %117 = vector.extract_strided_slice %114 {offsets = [2, 0], sizes = [24, 16], strides = [1, 1]} : vector<42x16xf32> to vector<24x16xf32>
    %118 = vector.extract_strided_slice %114 {offsets = [6, 0], sizes = [24, 16], strides = [1, 1]} : vector<42x16xf32> to vector<24x16xf32>
    %119 = vector.extract_strided_slice %114 {offsets = [7, 0], sizes = [24, 16], strides = [1, 1]} : vector<42x16xf32> to vector<24x16xf32>
    %120 = vector.extract_strided_slice %114 {offsets = [8, 0], sizes = [24, 16], strides = [1, 1]} : vector<42x16xf32> to vector<24x16xf32>
    %121 = vector.extract_strided_slice %114 {offsets = [12, 0], sizes = [24, 16], strides = [1, 1]} : vector<42x16xf32> to vector<24x16xf32>
    %122 = vector.extract_strided_slice %114 {offsets = [13, 0], sizes = [24, 16], strides = [1, 1]} : vector<42x16xf32> to vector<24x16xf32>
    %123 = vector.extract_strided_slice %114 {offsets = [14, 0], sizes = [24, 16], strides = [1, 1]} : vector<42x16xf32> to vector<24x16xf32>
    %124 = tpu.concatenate %115, %116, %117, %118, %119, %120, %121, %122, %123 in 1 : vector<24x16xf32>, vector<24x16xf32>, vector<24x16xf32>, vector<24x16xf32>, vector<24x16xf32>, vector<24x16xf32>, vector<24x16xf32>, vector<24x16xf32>, vector<24x16xf32> -> vector<24x144xf32>
    %125 = arith.truncf %124 : vector<24x144xf32> to vector<24x144xbf16>
    %c0_42 = arith.constant 0 : index
    %c0_43 = arith.constant 0 : index
    %126 = vector.load %arg13[%c0_42, %c0_43] : memref<144x32xbf16, #tpu.memory_space<vmem>>, vector<144x32xbf16>
    %cst_44 = arith.constant dense<0.000000e+00> : vector<24x32xf32>
    %127 = tpu.matmul %125, %126, %cst_44 {dimension_numbers = #tpu.dot_dimension_numbers<[1], [0], [0], [1], [0, 0, 1, 1], [], []>} : vector<24x144xbf16>, vector<144x32xbf16>, vector<24x32xf32> -> vector<24x32xf32>
    %c0_45 = arith.constant 0 : index
    %c0_46 = arith.constant 0 : index
    %128 = vector.load %arg14[%c0_45, %c0_46] : memref<1x32xf32, #tpu.memory_space<vmem>>, vector<1x32xf32>
    %129 = vector.broadcast %128 : vector<1x32xf32> to vector<24x32xf32>
    %130 = arith.addf %127, %129 : vector<24x32xf32>
    %cst_47 = arith.constant 5.000000e-01 : f32
    %131 = vector.broadcast %cst_47 : f32 to vector<24x32xf32>
    %132 = arith.mulf %131, %130 : vector<24x32xf32>
    %133 = arith.mulf %130, %130 : vector<24x32xf32>
    %134 = arith.mulf %133, %130 : vector<24x32xf32>
    %cst_48 = arith.constant 4.471500e-02 : f32
    %135 = vector.broadcast %cst_48 : f32 to vector<24x32xf32>
    %136 = arith.mulf %135, %134 : vector<24x32xf32>
    %137 = arith.addf %130, %136 : vector<24x32xf32>
    %cst_49 = arith.constant 0.797884583 : f32
    %138 = vector.broadcast %cst_49 : f32 to vector<24x32xf32>
    %139 = arith.mulf %138, %137 : vector<24x32xf32>
    %140 = math.tanh %139 : vector<24x32xf32>
    %cst_50 = arith.constant 1.000000e+00 : f32
    %141 = vector.broadcast %cst_50 : f32 to vector<24x32xf32>
    %142 = arith.addf %141, %140 : vector<24x32xf32>
    %143 = arith.mulf %132, %142 : vector<24x32xf32>
    %c0_51 = arith.constant 0 : index
    %c0_52 = arith.constant 0 : index
    %144 = vector.load %arg15[%c0_51, %c0_52] : memref<42x24xbf16, #tpu.memory_space<vmem>>, vector<42x24xbf16>
    %145 = arith.truncf %143 : vector<24x32xf32> to vector<24x32xbf16>
    %cst_53 = arith.constant dense<0.000000e+00> : vector<42x32xf32>
    %146 = tpu.matmul %144, %145, %cst_53 {dimension_numbers = #tpu.dot_dimension_numbers<[1], [0], [0], [1], [0, 0, 1, 1], [], []>} : vector<42x24xbf16>, vector<24x32xbf16>, vector<42x32xf32> -> vector<42x32xf32>
    %147 = vector.extract_strided_slice %146 {offsets = [0, 0], sizes = [24, 32], strides = [1, 1]} : vector<42x32xf32> to vector<24x32xf32>
    %148 = vector.extract_strided_slice %146 {offsets = [1, 0], sizes = [24, 32], strides = [1, 1]} : vector<42x32xf32> to vector<24x32xf32>
    %149 = vector.extract_strided_slice %146 {offsets = [2, 0], sizes = [24, 32], strides = [1, 1]} : vector<42x32xf32> to vector<24x32xf32>
    %150 = vector.extract_strided_slice %146 {offsets = [6, 0], sizes = [24, 32], strides = [1, 1]} : vector<42x32xf32> to vector<24x32xf32>
    %151 = vector.extract_strided_slice %146 {offsets = [7, 0], sizes = [24, 32], strides = [1, 1]} : vector<42x32xf32> to vector<24x32xf32>
    %152 = vector.extract_strided_slice %146 {offsets = [8, 0], sizes = [24, 32], strides = [1, 1]} : vector<42x32xf32> to vector<24x32xf32>
    %153 = vector.extract_strided_slice %146 {offsets = [12, 0], sizes = [24, 32], strides = [1, 1]} : vector<42x32xf32> to vector<24x32xf32>
    %154 = vector.extract_strided_slice %146 {offsets = [13, 0], sizes = [24, 32], strides = [1, 1]} : vector<42x32xf32> to vector<24x32xf32>
    %155 = vector.extract_strided_slice %146 {offsets = [14, 0], sizes = [24, 32], strides = [1, 1]} : vector<42x32xf32> to vector<24x32xf32>
    %156 = tpu.concatenate %147, %148, %149, %150, %151, %152, %153, %154, %155 in 1 : vector<24x32xf32>, vector<24x32xf32>, vector<24x32xf32>, vector<24x32xf32>, vector<24x32xf32>, vector<24x32xf32>, vector<24x32xf32>, vector<24x32xf32>, vector<24x32xf32> -> vector<24x288xf32>
    %157 = arith.truncf %156 : vector<24x288xf32> to vector<24x288xbf16>
    %c0_54 = arith.constant 0 : index
    %c0_55 = arith.constant 0 : index
    %158 = vector.load %arg16[%c0_54, %c0_55] : memref<288x32xbf16, #tpu.memory_space<vmem>>, vector<288x32xbf16>
    %cst_56 = arith.constant dense<0.000000e+00> : vector<24x32xf32>
    %159 = tpu.matmul %157, %158, %cst_56 {dimension_numbers = #tpu.dot_dimension_numbers<[1], [0], [0], [1], [0, 0, 1, 1], [], []>} : vector<24x288xbf16>, vector<288x32xbf16>, vector<24x32xf32> -> vector<24x32xf32>
    %c0_57 = arith.constant 0 : index
    %c0_58 = arith.constant 0 : index
    %160 = vector.load %arg17[%c0_57, %c0_58] : memref<1x32xf32, #tpu.memory_space<vmem>>, vector<1x32xf32>
    %161 = vector.broadcast %160 : vector<1x32xf32> to vector<24x32xf32>
    %162 = arith.addf %159, %161 : vector<24x32xf32>
    %cst_59 = arith.constant 5.000000e-01 : f32
    %163 = vector.broadcast %cst_59 : f32 to vector<24x32xf32>
    %164 = arith.mulf %163, %162 : vector<24x32xf32>
    %165 = arith.mulf %162, %162 : vector<24x32xf32>
    %166 = arith.mulf %165, %162 : vector<24x32xf32>
    %cst_60 = arith.constant 4.471500e-02 : f32
    %167 = vector.broadcast %cst_60 : f32 to vector<24x32xf32>
    %168 = arith.mulf %167, %166 : vector<24x32xf32>
    %169 = arith.addf %162, %168 : vector<24x32xf32>
    %cst_61 = arith.constant 0.797884583 : f32
    %170 = vector.broadcast %cst_61 : f32 to vector<24x32xf32>
    %171 = arith.mulf %170, %169 : vector<24x32xf32>
    %172 = math.tanh %171 : vector<24x32xf32>
    %cst_62 = arith.constant 1.000000e+00 : f32
    %173 = vector.broadcast %cst_62 : f32 to vector<24x32xf32>
    %174 = arith.addf %173, %172 : vector<24x32xf32>
    %175 = arith.mulf %164, %174 : vector<24x32xf32>
    %176 = vector.extract_strided_slice %175 {offsets = [0, 0], sizes = [18, 32], strides = [1, 1]} : vector<24x32xf32> to vector<18x32xf32>
    %177 = vector.extract_strided_slice %175 {offsets = [6, 0], sizes = [18, 32], strides = [1, 1]} : vector<24x32xf32> to vector<18x32xf32>
    %178 = arith.maximumf %176, %177 : vector<18x32xf32>
    %179 = vector.extract_strided_slice %178 {offsets = [0, 0], sizes = [17, 32], strides = [1, 1]} : vector<18x32xf32> to vector<17x32xf32>
    %180 = vector.extract_strided_slice %178 {offsets = [1, 0], sizes = [17, 32], strides = [1, 1]} : vector<18x32xf32> to vector<17x32xf32>
    %181 = arith.maximumf %179, %180 : vector<17x32xf32>
    %c0_63 = arith.constant 0 : index
    %c0_64 = arith.constant 0 : index
    %182 = vector.load %arg18[%c0_63, %c0_64] : memref<20x17xbf16, #tpu.memory_space<vmem>>, vector<20x17xbf16>
    %183 = arith.truncf %181 : vector<17x32xf32> to vector<17x32xbf16>
    %cst_65 = arith.constant dense<0.000000e+00> : vector<20x32xf32>
    %184 = tpu.matmul %182, %183, %cst_65 {dimension_numbers = #tpu.dot_dimension_numbers<[1], [0], [0], [1], [0, 0, 1, 1], [], []>} : vector<20x17xbf16>, vector<17x32xbf16>, vector<20x32xf32> -> vector<20x32xf32>
    %185 = vector.extract_strided_slice %184 {offsets = [0, 0], sizes = [8, 32], strides = [1, 1]} : vector<20x32xf32> to vector<8x32xf32>
    %186 = vector.extract_strided_slice %184 {offsets = [1, 0], sizes = [8, 32], strides = [1, 1]} : vector<20x32xf32> to vector<8x32xf32>
    %187 = vector.extract_strided_slice %184 {offsets = [2, 0], sizes = [8, 32], strides = [1, 1]} : vector<20x32xf32> to vector<8x32xf32>
    %188 = vector.extract_strided_slice %184 {offsets = [4, 0], sizes = [8, 32], strides = [1, 1]} : vector<20x32xf32> to vector<8x32xf32>
    %189 = vector.extract_strided_slice %184 {offsets = [5, 0], sizes = [8, 32], strides = [1, 1]} : vector<20x32xf32> to vector<8x32xf32>
    %190 = vector.extract_strided_slice %184 {offsets = [6, 0], sizes = [8, 32], strides = [1, 1]} : vector<20x32xf32> to vector<8x32xf32>
    %191 = vector.extract_strided_slice %184 {offsets = [8, 0], sizes = [8, 32], strides = [1, 1]} : vector<20x32xf32> to vector<8x32xf32>
    %192 = vector.extract_strided_slice %184 {offsets = [9, 0], sizes = [8, 32], strides = [1, 1]} : vector<20x32xf32> to vector<8x32xf32>
    %193 = vector.extract_strided_slice %184 {offsets = [10, 0], sizes = [8, 32], strides = [1, 1]} : vector<20x32xf32> to vector<8x32xf32>
    %194 = tpu.concatenate %185, %186, %187, %188, %189, %190, %191, %192, %193 in 1 : vector<8x32xf32>, vector<8x32xf32>, vector<8x32xf32>, vector<8x32xf32>, vector<8x32xf32>, vector<8x32xf32>, vector<8x32xf32>, vector<8x32xf32>, vector<8x32xf32> -> vector<8x288xf32>
    %195 = arith.truncf %194 : vector<8x288xf32> to vector<8x288xbf16>
    %c0_66 = arith.constant 0 : index
    %c0_67 = arith.constant 0 : index
    %196 = vector.load %arg19[%c0_66, %c0_67] : memref<288x64xbf16, #tpu.memory_space<vmem>>, vector<288x64xbf16>
    %cst_68 = arith.constant dense<0.000000e+00> : vector<8x64xf32>
    %197 = tpu.matmul %195, %196, %cst_68 {dimension_numbers = #tpu.dot_dimension_numbers<[1], [0], [0], [1], [0, 0, 1, 1], [], []>} : vector<8x288xbf16>, vector<288x64xbf16>, vector<8x64xf32> -> vector<8x64xf32>
    %c0_69 = arith.constant 0 : index
    %c0_70 = arith.constant 0 : index
    %198 = vector.load %arg20[%c0_69, %c0_70] : memref<1x64xf32, #tpu.memory_space<vmem>>, vector<1x64xf32>
    %199 = vector.broadcast %198 : vector<1x64xf32> to vector<8x64xf32>
    %200 = arith.addf %197, %199 : vector<8x64xf32>
    %cst_71 = arith.constant 5.000000e-01 : f32
    %201 = vector.broadcast %cst_71 : f32 to vector<8x64xf32>
    %202 = arith.mulf %201, %200 : vector<8x64xf32>
    %203 = arith.mulf %200, %200 : vector<8x64xf32>
    %204 = arith.mulf %203, %200 : vector<8x64xf32>
    %cst_72 = arith.constant 4.471500e-02 : f32
    %205 = vector.broadcast %cst_72 : f32 to vector<8x64xf32>
    %206 = arith.mulf %205, %204 : vector<8x64xf32>
    %207 = arith.addf %200, %206 : vector<8x64xf32>
    %cst_73 = arith.constant 0.797884583 : f32
    %208 = vector.broadcast %cst_73 : f32 to vector<8x64xf32>
    %209 = arith.mulf %208, %207 : vector<8x64xf32>
    %210 = math.tanh %209 : vector<8x64xf32>
    %cst_74 = arith.constant 1.000000e+00 : f32
    %211 = vector.broadcast %cst_74 : f32 to vector<8x64xf32>
    %212 = arith.addf %211, %210 : vector<8x64xf32>
    %213 = arith.mulf %202, %212 : vector<8x64xf32>
    %c0_75 = arith.constant 0 : index
    %c0_76 = arith.constant 0 : index
    %214 = vector.load %arg21[%c0_75, %c0_76] : memref<20x8xbf16, #tpu.memory_space<vmem>>, vector<20x8xbf16>
    %215 = arith.truncf %213 : vector<8x64xf32> to vector<8x64xbf16>
    %cst_77 = arith.constant dense<0.000000e+00> : vector<20x64xf32>
    %216 = tpu.matmul %214, %215, %cst_77 {dimension_numbers = #tpu.dot_dimension_numbers<[1], [0], [0], [1], [0, 0, 1, 1], [], []>} : vector<20x8xbf16>, vector<8x64xbf16>, vector<20x64xf32> -> vector<20x64xf32>
    %217 = vector.extract_strided_slice %216 {offsets = [0, 0], sizes = [8, 64], strides = [1, 1]} : vector<20x64xf32> to vector<8x64xf32>
    %218 = vector.extract_strided_slice %216 {offsets = [1, 0], sizes = [8, 64], strides = [1, 1]} : vector<20x64xf32> to vector<8x64xf32>
    %219 = vector.extract_strided_slice %216 {offsets = [2, 0], sizes = [8, 64], strides = [1, 1]} : vector<20x64xf32> to vector<8x64xf32>
    %220 = vector.extract_strided_slice %216 {offsets = [4, 0], sizes = [8, 64], strides = [1, 1]} : vector<20x64xf32> to vector<8x64xf32>
    %221 = vector.extract_strided_slice %216 {offsets = [5, 0], sizes = [8, 64], strides = [1, 1]} : vector<20x64xf32> to vector<8x64xf32>
    %222 = vector.extract_strided_slice %216 {offsets = [6, 0], sizes = [8, 64], strides = [1, 1]} : vector<20x64xf32> to vector<8x64xf32>
    %223 = vector.extract_strided_slice %216 {offsets = [8, 0], sizes = [8, 64], strides = [1, 1]} : vector<20x64xf32> to vector<8x64xf32>
    %224 = vector.extract_strided_slice %216 {offsets = [9, 0], sizes = [8, 64], strides = [1, 1]} : vector<20x64xf32> to vector<8x64xf32>
    %225 = vector.extract_strided_slice %216 {offsets = [10, 0], sizes = [8, 64], strides = [1, 1]} : vector<20x64xf32> to vector<8x64xf32>
    %226 = tpu.concatenate %217, %218, %219, %220, %221, %222, %223, %224, %225 in 1 : vector<8x64xf32>, vector<8x64xf32>, vector<8x64xf32>, vector<8x64xf32>, vector<8x64xf32>, vector<8x64xf32>, vector<8x64xf32>, vector<8x64xf32>, vector<8x64xf32> -> vector<8x576xf32>
    %227 = arith.truncf %226 : vector<8x576xf32> to vector<8x576xbf16>
    %c0_78 = arith.constant 0 : index
    %c0_79 = arith.constant 0 : index
    %228 = vector.load %arg22[%c0_78, %c0_79] : memref<576x64xbf16, #tpu.memory_space<vmem>>, vector<576x64xbf16>
    %cst_80 = arith.constant dense<0.000000e+00> : vector<8x64xf32>
    %229 = tpu.matmul %227, %228, %cst_80 {dimension_numbers = #tpu.dot_dimension_numbers<[1], [0], [0], [1], [0, 0, 1, 1], [], []>} : vector<8x576xbf16>, vector<576x64xbf16>, vector<8x64xf32> -> vector<8x64xf32>
    %c0_81 = arith.constant 0 : index
    %c0_82 = arith.constant 0 : index
    %230 = vector.load %arg23[%c0_81, %c0_82] : memref<1x64xf32, #tpu.memory_space<vmem>>, vector<1x64xf32>
    %231 = vector.broadcast %230 : vector<1x64xf32> to vector<8x64xf32>
    %232 = arith.addf %229, %231 : vector<8x64xf32>
    %cst_83 = arith.constant 5.000000e-01 : f32
    %233 = vector.broadcast %cst_83 : f32 to vector<8x64xf32>
    %234 = arith.mulf %233, %232 : vector<8x64xf32>
    %235 = arith.mulf %232, %232 : vector<8x64xf32>
    %236 = arith.mulf %235, %232 : vector<8x64xf32>
    %cst_84 = arith.constant 4.471500e-02 : f32
    %237 = vector.broadcast %cst_84 : f32 to vector<8x64xf32>
    %238 = arith.mulf %237, %236 : vector<8x64xf32>
    %239 = arith.addf %232, %238 : vector<8x64xf32>
    %cst_85 = arith.constant 0.797884583 : f32
    %240 = vector.broadcast %cst_85 : f32 to vector<8x64xf32>
    %241 = arith.mulf %240, %239 : vector<8x64xf32>
    %242 = math.tanh %241 : vector<8x64xf32>
    %cst_86 = arith.constant 1.000000e+00 : f32
    %243 = vector.broadcast %cst_86 : f32 to vector<8x64xf32>
    %244 = arith.addf %243, %242 : vector<8x64xf32>
    %245 = arith.mulf %234, %244 : vector<8x64xf32>
    %c0_87 = arith.constant 0 : index
    %c0_88 = arith.constant 0 : index
    %246 = vector.load %arg24[%c0_87, %c0_88] : memref<4x8xbf16, #tpu.memory_space<vmem>>, vector<4x8xbf16>
    %247 = arith.truncf %245 : vector<8x64xf32> to vector<8x64xbf16>
    %cst_89 = arith.constant dense<0.000000e+00> : vector<4x64xf32>
    %248 = tpu.matmul %246, %247, %cst_89 {dimension_numbers = #tpu.dot_dimension_numbers<[1], [0], [0], [1], [0, 0, 1, 1], [], []>} : vector<4x8xbf16>, vector<8x64xbf16>, vector<4x64xf32> -> vector<4x64xf32>
    %249 = arith.truncf %248 : vector<4x64xf32> to vector<4x64xbf16>
    %c0_90 = arith.constant 0 : index
    %c0_91 = arith.constant 0 : index
    %250 = vector.load %arg25[%c0_90, %c0_91] : memref<64x32xbf16, #tpu.memory_space<vmem>>, vector<64x32xbf16>
    %cst_92 = arith.constant dense<0.000000e+00> : vector<4x32xf32>
    %251 = tpu.matmul %249, %250, %cst_92 {dimension_numbers = #tpu.dot_dimension_numbers<[1], [0], [0], [1], [0, 0, 1, 1], [], []>} : vector<4x64xbf16>, vector<64x32xbf16>, vector<4x32xf32> -> vector<4x32xf32>
    %c0_93 = arith.constant 0 : index
    %c0_94 = arith.constant 0 : index
    %252 = vector.load %arg26[%c0_93, %c0_94] : memref<1x32xf32, #tpu.memory_space<vmem>>, vector<1x32xf32>
    %253 = vector.broadcast %252 : vector<1x32xf32> to vector<4x32xf32>
    %254 = arith.addf %251, %253 : vector<4x32xf32>
    %cst_95 = arith.constant 5.000000e-01 : f32
    %255 = vector.broadcast %cst_95 : f32 to vector<4x32xf32>
    %256 = arith.mulf %255, %254 : vector<4x32xf32>
    %257 = arith.mulf %254, %254 : vector<4x32xf32>
    %258 = arith.mulf %257, %254 : vector<4x32xf32>
    %cst_96 = arith.constant 4.471500e-02 : f32
    %259 = vector.broadcast %cst_96 : f32 to vector<4x32xf32>
    %260 = arith.mulf %259, %258 : vector<4x32xf32>
    %261 = arith.addf %254, %260 : vector<4x32xf32>
    %cst_97 = arith.constant 0.797884583 : f32
    %262 = vector.broadcast %cst_97 : f32 to vector<4x32xf32>
    %263 = arith.mulf %262, %261 : vector<4x32xf32>
    %264 = math.tanh %263 : vector<4x32xf32>
    %cst_98 = arith.constant 1.000000e+00 : f32
    %265 = vector.broadcast %cst_98 : f32 to vector<4x32xf32>
    %266 = arith.addf %265, %264 : vector<4x32xf32>
    %267 = arith.mulf %256, %266 : vector<4x32xf32>
    %268 = arith.truncf %267 : vector<4x32xf32> to vector<4x32xbf16>
    %c0_99 = arith.constant 0 : index
    %c0_100 = arith.constant 0 : index
    %269 = vector.load %arg27[%c0_99, %c0_100] : memref<32x1xbf16, #tpu.memory_space<vmem>>, vector<32x1xbf16>
    %cst_101 = arith.constant dense<0.000000e+00> : vector<4x1xf32>
    %270 = tpu.matmul %268, %269, %cst_101 {dimension_numbers = #tpu.dot_dimension_numbers<[1], [0], [0], [1], [0, 0, 1, 1], [], []>} : vector<4x32xbf16>, vector<32x1xbf16>, vector<4x1xf32> -> vector<4x1xf32>
    %c0_102 = arith.constant 0 : index
    %c0_103 = arith.constant 0 : index
    %271 = vector.load %arg28[%c0_102, %c0_103] : memref<1x1xf32, #tpu.memory_space<vmem>>, vector<1x1xf32>
    %272 = vector.broadcast %271 : vector<1x1xf32> to vector<4x1xf32>
    %273 = arith.addf %270, %272 : vector<4x1xf32>
    %c0_104 = arith.constant 0 : index
    %c0_105 = arith.constant 0 : index
    %c0_106 = arith.constant 0 : index
    %274 = vector.load %arg29[%c0_104, %c0_105, %c0_106] : memref<1x4x1xf32, #tpu.memory_space<vmem>>, vector<1x4x1xf32>
    %275 = vector.shape_cast %274 : vector<1x4x1xf32> to vector<4x1xf32>
    %276 = vector.shape_cast %273 : vector<4x1xf32> to vector<1x4x1xf32>
    tpu.vector_store %arg29[%c0_104, %c0_105, %c0_106], %276 {strides = array<i32>} : memref<1x4x1xf32, #tpu.memory_space<vmem>>, vector<1x4x1xf32>,
    return
  }
  func.func @transform_0(%arg0: i32) -> (i32, i32, i32) {
    %c0_i32 = arith.constant 0 : i32
    %c0_i32_0 = arith.constant 0 : i32
    %c0_i32_1 = arith.constant 0 : i32
    return %arg0, %c0_i32, %c0_i32_0 : i32, i32, i32
  }
  func.func @transform_1(%arg0: i32) -> (i32, i32) {
    %c0_i32 = arith.constant 0 : i32
    %c0_i32_0 = arith.constant 0 : i32
    %c0_i32_1 = arith.constant 0 : i32
    return %c0_i32, %c0_i32_0 : i32, i32
  }
  func.func @transform_2(%arg0: i32) -> (i32, i32) {
    %c0_i32 = arith.constant 0 : i32
    %c0_i32_0 = arith.constant 0 : i32
    %c0_i32_1 = arith.constant 0 : i32
    return %c0_i32, %c0_i32_0 : i32, i32
  }
  func.func @transform_3(%arg0: i32) -> (i32, i32) {
    %c0_i32 = arith.constant 0 : i32
    %c0_i32_0 = arith.constant 0 : i32
    %c0_i32_1 = arith.constant 0 : i32
    return %c0_i32, %c0_i32_0 : i32, i32
  }
  func.func @transform_4(%arg0: i32) -> (i32, i32) {
    %c0_i32 = arith.constant 0 : i32
    %c0_i32_0 = arith.constant 0 : i32
    %c0_i32_1 = arith.constant 0 : i32
    return %c0_i32, %c0_i32_0 : i32, i32
  }
  func.func @transform_5(%arg0: i32) -> (i32, i32) {
    %c0_i32 = arith.constant 0 : i32
    %c0_i32_0 = arith.constant 0 : i32
    %c0_i32_1 = arith.constant 0 : i32
    return %c0_i32, %c0_i32_0 : i32, i32
  }
  func.func @transform_6(%arg0: i32) -> (i32, i32) {
    %c0_i32 = arith.constant 0 : i32
    %c0_i32_0 = arith.constant 0 : i32
    %c0_i32_1 = arith.constant 0 : i32
    return %c0_i32, %c0_i32_0 : i32, i32
  }
  func.func @transform_7(%arg0: i32) -> (i32, i32) {
    %c0_i32 = arith.constant 0 : i32
    %c0_i32_0 = arith.constant 0 : i32
    %c0_i32_1 = arith.constant 0 : i32
    return %c0_i32, %c0_i32_0 : i32, i32
  }
  func.func @transform_8(%arg0: i32) -> (i32, i32) {
    %c0_i32 = arith.constant 0 : i32
    %c0_i32_0 = arith.constant 0 : i32
    %c0_i32_1 = arith.constant 0 : i32
    return %c0_i32, %c0_i32_0 : i32, i32
  }
  func.func @transform_9(%arg0: i32) -> (i32, i32) {
    %c0_i32 = arith.constant 0 : i32
    %c0_i32_0 = arith.constant 0 : i32
    %c0_i32_1 = arith.constant 0 : i32
    return %c0_i32, %c0_i32_0 : i32, i32
  }
  func.func @transform_10(%arg0: i32) -> (i32, i32) {
    %c0_i32 = arith.constant 0 : i32
    %c0_i32_0 = arith.constant 0 : i32
    %c0_i32_1 = arith.constant 0 : i32
    return %c0_i32, %c0_i32_0 : i32, i32
  }
  func.func @transform_11(%arg0: i32) -> (i32, i32) {
    %c0_i32 = arith.constant 0 : i32
    %c0_i32_0 = arith.constant 0 : i32
    %c0_i32_1 = arith.constant 0 : i32
    return %c0_i32, %c0_i32_0 : i32, i32
  }
  func.func @transform_12(%arg0: i32) -> (i32, i32) {
    %c0_i32 = arith.constant 0 : i32
    %c0_i32_0 = arith.constant 0 : i32
    %c0_i32_1 = arith.constant 0 : i32
    return %c0_i32, %c0_i32_0 : i32, i32
  }
  func.func @transform_13(%arg0: i32) -> (i32, i32) {
    %c0_i32 = arith.constant 0 : i32
    %c0_i32_0 = arith.constant 0 : i32
    %c0_i32_1 = arith.constant 0 : i32
    return %c0_i32, %c0_i32_0 : i32, i32
  }
  func.func @transform_14(%arg0: i32) -> (i32, i32) {
    %c0_i32 = arith.constant 0 : i32
    %c0_i32_0 = arith.constant 0 : i32
    %c0_i32_1 = arith.constant 0 : i32
    return %c0_i32, %c0_i32_0 : i32, i32
  }
  func.func @transform_15(%arg0: i32) -> (i32, i32) {
    %c0_i32 = arith.constant 0 : i32
    %c0_i32_0 = arith.constant 0 : i32
    %c0_i32_1 = arith.constant 0 : i32
    return %c0_i32, %c0_i32_0 : i32, i32
  }
  func.func @transform_16(%arg0: i32) -> (i32, i32) {
    %c0_i32 = arith.constant 0 : i32
    %c0_i32_0 = arith.constant 0 : i32
    %c0_i32_1 = arith.constant 0 : i32
    return %c0_i32, %c0_i32_0 : i32, i32
  }
  func.func @transform_17(%arg0: i32) -> (i32, i32) {
    %c0_i32 = arith.constant 0 : i32
    %c0_i32_0 = arith.constant 0 : i32
    %c0_i32_1 = arith.constant 0 : i32
    return %c0_i32, %c0_i32_0 : i32, i32
  }
  func.func @transform_18(%arg0: i32) -> (i32, i32) {
    %c0_i32 = arith.constant 0 : i32
    %c0_i32_0 = arith.constant 0 : i32
    %c0_i32_1 = arith.constant 0 : i32
    return %c0_i32, %c0_i32_0 : i32, i32
  }
  func.func @transform_19(%arg0: i32) -> (i32, i32) {
    %c0_i32 = arith.constant 0 : i32
    %c0_i32_0 = arith.constant 0 : i32
    %c0_i32_1 = arith.constant 0 : i32
    return %c0_i32, %c0_i32_0 : i32, i32
  }
  func.func @transform_20(%arg0: i32) -> (i32, i32) {
    %c0_i32 = arith.constant 0 : i32
    %c0_i32_0 = arith.constant 0 : i32
    %c0_i32_1 = arith.constant 0 : i32
    return %c0_i32, %c0_i32_0 : i32, i32
  }
  func.func @transform_21(%arg0: i32) -> (i32, i32) {
    %c0_i32 = arith.constant 0 : i32
    %c0_i32_0 = arith.constant 0 : i32
    %c0_i32_1 = arith.constant 0 : i32
    return %c0_i32, %c0_i32_0 : i32, i32
  }
  func.func @transform_22(%arg0: i32) -> (i32, i32) {
    %c0_i32 = arith.constant 0 : i32
    %c0_i32_0 = arith.constant 0 : i32
    %c0_i32_1 = arith.constant 0 : i32
    return %c0_i32, %c0_i32_0 : i32, i32
  }
  func.func @transform_23(%arg0: i32) -> (i32, i32) {
    %c0_i32 = arith.constant 0 : i32
    %c0_i32_0 = arith.constant 0 : i32
    %c0_i32_1 = arith.constant 0 : i32
    return %c0_i32, %c0_i32_0 : i32, i32
  }
  func.func @transform_24(%arg0: i32) -> (i32, i32) {
    %c0_i32 = arith.constant 0 : i32
    %c0_i32_0 = arith.constant 0 : i32
    %c0_i32_1 = arith.constant 0 : i32
    return %c0_i32, %c0_i32_0 : i32, i32
  }
  func.func @transform_25(%arg0: i32) -> (i32, i32) {
    %c0_i32 = arith.constant 0 : i32
    %c0_i32_0 = arith.constant 0 : i32
    %c0_i32_1 = arith.constant 0 : i32
    return %c0_i32, %c0_i32_0 : i32, i32
  }
  func.func @transform_26(%arg0: i32) -> (i32, i32) {
    %c0_i32 = arith.constant 0 : i32
    %c0_i32_0 = arith.constant 0 : i32
    %c0_i32_1 = arith.constant 0 : i32
    return %c0_i32, %c0_i32_0 : i32, i32
  }
  func.func @transform_27(%arg0: i32) -> (i32, i32) {
    %c0_i32 = arith.constant 0 : i32
    %c0_i32_0 = arith.constant 0 : i32
    %c0_i32_1 = arith.constant 0 : i32
    return %c0_i32, %c0_i32_0 : i32, i32
  }
  func.func @transform_28(%arg0: i32) -> (i32, i32, i32) {
    %c0_i32 = arith.constant 0 : i32
    %c0_i32_0 = arith.constant 0 : i32
    %c0_i32_1 = arith.constant 0 : i32
    return %arg0, %c0_i32, %c0_i32_0 : i32, i32, i32
  }
}

</mosaic_0001>

<bundles_post_ra>
// kernel: _lambda_.1
= control target key start
LH: loop header
LB: loop body
LE: loop exit
PB: predicated region body
PF: predicated region fallthrough
CT: control target
= control target key end

     0   :  { %s13929_s0 = inlined_call_operand.vmem [shape: f32[2,342,8], index: 0, kind: input, shape index: {}]   ;;  %s13930_s1 = inlined_call_operand.vmem [shape: bf16[8,8], index: 1, kind: input, shape index: {}]   ;;  %s13931_s2 = inlined_call_operand.vmem [shape: f32[342,8], index: 2, kind: input, shape index: {}]   ;;  %s13932_s3 = inlined_call_operand.vmem [shape: bf16[72,8], index: 3, kind: input, shape index: {}]   ;;  %s13933_s4 = inlined_call_operand.vmem [shape: f32[1,8], index: 4, kind: input, shape index: {}]   ;;  %s13934_s5 = inlined_call_operand.vmem [shape: bf16[110,269], index: 5, kind: input, shape index: {}]   ;;  %s13935_s6 = inlined_call_operand.vmem [shape: bf16[72,16], index: 6, kind: input, shape index: {}]   ;;  %s13936_s7 = inlined_call_operand.vmem [shape: f32[1,16], index: 7, kind: input, shape index: {}]   ;;  %s13937_s8 = inlined_call_operand.vmem [shape: bf16[110,80], index: 8, kind: input, shape index: {}]   ;;  %s13938_s9 = inlined_call_operand.vmem [shape: bf16[144,16], index: 9, kind: input, shape index: {}]   ;;  %s13939_s10 = inlined_call_operand.vmem [shape: f32[1,16], index: 10, kind: input, shape index: {}]   ;;  %s13940_s11 = inlined_call_operand.vmem [shape: bf16[42,69], index: 11, kind: input, shape index: {}]   ;;  %s13941_s12 = inlined_call_operand.vmem [shape: bf16[144,32], index: 12, kind: input, shape index: {}]   ;;  %s13942_s13 = inlined_call_operand.vmem [shape: f32[1,32], index: 13, kind: input, shape index: {}]   ;;  %s13943_s14 = inlined_call_operand.vmem [shape: bf16[42,24], index: 14, kind: input, shape index: {}]   ;;  %s13944_s15 = inlined_call_operand.vmem [shape: bf16[288,32], index: 15, kind: input, shape index: {}]   ;;  %s13945_s16 = inlined_call_operand.vmem [shape: f32[1,32], index: 16, kind: input, shape index: {}]   ;;  %s13946_s17 = inlined_call_operand.vmem [shape: bf16[20,17], index: 17, kind: input, shape index: {}]   ;;  %s13947_s18 = inlined_call_operand.vmem [shape: bf16[288,64], index: 18, kind: input, shape index: {}]   ;;  %s13948_s19 = inlined_call_operand.vmem [shape: f32[1,64], index: 19, kind: input, shape index: {}]   ;;  %s13949_s20 = inlined_call_operand.vmem [shape: bf16[20,8], index: 20, kind: input, shape index: {}]   ;;  %s13950_s21 = inlined_call_operand.vmem [shape: bf16[576,64], index: 21, kind: input, shape index: {}]   ;;  %s13951_s22 = inlined_call_operand.vmem [shape: f32[1,64], index: 22, kind: input, shape index: {}]   ;;  %s13952_s23 = inlined_call_operand.vmem [shape: bf16[4,8], index: 23, kind: input, shape index: {}]   ;;  %s13953_s24 = inlined_call_operand.vmem [shape: bf16[64,32], index: 24, kind: input, shape index: {}]   ;;  %s13954_s25 = inlined_call_operand.vmem [shape: f32[1,32], index: 25, kind: input, shape index: {}]   ;;  %s13955_s26 = inlined_call_operand.vmem [shape: bf16[32,1], index: 26, kind: input, shape index: {}]   ;;  %s13956_s27 = inlined_call_operand.<no memory space> [shape: f32[1,1], index: 27, kind: input, shape index: {}]   ;;  %s13957_s28 = inlined_call_operand.vmem [shape: f32[2,4,1], index: 28, kind: output, shape index: {}]  }
   0x1   :  { %14021 = sst [smem:[#allocation17_spill]] %s13929_s0  ;;  %v33_v0 = vstv %s13956_s27 }
   0x2   :  { %14022 = sst [smem:[#allocation18_spill]] %s13930_s1  ;;  %34 = vst [vmem:[#allocation2] sm:$0x1] %v33_v0 }
   0x3   :  { %14023 = sst [smem:[#allocation19_spill]] %s13931_s2 }
   0x4   :  { %14024 = sst [smem:[#allocation20_spill]] %s13932_s3 }
   0x5   :  { %14025 = sst [smem:[#allocation21_spill]] %s13933_s4 }
   0x6   :  { %14026 = sst [smem:[#allocation22_spill]] %s13934_s5 }
   0x7   :  { %14027 = sst [smem:[#allocation23_spill]] %s13935_s6 }
   0x8   :  { %14028 = sst [smem:[#allocation24_spill]] %s13936_s7 }
   0x9   :  { %14029 = sst [smem:[#allocation25_spill]] %s13937_s8 }
   0xa   :  { %14030 = sst [smem:[#allocation26_spill]] %s13938_s9  ;;  %s9541_s9 = smov 0  }
   0xb   :  { %14031 = sst [smem:[#allocation27_spill]] %s13939_s10 }
   0xc   :  { %14032 = sst [smem:[#allocation28_spill]] %s13940_s11 }
   0xd   :  { %14033 = sst [smem:[#allocation29_spill]] %s13941_s12 }
   0xe   :  { %14034 = sst [smem:[#allocation30_spill]] %s13954_s25 }
   0xf   :  { %14035 = sst [smem:[#allocation31_spill]] %s13957_s28 }
  0x10 LB: > { %14036 = sst [smem:[#allocation3_spill]] %s9378_s9  ;;  %s7252_s30 = sadd.s32 4294967295, %s9378_s9   ;;  %s9378_s9 = sphi %s9541_s9, %s40_s9  }
  0x11   : > { %p7256_p0 = scmp.ge.s32.totalorder %s9378_s9, 1  ;;  %p764_p1 = scmp.lt.s32.totalorder %s9378_s9, 3 }
  0x13   : > { %p765_p2 = pnand %p7256_p0, %p764_p1 }
  0x15   : > { %768 = sbr.rel (%p765_p2) target bundleno = 4250 (0x109a), region = 132 }
  0x1a   : > { %s14037_s10 = sld [smem:[#allocation18_spill]]  ;;  %vm1021_vm0 = vcmask 1043456   ;;  %p837_p3 = scmp.lt.s32.totalorder %s7252_s30, 1  ;;  %vm954_vm1 = vcmask 64512   ;;  %vm1178_vm2 = vcmask 1046528   ;;  %vm1360_vm3 = vcmask 1045504  }
  0x1b   : > { %s14039_s29 = sld [smem:[#allocation17_spill]]  ;;  %s13969_s6 = smov 8   ;;  %vm1656_vm4 = vcmask 1044480   ;;  %vm2315_vm5 = vcmask 1041408   ;;  %vm2133_vm6 = vcmask 1042432   ;;  %vm2533_vm7 = vcmask 130048  }
  0x1c   : > { %s14134_s30 = smov (!%p837_p3, %s7252_s30), 1  ;;  %s14040_s1 = sld [smem:[#allocation19_spill]]  ;;  %vm2570_vm8 = vcmask 195584   ;;  %vm2607_vm9 = vcmask 261120   ;;  %vm2644_vm10 = vcmask 326656   ;;  %vm2681_vm11 = vcmask 392192  }
  0x1d   : > { %14038 = sst [smem:[#allocation4_spill]] %s14134_s30  ;;  %s8044_s27 = smul.u32 344, %s14134_s30  ;;  %vm2718_vm12 = vcmask 457728   ;;  %vm2755_vm13 = vcmask 523264   ;;  %vm2850_vm14 = vcmask 588800   ;;  %vm3819_vm15 = vcmask 105472  }
  0x1e   : > { %s13971_s7 = smov 40   ;;  %s13977_s12 = smov 24  }
  0x1f   : > { %s13979_s0 = smov 48   ;;  %s13981_s11 = smov 56  }
  0x20   : > { %v912_v1 = vld [vmem:[%s14037_s10] sm:$0xf]  ;;  %s13975_s10 = smov 32   ;;  %s14043_s3 = smov 8  }
  0x21   : > { %v1023_v2 = vsel %vm1021_vm0, %v912_v1, 0  ;;  %s9559_s2 = scalar_lea.vmem %s14039_s29, %s8044_s27  ;;  %s13967_s29 = smov 16  }
  0x22   : > { %1032 = vmatpush.bf16.msra.mxu0 %v1023_v2  ;;  %v847_v3 = vld [vmem:[%s9559_s2] sm:$0xff]  ;;  %v848_v4 = vld [vmem:[%s9559_s2 + $0x8] sm:$0xff]  ;;  %v849_v6 = vld [vmem:[%s9559_s2 + $0x10] sm:$0xff]  ;;  %s13973_s27 = smov 64   ;;  %s14045_s5 = smov 24  }
  0x23   : > { %v890_v5 = vpack.c.bf16 %v848_v4, %v847_v3  ;;  %v850_v7 = vld [vmem:[%s9559_s2 + $0x18] sm:$0xff]  ;;  %v851_v9 = vld [vmem:[%s9559_s2 + $0x20] sm:$0xff]  ;;  %v852_v10 = vld [vmem:[%s9559_s2 + $0x28] sm:$0xff]  ;;  %s14059_s4 = sld [smem:[#allocation21_spill]] }
  0x24   : > { %v891_v8 = vpack.c.bf16 %v850_v7, %v849_v6  ;;  %v892_v11 = vpack.c.bf16 %v852_v10, %v851_v9  ;;  %v853_v12 = vld [vmem:[%s9559_s2 + $0x30] sm:$0xff]  ;;  %v854_v13 = vld [vmem:[%s9559_s2 + $0x38] sm:$0xff]  ;;  %v855_v15 = vld [vmem:[%s9559_s2 + $0x40] sm:$0xff]  ;;  %s14119_s8 = sld [smem:[#allocation23_spill]] }
  0x25   : > { %7259 = vmatmul.msk.bf16.vlgmr.msra.gmra.mxu0 %vm954_vm1, %v890_v5  ;;  %v893_v14 = vpack.c.bf16 %v854_v13, %v853_v12  ;;  %v856_v16 = vld [vmem:[%s9559_s2 + $0x48] sm:$0xff]  ;;  %v857_v18 = vld [vmem:[%s9559_s2 + $0x50] sm:$0xff]  ;;  %v858_v19 = vld [vmem:[%s9559_s2 + $0x58] sm:$0xff]  ;;  %s14120_s9 = sld [smem:[#allocation24_spill]] }
  0x26   : > { %v894_v17 = vpack.c.bf16 %v856_v16, %v855_v15  ;;  %v895_v20 = vpack.c.bf16 %v858_v19, %v857_v18  ;;  %v859_v21 = vld [vmem:[%s9559_s2 + $0x60] sm:$0xff]  ;;  %v860_v22 = vld [vmem:[%s9559_s2 + $0x68] sm:$0xff]  ;;  %v861_v24 = vld [vmem:[%s9559_s2 + $0x70] sm:$0xff]  ;;  %s14122_s28 = sld [smem:[#allocation26_spill]] }
  0x27   : > { %v896_v23 = vpack.c.bf16 %v860_v22, %v859_v21  ;;  %v862_v25 = vld [vmem:[%s9559_s2 + $0x78] sm:$0xff]  ;;  %v863_v27 = vld [vmem:[%s9559_s2 + $0x80] sm:$0xff]  ;;  %v864_v28 = vld [vmem:[%s9559_s2 + $0x88] sm:$0xff]  ;;  %s14124_s25 = sld [smem:[#allocation29_spill]] }
  0x28   : > { %v897_v26 = vpack.c.bf16 %v862_v25, %v861_v24  ;;  %v898_v29 = vpack.c.bf16 %v864_v28, %v863_v27  ;;  %v914_v32 = vld [vmem:[%s14040_s1 + $0x8] sm:$0xff]  ;;  %v913_v33 = vld [vmem:[%s14040_s1] sm:$0xff]  ;;  %v865_v34 = vld [vmem:[%s9559_s2 + $0x90] sm:$0xff] }
  0x29   : > { %v866_v35 = vld [vmem:[%s9559_s2 + $0x98] sm:$0xff]  ;;  %v915_v37 = vld [vmem:[%s14040_s1 + $0x10] sm:$0xff]  ;;  %v867_v54 = vld [vmem:[%s9559_s2 + $0xa0] sm:$0xff] }
  0x2a   : > { %v899_v39 = vpack.c.bf16 %v866_v35, %v865_v34  ;;  %v916_v51 = vld [vmem:[%s14040_s1 + $0x18] sm:$0xff]  ;;  %v868_v55 = vld [vmem:[%s9559_s2 + $0xa8] sm:$0xff]  ;;  %v917_v58 = vld [vmem:[%s14040_s1 + $0x20] sm:$0xff] }
  0x2b   : > { %v900_v60 = vpack.c.bf16 %v868_v55, %v867_v54  ;;  %v918_v13 = vld [vmem:[%s14040_s1 + $0x28] sm:$0xff]  ;;  %v870_v21 = vld [vmem:[%s9559_s2 + $0xb8] sm:$0xff]  ;;  %v919_v24 = vld [vmem:[%s14040_s1 + $0x30] sm:$0xff] }
  0x2c   : > { %v920_v55 = vld [vmem:[%s14040_s1 + $0x38] sm:$0xff] }
  0x35   : > { %7260 = vmatmul.msk.bf16.gmra.mxu0 %vm954_vm1, %v891_v8 }
  0x45   : > { %7261 = vmatmul.msk.bf16.gmra.mxu0 %vm954_vm1, %v892_v11 }
  0x55   : > { %7262 = vmatmul.msk.bf16.gmra.mxu0 %vm954_vm1, %v893_v14 }
  0x65   : > { %7263 = vmatmul.msk.bf16.gmra.mxu0 %vm954_vm1, %v894_v17 }
  0x75   : > { %7264 = vmatmul.msk.bf16.gmra.mxu0 %vm954_vm1, %v895_v20  ;;  %v869_v20 = vld [vmem:[%s9559_s2 + $0xb0] sm:$0xff] }
  0x76   : > { %v901_v27 = vpack.c.bf16 %v870_v21, %v869_v20 }
  0x85   : > { %7265 = vmatmul.msk.bf16.gmra.mxu0 %vm954_vm1, %v896_v23 }
  0x95   : > { %7266 = vmatmul.msk.bf16.gmra.mxu0 %vm954_vm1, %v897_v26 }
  0xa2   : > { %v1034_v30 = vpop.f32.mrf.mxu0 }
  0xa3   : > { %v9601_v38 = vadd.f32 %v1034_v30, %v913_v33 }
  0xa5   : > { %7267 = vmatmul.msk.bf16.gmra.mxu0 %vm954_vm1, %v898_v29  ;;  %v1179_v43 = vrot.slane %v9601_v38, 1  ;;  %v1361_v52 = vrot.slane %v9601_v38, 2 }
  0xaa   : > { %v1036_v31 = vpop.f32.mrf.mxu0 }
  0xab   : > { %v9596_v36 = vadd.f32 %v1036_v31, %v914_v32 }
  0xad   : > { %v1180_v41 = vrot.slane %v9596_v36, 1  ;;  %v1362_v50 = vrot.slane %v9596_v36, 2 }
  0xaf   : > { %v1181_v45 = vsel %vm1178_vm2, %v1179_v43, %v1180_v41  ;;  %v1363_v57 = vsel %vm1360_vm3, %v1361_v52, %v1362_v50 }
  0xb2   : > { %v1039_v40 = vpop.f32.mrf.mxu0 }
  0xb3   : > { %v9604_v42 = vadd.f32 %v1039_v40, %v915_v37 }
  0xb5   : > { %v1182_v44 = vrot.slane %v9604_v42, 1  ;;  %7268 = vmatmul.msk.bf16.gmra.mxu0 %vm954_vm1, %v899_v39  ;;  %v1364_v48 = vrot.slane %v9604_v42, 2  ;;  %v1838_v1 = vrot.slane %v9604_v42, 4  ;;  %v1657_v16 = vrot.slane %v9604_v42, 3 }
  0xb7   : > { %v1183_v46 = vsel %vm1178_vm2, %v1180_v41, %v1182_v44  ;;  %v1365_v53 = vsel %vm1360_vm3, %v1362_v50, %v1364_v48 }
  0xb8   : > { %v8066_v47 = vpack.i.bf16 %v1183_v46, %v1181_v45  ;;  %v8071_v59 = vpack.i.bf16 %v1365_v53, %v1363_v57 }
  0xba   : > { %v1041_v49 = vpop.f32.mrf.mxu0  ;;  %8067 = vrot.lane.b32.xlu0 %v8066_v47, %s13969_s6 }
  0xbb   : > { %v9621_v56 = vadd.f32 %v1041_v49, %v916_v51 }
  0xbd   : > { %v1839_v63 = vrot.slane %v9621_v56, 4  ;;  %v1366_v0 = vrot.slane %v9621_v56, 2  ;;  %v1658_v14 = vrot.slane %v9621_v56, 3  ;;  %v1184_v15 = vrot.slane %v9621_v56, 1 }
  0xbf   : > { %v1840_v4 = vsel %vm1021_vm0, %v1838_v1, %v1839_v63  ;;  %v1367_v6 = vsel %vm1360_vm3, %v1364_v48, %v1366_v0  ;;  %v1659_v22 = vsel %vm1656_vm4, %v1657_v16, %v1658_v14  ;;  %v1185_v23 = vsel %vm1178_vm2, %v1182_v44, %v1184_v15 }
  0xc2   : > { %v1044_v61 = vpop.f32.mrf.mxu0  ;;  %8072 = vrot.lane.b32.xlu0 %v8071_v59, %s13967_s29 }
  0xc3   : > { %v9628_v62 = vadd.f32 %v1044_v61, %v917_v58 }
  0xc5   : > { %v1841_v2 = vrot.slane %v9628_v62, 4  ;;  %v1368_v3 = vrot.slane %v9628_v62, 2  ;;  %7269 = vmatmul.msk.bf16.gmra.mxu0 %vm954_vm1, %v900_v60  ;;  %v1660_v10 = vrot.slane %v9628_v62, 3  ;;  %v1186_v11 = vrot.slane %v9628_v62, 1 }
  0xc6   : > { %v2316_v33 = vrot.slane %v9628_v62, 6  ;;  %v2134_v37 = vrot.slane %v9628_v62, 5 }
  0xc7   : > { %v1842_v5 = vsel %vm1021_vm0, %v1839_v63, %v1841_v2  ;;  %v1369_v7 = vsel %vm1360_vm3, %v1366_v0, %v1368_v3  ;;  %v1661_v17 = vsel %vm1656_vm4, %v1658_v14, %v1660_v10  ;;  %v1187_v18 = vsel %vm1178_vm2, %v1184_v15, %v1186_v11  ;;  %v921_v63 = vld [vmem:[%s14040_s1 + $0x40] sm:$0xff] }
  0xc8   : > { %v8086_v8 = vpack.i.bf16 %v1842_v5, %v1840_v4  ;;  %v8096_v9 = vpack.i.bf16 %v1369_v7, %v1367_v6  ;;  %v8081_v25 = vpack.i.bf16 %v1661_v17, %v1659_v22  ;;  %v8091_v26 = vpack.i.bf16 %v1187_v18, %v1185_v23  ;;  %v871_v7 = vld [vmem:[%s9559_s2 + $0xc0] sm:$0xff] }
  0xca   : > { %v1046_v12 = vpop.f32.mrf.mxu0  ;;  %8087 = vrot.lane.b32.xlu2 %v8086_v8, %s13971_s7  ;;  %8077 = vrot.lane.b32.xlu1 %v8096_v9, %s13977_s12  ;;  %v872_v8 = vld [vmem:[%s9559_s2 + $0xc8] sm:$0xff] }
  0xcb   : > { %8097 = vrot.lane.b32.xlu0 %v8096_v9, %s13967_s29  ;;  %v9659_v19 = vadd.f32 %v1046_v12, %v918_v13  ;;  %v902_v9 = vpack.c.bf16 %v872_v8, %v871_v7 }
  0xcd   : > { %v2317_v29 = vrot.slane %v9659_v19, 6  ;;  %v1843_v30 = vrot.slane %v9659_v19, 4  ;;  %v2135_v32 = vrot.slane %v9659_v19, 5  ;;  %v1370_v53 = vrot.slane %v9659_v19, 2 }
  0xce   : > { %v1662_v54 = vrot.slane %v9659_v19, 3 }
  0xcf   : > { %v2318_v40 = vsel %vm2315_vm5, %v2316_v33, %v2317_v29  ;;  %v1844_v41 = vsel %vm1021_vm0, %v1841_v2, %v1843_v30  ;;  %v2136_v45 = vsel %vm2133_vm6, %v2134_v37, %v2135_v32  ;;  %v1371_v60 = vsel %vm1360_vm3, %v1368_v3, %v1370_v53 }
  0xd0   : > { %v1663_v61 = vsel %vm1656_vm4, %v1660_v10, %v1662_v54  ;;  %v1188_v3 = vrot.slane %v9659_v19, 1 }
  0xd2   : > { %v1049_v28 = vpop.f32.mrf.mxu0  ;;  %8082 = vrot.lane.b32.xlu1 %v8081_v25, %s13975_s10  ;;  %8092 = vrot.lane.b32.xlu2 %v8091_v26, %s13969_s6  ;;  %v1189_v13 = vsel %vm1178_vm2, %v1186_v11, %v1188_v3 }
  0xd3   : > { %v9672_v31 = vadd.f32 %v1049_v28, %v919_v24 }
  0xd5   : > { %v2319_v34 = vrot.slane %v9672_v31, 6  ;;  %v1845_v35 = vrot.slane %v9672_v31, 4  ;;  %v2137_v39 = vrot.slane %v9672_v31, 5  ;;  %7270 = vmatmul.msk.bf16.gmra.mxu0 %vm954_vm1, %v901_v27  ;;  %v1372_v50 = vrot.slane %v9672_v31, 2 }
  0xd6   : > { %v1664_v51 = vrot.slane %v9672_v31, 3  ;;  %v1190_v2 = vrot.slane %v9672_v31, 1 }
  0xd7   : > { %v2320_v43 = vsel %vm2315_vm5, %v2317_v29, %v2319_v34  ;;  %v1846_v44 = vsel %vm1021_vm0, %v1843_v30, %v1845_v35  ;;  %v2138_v46 = vsel %vm2133_vm6, %v2135_v32, %v2137_v39  ;;  %v1373_v57 = vsel %vm1360_vm3, %v1370_v53, %v1372_v50 }
  0xd8   : > { %v8111_v47 = vpack.i.bf16 %v2320_v43, %v2318_v40  ;;  %v8101_v48 = vpack.i.bf16 %v1846_v44, %v1844_v41  ;;  %v8106_v49 = vpack.i.bf16 %v2138_v46, %v2136_v45  ;;  %v1665_v58 = vsel %vm1656_vm4, %v1662_v54, %v1664_v51  ;;  %v923_v40 = vld [vmem:[%s14040_s1 + $0x50] sm:$0xff]  ;;  %v874_v44 = vld [vmem:[%s9559_s2 + $0xd8] sm:$0xff]  ;;  %v922_v45 = vld [vmem:[%s14040_s1 + $0x48] sm:$0xff] }
  0xd9   : > { %v8116_v0 = vpack.i.bf16 %v1373_v57, %v1371_v60  ;;  %v8121_v1 = vpack.i.bf16 %v1665_v58, %v1663_v61  ;;  %v1191_v10 = vsel %vm1178_vm2, %v1188_v3, %v1190_v2  ;;  %v873_v43 = vld [vmem:[%s9559_s2 + $0xd0] sm:$0xff] }
  0xda   : > { %v1051_v52 = vpop.f32.mrf.mxu0  ;;  %8112 = vrot.lane.b32.xlu1 %v8111_v47, %s13973_s27  ;;  %8102 = vrot.lane.b32.xlu2 %v8101_v48, %s13979_s0  ;;  %v8131_v16 = vpack.i.bf16 %v1191_v10, %v1189_v13  ;;  %v903_v47 = vpack.c.bf16 %v874_v44, %v873_v43 }
  0xdb   : > { %8107 = vrot.lane.b32.xlu0 %v8106_v49, %s13981_s11  ;;  %v9705_v59 = vadd.f32 %v1051_v52, %v920_v55 }
  0xdd   : > { %v2321_v6 = vrot.slane %v9705_v59, 6  ;;  %v1847_v11 = vrot.slane %v9705_v59, 4  ;;  %v2139_v23 = vrot.slane %v9705_v59, 5  ;;  %v1374_v24 = vrot.slane %v9705_v59, 2 }
  0xde   : > { %v1192_v46 = vrot.slane %v9705_v59, 1 }
  0xdf   : > { %v2322_v14 = vsel %vm2315_vm5, %v2319_v34, %v2321_v6  ;;  %v1848_v28 = vsel %vm1021_vm0, %v1845_v35, %v1847_v11  ;;  %v2140_v29 = vsel %vm2133_vm6, %v2137_v39, %v2139_v23  ;;  %v1375_v33 = vsel %vm1360_vm3, %v1372_v50, %v1374_v24 }
  0xe0   : > { %v1666_v39 = vrot.slane %v9705_v59, 3  ;;  %v1193_v55 = vsel %vm1178_vm2, %v1190_v2, %v1192_v46 }
  0xe2   : > { %v1054_v4 = vpop.f32.mrf.mxu0  ;;  %8117 = vrot.lane.b32.xlu1 %v8116_v0, %s13977_s12  ;;  %8122 = vrot.lane.b32.xlu2 %v8121_v1, %s13975_s10  ;;  %v1667_v53 = vsel %vm1656_vm4, %v1664_v51, %v1666_v39 }
  0xe3   : > { %v9719_v5 = vadd.f32 %v1054_v4, %v921_v63  ;;  %8127 = vrot.lane.b32.xlu0 %v8101_v48, %s13971_s7 }
  0xe5   : > { %v2323_v12 = vrot.slane %v9719_v5, 6  ;;  %7271 = vmatmul.msk.bf16.gmra.mxu0 %vm954_vm1, %v902_v9  ;;  %v1849_v18 = vrot.slane %v9719_v5, 4  ;;  %v2141_v20 = vrot.slane %v9719_v5, 5  ;;  %v1376_v22 = vrot.slane %v9719_v5, 2 }
  0xe6   : > { %v1668_v37 = vrot.slane %v9719_v5, 3  ;;  %v1194_v35 = vrot.slane %v9719_v5, 1 }
  0xe7   : > { %v2324_v15 = vsel %vm2315_vm5, %v2321_v6, %v2323_v12  ;;  %v1850_v25 = vsel %vm1021_vm0, %v1847_v11, %v1849_v18  ;;  %v2142_v26 = vsel %vm2133_vm6, %v2139_v23, %v2141_v20  ;;  %v1377_v27 = vsel %vm1360_vm3, %v1374_v24, %v1376_v22 }
  0xe8   : > { %v8151_v17 = vpack.i.bf16 %v2324_v15, %v2322_v14  ;;  %v8141_v30 = vpack.i.bf16 %v1850_v25, %v1848_v28  ;;  %v8146_v32 = vpack.i.bf16 %v2142_v26, %v2140_v29  ;;  %v8156_v34 = vpack.i.bf16 %v1377_v27, %v1375_v33  ;;  %v924_v27 = vld [vmem:[%s14040_s1 + $0x58] sm:$0xff]  ;;  %v925_v28 = vld [vmem:[%s14040_s1 + $0x60] sm:$0xff]  ;;  %v876_v29 = vld [vmem:[%s9559_s2 + $0xe8] sm:$0xff] }
  0xe9   : > { %v1669_v49 = vsel %vm1656_vm4, %v1666_v39, %v1668_v37  ;;  %v1195_v50 = vsel %vm1178_vm2, %v1192_v46, %v1194_v35 }
  0xea   : > { %v1056_v21 = vpop.f32.mrf.mxu0  ;;  %8132 = vrot.lane.b32.xlu1 %v8131_v16, %s13969_s6  ;;  %8137 = vrot.lane.b32.xlu2 %v8116_v0, %s13967_s29  ;;  %v8161_v54 = vpack.i.bf16 %v1669_v49, %v1667_v53  ;;  %v8171_v57 = vpack.i.bf16 %v1195_v50, %v1193_v55 }
  0xeb   : > { %8152 = vrot.lane.b32.xlu0 %v8151_v17, %s13973_s27  ;;  %v9779_v52 = vadd.f32 %v1056_v21, %v922_v45 }
  0xed   : > { %v2325_v63 = vrot.slane %v9779_v52, 6  ;;  %v1851_v0 = vrot.slane %v9779_v52, 4  ;;  %v2143_v10 = vrot.slane %v9779_v52, 5  ;;  %v1670_v13 = vrot.slane %v9779_v52, 3 }
  0xef   : > { %v2326_v2 = vsel %vm2315_vm5, %v2323_v12, %v2325_v63  ;;  %v1852_v3 = vsel %vm1021_vm0, %v1849_v18, %v1851_v0  ;;  %v1378_v12 = vrot.slane %v9779_v52, 2  ;;  %v2144_v18 = vsel %vm2133_vm6, %v2141_v20, %v2143_v10 }
  0xf0   : > { %v1671_v24 = vsel %vm1656_vm4, %v1668_v37, %v1670_v13  ;;  %v1196_v20 = vrot.slane %v9779_v52, 1 }
  0xf1   : > { %v1379_v21 = vsel %vm1360_vm3, %v1376_v22, %v1378_v12  ;;  %v875_v22 = vld [vmem:[%s9559_s2 + $0xe0] sm:$0xff] }
  0xf2   : > { %v1059_v41 = vpop.f32.mrf.mxu0  ;;  %8142 = vrot.lane.b32.xlu1 %v8141_v30, %s13979_s0  ;;  %8147 = vrot.lane.b32.xlu2 %v8146_v32, %s13981_s11 }
  0xf3   : > { %8157 = vrot.lane.b32.xlu0 %v8156_v34, %s13977_s12  ;;  %v9772_v48 = vadd.f32 %v1059_v41, %v923_v40  ;;  %v1197_v40 = vsel %vm1178_vm2, %v1194_v35, %v1196_v20 }
  0xf5   : > { %7272 = vmatmul.msk.bf16.gmra.mxu0 %vm954_vm1, %v903_v47  ;;  %v2327_v58 = vrot.slane %v9772_v48, 6  ;;  %v1853_v60 = vrot.slane %v9772_v48, 4  ;;  %v2145_v7 = vrot.slane %v9772_v48, 5  ;;  %v1380_v8 = vrot.slane %v9772_v48, 2 }
  0xf6   : > { %v1672_v9 = vrot.slane %v9772_v48, 3  ;;  %v1198_v26 = vrot.slane %v9772_v48, 1 }
  0xf7   : > { %v2328_v51 = vsel %vm2315_vm5, %v2325_v63, %v2327_v58  ;;  %v1854_v1 = vsel %vm1021_vm0, %v1851_v0, %v1853_v60  ;;  %v2146_v15 = vsel %vm2133_vm6, %v2143_v10, %v2145_v7  ;;  %v1381_v16 = vsel %vm1360_vm3, %v1378_v12, %v1380_v8 }
  0xf8   : > { %v8191_v4 = vpack.i.bf16 %v2328_v51, %v2326_v2  ;;  %v8181_v6 = vpack.i.bf16 %v1854_v1, %v1852_v3  ;;  %v1673_v17 = vsel %vm1656_vm4, %v1670_v13, %v1672_v9  ;;  %v8186_v11 = vpack.i.bf16 %v2146_v15, %v2144_v18  ;;  %v926_v2 = vld [vmem:[%s14040_s1 + $0x68] sm:$0xff] }
  0xf9   : > { %v8196_v23 = vpack.i.bf16 %v1381_v16, %v1379_v21  ;;  %v8201_v25 = vpack.i.bf16 %v1673_v17, %v1671_v24 }
  0xfa   : > { %8162 = vrot.lane.b32.xlu1 %v8161_v54, %s13975_s10  ;;  %8167 = vrot.lane.b32.xlu2 %v8141_v30, %s13971_s7  ;;  %v1061_v61 = vpop.f32.mrf.mxu0  ;;  %v904_v30 = vpack.c.bf16 %v876_v29, %v875_v22 }
  0xfb   : > { %8172 = vrot.lane.b32.xlu0 %v8171_v57, %s13969_s6  ;;  %v9832_v32 = vadd.f32 %v1061_v61, %v924_v27  ;;  %v878_v27 = vld [vmem:[%s9559_s2 + $0xf8] sm:$0xff] }
  0xfd   : > { %v2329_v39 = vrot.slane %v9832_v32, 6  ;;  %v1855_v44 = vrot.slane %v9832_v32, 4  ;;  %v2147_v46 = vrot.slane %v9832_v32, 5  ;;  %v1382_v63 = vrot.slane %v9832_v32, 2 }
  0xfe   : > { %v1200_v21 = vrot.slane %v9832_v32, 1 }
  0xff   : > { %v2330_v35 = vsel %vm2315_vm5, %v2327_v58, %v2329_v39  ;;  %v1856_v50 = vsel %vm1021_vm0, %v1853_v60, %v1855_v44  ;;  %v2148_v54 = vsel %vm2133_vm6, %v2145_v7, %v2147_v46  ;;  %v1674_v60 = vrot.slane %v9832_v32, 3 }
 0x100   : > { %v1383_v3 = vsel %vm1360_vm3, %v1380_v8, %v1382_v63  ;;  %v1201_v29 = vsel %vm1178_vm2, %v1198_v26, %v1200_v21 }
 0x101   : > { %v1675_v10 = vsel %vm1656_vm4, %v1672_v9, %v1674_v60 }
 0x102   : > { %8177 = vrot.lane.b32.xlu1 %v8156_v34, %s13967_s29  ;;  %8192 = vrot.lane.b32.xlu2 %v8191_v4, %s13973_s27  ;;  %v1064_v14 = vpop.f32.mrf.mxu0  ;;  %v1199_v34 = vsel %vm1178_vm2, %v1196_v20, %v1198_v26  ;;  %v927_v4 = vld [vmem:[%s14040_s1 + $0x70] sm:$0xff] }
 0x103   : > { %8182 = vrot.lane.b32.xlu0 %v8181_v6, %s13979_s0  ;;  %v9834_v33 = vadd.f32 %v1064_v14, %v925_v28  ;;  %v8211_v41 = vpack.i.bf16 %v1199_v34, %v1197_v40 }
 0x105   : > { %7273 = vmatmul.msk.bf16.gmra.mxu0 %vm954_vm1, %v904_v30  ;;  %v2331_v43 = vrot.slane %v9834_v33, 6  ;;  %v1857_v45 = vrot.slane %v9834_v33, 4  ;;  %v2149_v47 = vrot.slane %v9834_v33, 5  ;;  %v1384_v51 = vrot.slane %v9834_v33, 2 }
 0x106   : > { %v1676_v1 = vrot.slane %v9834_v33, 3  ;;  %v1202_v9 = vrot.slane %v9834_v33, 1 }
 0x107   : > { %v2332_v49 = vsel %vm2315_vm5, %v2329_v39, %v2331_v43  ;;  %v1858_v53 = vsel %vm1021_vm0, %v1855_v44, %v1857_v45  ;;  %v2150_v55 = vsel %vm2133_vm6, %v2147_v46, %v2149_v47  ;;  %v1385_v7 = vsel %vm1360_vm3, %v1382_v63, %v1384_v51 }
 0x108   : > { %v8231_v57 = vpack.i.bf16 %v2332_v49, %v2330_v35  ;;  %v8221_v61 = vpack.i.bf16 %v1858_v53, %v1856_v50  ;;  %v8226_v58 = vpack.i.bf16 %v2150_v55, %v2148_v54  ;;  %v1677_v12 = vsel %vm1656_vm4, %v1674_v60, %v1676_v1 }
 0x109   : > { %v8236_v16 = vpack.i.bf16 %v1385_v7, %v1383_v3  ;;  %v8241_v17 = vpack.i.bf16 %v1677_v12, %v1675_v10  ;;  %v1203_v30 = vsel %vm1178_vm2, %v1200_v21, %v1202_v9  ;;  %v929_v7 = vld [vmem:[%s14040_s1 + $0x80] sm:$0xff] }
 0x10a   : > { %8187 = vrot.lane.b32.xlu1 %v8186_v11, %s13981_s11  ;;  %8197 = vrot.lane.b32.xlu2 %v8196_v23, %s13977_s12  ;;  %v1066_v37 = vpop.f32.mrf.mxu0  ;;  %v8251_v40 = vpack.i.bf16 %v1203_v30, %v1201_v29 }
 0x10b   : > { %8202 = vrot.lane.b32.xlu0 %v8201_v25, %s13975_s10  ;;  %v9888_v14 = vadd.f32 %v1066_v37, %v926_v2  ;;  %v877_v25 = vld [vmem:[%s9559_s2 + $0xf0] sm:$0xff] }
 0x10c   : > { %v905_v22 = vpack.c.bf16 %v878_v27, %v877_v25 }
 0x10d   : > { %v2151_v46 = vrot.slane %v9888_v14, 5  ;;  %v1386_v35 = vrot.slane %v9888_v14, 2  ;;  %v1678_v3 = vrot.slane %v9888_v14, 3  ;;  %v1204_v10 = vrot.slane %v9888_v14, 1 }
 0x10f   : > { %v1205_v27 = vsel %vm1178_vm2, %v1202_v9, %v1204_v10 }
 0x112   : > { %8207 = vrot.lane.b32.xlu1 %v8181_v6, %s13971_s7  ;;  %8212 = vrot.lane.b32.xlu2 %v8211_v41, %s13969_s6  ;;  %v1069_v0 = vpop.f32.mrf.mxu0  ;;  %s14041_s7 = sld [smem:[#allocation20_spill]]  ;;  %s14042_s6 = smov 40   ;;  %v1859_v41 = vrot.slane %v9888_v14, 4 }
 0x113   : > { %8217 = vrot.lane.b32.xlu0 %v8196_v23, %s13967_s29  ;;  %v9890_v8 = vadd.f32 %v1069_v0, %v927_v4  ;;  %v2333_v23 = vrot.slane %v9888_v14, 6  ;;  %s14044_s29 = smov 16   ;;  %v1387_v0 = vsel %vm1360_vm3, %v1384_v51, %v1386_v35 }
 0x114   : > { %v1860_v55 = vsel %vm1021_vm0, %v1857_v45, %v1859_v41 }
 0x115   : > { %v2335_v24 = vrot.slane %v9890_v8, 6  ;;  %v2334_v34 = vsel %vm2315_vm5, %v2331_v43, %v2333_v23  ;;  %7274 = vmatmul.msk.bf16.gmra.mxu0 %vm954_vm1, %v905_v22  ;;  %v1861_v44 = vrot.slane %v9890_v8, 4  ;;  %v2153_v43 = vrot.slane %v9890_v8, 5 }
 0x116   : > { %v1388_v49 = vrot.slane %v9890_v8, 2  ;;  %v1680_v51 = vrot.slane %v9890_v8, 3  ;;  %v1206_v12 = vrot.slane %v9890_v8, 1 }
 0x117   : > { %v2336_v37 = vsel %vm2315_vm5, %v2333_v23, %v2335_v24  ;;  %v2154_v63 = vsel %vm2133_vm6, %v2151_v46, %v2153_v43  ;;  %v1679_v23 = vsel %vm1656_vm4, %v1676_v1, %v1678_v3 }
 0x118   : > { %v2818_v6 = vld [vmem:[%s14041_s7 + $0x20] sm:$0xf]  ;;  %v7907_v28 = vld [vmem:[%s14041_s7 + $0x18] sm:$0xff]  ;;  %v7906_v26 = vld [vmem:[%s14041_s7 + $0x10] sm:$0xff]  ;;  %v8271_v39 = vpack.i.bf16 %v2336_v37, %v2334_v34  ;;  %v1681_v25 = vsel %vm1656_vm4, %v1678_v3, %v1680_v51 }
 0x119   : > { %v2840_v13 = vunpack.c.l.b16 %v2818_v6  ;;  %v7905_v53 = vld [vmem:[%s14041_s7 + $0x8] sm:$0xff]  ;;  %v7904_v45 = vld [vmem:[%s14041_s7] sm:$0xff]  ;;  %v928_v6 = vld [vmem:[%s14040_s1 + $0x78] sm:$0xff]  ;;  %v8281_v22 = vpack.i.bf16 %v1681_v25, %v1679_v23  ;;  %s14049_s7 = smov 56  }
 0x11a   : > { %8232 = vrot.lane.b32.xlu1 %v8231_v57, %s13973_s27  ;;  %8222 = vrot.lane.b32.xlu2 %v8221_v61, %s13979_s0  ;;  %v9892_v18 = vpop.f32.mrf.mxu0  ;;  %v1862_v57 = vsel %vm1021_vm0, %v1859_v41, %v1861_v44 }
 0x11b   : > { %8227 = vrot.lane.b32.xlu0 %v8226_v58, %s13981_s11  ;;  %v2845_v15 = vpack.c.b16 %v2840_v13, %v2840_v13  ;;  %v1389_v58 = vsel %vm1360_vm3, %v1386_v35, %v1388_v49  ;;  %v8261_v60 = vpack.i.bf16 %v1862_v57, %v1860_v55  ;;  %v9976_v21 = vadd.f32 %v9892_v18, %v928_v6 }
 0x11c   : > { %v8276_v4 = vpack.i.bf16 %v1389_v58, %v1387_v0 }
 0x11d   : > { %v2906_v11 = vsel %vm1021_vm0, %v2845_v15, 0  ;;  %v2337_v30 = vrot.slane %v9976_v21, 6  ;;  %v1863_v34 = vrot.slane %v9976_v21, 4  ;;  %v1390_v57 = vrot.slane %v9976_v21, 2 }
 0x11e   : > { %2911 = vmatpush.bf16.msra.mxu1 %v2906_v11  ;;  %v1208_v6 = vrot.slane %v9976_v21, 1 }
 0x11f   : > { %v1864_v35 = vsel %vm1021_vm0, %v1861_v44, %v1863_v34 }
 0x122   : > { %8237 = vrot.lane.b32.xlu1 %v8236_v16, %s13977_s12  ;;  %8242 = vrot.lane.b32.xlu2 %v8241_v17, %s13975_s10  ;;  %v1074_v50 = vpop.f32.mrf.mxu0  ;;  %v880_v17 = vld [vmem:[%s9559_s2 + $0x108] sm:$0xff]  ;;  %s14046_s12 = smov 32   ;;  %s14047_s10 = smov 64  }
 0x123   : > { %8247 = vrot.lane.b32.xlu0 %v8221_v61, %s14042_s6  ;;  %2912 = vmatpush.bf16.msra.mxu1 %v7907_v28  ;;  %v2152_v61 = vsel %vm2133_vm6, %v2149_v47, %v2151_v46  ;;  %v9978_v11 = vadd.f32 %v1074_v50, %v929_v7  ;;  %v1207_v28 = vsel %vm1178_vm2, %v1204_v10, %v1206_v12 }
 0x124   : > { %v9907_v20 = vpop.permute.xlu2 %8087  ;;  %v8266_v2 = vpack.i.bf16 %v2154_v63, %v2152_v61  ;;  %v8291_v29 = vpack.i.bf16 %v1207_v28, %v1205_v27  ;;  %v1682_v61 = vrot.slane %v9976_v21, 3 }
 0x125   : > { %v2339_v1 = vrot.slane %v9978_v11, 6  ;;  %v1865_v9 = vrot.slane %v9978_v11, 4  ;;  %v1392_v0 = vrot.slane %v9978_v11, 2 }
 0x127   : > { %2913 = vmatpush.bf16.msra.mxu1 %v7906_v26  ;;  %v2340_v46 = vsel %vm2315_vm5, %v2337_v30, %v2339_v1  ;;  %v1866_v50 = vsel %vm1021_vm0, %v1863_v34, %v1865_v9  ;;  %v1393_v28 = vsel %vm1360_vm3, %v1390_v57, %v1392_v0  ;;  %v1210_v34 = vrot.slane %v9978_v11, 1 }
 0x128   : > { %v10017_v63 = vpack.i.bf16 %v1866_v50, %v1864_v35 }
 0x12a   : > { %8252 = vrot.lane.b32.xlu1 %v8251_v40, %s14043_s3  ;;  %8257 = vrot.lane.b32.xlu2 %v8236_v16, %s14044_s29  ;;  %v9969_v13 = vpop.f32.mrf.mxu0  ;;  %v879_v16 = vld [vmem:[%s9559_s2 + $0x100] sm:$0xff] }
 0x12b   : > { %8272 = vrot.lane.b32.xlu0 %v8271_v39, %s13973_s27  ;;  %2914 = vmatpush.bf16.msra.mxu1 %v7905_v53  ;;  %v906_v18 = vpack.c.bf16 %v880_v17, %v879_v16  ;;  %v2338_v39 = vsel %vm2315_vm5, %v2335_v24, %v2337_v30  ;;  %v2155_v53 = vrot.slane %v9976_v21, 5  ;;  %v2157_v24 = vrot.slane %v9978_v11, 5  ;;  %s14121_s27 = sld [smem:[#allocation25_spill]] }
 0x12c   : > { %v9935_v54 = vpop.permute.xlu2 %8092  ;;  %v9954_v47 = vpop.permute.xlu0 %8067  ;;  %v8311_v55 = vpack.i.bf16 %v2340_v46, %v2338_v39  ;;  %v1683_v17 = vsel %vm1656_vm4, %v1680_v51, %v1682_v61  ;;  %v931_v46 = vld [vmem:[%s14040_s1 + $0x90] sm:$0xff] }
 0x12d   : > { %7275 = vmatmul.msk.bf16.gmra.mxu0 %vm954_vm1, %v906_v18  ;;  %v8070_v44 = vunpack.i.h.bf16 %v9954_v47  ;;  %v8069_v58 = vunpack.i.l.bf16 %v9954_v47  ;;  %v2156_v3 = vsel %vm2133_vm6, %v2153_v43, %v2155_v53  ;;  %v2158_v43 = vsel %vm2133_vm6, %v2155_v53, %v2157_v24 }
 0x12f   : > { %2915 = vmatpush.bf16.msra.mxu1 %v7904_v45  ;;  %v1684_v45 = vrot.slane %v9978_v11, 3  ;;  %v2498_v18 = vsel %vm954_vm1, %v9596_v36, %v8070_v44  ;;  %v930_v36 = vld [vmem:[%s14040_s1 + $0x88] sm:$0xff] }
 0x130   : > { %v10078_v44 = vadd.f32 %v9969_v13, %v930_v36 }
 0x131   : > { %v1685_v51 = vsel %vm1656_vm4, %v1682_v61, %v1684_v45  ;;  %v1209_v61 = vsel %vm1178_vm2, %v1206_v12, %v1208_v6 }
 0x132   : > { %8262 = vrot.lane.b32.xlu1 %v8261_v60, %s13979_s0  ;;  %8267 = vrot.lane.b32.xlu2 %v8266_v2, %s13981_s11  ;;  %v10002_v26 = vpop.f32.mrf.mxu0  ;;  %v8321_v53 = vpack.i.bf16 %v1685_v51, %v1683_v17 }
 0x133   : > { %8277 = vrot.lane.b32.xlu0 %v8276_v4, %s14045_s5 }
 0x134   : > { %v9971_v15 = vpop.permute.xlu2 %8102  ;;  %v8073_v37 = vpop.permute.xlu0 %8072 }
 0x135   : > { %v8074_v2 = vunpack.i.l.bf16 %v8073_v37 }
 0x13a   : > { %8282 = vrot.lane.b32.xlu1 %v8281_v22, %s14046_s12  ;;  %8287 = vrot.lane.b32.xlu2 %v8261_v60, %s14042_s6  ;;  %v8075_v60 = vunpack.i.h.bf16 %v8073_v37  ;;  %v10057_v30 = vpop.f32.mrf.mxu0 }
 0x13b   : > { %8292 = vrot.lane.b32.xlu0 %v8291_v29, %s14043_s3 }
 0x13c   : > { %v8078_v40 = vpop.permute.xlu1 %8077  ;;  %v10000_v41 = vpop.permute.xlu2 %8122  ;;  %v2535_v29 = vsel %vm2533_vm7, %v2498_v18, %v8075_v60  ;;  %v882_v60 = vld [vmem:[%s9559_s2 + $0x118] sm:$0xff] }
 0x13d   : > { %v8080_v7 = vunpack.i.h.bf16 %v8078_v40  ;;  %v8079_v47 = vunpack.i.l.bf16 %v8078_v40  ;;  %v10040_v23 = vpop.permute.xlu0 %8097  ;;  %v8306_v40 = vpack.i.bf16 %v2158_v43, %v2156_v3 }
 0x142   : > { %8297 = vrot.lane.b32.xlu1 %v8276_v4, %s14044_s29  ;;  %8312 = vrot.lane.b32.xlu2 %v8311_v55, %s14047_s10  ;;  %v1391_v4 = vsel %vm1360_vm3, %v1388_v49, %v1390_v57  ;;  %v2497_v49 = vsel %vm954_vm1, %v9601_v38, %v8069_v58  ;;  %v2572_v38 = vsel %vm2570_vm8, %v2535_v29, %v8080_v7  ;;  %v8090_v55 = vunpack.i.h.bf16 %v9907_v20  ;;  %v1084_v29 = vpop.f32.mrf.mxu0 }
 0x143   : > { %8302 = vrot.lane.b32.xlu0 %v10017_v63, %s13979_s0  ;;  %v2534_v22 = vsel %vm2533_vm7, %v2497_v49, %v8074_v2  ;;  %v8316_v39 = vpack.i.bf16 %v1393_v28, %v1391_v4  ;;  %v8089_v57 = vunpack.i.l.bf16 %v9907_v20  ;;  %v1211_v58 = vsel %vm1178_vm2, %v1208_v6, %v1210_v34  ;;  %v881_v20 = vld [vmem:[%s9559_s2 + $0x110] sm:$0xff]  ;;  %s14118_s0 = sld [smem:[#allocation22_spill]] }
 0x144   : > { %v8083_v10 = vpop.permute.xlu1 %8082  ;;  %v10032_v16 = vpop.permute.xlu2 %8137  ;;  %v2571_v37 = vsel %vm2570_vm8, %v2534_v22, %v8079_v47  ;;  %v10087_v2 = vadd.f32 %v10002_v26, %v931_v46  ;;  %v907_v47 = vpack.c.bf16 %v882_v60, %v881_v20  ;;  %v8104_v4 = vunpack.i.l.bf16 %v9971_v15 }
 0x145   : > { %v8085_v25 = vunpack.i.h.bf16 %v8083_v10  ;;  %v8084_v27 = vunpack.i.l.bf16 %v8083_v10  ;;  %v8105_v10 = vunpack.i.h.bf16 %v9971_v15  ;;  %v8331_v26 = vpack.i.bf16 %v1211_v58, %v1209_v61 }
 0x146   : > { %7276 = vmatmul.msk.bf16.gmra.mxu0 %vm954_vm1, %v907_v47  ;;  %v2341_v49 = vrot.slane %v10078_v44, 6  ;;  %v1867_v15 = vrot.slane %v10078_v44, 4  ;;  %v1394_v60 = vrot.slane %v10078_v44, 2 }
 0x147   : > { %v2608_v35 = vsel %vm2607_vm9, %v2571_v37, %v8084_v27  ;;  %v2609_v50 = vsel %vm2607_vm9, %v2572_v38, %v8085_v25  ;;  %v2343_v38 = vrot.slane %v10087_v2, 6 }
 0x148   : > { %v2645_v3 = vsel %vm2644_vm10, %v2608_v35, %v8089_v57  ;;  %v2646_v12 = vsel %vm2644_vm10, %v2609_v50, %v8090_v55  ;;  %v2159_v35 = vrot.slane %v10078_v44, 5  ;;  %v2161_v50 = vrot.slane %v10087_v2, 5 }
 0x149   : > { %v2682_v28 = vsel %vm2681_vm11, %v2645_v3, %v8104_v4  ;;  %v2683_v18 = vsel %vm2681_vm11, %v2646_v12, %v8105_v10  ;;  %v2344_v61 = vsel %vm2315_vm5, %v2341_v49, %v2343_v38  ;;  %v1868_v58 = vsel %vm1021_vm0, %v1865_v9, %v1867_v15 }
 0x14a   : > { %8307 = vrot.lane.b32.xlu1 %v8306_v40, %s13981_s11  ;;  %8317 = vrot.lane.b32.xlu2 %v8316_v39, %s14045_s5  ;;  %v1869_v40 = vrot.slane %v10087_v2, 4  ;;  %v2160_v20 = vsel %vm2133_vm6, %v2157_v24, %v2159_v35  ;;  %v10137_v9 = vpop.f32.mrf.mxu0  ;;  %v1686_v10 = vrot.slane %v10078_v44, 3  ;;  %v1688_v4 = vrot.slane %v10087_v2, 3  ;;  %s14048_s11 = smov 48  }
 0x14b   : > { %8322 = vrot.lane.b32.xlu0 %v8321_v53, %s14046_s12  ;;  %v8094_v24 = vunpack.i.l.bf16 %v9935_v54 }
 0x14c   : > { %v8113_v7 = vpop.permute.xlu1 %8112  ;;  %v10091_v13 = vpop.permute.xlu2 %8147 }
 0x14d   : > { %v8115_v6 = vunpack.i.h.bf16 %v8113_v7  ;;  %v8114_v17 = vunpack.i.l.bf16 %v8113_v7  ;;  %v8108_v25 = vpop.permute.xlu0 %8107  ;;  %v1396_v7 = vrot.slane %v10087_v2, 2 }
 0x14e   : > { %v8110_v27 = vunpack.i.h.bf16 %v8108_v25  ;;  %v8109_v43 = vunpack.i.l.bf16 %v8108_v25  ;;  %v933_v25 = vld [vmem:[%s14040_s1 + $0xa0] sm:$0xff] }
 0x150   : > { %v2719_v51 = vsel %vm2718_vm12, %v2682_v28, %v8109_v43  ;;  %v2720_v22 = vsel %vm2718_vm12, %v2683_v18, %v8110_v27  ;;  %v1212_v27 = vrot.slane %v10078_v44, 1  ;;  %v8100_v43 = vunpack.i.h.bf16 %v10040_v23 }
 0x151   : > { %v2756_v36 = vsel %vm2755_vm13, %v2719_v51, %v8114_v17  ;;  %v2757_v37 = vsel %vm2755_vm13, %v2720_v22, %v8115_v6  ;;  %v8095_v6 = vunpack.i.h.bf16 %v9935_v54  ;;  %v932_v17 = vld [vmem:[%s14040_s1 + $0x98] sm:$0xff]  ;;  %v1395_v54 = vsel %vm1360_vm3, %v1392_v0, %v1394_v60 }
 0x152   : > { %8327 = vrot.lane.b32.xlu1 %v10017_v63, %s14042_s6  ;;  %8332 = vrot.lane.b32.xlu2 %v8331_v26, %s14043_s3  ;;  %v2792_v46 = vpack.c.bf16 %v2757_v37, %v2756_v36  ;;  %v2342_v63 = vsel %vm2315_vm5, %v2339_v1, %v2341_v49  ;;  %v2162_v1 = vsel %vm2133_vm6, %v2159_v35, %v2161_v50  ;;  %v8099_v26 = vunpack.i.l.bf16 %v10040_v23 }
 0x153   : > { %8337 = vrot.lane.b32.xlu0 %v8316_v39, %s14044_s29  ;;  %v1870_v39 = vsel %vm1021_vm0, %v1867_v15, %v1869_v40  ;;  %v8351_v3 = vpack.i.bf16 %v2344_v61, %v2342_v63  ;;  %v8346_v47 = vpack.i.bf16 %v2162_v1, %v2160_v20  ;;  %v1397_v22 = vsel %vm1360_vm3, %v1394_v60, %v1396_v7 }
 0x154   : > { %7297 = vmatmul.msk.bf16.vlgmr.msra.gmra.mxu1 %vm2850_vm14, %v2792_v46  ;;  %v8118_v53 = vpop.permute.xlu1 %8117  ;;  %v10113_v55 = vpop.permute.xlu2 %8167  ;;  %v8341_v12 = vpack.i.bf16 %v1870_v39, %v1868_v58  ;;  %v1214_v15 = vrot.slane %v10087_v2, 1  ;;  %v10167_v23 = vadd.f32 %v10057_v30, %v932_v17  ;;  %v10169_v36 = vadd.f32 %v1084_v29, %v933_v25 }
 0x155   : > { %v10115_v57 = vpop.permute.xlu0 %8127  ;;  %v8120_v28 = vunpack.i.h.bf16 %v8118_v53  ;;  %v8119_v18 = vunpack.i.l.bf16 %v8118_v53  ;;  %v1687_v0 = vsel %vm1656_vm4, %v1684_v45, %v1686_v10  ;;  %v1689_v46 = vsel %vm1656_vm4, %v1686_v10, %v1688_v4 }
 0x156   : > { %v2500_v35 = vsel %vm954_vm1, %v9621_v56, %v8095_v6  ;;  %v2499_v53 = vsel %vm954_vm1, %v9604_v42, %v8094_v24  ;;  %v1213_v30 = vsel %vm1178_vm2, %v1210_v34, %v1212_v27  ;;  %v8356_v61 = vpack.i.bf16 %v1397_v22, %v1395_v54  ;;  %v883_v6 = vld [vmem:[%s9559_s2 + $0x120] sm:$0xff]  ;;  %v884_v24 = vld [vmem:[%s9559_s2 + $0x128] sm:$0xff] }
 0x157   : > { %v2537_v29 = vsel %vm2533_vm7, %v2500_v35, %v8100_v43  ;;  %v2536_v63 = vsel %vm2533_vm7, %v2499_v53, %v8099_v26  ;;  %v8361_v39 = vpack.i.bf16 %v1689_v46, %v1687_v0  ;;  %v1215_v42 = vsel %vm1178_vm2, %v1212_v27, %v1214_v15 }
 0x158   : > { %v2573_v45 = vsel %vm2570_vm8, %v2536_v63, %v8119_v18  ;;  %v2574_v58 = vsel %vm2570_vm8, %v2537_v29, %v8120_v28  ;;  %v8125_v56 = vunpack.i.h.bf16 %v10000_v41  ;;  %v8124_v34 = vunpack.i.l.bf16 %v10000_v41 }
 0x159   : > { %v2345_v20 = vrot.slane %v10167_v23, 6  ;;  %v2347_v1 = vrot.slane %v10169_v36, 6  ;;  %v8371_v10 = vpack.i.bf16 %v1215_v42, %v1213_v30  ;;  %v8130_v41 = vunpack.i.h.bf16 %v10115_v57 }
 0x15a   : > { %8352 = vrot.lane.b32.xlu1 %v8351_v3, %s14047_s10  ;;  %8342 = vrot.lane.b32.xlu2 %v8341_v12, %s14048_s11  ;;  %v2610_v60 = vsel %vm2607_vm9, %v2573_v45, %v8124_v34  ;;  %v2611_v3 = vsel %vm2607_vm9, %v2574_v58, %v8125_v56  ;;  %v8129_v17 = vunpack.i.l.bf16 %v10115_v57  ;;  %v1871_v43 = vrot.slane %v10167_v23, 4 }
 0x15b   : > { %8347 = vrot.lane.b32.xlu0 %v8346_v47, %s14049_s7  ;;  %v10200_v47 = vpop.f32.mrf.mxu0  ;;  %v908_v26 = vpack.c.bf16 %v884_v24, %v883_v6  ;;  %v2348_v22 = vsel %vm2315_vm5, %v2345_v20, %v2347_v1  ;;  %v8150_v57 = vunpack.i.h.bf16 %v10091_v13  ;;  %v8149_v0 = vunpack.i.l.bf16 %v10091_v13 }
 0x15c   : > { %v10158_v49 = vpop.permute.xlu1 %8132  ;;  %v10160_v51 = vpop.permute.xlu2 %8192  ;;  %v2647_v46 = vsel %vm2644_vm10, %v2610_v60, %v8129_v17  ;;  %v2648_v35 = vsel %vm2644_vm10, %v2611_v3, %v8130_v41  ;;  %v1873_v58 = vrot.slane %v10169_v36, 4  ;;  %v2163_v13 = vrot.slane %v10167_v23, 5 }
 0x15d   : > { %v8153_v37 = vpop.permute.xlu0 %8152  ;;  %7277 = vmatmul.msk.bf16.gmra.mxu0 %vm954_vm1, %v908_v26  ;;  %v2165_v34 = vrot.slane %v10169_v36, 5  ;;  %v1400_v60 = vrot.slane %v10169_v36, 2 }
 0x15e   : > { %v8155_v53 = vunpack.i.h.bf16 %v8153_v37  ;;  %v8154_v30 = vunpack.i.l.bf16 %v8153_v37  ;;  %v2164_v17 = vsel %vm2133_vm6, %v2161_v50, %v2163_v13  ;;  %v934_v50 = vld [vmem:[%s14040_s1 + $0xa8] sm:$0xff] }
 0x162   : > { %8357 = vrot.lane.b32.xlu1 %v8356_v61, %s14045_s5  ;;  %8362 = vrot.lane.b32.xlu2 %v8361_v39, %s14046_s12 }
 0x163   : > { %8367 = vrot.lane.b32.xlu0 %v8341_v12, %s14042_s6  ;;  %v2346_v12 = vsel %vm2315_vm5, %v2343_v38, %v2345_v20  ;;  %v1398_v20 = vrot.slane %v10167_v23, 2  ;;  %v10236_v3 = vpop.f32.mrf.mxu0 }
 0x164   : > { %v8143_v25 = vpop.permute.xlu1 %8142  ;;  %v10206_v27 = vpop.permute.xlu2 %8197  ;;  %v8391_v39 = vpack.i.bf16 %v2348_v22, %v2346_v12 }
 0x165   : > { %v8145_v54 = vunpack.i.h.bf16 %v8143_v25  ;;  %v8144_v28 = vunpack.i.l.bf16 %v8143_v25  ;;  %v10209_v18 = vpop.permute.xlu0 %8157  ;;  %v2166_v25 = vsel %vm2133_vm6, %v2163_v13, %v2165_v34  ;;  %v1399_v26 = vsel %vm1360_vm3, %v1396_v7, %v1398_v20 }
 0x166   : > { %v8386_v22 = vpack.i.bf16 %v2166_v25, %v2164_v17  ;;  %v8135_v7 = vunpack.i.h.bf16 %v10158_v49 }
 0x167   : > { %v2684_v29 = vsel %vm2681_vm11, %v2647_v46, %v8144_v28  ;;  %v2685_v38 = vsel %vm2681_vm11, %v2648_v35, %v8145_v54  ;;  %v1690_v54 = vrot.slane %v10167_v23, 3  ;;  %v1216_v28 = vrot.slane %v10167_v23, 1  ;;  %v935_v46 = vld [vmem:[%s14040_s1 + $0xb0] sm:$0xff] }
 0x168   : > { %v2721_v63 = vsel %vm2718_vm12, %v2684_v29, %v8149_v0  ;;  %v2722_v45 = vsel %vm2718_vm12, %v2685_v38, %v8150_v57  ;;  %v1218_v57 = vrot.slane %v10169_v36, 1  ;;  %v8134_v0 = vunpack.i.l.bf16 %v10158_v49 }
 0x169   : > { %v2758_v42 = vsel %vm2755_vm13, %v2721_v63, %v8154_v30  ;;  %v2759_v56 = vsel %vm2755_vm13, %v2722_v45, %v8155_v53  ;;  %v10278_v53 = vadd.f32 %v10137_v9, %v934_v50  ;;  %v1691_v49 = vsel %vm1656_vm4, %v1688_v4, %v1690_v54 }
 0x16a   : > { %8372 = vrot.lane.b32.xlu1 %v8371_v10, %s14043_s3  ;;  %8377 = vrot.lane.b32.xlu2 %v8356_v61, %s14044_s29  ;;  %v2793_v37 = vpack.c.bf16 %v2759_v56, %v2758_v42  ;;  %v1872_v61 = vsel %vm1021_vm0, %v1869_v40, %v1871_v43  ;;  %v1874_v10 = vsel %vm1021_vm0, %v1871_v43, %v1873_v58  ;;  %v1692_v43 = vrot.slane %v10169_v36, 3  ;;  %v886_v42 = vld [vmem:[%s9559_s2 + $0x138] sm:$0xff] }
 0x16b   : > { %8392 = vrot.lane.b32.xlu0 %v8391_v39, %s14047_s10  ;;  %v1401_v40 = vsel %vm1360_vm3, %v1398_v20, %v1400_v60  ;;  %v8381_v12 = vpack.i.bf16 %v1874_v10, %v1872_v61  ;;  %v1217_v29 = vsel %vm1178_vm2, %v1214_v15, %v1216_v28  ;;  %v8140_v38 = vunpack.i.h.bf16 %v10032_v16  ;;  %v885_v39 = vld [vmem:[%s9559_s2 + $0x130] sm:$0xff]  ;;  %v10311_v20 = vpop.f32.mrf.mxu0 }
 0x16c   : > { %v8163_v6 = vpop.permute.xlu1 %8162  ;;  %v10238_v24 = vpop.permute.xlu2 %8212  ;;  %7298 = vmatmul.msk.bf16.gmra.mxu1 %vm2850_vm14, %v2793_v37  ;;  %v10273_v35 = vpack.i.bf16 %v1401_v40, %v1399_v26  ;;  %v1693_v30 = vsel %vm1656_vm4, %v1690_v54, %v1692_v43  ;;  %v8139_v9 = vunpack.i.l.bf16 %v10032_v16  ;;  %v10294_v63 = vadd.f32 %v10200_v47, %v935_v46 }
 0x16d   : > { %v10241_v41 = vpop.permute.xlu0 %8172  ;;  %v1219_v4 = vsel %vm1178_vm2, %v1216_v28, %v1218_v57  ;;  %v2502_v15 = vsel %vm954_vm1, %v9659_v19, %v8135_v7  ;;  %v2501_v56 = vsel %vm954_vm1, %v9628_v62, %v8134_v0  ;;  %v8160_v16 = vunpack.i.h.bf16 %v10209_v18 }
 0x16e   : > { %v8159_v47 = vunpack.i.l.bf16 %v10209_v18  ;;  %v8165_v61 = vunpack.i.h.bf16 %v8163_v6  ;;  %v8164_v10 = vunpack.i.l.bf16 %v8163_v6  ;;  %v8401_v17 = vpack.i.bf16 %v1693_v30, %v1691_v49 }
 0x16f   : > { %v909_v25 = vpack.c.bf16 %v886_v42, %v885_v39  ;;  %v8411_v26 = vpack.i.bf16 %v1219_v4, %v1217_v29  ;;  %v2349_v40 = vrot.slane %v10278_v53, 6  ;;  %v1875_v54 = vrot.slane %v10278_v53, 4 }
 0x170   : > { %v2538_v19 = vsel %vm2533_vm7, %v2501_v56, %v8139_v9  ;;  %v2539_v62 = vsel %vm2533_vm7, %v2502_v15, %v8140_v38  ;;  %v2351_v28 = vrot.slane %v10294_v63, 6  ;;  %v1877_v18 = vrot.slane %v10294_v63, 4 }
 0x171   : > { %7278 = vmatmul.msk.bf16.gmra.mxu0 %vm954_vm1, %v909_v25  ;;  %v2576_v50 = vsel %vm2570_vm8, %v2539_v62, %v8160_v16  ;;  %v2575_v6 = vsel %vm2570_vm8, %v2538_v19, %v8159_v47  ;;  %v1402_v7 = vrot.slane %v10278_v53, 2  ;;  %v8170_v29 = vunpack.i.h.bf16 %v10113_v55 }
 0x172   : > { %8382 = vrot.lane.b32.xlu1 %v8381_v12, %s14048_s11  ;;  %8387 = vrot.lane.b32.xlu2 %v8386_v22, %s14049_s7  ;;  %v2167_v22 = vrot.slane %v10278_v53, 5  ;;  %v2612_v0 = vsel %vm2607_vm9, %v2575_v6, %v8164_v10  ;;  %v2613_v46 = vsel %vm2607_vm9, %v2576_v50, %v8165_v61  ;;  %v8169_v38 = vunpack.i.l.bf16 %v10113_v55 }
 0x173   : > { %8397 = vrot.lane.b32.xlu0 %v10273_v35, %s14045_s5  ;;  %v2350_v9 = vsel %vm2315_vm5, %v2347_v1, %v2349_v40  ;;  %v1876_v4 = vsel %vm1021_vm0, %v1873_v58, %v1875_v54  ;;  %v1878_v55 = vsel %vm1021_vm0, %v1875_v54, %v1877_v18  ;;  %v2169_v15 = vrot.slane %v10294_v63, 5  ;;  %v10355_v54 = vpop.f32.mrf.mxu0 }
 0x174   : > { %v10296_v45 = vpop.permute.xlu1 %8177  ;;  %v10298_v13 = vpop.permute.xlu2 %8222  ;;  %v1404_v56 = vrot.slane %v10294_v63, 2  ;;  %v2649_v1 = vsel %vm2644_vm10, %v2612_v0, %v8169_v38  ;;  %v2650_v16 = vsel %vm2644_vm10, %v2613_v46, %v8170_v29  ;;  %v8195_v61 = vunpack.i.h.bf16 %v10160_v51 }
 0x175   : > { %v8183_v37 = vpop.permute.xlu0 %8182  ;;  %v8194_v10 = vunpack.i.l.bf16 %v10160_v51  ;;  %v1694_v19 = vrot.slane %v10278_v53, 3  ;;  %v2168_v51 = vsel %vm2133_vm6, %v2165_v34, %v2167_v22  ;;  %v10363_v0 = vpack.i.bf16 %v1878_v55, %v1876_v4 }
 0x176   : > { %v8185_v49 = vunpack.i.h.bf16 %v8183_v37  ;;  %v8184_v30 = vunpack.i.l.bf16 %v8183_v37  ;;  %v8175_v29 = vunpack.i.h.bf16 %v10241_v41  ;;  %v8174_v38 = vunpack.i.l.bf16 %v10241_v41 }
 0x177   : > { %v1405_v34 = vsel %vm1360_vm3, %v1402_v7, %v1404_v56  ;;  %v8179_v4 = vunpack.i.l.bf16 %v10296_v45 }
 0x178   : > { %v2687_v25 = vsel %vm2681_vm11, %v2650_v16, %v8185_v49  ;;  %v2170_v49 = vsel %vm2133_vm6, %v2167_v22, %v2169_v15  ;;  %v1696_v22 = vrot.slane %v10294_v63, 3  ;;  %v1222_v16 = vrot.slane %v10294_v63, 1 }
 0x17a   : > { %8402 = vrot.lane.b32.xlu1 %v8401_v17, %s14046_s12  ;;  %8407 = vrot.lane.b32.xlu2 %v8381_v12, %s14042_s6  ;;  %v2352_v12 = vsel %vm2315_vm5, %v2349_v40, %v2351_v28  ;;  %v2686_v17 = vsel %vm2681_vm11, %v2649_v1, %v8184_v30  ;;  %v1403_v30 = vsel %vm1360_vm3, %v1400_v60, %v1402_v7 }
 0x17b   : > { %8412 = vrot.lane.b32.xlu0 %v8411_v26, %s14043_s3  ;;  %v8431_v62 = vpack.i.bf16 %v2352_v12, %v2350_v9  ;;  %v8180_v9 = vunpack.i.h.bf16 %v10296_v45  ;;  %v888_v12 = vld [vmem:[%s9559_s2 + $0x148] sm:$0xff]  ;;  %v8426_v7 = vpack.i.bf16 %v2170_v49, %v2168_v51  ;;  %v8436_v1 = vpack.i.bf16 %v1405_v34, %v1403_v30  ;;  %v10414_v51 = vpop.f32.mrf.mxu0 }
 0x17c   : > { %v8188_v39 = vpop.permute.xlu1 %8187  ;;  %v10337_v42 = vpop.permute.xlu2 %8242  ;;  %v1695_v45 = vsel %vm1656_vm4, %v1692_v43, %v1694_v19  ;;  %v8200_v43 = vunpack.i.h.bf16 %v10206_v27 }
 0x17d   : > { %v8190_v58 = vunpack.i.h.bf16 %v8188_v39  ;;  %v8189_v47 = vunpack.i.l.bf16 %v8188_v39  ;;  %v8203_v37 = vpop.permute.xlu0 %8202  ;;  %v887_v39 = vld [vmem:[%s9559_s2 + $0x140] sm:$0xff] }
 0x17f   : > { %v2723_v26 = vsel %vm2718_vm12, %v2686_v17, %v8189_v47  ;;  %v2724_v40 = vsel %vm2718_vm12, %v2687_v25, %v8190_v58  ;;  %v2504_v58 = vsel %vm954_vm1, %v9705_v59, %v8175_v29  ;;  %v2503_v47 = vsel %vm954_vm1, %v9672_v31, %v8174_v38  ;;  %v936_v59 = vld [vmem:[%s14040_s1 + $0xb8] sm:$0xff] }
 0x180   : > { %v2760_v50 = vsel %vm2755_vm13, %v2723_v26, %v8194_v10  ;;  %v2761_v6 = vsel %vm2755_vm13, %v2724_v40, %v8195_v61  ;;  %v1697_v61 = vsel %vm1656_vm4, %v1694_v19, %v1696_v22  ;;  %v910_v10 = vpack.c.bf16 %v888_v12, %v887_v39  ;;  %v937_v19 = vld [vmem:[%s14040_s1 + $0xc0] sm:$0xff] }
 0x181   : > { %v2794_v46 = vpack.c.bf16 %v2761_v6, %v2760_v50  ;;  %v2540_v17 = vsel %vm2533_vm7, %v2503_v47, %v8179_v4  ;;  %v2541_v25 = vsel %vm2533_vm7, %v2504_v58, %v8180_v9  ;;  %v8205_v26 = vunpack.i.h.bf16 %v8203_v37 }
 0x182   : > { %8417 = vrot.lane.b32.xlu1 %v10273_v35, %s14044_s29  ;;  %8432 = vrot.lane.b32.xlu2 %v8431_v62, %s14047_s10  ;;  %v1220_v35 = vrot.slane %v10278_v53, 1  ;;  %v8204_v40 = vunpack.i.l.bf16 %v8203_v37  ;;  %v8199_v62 = vunpack.i.l.bf16 %v10206_v27  ;;  %v8441_v6 = vpack.i.bf16 %v1697_v61, %v1695_v45 }
 0x183   : > { %8422 = vrot.lane.b32.xlu0 %v10363_v0, %s14048_s11  ;;  %7299 = vmatmul.msk.bf16.gmra.mxu1 %vm2850_vm14, %v2794_v46  ;;  %v2578_v46 = vsel %vm2570_vm8, %v2541_v25, %v8200_v43  ;;  %v10421_v27 = vadd.f32 %v10236_v3, %v936_v59  ;;  %v10430_v38 = vadd.f32 %v10311_v20, %v937_v19  ;;  %v8225_v39 = vunpack.i.h.bf16 %v10298_v13  ;;  %v10451_v59 = vpop.f32.mrf.mxu0 }
 0x184   : > { %v8208_v60 = vpop.permute.xlu1 %8207  ;;  %v10385_v41 = vpop.permute.xlu2 %8257  ;;  %7279 = vmatmul.msk.bf16.gmra.mxu0 %vm954_vm1, %v910_v10  ;;  %v2577_v37 = vsel %vm2570_vm8, %v2540_v17, %v8199_v62  ;;  %v2615_v30 = vsel %vm2607_vm9, %v2578_v46, %v8205_v26  ;;  %v1221_v29 = vsel %vm1178_vm2, %v1218_v57, %v1220_v35  ;;  %v8224_v12 = vunpack.i.l.bf16 %v10298_v13 }
 0x185   : > { %v10390_v55 = vpop.permute.xlu0 %8217  ;;  %v8210_v31 = vunpack.i.h.bf16 %v8208_v60  ;;  %v8209_v50 = vunpack.i.l.bf16 %v8208_v60  ;;  %v2614_v49 = vsel %vm2607_vm9, %v2577_v37, %v8204_v40  ;;  %14050 = vst [vmem:[#allocation5_spill] sm:$0xff] %v10430_v38  ;;  %v1223_v60 = vsel %vm1178_vm2, %v1220_v35, %v1222_v16 }
 0x186   : > { %v8451_v47 = vpack.i.bf16 %v1223_v60, %v1221_v29  ;;  %v2353_v35 = vrot.slane %v10421_v27, 6  ;;  %v2355_v26 = vrot.slane %v10430_v38, 6  ;;  %v1879_v43 = vrot.slane %v10421_v27, 4 }
 0x187   : > { %v2651_v34 = vsel %vm2644_vm10, %v2614_v49, %v8209_v50  ;;  %v2652_v9 = vsel %vm2644_vm10, %v2615_v30, %v8210_v31  ;;  %v1881_v62 = vrot.slane %v10430_v38, 4  ;;  %v2171_v50 = vrot.slane %v10421_v27, 5 }
 0x188   : > { %v2688_v61 = vsel %vm2681_vm11, %v2651_v34, %v8224_v12  ;;  %v2689_v10 = vsel %vm2681_vm11, %v2652_v9, %v8225_v39  ;;  %v2173_v19 = vrot.slane %v10430_v38, 5  ;;  %v2356_v49 = vsel %vm2315_vm5, %v2353_v35, %v2355_v26  ;;  %v938_v9 = vld [vmem:[%s14040_s1 + $0xc8] sm:$0xff] }
 0x189   : > { %v1880_v30 = vsel %vm1021_vm0, %v1877_v18, %v1879_v43  ;;  %v2172_v29 = vsel %vm2133_vm6, %v2169_v15, %v2171_v50  ;;  %v1406_v34 = vrot.slane %v10421_v27, 2  ;;  %v1408_v18 = vrot.slane %v10430_v38, 2 }
 0x18a   : > { %8427 = vrot.lane.b32.xlu1 %v8426_v7, %s14049_s7  ;;  %8437 = vrot.lane.b32.xlu2 %v8436_v1, %s14045_s5  ;;  %v1700_v12 = vrot.slane %v10430_v38, 3  ;;  %v8215_v15 = vunpack.i.h.bf16 %v10238_v24 }
 0x18b   : > { %8442 = vrot.lane.b32.xlu0 %v8441_v6, %s14046_s12 }
 0x18c   : > { %v8233_v4 = vpop.permute.xlu1 %8232  ;;  %v10434_v3 = vpop.permute.xlu2 %8267 }
 0x18d   : > { %v8235_v7 = vunpack.i.h.bf16 %v8233_v4  ;;  %v8234_v57 = vunpack.i.l.bf16 %v8233_v4  ;;  %v8228_v45 = vpop.permute.xlu0 %8227  ;;  %v1698_v4 = vrot.slane %v10421_v27, 3 }
 0x18e   : > { %v8230_v20 = vunpack.i.h.bf16 %v8228_v45  ;;  %v8229_v58 = vunpack.i.l.bf16 %v8228_v45  ;;  %v10492_v45 = vadd.f32 %v10355_v54, %v938_v9 }
 0x18f   : > { %v1699_v54 = vsel %vm1656_vm4, %v1696_v22, %v1698_v4  ;;  %v1226_v22 = vrot.slane %v10430_v38, 1 }
 0x190   : > { %v2725_v17 = vsel %vm2718_vm12, %v2688_v61, %v8229_v58  ;;  %v2726_v25 = vsel %vm2718_vm12, %v2689_v10, %v8230_v20  ;;  %14051 = vst [vmem:[#allocation6_spill] sm:$0xff] %v10492_v45  ;;  %v939_v20 = vld [vmem:[%s14040_s1 + $0xd0] sm:$0xff]  ;;  %v1407_v58 = vsel %vm1360_vm3, %v1404_v56, %v1406_v34  ;;  %v8219_v61 = vunpack.i.l.bf16 %v10390_v55  ;;  %v10511_v10 = vpop.f32.mrf.mxu0 }
 0x191   : > { %v2762_v13 = vsel %vm2755_vm13, %v2725_v17, %v8234_v57  ;;  %v2763_v40 = vsel %vm2755_vm13, %v2726_v25, %v8235_v7  ;;  %v8214_v57 = vunpack.i.l.bf16 %v10238_v24  ;;  %v1409_v24 = vsel %vm1360_vm3, %v1406_v34, %v1408_v18 }
 0x192   : > { %8447 = vrot.lane.b32.xlu1 %v10363_v0, %s14042_s6  ;;  %8452 = vrot.lane.b32.xlu2 %v8451_v47, %s14043_s3  ;;  %v2795_v31 = vpack.c.bf16 %v2763_v40, %v2762_v13  ;;  %v2354_v0 = vsel %vm2315_vm5, %v2351_v28, %v2353_v35  ;;  %v2174_v28 = vsel %vm2133_vm6, %v2171_v50, %v2173_v19  ;;  %v8220_v47 = vunpack.i.h.bf16 %v10390_v55 }
 0x193   : > { %8457 = vrot.lane.b32.xlu0 %v8436_v1, %s14044_s29  ;;  %v1882_v1 = vsel %vm1021_vm0, %v1879_v43, %v1881_v62  ;;  %v8471_v60 = vpack.i.bf16 %v2356_v49, %v2354_v0  ;;  %v8466_v7 = vpack.i.bf16 %v2174_v28, %v2172_v29  ;;  %v1701_v55 = vsel %vm1656_vm4, %v1698_v4, %v1700_v12 }
 0x194   : > { %7300 = vmatmul.msk.bf16.gmra.mxu1 %vm2850_vm14, %v2795_v31  ;;  %v8238_v6 = vpop.permute.xlu1 %8237  ;;  %v10460_v37 = vpop.permute.xlu2 %8287  ;;  %v8461_v39 = vpack.i.bf16 %v1882_v1, %v1880_v30  ;;  %v1224_v13 = vrot.slane %v10421_v27, 1  ;;  %v10522_v40 = vadd.f32 %v10414_v51, %v939_v20  ;;  %v2506_v31 = vsel %vm954_vm1, %v9779_v52, %v8215_v15 }
 0x195   : > { %v10462_v46 = vpop.permute.xlu0 %8247  ;;  %v8240_v17 = vunpack.i.h.bf16 %v8238_v6  ;;  %v8239_v25 = vunpack.i.l.bf16 %v8238_v6  ;;  %v2505_v50 = vsel %vm954_vm1, %v9719_v5, %v8214_v57  ;;  %v8476_v6 = vpack.i.bf16 %v1409_v24, %v1407_v58 }
 0x196   : > { %14052 = vst [vmem:[#allocation7_spill] sm:$0xff] %v10522_v40  ;;  %v2543_v0 = vsel %vm2533_vm7, %v2506_v31, %v8220_v47  ;;  %v2542_v49 = vsel %vm2533_vm7, %v2505_v50, %v8219_v61  ;;  %v8481_v30 = vpack.i.bf16 %v1701_v55, %v1699_v54  ;;  %v1225_v29 = vsel %vm1178_vm2, %v1222_v16, %v1224_v13 }
 0x197   : > { %v2579_v1 = vsel %vm2570_vm8, %v2542_v49, %v8239_v25  ;;  %v2580_v51 = vsel %vm2570_vm8, %v2543_v0, %v8240_v17  ;;  %v2357_v28 = vrot.slane %v10492_v45, 6  ;;  %v8245_v52 = vunpack.i.h.bf16 %v10337_v42 }
 0x198   : > { %v8244_v5 = vunpack.i.l.bf16 %v10337_v42  ;;  %v1227_v34 = vsel %vm1178_vm2, %v1224_v13, %v1226_v22  ;;  %v2359_v9 = vrot.slane %v10522_v40, 6  ;;  %v8250_v42 = vunpack.i.h.bf16 %v10462_v46 }
 0x199   : > { %v2617_v16 = vsel %vm2607_vm9, %v2580_v51, %v8245_v52  ;;  %v8491_v20 = vpack.i.bf16 %v1227_v34, %v1225_v29  ;;  %v2358_v58 = vsel %vm2315_vm5, %v2355_v26, %v2357_v28  ;;  %v1883_v54 = vrot.slane %v10492_v45, 4  ;;  %v941_v51 = vld [vmem:[%s14040_s1 + $0xe0] sm:$0xff] }
 0x19a   : > { %8472 = vrot.lane.b32.xlu1 %v8471_v60, %s14047_s10  ;;  %8462 = vrot.lane.b32.xlu2 %v8461_v39, %s14048_s11  ;;  %v2616_v4 = vsel %vm2607_vm9, %v2579_v1, %v8244_v5  ;;  %v10548_v60 = vpop.f32.mrf.mxu0  ;;  %v8269_v17 = vunpack.i.l.bf16 %v10434_v3  ;;  %v2654_v55 = vsel %vm2644_vm10, %v2617_v16, %v8250_v42  ;;  %v1885_v1 = vrot.slane %v10522_v40, 4 }
 0x19b   : > { %8467 = vrot.lane.b32.xlu0 %v8466_v7, %s14049_s7  ;;  %v8249_v7 = vunpack.i.l.bf16 %v10462_v46  ;;  %v8270_v46 = vunpack.i.h.bf16 %v10434_v3  ;;  %v940_v3 = vld [vmem:[%s14040_s1 + $0xd8] sm:$0xff]  ;;  %v2177_v52 = vrot.slane %v10522_v40, 5  ;;  %v1410_v34 = vrot.slane %v10492_v45, 2 }
 0x19c   : > { %v10513_v35 = vpop.permute.xlu1 %8252  ;;  %v10515_v56 = vpop.permute.xlu2 %8312  ;;  %v10588_v16 = vadd.f32 %v10451_v59, %v940_v3  ;;  %v10591_v42 = vadd.f32 %v10511_v10, %v941_v51  ;;  %v8259_v3 = vunpack.i.l.bf16 %v10385_v41 }
 0x19d   : > { %v8273_v43 = vpop.permute.xlu0 %8272  ;;  %v2653_v25 = vsel %vm2644_vm10, %v2616_v4, %v8249_v7  ;;  %v1412_v4 = vrot.slane %v10522_v40, 2 }
 0x19e   : > { %v8275_v13 = vunpack.i.h.bf16 %v8273_v43  ;;  %v8274_v26 = vunpack.i.l.bf16 %v8273_v43  ;;  %14053 = vst [vmem:[#allocation8_spill] sm:$0xff] %v10588_v16 }
 0x19f   : > { %14054 = vst [vmem:[#allocation9_spill] sm:$0xff] %v10591_v42 }
 0x1a2   : > { %8477 = vrot.lane.b32.xlu1 %v8476_v6, %s14045_s5  ;;  %8482 = vrot.lane.b32.xlu2 %v8481_v30, %s14046_s12 }
 0x1a3   : > { %8487 = vrot.lane.b32.xlu0 %v8461_v39, %s14042_s6  ;;  %v2360_v39 = vsel %vm2315_vm5, %v2357_v28, %v2359_v9  ;;  %v2175_v28 = vrot.slane %v10492_v45, 5 }
 0x1a4   : > { %v8263_v15 = vpop.permute.xlu1 %8262  ;;  %v10552_v57 = vpop.permute.xlu2 %8317  ;;  %v8511_v0 = vpack.i.bf16 %v2360_v39, %v2358_v58  ;;  %v1886_v58 = vsel %vm1021_vm0, %v1883_v54, %v1885_v1  ;;  %v1413_v39 = vsel %vm1360_vm3, %v1410_v34, %v1412_v4 }
 0x1a5   : > { %v8265_v47 = vunpack.i.h.bf16 %v8263_v15  ;;  %v8264_v61 = vunpack.i.l.bf16 %v8263_v15  ;;  %v10557_v24 = vpop.permute.xlu0 %8277  ;;  %v2176_v59 = vsel %vm2133_vm6, %v2173_v19, %v2175_v28  ;;  %v2178_v10 = vsel %vm2133_vm6, %v2175_v28, %v2177_v52 }
 0x1a6   : > { %v1228_v19 = vrot.slane %v10492_v45, 1 }
 0x1a7   : > { %v2690_v31 = vsel %vm2681_vm11, %v2653_v25, %v8264_v61  ;;  %v2691_v50 = vsel %vm2681_vm11, %v2654_v55, %v8265_v47  ;;  %v1702_v47 = vrot.slane %v10492_v45, 3  ;;  %v10611_v61 = vpop.f32.mrf.mxu0  ;;  %v8506_v25 = vpack.i.bf16 %v2178_v10, %v2176_v59 }
 0x1a8   : > { %v2727_v49 = vsel %vm2718_vm12, %v2690_v31, %v8269_v17  ;;  %v2728_v30 = vsel %vm2718_vm12, %v2691_v50, %v8270_v46  ;;  %v1230_v46 = vrot.slane %v10522_v40, 1  ;;  %v2361_v55 = vrot.slane %v10588_v16, 6 }
 0x1a9   : > { %v2764_v43 = vsel %vm2755_vm13, %v2727_v49, %v8274_v26  ;;  %v2765_v29 = vsel %vm2755_vm13, %v2728_v30, %v8275_v13  ;;  %v2363_v13 = vrot.slane %v10591_v42, 6  ;;  %v8255_v26 = vunpack.i.h.bf16 %v10513_v35 }
 0x1aa   : > { %8492 = vrot.lane.b32.xlu1 %v8491_v20, %s14043_s3  ;;  %8497 = vrot.lane.b32.xlu2 %v8476_v6, %s14044_s29  ;;  %v2796_v5 = vpack.c.bf16 %v2765_v29, %v2764_v43  ;;  %v1884_v6 = vsel %vm1021_vm0, %v1881_v62, %v1883_v54  ;;  %v1411_v62 = vsel %vm1360_vm3, %v1408_v18, %v1410_v34  ;;  %v1704_v54 = vrot.slane %v10522_v40, 3 }
 0x1ab   : > { %8512 = vrot.lane.b32.xlu0 %v8511_v0, %s14047_s10  ;;  %v8501_v17 = vpack.i.bf16 %v1886_v58, %v1884_v6  ;;  %v8254_v18 = vunpack.i.l.bf16 %v10513_v35  ;;  %v10626_v31 = vpack.i.bf16 %v1413_v39, %v1411_v62  ;;  %v1703_v50 = vsel %vm1656_vm4, %v1700_v12, %v1702_v47 }
 0x1ac   : > { %v10593_v7 = vpop.permute.xlu1 %8282  ;;  %v10595_v15 = vpop.permute.xlu2 %8332  ;;  %7301 = vmatmul.msk.bf16.gmra.mxu1 %vm2850_vm14, %v2796_v5  ;;  %v1705_v0 = vsel %vm1656_vm4, %v1702_v47, %v1704_v54  ;;  %v1887_v49 = vrot.slane %v10588_v16, 4  ;;  %v1889_v30 = vrot.slane %v10591_v42, 4  ;;  %v8260_v35 = vunpack.i.h.bf16 %v10385_v41 }
 0x1ad   : > { %v10601_v20 = vpop.permute.xlu0 %8292  ;;  %v1229_v12 = vsel %vm1178_vm2, %v1226_v22, %v1228_v19  ;;  %v1231_v51 = vsel %vm1178_vm2, %v1228_v19, %v1230_v46  ;;  %v10655_v28 = vsel %vm2315_vm5, %v2359_v9, %v2361_v55  ;;  %v10660_v41 = vsel %vm2315_vm5, %v2361_v55, %v2363_v13 }
 0x1ae   : > { %v2179_v22 = vrot.slane %v10588_v16, 5  ;;  %v2181_v5 = vrot.slane %v10591_v42, 5  ;;  %v2508_v34 = vsel %vm954_vm1, %v9832_v32, %v8255_v26  ;;  %v2507_v6 = vsel %vm954_vm1, %v9772_v48, %v8254_v18 }
 0x1af   : > { %v8280_v58 = vunpack.i.h.bf16 %v10557_v24  ;;  %v8279_v9 = vunpack.i.l.bf16 %v10557_v24  ;;  %v8285_v10 = vunpack.i.h.bf16 %v10593_v7  ;;  %v8284_v47 = vunpack.i.l.bf16 %v10593_v7 }
 0x1b0   : > { %v1888_v62 = vsel %vm1021_vm0, %v1885_v1, %v1887_v49  ;;  %v1890_v39 = vsel %vm1021_vm0, %v1887_v49, %v1889_v30  ;;  %v8521_v19 = vpack.i.bf16 %v1705_v0, %v1703_v50  ;;  %v8531_v32 = vpack.i.bf16 %v1231_v51, %v1229_v12  ;;  %v942_v50 = vld [vmem:[%s14040_s1 + $0xe8] sm:$0xff] }
 0x1b1   : > { %v8551_v48 = vpack.i.bf16 %v10660_v41, %v10655_v28  ;;  %v2544_v24 = vsel %vm2533_vm7, %v2507_v6, %v8259_v3  ;;  %v2545_v55 = vsel %vm2533_vm7, %v2508_v34, %v8260_v35  ;;  %v10685_v7 = vsel %vm2133_vm6, %v2177_v52, %v2179_v22  ;;  %v943_v41 = vld [vmem:[%s14040_s1 + $0xf0] sm:$0xff] }
 0x1b2   : > { %8502 = vrot.lane.b32.xlu1 %v8501_v17, %s14048_s11  ;;  %8507 = vrot.lane.b32.xlu2 %v8506_v25, %s14049_s7  ;;  %v10678_v25 = vpop.f32.mrf.mxu0  ;;  %v1414_v1 = vrot.slane %v10588_v16, 2  ;;  %v2582_v26 = vsel %vm2570_vm8, %v2545_v55, %v8280_v58  ;;  %v2581_v18 = vsel %vm2570_vm8, %v2544_v24, %v8279_v9  ;;  %v10693_v0 = vpack.i.bf16 %v1890_v39, %v1888_v62 }
 0x1b3   : > { %8517 = vrot.lane.b32.xlu0 %v10626_v31, %s14045_s5  ;;  %v10698_v49 = vsel %vm2133_vm6, %v2179_v22, %v2181_v5  ;;  %v2618_v52 = vsel %vm2607_vm9, %v2581_v18, %v8284_v47  ;;  %v2619_v35 = vsel %vm2607_vm9, %v2582_v26, %v8285_v10  ;;  %v8290_v51 = vunpack.i.h.bf16 %v10460_v37 }
 0x1b4   : > { %v10648_v43 = vpop.permute.xlu1 %8297  ;;  %v10650_v29 = vpop.permute.xlu2 %8342  ;;  %v8289_v28 = vunpack.i.l.bf16 %v10460_v37  ;;  %v1416_v22 = vrot.slane %v10591_v42, 2  ;;  %v1706_v34 = vrot.slane %v10588_v16, 3  ;;  %v8315_v6 = vunpack.i.h.bf16 %v10515_v56 }
 0x1b5   : > { %v8303_v59 = vpop.permute.xlu0 %8302  ;;  %v10714_v58 = vadd.f32 %v10548_v60, %v942_v50  ;;  %v1415_v37 = vsel %vm1360_vm3, %v1412_v4, %v1414_v1  ;;  %v2656_v47 = vsel %vm2644_vm10, %v2619_v35, %v8290_v51  ;;  %v8314_v60 = vunpack.i.l.bf16 %v10515_v56 }
 0x1b6   : > { %v8305_v3 = vunpack.i.h.bf16 %v8303_v59  ;;  %v8304_v12 = vunpack.i.l.bf16 %v8303_v59  ;;  %v1708_v59 = vrot.slane %v10591_v42, 3  ;;  %v2655_v10 = vsel %vm2644_vm10, %v2618_v52, %v8289_v28 }
 0x1b7   : > { %14055 = vst [vmem:[#allocation10_spill] sm:$0xff] %v10714_v58  ;;  %v10730_v55 = vadd.f32 %v10611_v61, %v943_v41  ;;  %v1417_v18 = vsel %vm1360_vm3, %v1414_v1, %v1416_v22  ;;  %v1707_v50 = vsel %vm1656_vm4, %v1704_v54, %v1706_v34  ;;  %v1232_v35 = vrot.slane %v10588_v16, 1 }
 0x1b8   : > { %v2693_v24 = vsel %vm2681_vm11, %v2656_v47, %v8305_v3  ;;  %v1709_v61 = vsel %vm1656_vm4, %v1706_v34, %v1708_v59  ;;  %v1234_v1 = vrot.slane %v10591_v42, 1  ;;  %v2365_v54 = vrot.slane %v10714_v58, 6 }
 0x1b9   : > { %14056 = vst [vmem:[#allocation11_spill] sm:$0xff] %v10730_v55  ;;  %v8295_v28 = vunpack.i.h.bf16 %v10601_v20  ;;  %v8294_v41 = vunpack.i.l.bf16 %v10601_v20  ;;  %v2367_v34 = vrot.slane %v10730_v55, 6  ;;  %v8320_v47 = vunpack.i.h.bf16 %v10552_v57 }
 0x1ba   : > { %8522 = vrot.lane.b32.xlu1 %v8521_v19, %s14046_s12  ;;  %8527 = vrot.lane.b32.xlu2 %v8501_v17, %s14042_s6  ;;  %v10748_v51 = vpop.f32.mrf.mxu0 }
 0x1bb   : > { %8532 = vrot.lane.b32.xlu0 %v8531_v32, %s14043_s3  ;;  %v2692_v32 = vsel %vm2681_vm11, %v2655_v10, %v8304_v12  ;;  %v8546_v12 = vpack.i.bf16 %v10698_v49, %v10685_v7  ;;  %v8299_v7 = vunpack.i.l.bf16 %v10648_v43  ;;  %v10763_v49 = vpack.i.bf16 %v1417_v18, %v1415_v37 }
 0x1bc   : > { %v8308_v17 = vpop.permute.xlu1 %8307  ;;  %v10716_v9 = vpop.permute.xlu2 %8362  ;;  %v1235_v37 = vsel %vm1178_vm2, %v1232_v35, %v1234_v1 }
 0x1bd   : > { %v8310_v62 = vunpack.i.h.bf16 %v8308_v17  ;;  %v8309_v39 = vunpack.i.l.bf16 %v8308_v17  ;;  %v10724_v19 = vpop.permute.xlu0 %8322  ;;  %v8561_v17 = vpack.i.bf16 %v1709_v61, %v1707_v50 }
 0x1be   : > { %v8324_v18 = vunpack.i.l.bf16 %v10724_v19 }
 0x1bf   : > { %v2729_v4 = vsel %vm2718_vm12, %v2692_v32, %v8309_v39  ;;  %v2730_v26 = vsel %vm2718_vm12, %v2693_v24, %v8310_v62  ;;  %v8319_v62 = vunpack.i.l.bf16 %v10552_v57  ;;  %v2509_v32 = vsel %vm954_vm1, %v9834_v33, %v8294_v41 }
 0x1c0   : > { %v2766_v56 = vsel %vm2755_vm13, %v2729_v4, %v8314_v60  ;;  %v2767_v52 = vsel %vm2755_vm13, %v2730_v26, %v8315_v6  ;;  %v8300_v6 = vunpack.i.h.bf16 %v10648_v43  ;;  %v1893_v43 = vrot.slane %v10730_v55, 4 }
 0x1c1   : > { %v2797_v3 = vpack.c.bf16 %v2767_v52, %v2766_v56  ;;  %v10784_v60 = vsel %vm2315_vm5, %v2363_v13, %v2365_v54  ;;  %v10793_v57 = vsel %vm2315_vm5, %v2365_v54, %v2367_v34  ;;  %v2183_v24 = vrot.slane %v10714_v58, 5 }
 0x1c2   : > { %8537 = vrot.lane.b32.xlu1 %v10626_v31, %s14044_s29  ;;  %8552 = vrot.lane.b32.xlu2 %v8551_v48, %s14047_s10  ;;  %v10770_v31 = vsel %vm1178_vm2, %v1230_v46, %v1232_v35  ;;  %v1891_v48 = vrot.slane %v10714_v58, 4  ;;  %v2510_v46 = vsel %vm954_vm1, %v9888_v14, %v8295_v28  ;;  %v2546_v4 = vsel %vm2533_vm7, %v2509_v32, %v8299_v7  ;;  %v944_v14 = vld [vmem:[%s14040_s1 + $0xf8] sm:$0xff] }
 0x1c3   : > { %8542 = vrot.lane.b32.xlu0 %v10693_v0, %s14048_s11  ;;  %7302 = vmatmul.msk.bf16.gmra.mxu1 %vm2850_vm14, %v2797_v3  ;;  %v2547_v26 = vsel %vm2533_vm7, %v2510_v46, %v8300_v6  ;;  %v8325_v13 = vunpack.i.h.bf16 %v10724_v19  ;;  %v8571_v61 = vpack.i.bf16 %v1235_v37, %v10770_v31  ;;  %v8591_v35 = vpack.i.bf16 %v10793_v57, %v10784_v60  ;;  %v10813_v3 = vpop.f32.mrf.mxu0  ;;  %v945_v6 = vld [vmem:[%s14040_s1 + $0x100] sm:$0xff] }
 0x1c4   : > { %v8328_v20 = vpop.permute.xlu1 %8327  ;;  %v10765_v10 = vpop.permute.xlu2 %8377  ;;  %v1892_v56 = vsel %vm1021_vm0, %v1889_v30, %v1891_v48  ;;  %v1894_v52 = vsel %vm1021_vm0, %v1891_v48, %v1893_v43  ;;  %v2185_v19 = vrot.slane %v10730_v55, 5  ;;  %v1418_v54 = vrot.slane %v10714_v58, 2 }
 0x1c5   : > { %v10776_v39 = vpop.permute.xlu0 %8337  ;;  %v8330_v33 = vunpack.i.h.bf16 %v8328_v20  ;;  %v8329_v50 = vunpack.i.l.bf16 %v8328_v20  ;;  %v2583_v28 = vsel %vm2570_vm8, %v2546_v4, %v8319_v62  ;;  %v2584_v41 = vsel %vm2570_vm8, %v2547_v26, %v8320_v47 }
 0x1c6   : > { %v10819_v30 = vadd.f32 %v10678_v25, %v944_v14  ;;  %v1420_v7 = vrot.slane %v10730_v55, 2  ;;  %v2620_v20 = vsel %vm2607_vm9, %v2583_v28, %v8324_v18  ;;  %v2621_v31 = vsel %vm2607_vm9, %v2584_v41, %v8325_v13 }
 0x1c7   : > { %v10831_v48 = vpack.i.bf16 %v1894_v52, %v1892_v56  ;;  %v10836_v25 = vsel %vm2133_vm6, %v2181_v5, %v2183_v24  ;;  %v2657_v47 = vsel %vm2644_vm10, %v2620_v20, %v8329_v50  ;;  %v2658_v62 = vsel %vm2644_vm10, %v2621_v31, %v8330_v33 }
 0x1c8   : > { %14057 = vst [vmem:[#allocation12_spill] sm:$0xff] %v10819_v30  ;;  %v1710_v32 = vrot.slane %v10714_v58, 3  ;;  %v10846_v18 = vadd.f32 %v10748_v51, %v945_v6  ;;  %v8335_v5 = vunpack.i.h.bf16 %v10595_v15  ;;  %v8334_v14 = vunpack.i.l.bf16 %v10595_v15 }
 0x1c9   : > { %v1712_v28 = vrot.slane %v10730_v55, 3  ;;  %v1238_v51 = vrot.slane %v10730_v55, 1  ;;  %v2369_v6 = vrot.slane %v10819_v30, 6 }
 0x1ca   : > { %8547 = vrot.lane.b32.xlu1 %v8546_v12, %s14049_s7  ;;  %8557 = vrot.lane.b32.xlu2 %v10763_v49, %s14045_s5  ;;  %v8345_v12 = vunpack.i.h.bf16 %v10650_v29  ;;  %14058 = vst [vmem:[#allocation13_spill] sm:$0xff] %v10846_v18 }
 0x1cb   : > { %8562 = vrot.lane.b32.xlu0 %v8561_v17, %s14046_s12  ;;  %v8344_v17 = vunpack.i.l.bf16 %v10650_v29  ;;  %v1236_v29 = vrot.slane %v10714_v58, 1 }
 0x1cc   : > { %v8353_v37 = vpop.permute.xlu1 %8352  ;;  %v10841_v46 = vpop.permute.xlu2 %8387  ;;  %v2695_v52 = vsel %vm2681_vm11, %v2658_v62, %v8345_v12  ;;  %v2186_v12 = vsel %vm2133_vm6, %v2183_v24, %v2185_v19  ;;  %v10878_v24 = vsel %vm954_vm1, %v9890_v8, %v8334_v14  ;;  %v10894_v8 = vsel %vm1656_vm4, %v1710_v32, %v1712_v28 }
 0x1cd   : > { %v8355_v4 = vunpack.i.h.bf16 %v8353_v37  ;;  %v8354_v26 = vunpack.i.l.bf16 %v8353_v37  ;;  %v8348_v13 = vpop.permute.xlu0 %8347  ;;  %v2694_v33 = vsel %vm2681_vm11, %v2657_v47, %v8344_v17  ;;  %v13989_v47 = vrot.slane %v10846_v18, 6 }
 0x1ce   : > { %v8350_v50 = vunpack.i.h.bf16 %v8348_v13  ;;  %v8349_v56 = vunpack.i.l.bf16 %v8348_v13  ;;  %v1419_v37 = vsel %vm1360_vm3, %v1416_v22, %v1418_v54  ;;  %v1895_v17 = vrot.slane %v10819_v30, 4  ;;  %v1119_v13 = vpop.f32.mrf.mxu0 }
 0x1cf   : > { %v1421_v22 = vsel %vm1360_vm3, %v1418_v54, %v1420_v7  ;;  %v10904_v54 = vsel %vm1178_vm2, %v1236_v29, %v1238_v51 }
 0x1d0   : > { %v2731_v41 = vsel %vm2718_vm12, %v2694_v33, %v8349_v56  ;;  %v2732_v20 = vsel %vm2718_vm12, %v2695_v52, %v8350_v50  ;;  %v13986_v50 = vrot.slane %v10846_v18, 5  ;;  %v1422_v56 = vrot.slane %v10819_v30, 2  ;;  %v10924_v33 = vld [vmem:[%s14059_s4] ss:$0 sm:$0xff] }
 0x1d1   : > { %v2768_v15 = vsel %vm2755_vm13, %v2731_v41, %v8354_v26  ;;  %v2769_v31 = vsel %vm2755_vm13, %v2732_v20, %v8355_v4  ;;  %v13988_v4 = vrot.slane %v10846_v18, 4  ;;  %v10874_v26 = vsel %vm954_vm1, %v9976_v21, %v8335_v5 }
 0x1d2   : > { %8567 = vrot.lane.b32.xlu1 %v10693_v0, %s14042_s6  ;;  %8572 = vrot.lane.b32.xlu2 %v8571_v61, %s14043_s3  ;;  %v2798_v62 = vpack.c.bf16 %v2769_v31, %v2768_v15  ;;  %v2917_v0 = vpop.f32.mrf.mxu1  ;;  %v10888_v61 = vsel %vm1656_vm4, %v1708_v59, %v1710_v32  ;;  %v10909_v59 = vsel %vm2315_vm5, %v2367_v34, %v2369_v6  ;;  %v1714_v41 = vrot.slane %v10819_v30, 3  ;;  %v946_v31 = vld [vmem:[%s14040_s1 + $0x108] sm:$0xff] }
 0x1d3   : > { %8577 = vrot.lane.b32.xlu0 %v10763_v49, %s14044_s29  ;;  %v10899_v49 = vsel %vm1178_vm2, %v1234_v1, %v1236_v29  ;;  %v10916_v32 = vsel %vm2315_vm5, %v2369_v6, %v13989_v47  ;;  %v2187_v1 = vrot.slane %v10819_v30, 5  ;;  %v1896_v34 = vsel %vm1021_vm0, %v1893_v43, %v1895_v17 }
 0x1d4   : > { %7303 = vmatmul.msk.bf16.gmra.mxu1 %vm2850_vm14, %v2798_v62  ;;  %v8358_v21 = vpop.permute.xlu1 %8357  ;;  %v10891_v5 = vpop.permute.xlu2 %8407  ;;  %v1898_v52 = vsel %vm1021_vm0, %v1895_v17, %v13988_v4  ;;  %v13985_v29 = vrot.slane %v10846_v18, 2  ;;  %v8586_v20 = vpack.i.bf16 %v2186_v12, %v10836_v25  ;;  %v10935_v6 = vpack.i.bf16 %v1421_v22, %v1419_v37  ;;  %v947_v25 = vld [vmem:[%s14040_s1 + $0x110] sm:$0xff] }
 0x1d5   : > { %v10911_v14 = vpop.permute.xlu0 %8367  ;;  %v13987_v15 = vrot.slane %v10846_v18, 3  ;;  %v8601_v43 = vpack.i.bf16 %v10894_v8, %v10888_v61  ;;  %v10950_v12 = vpack.i.bf16 %v1898_v52, %v1896_v34  ;;  %v10955_v37 = vsel %vm2133_vm6, %v2185_v19, %v2187_v1 }
 0x1d6   : > { %v10960_v22 = vsel %vm2133_vm6, %v2187_v1, %v13986_v50  ;;  %v1423_v61 = vsel %vm1360_vm3, %v1420_v7, %v1422_v56  ;;  %v10966_v8 = vadd.f32 %v10924_v33, %v2917_v0  ;;  %v1425_v19 = vsel %vm1360_vm3, %v1422_v56, %v13985_v29  ;;  %v10986_v60 = vpop.f32.mrf.mxu0 }
 0x1d7   : > { %v10978_v1 = vsel %vm1656_vm4, %v1712_v28, %v1714_v41  ;;  %v8340_v7 = vunpack.i.h.bf16 %v10776_v39  ;;  %v8339_v0 = vunpack.i.l.bf16 %v10776_v39  ;;  %v10984_v34 = vadd.f32 %v10813_v3, %v946_v31 }
 0x1d8   : > { %v10991_v57 = vsel %vm1656_vm4, %v1714_v41, %v13987_v15  ;;  %v8360_v28 = vunpack.i.h.bf16 %v8358_v21  ;;  %v8359_v56 = vunpack.i.l.bf16 %v8358_v21  ;;  %v10998_v39 = vadd.f32 %v1119_v13, %v947_v25 }
 0x1d9   : > { %14060 = vst [vmem:[#allocation14_spill] sm:$0xff] %v10984_v34  ;;  %v8364_v3 = vunpack.i.l.bf16 %v10716_v9  ;;  %v1240_v41 = vrot.slane %v10819_v30, 1  ;;  %v13990_v15 = vrot.slane %v10846_v18, 1  ;;  %v3043_v21 = vmul.f32 %v10966_v8, %v10966_v8 }
 0x1da   : > { %8592 = vrot.lane.b32.xlu1 %v8591_v35, %s14047_s10  ;;  %8582 = vrot.lane.b32.xlu2 %v10831_v48, %s14048_s11  ;;  %v8365_v35 = vunpack.i.h.bf16 %v10716_v9  ;;  %v11007_v17 = vpack.i.bf16 %v1425_v19, %v1423_v61  ;;  %v2549_v9 = vsel %vm2533_vm7, %v10874_v26, %v8340_v7  ;;  %v2548_v25 = vsel %vm2533_vm7, %v10878_v24, %v8339_v0 }
 0x1db   : > { %8587 = vrot.lane.b32.xlu0 %v8586_v20, %s14049_s7  ;;  %v2919_v20 = vpop.f32.mrf.mxu1  ;;  %v2373_v50 = vrot.slane %v10984_v34, 6  ;;  %v2585_v62 = vsel %vm2570_vm8, %v2548_v25, %v8359_v56  ;;  %v2586_v4 = vsel %vm2570_vm8, %v2549_v9, %v8360_v28  ;;  %v13995_v61 = vrot.slane %v10998_v39, 6 }
 0x1dc   : > { %v10994_v52 = vpop.permute.xlu1 %8372  ;;  %v10996_v29 = vpop.permute.xlu2 %8432  ;;  %v11019_v47 = vadd.f32 %v10924_v33, %v2919_v20  ;;  %v11025_v19 = vsel %vm1178_vm2, %v1238_v51, %v1240_v41  ;;  %v11030_v26 = vsel %vm1178_vm2, %v1240_v41, %v13990_v15  ;;  %v1899_v24 = vrot.slane %v10984_v34, 4 }
 0x1dd   : > { %v8393_v31 = vpop.permute.xlu0 %8392  ;;  %v8390_v0 = vunpack.i.h.bf16 %v10841_v46  ;;  %v8389_v28 = vunpack.i.l.bf16 %v10841_v46  ;;  %v3079_v56 = vmul.f32 %v3043_v21, %v10966_v8  ;;  %v2191_v51 = vrot.slane %v10984_v34, 5 }
 0x1de   : > { %v2622_v20 = vsel %vm2607_vm9, %v2585_v62, %v8364_v3  ;;  %v2623_v41 = vsel %vm2607_vm9, %v2586_v4, %v8365_v35  ;;  %v1124_v9 = vpop.f32.mrf.mxu0  ;;  %v14061_v25 = vrot.slane %v10846_v18, 6  ;;  %v8370_v13 = vunpack.i.h.bf16 %v10911_v14 }
 0x1df   : > { %v3044_v62 = vmul.f32 %v11019_v47, %v11019_v47  ;;  %v14062_v21 = vrot.slane %v10846_v18, 4  ;;  %v3115_v30 = vmul.f32 0.044715, %v3079_v56  ;;  %v8394_v16 = vunpack.i.l.bf16 %v8393_v31 }
 0x1e0   : > { %v11048_v46 = vsel %vm2315_vm5, %v14061_v25, %v2373_v50  ;;  %v2660_v42 = vsel %vm2644_vm10, %v2623_v41, %v8370_v13  ;;  %v1718_v41 = vrot.slane %v10984_v34, 3 }
 0x1e1   : > { %v1900_v7 = vsel %vm1021_vm0, %v14062_v21, %v1899_v24  ;;  %v3080_v38 = vmul.f32 %v3044_v62, %v11019_v47 }
 0x1e2   : > { %8597 = vrot.lane.b32.xlu1 %v10935_v6, %s14045_s5  ;;  %8602 = vrot.lane.b32.xlu2 %v8601_v43, %s14046_s12  ;;  %v8369_v43 = vunpack.i.l.bf16 %v10911_v14  ;;  %v14063_v14 = vrot.slane %v10998_v39, 4 }
 0x1e3   : > { %8607 = vrot.lane.b32.xlu0 %v10831_v48, %s14042_s6  ;;  %v11060_v48 = vsel %vm2315_vm5, %v2373_v50, %v13995_v61  ;;  %v1426_v50 = vrot.slane %v10984_v34, 2  ;;  %v8395_v61 = vunpack.i.h.bf16 %v8393_v31  ;;  %v14000_v31 = vrot.slane %v10998_v39, 3 }
 0x1e4   : > { %v8383_v3 = vpop.permute.xlu1 %8382  ;;  %v11055_v4 = vpop.permute.xlu2 %8437  ;;  %v1902_v55 = vsel %vm1021_vm0, %v1899_v24, %v14063_v14  ;;  %v2659_v58 = vsel %vm2644_vm10, %v2622_v20, %v8369_v43  ;;  %v14001_v24 = vrot.slane %v10998_v39, 2 }
 0x1e5   : > { %v8385_v35 = vunpack.i.h.bf16 %v8383_v3  ;;  %v8384_v25 = vunpack.i.l.bf16 %v8383_v3  ;;  %v11062_v15 = vpop.permute.xlu0 %8397 }
 0x1e7   : > { %v2696_v3 = vsel %vm2681_vm11, %v2659_v58, %v8384_v25  ;;  %v2697_v40 = vsel %vm2681_vm11, %v2660_v42, %v8385_v35  ;;  %v8380_v58 = vunpack.i.h.bf16 %v10765_v10  ;;  %v8379_v42 = vunpack.i.l.bf16 %v10765_v10  ;;  %v948_v10 = vld [vmem:[%s14040_s1 + $0x118] sm:$0xff] }
 0x1e8   : > { %v2733_v21 = vsel %vm2718_vm12, %v2696_v3, %v8389_v28  ;;  %v2734_v45 = vsel %vm2718_vm12, %v2697_v40, %v8390_v0  ;;  %v14064_v28 = vpack.i.bf16 %v10904_v54, %v10899_v49  ;;  %v949_v49 = vld [vmem:[%s14040_s1 + $0x120] sm:$0xff]  ;;  %v14067_v35 = vrot.slane %v10998_v39, 5 }
 0x1e9   : > { %v2922_v56 = vpop.f32.mrf.mxu1  ;;  %v2770_v20 = vsel %vm2755_vm13, %v2733_v21, %v8394_v16  ;;  %v2771_v13 = vsel %vm2755_vm13, %v2734_v45, %v8395_v61  ;;  %v8651_v45 = vpack.i.bf16 %v11030_v26, %v11025_v19  ;;  %v3151_v16 = vadd.f32 %v3115_v30, %v10966_v8 }
 0x1ea   : > { %8612 = vrot.lane.b32.xlu1 %v14064_v28, %s14043_s3  ;;  %8617 = vrot.lane.b32.xlu2 %v10935_v6, %s14044_s29  ;;  %v2799_v40 = vpack.c.bf16 %v2771_v13, %v2770_v20  ;;  %v14065_v61 = vpack.i.bf16 %v10916_v32, %v10909_v59  ;;  %v11106_v6 = vpack.i.bf16 %v1902_v55, %v1900_v7  ;;  %v14066_v30 = vrot.slane %v10846_v18, 5 }
 0x1eb   : > { %v11114_v59 = vmul.f32 0.5, %v10966_v8  ;;  %v3116_v32 = vmul.f32 0.044715, %v3080_v38  ;;  %v11124_v55 = vsel %vm2133_vm6, %v2191_v51, %v14067_v35  ;;  %v14068_v7 = vrot.slane %v10846_v18, 2  ;;  %v11131_v8 = vpop.f32.mrf.mxu0 }
 0x1ec   : > { %8632 = vrot.lane.b32.xlu0 %v14065_v61, %s14047_s10  ;;  %v11111_v0 = vsel %vm2133_vm6, %v14066_v30, %v2191_v51  ;;  %v11116_v43 = vpop.permute.xlu1 %8402  ;;  %v11118_v62 = vpop.permute.xlu2 %8452  ;;  %7304 = vmatmul.msk.bf16.gmra.mxu1 %vm2850_vm14, %v2799_v40  ;;  %v1429_v38 = vsel %vm1360_vm3, %v1426_v50, %v14001_v24  ;;  %v14069_v3 = vrot.slane %v10846_v18, 3  ;;  %v11144_v51 = vsel %vm1656_vm4, %v1718_v41, %v14000_v31 }
 0x1ed   : > { %v1427_v25 = vsel %vm1360_vm3, %v14068_v7, %v1426_v50  ;;  %v11129_v14 = vpop.permute.xlu0 %8412  ;;  %v1244_v20 = vrot.slane %v10984_v34, 1  ;;  %v8375_v13 = vunpack.i.h.bf16 %v10994_v52  ;;  %v8374_v28 = vunpack.i.l.bf16 %v10994_v52 }
 0x1ee   : > { %v11139_v21 = vsel %vm1656_vm4, %v14069_v3, %v1718_v41  ;;  %v11150_v40 = vadd.f32 %v10986_v60, %v948_v10  ;;  %v11152_v50 = vadd.f32 %v1124_v9, %v949_v49  ;;  %v3187_v61 = vmul.f32 0.7978846, %v3151_v16 }
 0x1ef   : > { %v3152_v7 = vadd.f32 %v3116_v32, %v11019_v47  ;;  %v11160_v3 = vadd.f32 %v10924_v33, %v2922_v56  ;;  %v11162_v31 = vpack.i.bf16 %v1429_v38, %v1427_v25  ;;  %v14002_v60 = vrot.slane %v10998_v39, 1 }
 0x1f0   : > { %v14070_v9 = vrot.slane %v10846_v18, 1  ;;  %v2514_v10 = vsel %vm954_vm1, %v10078_v44, %v8375_v13  ;;  %v2513_v49 = vsel %vm954_vm1, %v9978_v11, %v8374_v28  ;;  %v14071_v56 = vpack.i.bf16 %v10960_v22, %v10955_v37 }
 0x1f1   : > { %v2377_v32 = vrot.slane %v11150_v40, 6  ;;  %v14003_v25 = vrot.slane %v11152_v50, 6  ;;  %9240 = vtanh.f32 %v3187_v61  ;;  %v2924_v13 = vpop.f32.mrf.mxu1  ;;  %v11189_v11 = vmul.f32 0.5, %v11019_v47 }
 0x1f2   : > { %v11170_v16 = vsel %vm1178_vm2, %v14070_v9, %v1244_v20  ;;  %8622 = vrot.lane.b32.xlu1 %v10950_v12, %s14048_s11  ;;  %8627 = vrot.lane.b32.xlu2 %v14071_v56, %s14049_s7  ;;  %v3188_v28 = vmul.f32 0.7978846, %v3152_v7  ;;  %v8400_v37 = vunpack.i.h.bf16 %v11062_v15  ;;  %v3045_v22 = vmul.f32 %v11160_v3, %v11160_v3 }
 0x1f3   : > { %14072 = vst [vmem:[#allocation15_spill] sm:$0xff] %v11189_v11  ;;  %v11201_v56 = vsel %vm1178_vm2, %v1244_v20, %v14002_v60  ;;  %v2550_v52 = vsel %vm2533_vm7, %v2513_v49, %v8379_v42  ;;  %v2551_v47 = vsel %vm2533_vm7, %v2514_v10, %v8380_v58  ;;  %v8399_v7 = vunpack.i.l.bf16 %v11062_v15  ;;  %v11206_v24 = vpop.f32.mrf.mxu0 }
 0x1f4   : > { %8637 = vrot.lane.b32.xlu0 %v11007_v17, %s14045_s5  ;;  %v11194_v9 = vpop.permute.xlu1 %8417  ;;  %v11196_v61 = vpop.permute.xlu2 %8462  ;;  %v1903_v54 = vrot.slane %v11150_v40, 4  ;;  %v8405_v38 = vunpack.i.h.bf16 %v11116_v43  ;;  %v8404_v44 = vunpack.i.l.bf16 %v11116_v43  ;;  %v14073_v30 = vrot.slane %v10998_v39, 6 }
 0x1f5   : > { %v8423_v41 = vpop.permute.xlu0 %8422  ;;  %v11219_v58 = vsel %vm2315_vm5, %v2377_v32, %v14003_v25  ;;  %v11224_v10 = vadd.f32 %v10924_v33, %v2924_v13  ;;  %9242 = vtanh.f32 %v3188_v28  ;;  %v2588_v49 = vsel %vm2570_vm8, %v2551_v47, %v8400_v37 }
 0x1f6   : > { %v11214_v20 = vsel %vm2315_vm5, %v14073_v30, %v2377_v32  ;;  %v3081_v30 = vmul.f32 %v3045_v22, %v11160_v3  ;;  %v14005_v60 = vrot.slane %v11152_v50, 4  ;;  %v2587_v32 = vsel %vm2570_vm8, %v2550_v52, %v8399_v7 }
 0x1f7   : > { %v11231_v35 = vpop.eup %9240  ;;  %v14074_v13 = vrot.slane %v10998_v39, 4  ;;  %v2195_v43 = vrot.slane %v11150_v40, 5  ;;  %v2624_v28 = vsel %vm2607_vm9, %v2587_v32, %v8404_v44  ;;  %v2625_v37 = vsel %vm2607_vm9, %v2588_v49, %v8405_v38 }
 0x1f8   : > { %v8425_v22 = vunpack.i.h.bf16 %v8423_v41  ;;  %v8424_v47 = vunpack.i.l.bf16 %v8423_v41  ;;  %v14075_v42 = vpack.i.bf16 %v10991_v57, %v10978_v1  ;;  %v11249_v52 = vmul.f32 0.5, %v11160_v3 }
 0x1f9   : > { %v1904_v15 = vsel %vm1021_vm0, %v14074_v13, %v1903_v54  ;;  %v3046_v7 = vmul.f32 %v11224_v10, %v11224_v10  ;;  %v1430_v38 = vrot.slane %v11150_v40, 2  ;;  %v3117_v1 = vmul.f32 0.044715, %v3081_v30 }
 0x1fa   : > { %8642 = vrot.lane.b32.xlu1 %v14075_v42, %s14046_s12  ;;  %8647 = vrot.lane.b32.xlu2 %v10950_v12, %s14042_s6  ;;  %v8455_v57 = vunpack.i.h.bf16 %v11118_v62  ;;  %v1906_v42 = vsel %vm1021_vm0, %v1903_v54, %v14005_v60  ;;  %v14076_v32 = vunpack.i.l.bf16 %v10891_v5  ;;  %v14077_v26 = vunpack.i.h.bf16 %v10891_v5 }
 0x1fb   : > { %v11274_v41 = vpop.f32.mrf.mxu0  ;;  %v11276_v18 = vpop.eup %9242  ;;  %v8454_v54 = vunpack.i.l.bf16 %v11118_v62  ;;  %v8415_v60 = vunpack.i.h.bf16 %v11129_v14  ;;  %v8414_v5 = vunpack.i.l.bf16 %v11129_v14  ;;  %v14079_v34 = vunpack.i.l.bf16 %v10996_v29 }
 0x1fc   : > { %8652 = vrot.lane.b32.xlu0 %v8651_v45, %s14043_s3  ;;  %v8428_v44 = vpop.permute.xlu1 %8427  ;;  %v11260_v12 = vpop.permute.xlu2 %8482  ;;  %v2661_v19 = vsel %vm2644_vm10, %v2624_v28, %v14076_v32  ;;  %v2662_v45 = vsel %vm2644_vm10, %v2625_v37, %v14077_v26  ;;  %14078 = vst [vmem:[#allocation16_spill] sm:$0xff] %v11276_v18  ;;  %v3082_v37 = vmul.f32 %v3046_v7, %v11224_v10  ;;  %v14080_v62 = vunpack.i.h.bf16 %v10996_v29 }
 0x1fd   : > { %v8430_v30 = vunpack.i.h.bf16 %v8428_v44  ;;  %v8429_v13 = vunpack.i.l.bf16 %v8428_v44  ;;  %v11272_v25 = vpop.permute.xlu0 %8442  ;;  %v2698_v49 = vsel %vm2681_vm11, %v2661_v19, %v8424_v47  ;;  %v2699_v28 = vsel %vm2681_vm11, %v2662_v45, %v8425_v22 }
 0x1fe   : > { %v14081_v47 = vrot.slane %v10998_v39, 5  ;;  %v14082_v14 = vrot.slane %v11152_v50, 5  ;;  %v1722_v29 = vrot.slane %v11150_v40, 3  ;;  %v11309_v45 = vsel %vm954_vm1, %v10278_v53, %v8455_v57 }
 0x1ff   : > { %v2735_v44 = vsel %vm2718_vm12, %v2698_v49, %v8429_v13  ;;  %v2736_v32 = vsel %vm2718_vm12, %v2699_v28, %v8430_v30  ;;  %v3153_v49 = vadd.f32 %v3117_v1, %v11160_v3  ;;  %v8420_v30 = vunpack.i.h.bf16 %v11194_v9 }
 0x200   : > { %v2927_v26 = vpop.f32.mrf.mxu1  ;;  %v2772_v11 = vsel %vm2755_vm13, %v2735_v44, %v14079_v34  ;;  %v2773_v18 = vsel %vm2755_vm13, %v2736_v32, %v14080_v62  ;;  %v11295_v22 = vsel %vm2133_vm6, %v14081_v47, %v2195_v43  ;;  %v11300_v7 = vsel %vm2133_vm6, %v2195_v43, %v14082_v14 }
 0x201   : > { %v11304_v19 = vadd.f32 %v10924_v33, %v2927_v26  ;;  %v2800_v34 = vpack.c.bf16 %v2773_v18, %v2772_v11  ;;  %v8419_v13 = vunpack.i.l.bf16 %v11194_v9  ;;  %v14083_v3 = vpack.i.bf16 %v11060_v48, %v11048_v46 }
 0x202   : > { %8657 = vrot.lane.b32.xlu1 %v11007_v17, %s14044_s29  ;;  %v11319_v43 = vpack.i.bf16 %v1906_v42, %v1904_v15  ;;  %v11323_v18 = vsel %vm954_vm1, %v10169_v36, %v8454_v54  ;;  %v2516_v53 = vsel %vm954_vm1, %v10167_v23, %v8415_v60  ;;  %v3118_v11 = vmul.f32 0.044715, %v3082_v37  ;;  %v950_v17 = vld [vmem:[%s14040_s1 + $0x128] sm:$0xff]  ;;  %v951_v36 = vld [vmem:[%s14040_s1 + $0x130] sm:$0xff] }
 0x203   : > { %8672 = vrot.lane.b32.xlu2 %v14083_v3, %s14047_s10  ;;  %v3047_v9 = vmul.f32 %v11304_v19, %v11304_v19  ;;  %7305 = vmatmul.msk.bf16.gmra.mxu1 %vm2850_vm14, %v2800_v34  ;;  %v2515_v23 = vsel %vm954_vm1, %v10087_v2, %v8414_v5  ;;  %v8706_v60 = vpack.i.bf16 %v11300_v7, %v11295_v22  ;;  %v14084_v15 = vrot.slane %v10998_v39, 2  ;;  %v11357_v5 = vpop.f32.mrf.mxu0 }
 0x204   : > { %8662 = vrot.lane.b32.xlu0 %v11106_v6, %s14048_s11  ;;  %v8448_v46 = vpop.permute.xlu1 %8447  ;;  %v11340_v48 = vpop.permute.xlu2 %8497  ;;  %v14085_v57 = vrot.slane %v11152_v50, 2  ;;  %v3189_v54 = vmul.f32 0.7978846, %v3153_v49  ;;  %v14086_v37 = vrot.slane %v10998_v39, 3  ;;  %v14007_v32 = vrot.slane %v11152_v50, 3 }
 0x205   : > { %v11347_v1 = vsel %vm1360_vm3, %v14084_v15, %v1430_v38  ;;  %v3083_v28 = vmul.f32 %v3047_v9, %v11304_v19  ;;  %v11355_v2 = vpop.permute.xlu0 %8457  ;;  %v2552_v26 = vsel %vm2533_vm7, %v2515_v23, %v8419_v13  ;;  %v2553_v62 = vsel %vm2533_vm7, %v2516_v53, %v8420_v30 }
 0x206   : > { %v11352_v42 = vsel %vm1360_vm3, %v1430_v38, %v14085_v57  ;;  %v11362_v44 = vsel %vm1656_vm4, %v14086_v37, %v1722_v29  ;;  %v11368_v38 = vadd.f32 %v11131_v8, %v950_v17  ;;  %v11371_v47 = vadd.f32 %v11206_v24, %v951_v36 }
 0x207   : > { %v3154_v14 = vadd.f32 %v3118_v11, %v11224_v10  ;;  %v8445_v49 = vunpack.i.h.bf16 %v11272_v25  ;;  %v8444_v34 = vunpack.i.l.bf16 %v11272_v25  ;;  %v3119_v3 = vmul.f32 0.044715, %v3083_v28 }
 0x208   : > { %v8465_v9 = vunpack.i.h.bf16 %v11196_v61  ;;  %v8464_v15 = vunpack.i.l.bf16 %v11196_v61  ;;  %v8450_v13 = vunpack.i.h.bf16 %v8448_v46  ;;  %v8449_v23 = vunpack.i.l.bf16 %v8448_v46  ;;  %v2929_v30 = vpop.f32.mrf.mxu1 }
 0x209   : > { %9244 = vtanh.f32 %v3189_v54  ;;  %v14087_v8 = vunpack.i.l.bf16 %v11055_v4  ;;  %v3155_v53 = vadd.f32 %v3119_v3, %v11304_v19  ;;  %v11383_v11 = vadd.f32 %v10924_v33, %v2929_v30 }
 0x20a   : > { %v14088_v25 = vunpack.i.h.bf16 %v11055_v4  ;;  %v14089_v61 = vpack.i.bf16 %v11124_v55, %v11111_v0  ;;  %v11397_v36 = vsel %vm1656_vm4, %v1722_v29, %v14007_v32  ;;  %v1907_v46 = vrot.slane %v11368_v38, 4 }
 0x20b   : > { %v2589_v24 = vsel %vm2570_vm8, %v2552_v26, %v14087_v8  ;;  %8677 = vrot.lane.b32.xlu2 %v11162_v31, %s14045_s5  ;;  %v14010_v57 = vrot.slane %v11371_v47, 4  ;;  %v3190_v4 = vmul.f32 0.7978846, %v3154_v14  ;;  %v3048_v0 = vmul.f32 %v11383_v11, %v11383_v11 }
 0x20c   : > { %v2590_v17 = vsel %vm2570_vm8, %v2553_v62, %v14088_v25  ;;  %8667 = vrot.lane.b32.xlu1 %v14089_v61, %s14049_s7  ;;  %v2626_v54 = vsel %vm2607_vm9, %v2589_v24, %v8444_v34  ;;  %v14090_v55 = vpack.i.bf16 %v11144_v51, %v11139_v21  ;;  %v3191_v37 = vmul.f32 0.7978846, %v3155_v53  ;;  %v8473_v62 = vpop.permute.xlu1 %8472  ;;  %v11411_v3 = vpop.permute.xlu2 %8507 }
 0x20d   : > { %v2627_v28 = vsel %vm2607_vm9, %v2590_v17, %v8445_v49  ;;  %v2663_v29 = vsel %vm2644_vm10, %v2626_v54, %v8449_v23  ;;  %v2199_v14 = vrot.slane %v11368_v38, 5  ;;  %v3084_v49 = vmul.f32 %v3048_v0, %v11383_v11  ;;  %v8468_v8 = vpop.permute.xlu0 %8467  ;;  %v1136_v25 = vpop.f32.mrf.mxu0 }
 0x20e   : > { %8682 = vrot.lane.b32.xlu0 %v14090_v55, %s14046_s12  ;;  %v2664_v26 = vsel %vm2644_vm10, %v2627_v28, %v8450_v13  ;;  %v8475_v34 = vunpack.i.h.bf16 %v8473_v62  ;;  %v8474_v30 = vunpack.i.l.bf16 %v8473_v62  ;;  %v14009_v24 = vrot.slane %v11371_v47, 5 }
 0x20f   : > { %v8470_v21 = vunpack.i.h.bf16 %v8468_v8  ;;  %v8469_v51 = vunpack.i.l.bf16 %v8468_v8  ;;  %v2381_v53 = vrot.slane %v11368_v38, 6  ;;  %v14008_v23 = vrot.slane %v11371_v47, 6  ;;  %v9245_v13 = vpop.eup %9244 }
 0x210   : > { %9246 = vtanh.f32 %v3190_v4  ;;  %v3120_v17 = vmul.f32 0.044715, %v3084_v49  ;;  %v2700_v61 = vsel %vm2681_vm11, %v2663_v29, %v8464_v15  ;;  %v2701_v54 = vsel %vm2681_vm11, %v2664_v26, %v8465_v9 }
 0x211   : > { %9248 = vtanh.f32 %v3191_v37  ;;  %v2737_v28 = vsel %vm2718_vm12, %v2700_v61, %v8469_v51  ;;  %v2738_v0 = vsel %vm2718_vm12, %v2701_v54, %v8470_v21  ;;  %v14091_v55 = vrot.slane %v11152_v50, 4  ;;  %v2932_v25 = vpop.f32.mrf.mxu1 }
 0x212   : > { %v3156_v8 = vadd.f32 %v3120_v17, %v11383_v11  ;;  %v2774_v32 = vsel %vm2755_vm13, %v2737_v28, %v8474_v30  ;;  %v2775_v4 = vsel %vm2755_vm13, %v2738_v0, %v8475_v34  ;;  %v1910_v9 = vsel %vm1021_vm0, %v1907_v46, %v14010_v57 }
 0x213   : > { %v1908_v62 = vsel %vm1021_vm0, %v14091_v55, %v1907_v46  ;;  %v11432_v15 = vadd.f32 %v10924_v33, %v2932_v25  ;;  %v14092_v37 = vpack.i.bf16 %v11201_v56, %v11170_v16  ;;  %v2801_v29 = vpack.c.bf16 %v2775_v4, %v2774_v32 }
 0x214   : > { %8687 = vrot.lane.b32.xlu1 %v11106_v6, %s14042_s6  ;;  %v14093_v26 = vrot.slane %v11152_v50, 5  ;;  %v1248_v34 = vrot.slane %v11150_v40, 1  ;;  %v3192_v46 = vmul.f32 0.7978846, %v3156_v8  ;;  %v11451_v6 = vsel %vm2133_vm6, %v2199_v14, %v14009_v24  ;;  %v11466_v21 = vpop.permute.xlu2 %8527 }
 0x215   : > { %8692 = vrot.lane.b32.xlu2 %v14092_v37, %s14043_s3  ;;  %v14094_v16 = vrot.slane %v11152_v50, 6  ;;  %v11461_v32 = vsel %vm2315_vm5, %v2381_v53, %v14008_v23  ;;  %v3049_v30 = vmul.f32 %v11432_v15, %v11432_v15  ;;  %7306 = vmatmul.msk.bf16.gmra.mxu1 %vm2850_vm14, %v2801_v29  ;;  %v8721_v51 = vpack.i.bf16 %v11397_v36, %v11362_v44 }
 0x216   : > { %v11443_v49 = vsel %vm2133_vm6, %v14093_v26, %v2199_v14  ;;  %8697 = vrot.lane.b32.xlu0 %v11162_v31, %s14044_s29  ;;  %v8478_v31 = vpop.permute.xlu1 %8477  ;;  %v11470_v14 = vpack.i.bf16 %v11352_v42, %v11347_v1  ;;  %v9247_v17 = vpop.eup %9246  ;;  %v8485_v61 = vunpack.i.h.bf16 %v11260_v12  ;;  %9250 = vtanh.f32 %v3192_v46  ;;  %v952_v26 = vld [vmem:[%s14040_s1 + $0x138] sm:$0xff] }
 0x217   : > { %v11456_v56 = vsel %vm2315_vm5, %v14094_v16, %v2381_v53  ;;  %v11475_v53 = vpop.permute.xlu0 %8487  ;;  %v11477_v54 = vpack.i.bf16 %v1910_v9, %v1908_v62  ;;  %v1250_v28 = vrot.slane %v11152_v50, 1  ;;  %v9249_v0 = vpop.eup %9248  ;;  %v8484_v55 = vunpack.i.l.bf16 %v11260_v12 }
 0x218   : > { %v3085_v8 = vmul.f32 %v3049_v30, %v11432_v15  ;;  %v8741_v1 = vpack.i.bf16 %v11451_v6, %v11443_v49  ;;  %v14095_v25 = vrot.slane %v10998_v39, 1  ;;  %v1544_v62 = vrot.slane %v11368_v38, 2 }
 0x219   : > { %v1546_v9 = vrot.slane %v11371_v47, 2  ;;  %v3011_v37 = vmul.f32 0.5, %v11304_v19  ;;  %v3262_v16 = vadd.f32 1.0, %v9247_v17  ;;  %v8459_v30 = vunpack.i.l.bf16 %v11355_v2  ;;  %v2934_v23 = vpop.f32.mrf.mxu1 }
 0x21a   : > { %v11489_v4 = vsel %vm1178_vm2, %v14095_v25, %v1248_v34  ;;  %v3121_v29 = vmul.f32 0.044715, %v3085_v8  ;;  %v11500_v25 = vsel %vm1178_vm2, %v1248_v34, %v1250_v28  ;;  %v3263_v57 = vadd.f32 1.0, %v9249_v0 }
 0x21b   : > { %v11505_v19 = vadd.f32 %v10924_v33, %v2934_v23  ;;  %v14096_v8 = vpack.i.bf16 %v11219_v58, %v11214_v20  ;;  %v3010_v17 = vmul.f32 0.5, %v11224_v10  ;;  %v3261_v34 = vadd.f32 1.0, %v9245_v13 }
 0x21c   : > { %v3157_v42 = vadd.f32 %v3121_v29, %v11432_v15  ;;  %v9251_v28 = vpop.eup %9250  ;;  %v8460_v24 = vunpack.i.h.bf16 %v11355_v2  ;;  %v8480_v0 = vunpack.i.h.bf16 %v8478_v31  ;;  %v8479_v46 = vunpack.i.l.bf16 %v8478_v31  ;;  %v11526_v10 = vpop.permute.xlu2 %8552  ;;  %v953_v2 = vld [vmem:[%s14040_s1 + $0x140] sm:$0xff]  ;;  %s14130_s1 = sld [smem:[#allocation4_spill]] }
 0x21d   : > { %8712 = vrot.lane.b32.xlu1 %v14096_v8, %s14047_s10  ;;  %8702 = vrot.lane.b32.xlu2 %v11319_v43, %s14048_s11  ;;  %v11516_v29 = vadd.f32 %v11274_v41, %v952_v26  ;;  %v3050_v58 = vmul.f32 %v11505_v19, %v11505_v19  ;;  %v3264_v13 = vadd.f32 1.0, %v9251_v28  ;;  %v11531_v41 = vmul.f32 %v3262_v16, %v3010_v17 }
 0x21e   : > { %8707 = vrot.lane.b32.xlu0 %v8706_v60, %s14049_s7  ;;  %v3193_v20 = vmul.f32 0.7978846, %v3157_v42  ;;  %v11524_v23 = vpop.permute.xlu1 %8492  ;;  %v14097_v26 = vrot.slane %v11152_v50, 2  ;;  %v11539_v7 = vsel %vm1360_vm3, %v1544_v62, %v1546_v9  ;;  %v3012_v60 = vmul.f32 0.5, %v11383_v11 }
 0x21f   : > { %v8513_v31 = vpop.permute.xlu0 %8512  ;;  %v11542_v42 = vmul.f32 %v3263_v57, %v3011_v37  ;;  %v2554_v8 = vsel %vm2533_vm7, %v11323_v18, %v8459_v30  ;;  %v3086_v16 = vmul.f32 %v3050_v58, %v11505_v19  ;;  %v3297_v17 = vmul.f32 %v3261_v34, %v11249_v52 }
 0x220   : > { %v11536_v22 = vsel %vm1360_vm3, %v14097_v26, %v1544_v62  ;;  %9252 = vtanh.f32 %v3193_v20  ;;  %v2555_v28 = vsel %vm2533_vm7, %v11309_v45, %v8460_v24  ;;  %v2591_v26 = vsel %vm2570_vm8, %v2554_v8, %v8479_v46 }
 0x221   : > { %v11552_v62 = vadd.f32 %v11357_v5, %v953_v2  ;;  %v11554_v9 = vmul.f32 %v3264_v13, %v3012_v60  ;;  %v2592_v11 = vsel %vm2570_vm8, %v2555_v28, %v8480_v0  ;;  %v3122_v57 = vmul.f32 0.044715, %v3086_v16 }
 0x222   : > { %v2021_v18 = vrot.slane %v11516_v29, 4  ;;  %v3366_v37 = vrot.slane %v11531_v41, 2  ;;  %v8510_v30 = vunpack.i.h.bf16 %v11411_v3  ;;  %v3368_v52 = vrot.slane %v11542_v42, 2 }
 0x223   : > { %v3370_v45 = vrot.slane %v11554_v9, 2  ;;  %v3259_v24 = vadd.f32 1.0, %v11231_v35  ;;  %v8509_v5 = vunpack.i.l.bf16 %v11411_v3  ;;  %v2628_v46 = vsel %vm2607_vm9, %v2591_v26, %v8484_v55 }
 0x224   : > { %v3158_v34 = vadd.f32 %v3122_v57, %v11505_v19  ;;  %v3365_v0 = vrot.slane %v3297_v17, 2  ;;  %v3013_v20 = vmul.f32 0.5, %v11432_v15  ;;  %v8489_v58 = vunpack.i.l.bf16 %v11475_v53  ;;  %v11585_v55 = vpop.permute.xlu2 %8557 }
 0x225   : > { %8717 = vrot.lane.b32.xlu1 %v11470_v14, %s14045_s5  ;;  %8722 = vrot.lane.b32.xlu2 %v8721_v51, %s14046_s12  ;;  %v2629_v35 = vsel %vm2607_vm9, %v2592_v11, %v8485_v61  ;;  %v3371_v3 = vsel %vm1360_vm3, %v3368_v52, %v3370_v45  ;;  %v8490_v36 = vunpack.i.h.bf16 %v11475_v53  ;;  %v3295_v8 = vmul.f32 %v3259_v24, %v11114_v59 }
 0x226   : > { %8727 = vrot.lane.b32.xlu0 %v11319_v43, %s14042_s6  ;;  %v9253_v44 = vpop.eup %9252  ;;  %v3194_v51 = vmul.f32 0.7978846, %v3158_v34  ;;  %v8503_v15 = vpop.permute.xlu1 %8502  ;;  %v11587_v2 = vmax.f32 %v3297_v17, %v3371_v3  ;;  %v3367_v12 = vsel %vm1360_vm3, %v3365_v0, %v3366_v37  ;;  %v2665_v43 = vsel %vm2644_vm10, %v2628_v46, %v8489_v58 }
 0x227   : > { %v8505_v61 = vunpack.i.h.bf16 %v8503_v15  ;;  %v8504_v13 = vunpack.i.l.bf16 %v8503_v15  ;;  %v11593_v60 = vpop.permute.xlu0 %8517  ;;  %v2666_v53 = vsel %vm2644_vm10, %v2629_v35, %v8490_v36  ;;  %v8515_v16 = vunpack.i.h.bf16 %v8513_v31 }
 0x228   : > { %9254 = vtanh.f32 %v3194_v51  ;;  %v3265_v28 = vadd.f32 1.0, %v9253_v44  ;;  %v8514_v26 = vunpack.i.l.bf16 %v8513_v31  ;;  %v11599_v57 = vmax.f32 %v3295_v8, %v3367_v12 }
 0x229   : > { %v2702_v17 = vsel %vm2681_vm11, %v2665_v43, %v8504_v13  ;;  %v2703_v11 = vsel %vm2681_vm11, %v2666_v53, %v8505_v61  ;;  %v2203_v46 = vrot.slane %v11516_v29, 5  ;;  %v2023_v34 = vrot.slane %v11552_v62, 4  ;;  %v2937_v58 = vpop.f32.mrf.mxu1 }
 0x22a   : > { %v2739_v0 = vsel %vm2718_vm12, %v2702_v17, %v8509_v5  ;;  %v2740_v59 = vsel %vm2718_vm12, %v2703_v11, %v8510_v30  ;;  %v2205_v24 = vrot.slane %v11552_v62, 5  ;;  %v11608_v3 = vmul.f32 %v3265_v28, %v3013_v20 }
 0x22b   : > { %v2776_v35 = vsel %vm2755_vm13, %v2739_v0, %v8514_v26  ;;  %v2777_v31 = vsel %vm2755_vm13, %v2740_v59, %v8515_v16  ;;  %v2385_v44 = vrot.slane %v11516_v29, 6  ;;  %v2387_v36 = vrot.slane %v11552_v62, 6 }
 0x22c   : > { %v11613_v51 = vadd.f32 %v10924_v33, %v2937_v58  ;;  %v2802_v30 = vpack.c.bf16 %v2777_v31, %v2776_v35  ;;  %v8500_v5 = vunpack.i.h.bf16 %v11340_v48  ;;  %v8499_v20 = vunpack.i.l.bf16 %v11340_v48 }
 0x22d   : > { %8732 = vrot.lane.b32.xlu1 %v11477_v54, %s14048_s11  ;;  %8742 = vrot.lane.b32.xlu2 %v8741_v1, %s14049_s7  ;;  %v14098_v62 = vpack.i.bf16 %v11461_v32, %v11456_v56  ;;  %v14099_v15 = vrot.slane %v11368_v38, 3  ;;  %v14100_v12 = vrot.slane %v11152_v50, 3  ;;  %v11638_v1 = vpop.permute.xlu2 %8572  ;;  %v14101_v48 = vrot.slane %v11371_v47, 3 }
 0x22e   : > { %v9255_v61 = vpop.eup %9254  ;;  %v3051_v49 = vmul.f32 %v11613_v51, %v11613_v51  ;;  %v11636_v6 = vpop.permute.xlu1 %8522  ;;  %7307 = vmatmul.msk.bf16.gmra.mxu1 %vm2850_vm14, %v2802_v30  ;;  %v14103_v50 = vrot.slane %v11371_v47, 4  ;;  %v11658_v8 = vsel %vm1021_vm0, %v2021_v18, %v2023_v34  ;;  %v8494_v53 = vunpack.i.l.bf16 %v11524_v23 }
 0x22f   : > { %8752 = vrot.lane.b32.xlu0 %v14098_v62, %s14047_s10  ;;  %v11632_v43 = vsel %vm1656_vm4, %v14100_v12, %v14099_v15  ;;  %v14102_v56 = vmov %v14099_v15  ;;  %v11661_v16 = vpop.permute.xlu0 %8532  ;;  %v14104_v38 = vrot.slane %v11371_v47, 5  ;;  %v11669_v26 = vsel %vm2133_vm6, %v2203_v46, %v2205_v24  ;;  %v14106_v12 = vld [vmem:[#allocation16_spill] sm:$0xff] }
 0x230   : > { %v11646_v32 = vsel %vm1656_vm4, %v14102_v56, %v14101_v48  ;;  %v11653_v13 = vsel %vm1021_vm0, %v14103_v50, %v2021_v18  ;;  %v3372_v17 = vrot.slane %v11608_v3, 2  ;;  %v3087_v11 = vmul.f32 %v3051_v49, %v11613_v51 }
 0x231   : > { %v11666_v28 = vsel %vm2133_vm6, %v14104_v38, %v2203_v46  ;;  %v14105_v29 = vrot.slane %v11371_v47, 6  ;;  %v11679_v34 = vsel %vm2315_vm5, %v2385_v44, %v2387_v36  ;;  %v3266_v0 = vadd.f32 1.0, %v9255_v61  ;;  %v2939_v36 = vpop.f32.mrf.mxu1 }
 0x232   : > { %v8495_v59 = vunpack.i.h.bf16 %v11524_v23  ;;  %v8736_v58 = vpack.i.bf16 %v11500_v25, %v11489_v4  ;;  %v8756_v46 = vpack.i.bf16 %v11539_v7, %v11536_v22  ;;  %v3014_v24 = vmul.f32 0.5, %v11505_v19 }
 0x233   : > { %v11676_v18 = vsel %vm2315_vm5, %v14105_v29, %v2385_v44  ;;  %v3123_v35 = vmul.f32 0.044715, %v3087_v11  ;;  %v8761_v47 = vpack.i.bf16 %v11646_v32, %v11632_v43  ;;  %v8771_v31 = vpack.i.bf16 %v11658_v8, %v11653_v13  ;;  %v14107_v29 = vld [vmem:[#allocation15_spill] sm:$0xff] }
 0x234   : > { %v8776_v44 = vpack.i.bf16 %v11669_v26, %v11666_v28  ;;  %v2519_v23 = vsel %vm954_vm1, %v10294_v63, %v8494_v53  ;;  %v8781_v4 = vpack.i.bf16 %v11679_v34, %v11676_v18  ;;  %v11697_v25 = vmul.f32 %v3266_v0, %v3014_v24  ;;  %v14108_v26 = vld [vmem:[#allocation6_spill] sm:$0xff] }
 0x235   : > { %v3373_v19 = vsel %vm1360_vm3, %v3370_v45, %v3372_v17  ;;  %v8530_v22 = vunpack.i.h.bf16 %v11466_v21  ;;  %v3159_v7 = vadd.f32 %v3123_v35, %v11613_v51  ;;  %v11705_v30 = vadd.f32 %v10924_v33, %v2939_v36  ;;  %8737 = vrot.lane.b32.xlu1 %v8736_v58, %s14043_s3  ;;  %8747 = vrot.lane.b32.xlu2 %v11470_v14, %s14044_s29  ;;  %v11724_v48 = vpop.permute.xlu2 %8582 }
 0x236   : > { %v11711_v63 = vmax.f32 %v11531_v41, %v3373_v19  ;;  %v2520_v62 = vsel %vm954_vm1, %v10421_v27, %v8495_v59  ;;  %v8520_v45 = vunpack.i.h.bf16 %v11593_v60  ;;  %v3374_v15 = vrot.slane %v11697_v25, 2  ;;  %v11722_v49 = vpop.permute.xlu1 %8537 }
 0x237   : > { %8757 = vrot.lane.b32.xlu0 %v8756_v46, %s14045_s5  ;;  %v3260_v33 = vadd.f32 1.0, %v14106_v12  ;;  %v8519_v43 = vunpack.i.l.bf16 %v11593_v60  ;;  %v3195_v61 = vmul.f32 0.7978846, %v3159_v7  ;;  %v3052_v14 = vmul.f32 %v11705_v30, %v11705_v30  ;;  %v8543_v13 = vpop.permute.xlu0 %8542 }
 0x238   : > { %v3539_v27 = vrot.slane %v11711_v63, 1  ;;  %v8529_v56 = vunpack.i.l.bf16 %v11466_v21  ;;  %v2556_v32 = vsel %vm2533_vm7, %v2519_v23, %v8499_v20  ;;  %v8524_v50 = vunpack.i.l.bf16 %v11636_v6 }
 0x239   : > { %v3537_v8 = vrot.slane %v11587_v2, 1  ;;  %9256 = vtanh.f32 %v3195_v61  ;;  %v8525_v60 = vunpack.i.h.bf16 %v11636_v6  ;;  %v3088_v53 = vmul.f32 %v3052_v14, %v11705_v30 }
 0x23a   : > { %v3369_v38 = vsel %vm1360_vm3, %v3366_v37, %v3368_v52  ;;  %v2557_v21 = vsel %vm2533_vm7, %v2520_v62, %v8500_v5  ;;  %v3375_v20 = vsel %vm1360_vm3, %v3372_v17, %v3374_v15  ;;  %v3296_v0 = vmul.f32 %v3260_v33, %v14107_v29 }
 0x23b   : > { %v3540_v11 = vsel %vm1178_vm2, %v3537_v8, %v3539_v27  ;;  %v8555_v6 = vunpack.i.h.bf16 %v11526_v10  ;;  %v2594_v59 = vsel %vm2570_vm8, %v2557_v21, %v8520_v45  ;;  %v2593_v58 = vsel %vm2570_vm8, %v2556_v32, %v8519_v43 }
 0x23c   : > { %v3124_v46 = vmul.f32 0.044715, %v3088_v53  ;;  %v2630_v41 = vsel %vm2607_vm9, %v2593_v58, %v8524_v50  ;;  %v11749_v37 = vmax.f32 %v11542_v42, %v3375_v20  ;;  %v3637_v52 = vmax.f32 %v11587_v2, %v3540_v11  ;;  %v11786_v11 = vld [vmem:[%s14059_s4] ss:$0 sm:$0xff] }
 0x23d   : > { %v11752_v5 = vmax.f32 %v3296_v0, %v3369_v38  ;;  %v2631_v17 = vsel %vm2607_vm9, %v2594_v59, %v8525_v60  ;;  %v8545_v35 = vunpack.i.h.bf16 %v8543_v13  ;;  %v8544_v23 = vunpack.i.l.bf16 %v8543_v13  ;;  %8762 = vrot.lane.b32.xlu1 %v8761_v47, %s14046_s12  ;;  %8767 = vrot.lane.b32.xlu2 %v11477_v54, %s14042_s6  ;;  %v11767_v54 = vpop.permute.xlu2 %8602 }
 0x23e   : > { %v3160_v24 = vadd.f32 %v3124_v46, %v11705_v30  ;;  %v8554_v36 = vunpack.i.l.bf16 %v11526_v10  ;;  %v3541_v42 = vrot.slane %v11749_v37, 1  ;;  %v3534_v2 = vrot.slane %v11599_v57, 1  ;;  %v8548_v33 = vpop.permute.xlu1 %8547 }
 0x23f   : > { %8772 = vrot.lane.b32.xlu0 %v8771_v31, %s14048_s11  ;;  %v3535_v19 = vrot.slane %v11752_v5, 1  ;;  %v9257_v7 = vpop.eup %9256  ;;  %v3015_v62 = vmul.f32 0.5, %v11613_v51  ;;  %v8535_v45 = vunpack.i.h.bf16 %v11661_v16  ;;  %v8534_v47 = vunpack.i.l.bf16 %v11661_v16  ;;  %v8563_v14 = vpop.permute.xlu0 %8562 }
 0x240   : > { %v3196_v12 = vmul.f32 0.7978846, %v3160_v24  ;;  %v2667_v10 = vsel %vm2644_vm10, %v2630_v41, %v8529_v56  ;;  %v2668_v31 = vsel %vm2644_vm10, %v2631_v17, %v8530_v22  ;;  %v8550_v43 = vunpack.i.h.bf16 %v8548_v33  ;;  %v2942_v38 = vpop.f32.mrf.mxu1  ;;  %v14109_v41 = vld [vmem:[#allocation5_spill] sm:$0xff] }
 0x241   : > { %v8549_v61 = vunpack.i.l.bf16 %v8548_v33  ;;  %v2704_v32 = vsel %vm2681_vm11, %v2667_v10, %v8544_v23  ;;  %v2705_v51 = vsel %vm2681_vm11, %v2668_v31, %v8545_v35  ;;  %v3267_v50 = vadd.f32 1.0, %v9257_v7 }
 0x242   : > { %9258 = vtanh.f32 %v3196_v12  ;;  %v2742_v16 = vsel %vm2718_vm12, %v2705_v51, %v8550_v43  ;;  %v3542_v60 = vsel %vm1178_vm2, %v3539_v27, %v3541_v42  ;;  %v3536_v56 = vsel %vm1178_vm2, %v3534_v2, %v3535_v19 }
 0x243   : > { %v2741_v13 = vsel %vm2718_vm12, %v2704_v32, %v8549_v61  ;;  %v8540_v22 = vunpack.i.h.bf16 %v11722_v49  ;;  %v8539_v53 = vunpack.i.l.bf16 %v11722_v49  ;;  %v2779_v20 = vsel %vm2755_vm13, %v2742_v16, %v8555_v6 }
 0x244   : > { %v2778_v21 = vsel %vm2755_vm13, %v2741_v13, %v8554_v36  ;;  %v11789_v29 = vadd.f32 %v11786_v11, %v2942_v38  ;;  %v11791_v0 = vmul.f32 %v3267_v50, %v3015_v62  ;;  %v3638_v59 = vmax.f32 %v11711_v63, %v3542_v60 }
 0x245   : > { %v2803_v27 = vpack.c.bf16 %v2779_v20, %v2778_v21  ;;  %8777 = vrot.lane.b32.xlu1 %v8776_v44, %s14049_s7  ;;  %8782 = vrot.lane.b32.xlu2 %v8781_v4, %s14047_s10  ;;  %v3538_v49 = vsel %vm1178_vm2, %v3535_v19, %v3537_v8  ;;  %v3635_v6 = vmax.f32 %v11599_v57, %v3536_v56  ;;  %v11814_v4 = vpop.permute.xlu2 %8617  ;;  %v8560_v8 = vunpack.i.h.bf16 %v11585_v55 }
 0x246   : > { %v3053_v58 = vmul.f32 %v11789_v29, %v11789_v29  ;;  %v3376_v63 = vrot.slane %v11791_v0, 2  ;;  %v11808_v46 = vpack.c.bf16 %v3638_v59, %v3637_v52  ;;  %v2522_v44 = vsel %vm954_vm1, %v14108_v26, %v8535_v45  ;;  %v8568_v34 = vpop.permute.xlu1 %8567 }
 0x247   : > { %7308 = vmatmul.msk.bf16.gmra.mxu1 %vm2850_vm14, %v2803_v27  ;;  %v2521_v18 = vsel %vm954_vm1, %v14109_v41, %v8534_v47  ;;  %v3636_v57 = vmax.f32 %v11752_v5, %v3538_v49  ;;  %v2559_v24 = vsel %vm2533_vm7, %v2522_v44, %v8540_v22  ;;  %v11821_v35 = vpop.permute.xlu0 %8577  ;;  %v8559_v23 = vunpack.i.l.bf16 %v11585_v55 }
 0x248   : > { %v9259_v28 = vpop.eup %9258  ;;  %v2558_v17 = vsel %vm2533_vm7, %v2521_v18, %v8539_v53  ;;  %v3089_v52 = vmul.f32 %v3053_v58, %v11789_v29  ;;  %v8565_v36 = vunpack.i.h.bf16 %v8563_v14  ;;  %v8564_v2 = vunpack.i.l.bf16 %v8563_v14  ;;  %v2944_v10 = vpop.f32.mrf.mxu1 }
 0x249   : > { %v3268_v19 = vadd.f32 1.0, %v9259_v28  ;;  %v8569_v62 = vunpack.i.l.bf16 %v8568_v34  ;;  %v3016_v45 = vmul.f32 0.5, %v11705_v30  ;;  %v3377_v5 = vsel %vm1360_vm3, %v3374_v15, %v3376_v63 }
 0x24a   : > { %v3125_v7 = vmul.f32 0.044715, %v3089_v52  ;;  %v2595_v47 = vsel %vm2570_vm8, %v2558_v17, %v8559_v23  ;;  %v2596_v12 = vsel %vm2570_vm8, %v2559_v24, %v8560_v8  ;;  %v8570_v33 = vunpack.i.h.bf16 %v8568_v34 }
 0x24b   : > { %v11832_v55 = vadd.f32 %v11786_v11, %v2944_v10  ;;  %v11834_v43 = vmul.f32 %v3268_v19, %v3016_v45  ;;  %v3471_v61 = vmax.f32 %v11554_v9, %v3377_v5  ;;  %v2632_v30 = vsel %vm2607_vm9, %v2595_v47, %v8564_v2 }
 0x24c   : > { %v3161_v31 = vadd.f32 %v3125_v7, %v11789_v29  ;;  %v2633_v14 = vsel %vm2607_vm9, %v2596_v12, %v8565_v36  ;;  %v11839_v15 = vpack.c.bf16 %v3636_v57, %v3635_v6  ;;  %v2669_v51 = vsel %vm2644_vm10, %v2632_v30, %v8569_v62 }
 0x24d   : > { %v3054_v50 = vmul.f32 %v11832_v55, %v11832_v55  ;;  %v3378_v13 = vrot.slane %v11834_v43, 2  ;;  %v8585_v16 = vunpack.i.h.bf16 %v11724_v48  ;;  %v8584_v60 = vunpack.i.l.bf16 %v11724_v48  ;;  %v11848_v22 = vpop.permute.xlu2 %8627 }
 0x24e   : > { %v3197_v32 = vmul.f32 0.7978846, %v3161_v31  ;;  %v2670_v9 = vsel %vm2644_vm10, %v2633_v14, %v8570_v33  ;;  %v8593_v56 = vpop.permute.xlu1 %8592  ;;  %v3543_v53 = vrot.slane %v3471_v61, 1  ;;  %v3017_v7 = vmul.f32 0.5, %v11789_v29 }
 0x24f   : > { %v3090_v38 = vmul.f32 %v3054_v50, %v11832_v55  ;;  %v8595_v21 = vunpack.i.h.bf16 %v8593_v56  ;;  %v8594_v20 = vunpack.i.l.bf16 %v8593_v56  ;;  %v8588_v27 = vpop.permute.xlu0 %8587  ;;  %v2706_v6 = vsel %vm2681_vm11, %v2669_v51, %v8584_v60 }
 0x250   : > { %9260 = vtanh.f32 %v3197_v32  ;;  %v8590_v59 = vunpack.i.h.bf16 %v8588_v27  ;;  %v8589_v49 = vunpack.i.l.bf16 %v8588_v27  ;;  %v2707_v28 = vsel %vm2681_vm11, %v2670_v9, %v8585_v16 }
 0x251   : > { %v3126_v58 = vmul.f32 0.044715, %v3090_v38  ;;  %v3379_v48 = vsel %vm1360_vm3, %v3376_v63, %v3378_v13  ;;  %v3544_v26 = vsel %vm1178_vm2, %v3541_v42, %v3543_v53  ;;  %v2947_v8 = vpop.f32.mrf.mxu1  ;;  %v8574_v10 = vunpack.i.l.bf16 %v11638_v1 }
 0x252   : > { %v2743_v44 = vsel %vm2718_vm12, %v2706_v6, %v8589_v49  ;;  %v2744_v41 = vsel %vm2718_vm12, %v2707_v28, %v8590_v59  ;;  %v11860_v18 = vmax.f32 %v11608_v3, %v3379_v48  ;;  %v3639_v34 = vmax.f32 %v11749_v37, %v3544_v26  ;;  %v14111_v6 = vld [vmem:[#allocation8_spill] sm:$0xff] }
 0x253   : > { %v3162_v57 = vadd.f32 %v3126_v58, %v11832_v55  ;;  %v2780_v17 = vsel %vm2755_vm13, %v2743_v44, %v8594_v20  ;;  %v2781_v63 = vsel %vm2755_vm13, %v2744_v41, %v8595_v21  ;;  %v11867_v24 = vadd.f32 %v11786_v11, %v2947_v8  ;;  %v14110_v20 = vld [vmem:[#allocation7_spill] sm:$0xff] }
 0x254   : > { %v2804_v42 = vpack.c.bf16 %v2781_v63, %v2780_v17  ;;  %v3545_v52 = vrot.slane %v11860_v18, 1  ;;  %v8575_v32 = vunpack.i.h.bf16 %v11638_v1  ;;  %v8579_v29 = vunpack.i.l.bf16 %v11821_v35 }
 0x255   : > { %v3198_v36 = vmul.f32 0.7978846, %v3162_v57  ;;  %v3055_v3 = vmul.f32 %v11867_v24, %v11867_v24  ;;  %v11875_v62 = vpop.permute.xlu2 %8647  ;;  %v2523_v27 = vsel %vm954_vm1, %v14110_v20, %v8574_v10  ;;  %v3018_v49 = vmul.f32 0.5, %v11832_v55 }
 0x256   : > { %v9261_v23 = vpop.eup %9260  ;;  %v8598_v37 = vpop.permute.xlu1 %8597  ;;  %v3546_v19 = vsel %vm1178_vm2, %v3543_v53, %v3545_v52  ;;  %v2560_v58 = vsel %vm2533_vm7, %v2523_v27, %v8579_v29  ;;  %v8604_v55 = vunpack.i.l.bf16 %v11767_v54  ;;  %v8605_v8 = vunpack.i.h.bf16 %v11767_v54 }
 0x257   : > { %7309 = vmatmul.msk.bf16.gmra.mxu1 %vm2850_vm14, %v2804_v42  ;;  %v3269_v2 = vadd.f32 1.0, %v9261_v23  ;;  %9262 = vtanh.f32 %v3198_v36  ;;  %v8608_v45 = vpop.permute.xlu0 %8607  ;;  %v3091_v5 = vmul.f32 %v3055_v3, %v11867_v24  ;;  %v3640_v12 = vmax.f32 %v3471_v61, %v3546_v19 }
 0x258   : > { %v8580_v61 = vunpack.i.h.bf16 %v11821_v35  ;;  %v8600_v60 = vunpack.i.h.bf16 %v8598_v37  ;;  %v8599_v9 = vunpack.i.l.bf16 %v8598_v37  ;;  %v2524_v35 = vsel %vm954_vm1, %v14111_v6, %v8575_v32 }
 0x259   : > { %v11878_v47 = vmul.f32 %v3269_v2, %v3017_v7  ;;  %v3127_v33 = vmul.f32 0.044715, %v3091_v5  ;;  %v2949_v31 = vpop.f32.mrf.mxu1  ;;  %v11882_v14 = vpack.c.bf16 %v3640_v12, %v3639_v34  ;;  %v8630_v42 = vunpack.i.h.bf16 %v11848_v22 }
 0x25a   : > { %v11888_v50 = vadd.f32 %v11786_v11, %v2949_v31  ;;  %v2561_v48 = vsel %vm2533_vm7, %v2524_v35, %v8580_v61  ;;  %v2597_v26 = vsel %vm2570_vm8, %v2560_v58, %v8599_v9  ;;  %v8609_v3 = vunpack.i.l.bf16 %v8608_v45 }
 0x25b   : > { %v3380_v30 = vrot.slane %v11878_v47, 2  ;;  %v3163_v51 = vadd.f32 %v3127_v33, %v11867_v24  ;;  %v2598_v34 = vsel %vm2570_vm8, %v2561_v48, %v8600_v60  ;;  %v2634_v23 = vsel %vm2607_vm9, %v2597_v26, %v8604_v55 }
 0x25c   : > { %v3056_v53 = vmul.f32 %v11888_v50, %v11888_v50  ;;  %v2635_v37 = vsel %vm2607_vm9, %v2598_v34, %v8605_v8  ;;  %v8610_v7 = vunpack.i.h.bf16 %v8608_v45  ;;  %v8629_v10 = vunpack.i.l.bf16 %v11848_v22 }
 0x25d   : > { %v9263_v16 = vpop.eup %9262  ;;  %v3199_v56 = vmul.f32 0.7978846, %v3163_v51  ;;  %v3381_v1 = vsel %vm1360_vm3, %v3378_v13, %v3380_v30  ;;  %v11905_v44 = vpop.permute.xlu2 %8672  ;;  %v2671_v31 = vsel %vm2644_vm10, %v2634_v23, %v8609_v3  ;;  %v3019_v9 = vmul.f32 0.5, %v11867_v24 }
 0x25e   : > { %v11893_v38 = vpop.permute.xlu1 %8612  ;;  %v3270_v21 = vadd.f32 1.0, %v9263_v16  ;;  %v3092_v28 = vmul.f32 %v3056_v53, %v11888_v50  ;;  %v3473_v41 = vmax.f32 %v11697_v25, %v3381_v1  ;;  %v3020_v48 = vmul.f32 0.5, %v11888_v50 }
 0x25f   : > { %v8633_v59 = vpop.permute.xlu0 %8632  ;;  %9264 = vtanh.f32 %v3199_v56  ;;  %v8614_v55 = vunpack.i.l.bf16 %v11893_v38 }
 0x260   : > { %v11907_v13 = vmul.f32 %v3270_v21, %v3018_v49  ;;  %v3128_v57 = vmul.f32 0.044715, %v3092_v28  ;;  %v3547_v63 = vrot.slane %v3473_v41, 1  ;;  %v8634_v16 = vunpack.i.l.bf16 %v8633_v59 }
 0x262   : > { %v3382_v17 = vrot.slane %v11907_v13, 2  ;;  %v3164_v36 = vadd.f32 %v3128_v57, %v11888_v50  ;;  %v3548_v2 = vsel %vm1178_vm2, %v3545_v52, %v3547_v63  ;;  %v8635_v52 = vunpack.i.h.bf16 %v8633_v59 }
 0x263   : > { %v3641_v33 = vmax.f32 %v11860_v18, %v3548_v2  ;;  %v8619_v50 = vunpack.i.l.bf16 %v11814_v4 }
 0x264   : > { %v3383_v25 = vsel %vm1360_vm3, %v3380_v30, %v3382_v17  ;;  %v3200_v5 = vmul.f32 0.7978846, %v3164_v36  ;;  %v2672_v30 = vsel %vm2644_vm10, %v2635_v37, %v8610_v7  ;;  %v14113_v37 = vld [vmem:[#allocation10_spill] sm:$0xff]  ;;  %v8620_v7 = vunpack.i.h.bf16 %v11814_v4 }
 0x265   : > { %v9265_v19 = vpop.eup %9264  ;;  %v11921_v12 = vmax.f32 %v11791_v0, %v3383_v25  ;;  %v11933_v56 = vpop.permute.xlu2 %8677 }
 0x266   : > { %v8623_v54 = vpop.permute.xlu1 %8622  ;;  %9266 = vtanh.f32 %v3200_v5  ;;  %v3271_v0 = vadd.f32 1.0, %v9265_v19 }
 0x267   : > { %v8625_v32 = vunpack.i.h.bf16 %v8623_v54  ;;  %v8624_v29 = vunpack.i.l.bf16 %v8623_v54  ;;  %v8638_v51 = vpop.permute.xlu0 %8637  ;;  %v3549_v60 = vrot.slane %v11921_v12, 1 }
 0x268   : > { %v11940_v59 = vmul.f32 %v3271_v0, %v3019_v9  ;;  %v8639_v36 = vunpack.i.l.bf16 %v8638_v51 }
 0x269   : > { %v2708_v45 = vsel %vm2681_vm11, %v2671_v31, %v8624_v29  ;;  %v2709_v61 = vsel %vm2681_vm11, %v2672_v30, %v8625_v32  ;;  %v3550_v1 = vsel %vm1178_vm2, %v3547_v63, %v3549_v60  ;;  %v2952_v58 = vpop.f32.mrf.mxu1 }
 0x26a   : > { %v2745_v18 = vsel %vm2718_vm12, %v2708_v45, %v8629_v10  ;;  %v2746_v22 = vsel %vm2718_vm12, %v2709_v61, %v8630_v42  ;;  %v3642_v27 = vmax.f32 %v3473_v41, %v3550_v1  ;;  %v3384_v26 = vrot.slane %v11940_v59, 2  ;;  %v14112_v42 = vld [vmem:[#allocation9_spill] sm:$0xff] }
 0x26b   : > { %v2782_v53 = vsel %vm2755_vm13, %v2745_v18, %v8634_v16  ;;  %v2783_v21 = vsel %vm2755_vm13, %v2746_v22, %v8635_v52  ;;  %v8615_v41 = vunpack.i.h.bf16 %v11893_v38  ;;  %v2525_v23 = vsel %vm954_vm1, %v14112_v42, %v8614_v55 }
 0x26c   : > { %v2805_v20 = vpack.c.bf16 %v2783_v21, %v2782_v53  ;;  %v9267_v49 = vpop.eup %9266  ;;  %v11943_v35 = vpack.c.bf16 %v3642_v27, %v3641_v33  ;;  %v3385_v63 = vsel %vm1360_vm3, %v3382_v17, %v3384_v26  ;;  %v8640_v38 = vunpack.i.h.bf16 %v8638_v51 }
 0x26d   : > { %v3272_v28 = vadd.f32 1.0, %v9267_v49  ;;  %v2526_v25 = vsel %vm954_vm1, %v14113_v37, %v8615_v41  ;;  %v3475_v54 = vmax.f32 %v11834_v43, %v3385_v63  ;;  %v2562_v17 = vsel %vm2533_vm7, %v2525_v23, %v8619_v50 }
 0x26e   : > { %v8643_v6 = vpop.permute.xlu1 %8642  ;;  %7310 = vmatmul.msk.bf16.gmra.mxu1 %vm2850_vm14, %v2805_v20  ;;  %v2563_v10 = vsel %vm2533_vm7, %v2526_v25, %v8620_v7  ;;  %v2599_v31 = vsel %vm2570_vm8, %v2562_v17, %v8639_v36  ;;  %v8650_v45 = vunpack.i.h.bf16 %v11875_v62  ;;  %v8649_v61 = vunpack.i.l.bf16 %v11875_v62 }
 0x26f   : > { %v11945_v24 = vpop.permute.xlu0 %8652  ;;  %v11951_v34 = vmul.f32 %v3272_v28, %v3020_v48  ;;  %v11953_v57 = vpop.permute.xlu2 %8692  ;;  %v8644_v2 = vunpack.i.l.bf16 %v8643_v6  ;;  %v8645_v5 = vunpack.i.h.bf16 %v8643_v6  ;;  %v2600_v29 = vsel %vm2570_vm8, %v2563_v10, %v8640_v38 }
 0x270   : > { %v3551_v16 = vrot.slane %v3475_v54, 1  ;;  %v8675_v18 = vunpack.i.h.bf16 %v11905_v44  ;;  %v8674_v22 = vunpack.i.l.bf16 %v11905_v44  ;;  %v11988_v49 = vadd.f32 %v11786_v11, %v2952_v58 }
 0x271   : > { %v3386_v8 = vrot.slane %v11951_v34, 2  ;;  %v2954_v32 = vpop.f32.mrf.mxu1  ;;  %v2636_v51 = vsel %vm2607_vm9, %v2599_v31, %v8644_v2  ;;  %v2637_v43 = vsel %vm2607_vm9, %v2600_v29, %v8645_v5  ;;  %v8655_v50 = vunpack.i.h.bf16 %v11945_v24 }
 0x272   : > { %v2674_v21 = vsel %vm2644_vm10, %v2637_v43, %v8650_v45  ;;  %v3552_v44 = vsel %vm1178_vm2, %v3549_v60, %v3551_v16  ;;  %v3057_v36 = vmul.f32 %v11988_v49, %v11988_v49  ;;  %v8654_v37 = vunpack.i.l.bf16 %v11945_v24  ;;  %v14114_v24 = vld [vmem:[#allocation12_spill] sm:$0xff] }
 0x273   : > { %v3387_v33 = vsel %vm1360_vm3, %v3384_v26, %v3386_v8  ;;  %v3643_v23 = vmax.f32 %v11921_v12, %v3552_v44  ;;  %v12011_v25 = vadd.f32 %v11786_v11, %v2954_v32  ;;  %v2528_v17 = vsel %vm954_vm1, %v14114_v24, %v8655_v50 }
 0x274   : > { %v11975_v4 = vmax.f32 %v11878_v47, %v3387_v33  ;;  %v2673_v47 = vsel %vm2644_vm10, %v2636_v51, %v8649_v61  ;;  %v14115_v33 = vld [vmem:[#allocation11_spill] sm:$0xff] }
 0x275   : > { %v2527_v10 = vsel %vm954_vm1, %v14115_v33, %v8654_v37 }
 0x276   : > { %v11959_v3 = vpop.permute.xlu1 %8657  ;;  %v3553_v0 = vrot.slane %v11975_v4, 1 }
 0x277   : > { %v8663_v19 = vpop.permute.xlu0 %8662  ;;  %v11983_v53 = vpop.permute.xlu2 %8702  ;;  %v8660_v38 = vunpack.i.h.bf16 %v11959_v3  ;;  %v8659_v2 = vunpack.i.l.bf16 %v11959_v3  ;;  %v3058_v3 = vmul.f32 %v12011_v25, %v12011_v25 }
 0x278   : > { %v8665_v30 = vunpack.i.h.bf16 %v8663_v19  ;;  %v8664_v52 = vunpack.i.l.bf16 %v8663_v19  ;;  %v3554_v26 = vsel %vm1178_vm2, %v3551_v16, %v3553_v0 }
 0x279   : > { %v3644_v60 = vmax.f32 %v3475_v54, %v3554_v26  ;;  %v3093_v54 = vmul.f32 %v3057_v36, %v11988_v49  ;;  %v2564_v31 = vsel %vm2533_vm7, %v2527_v10, %v8659_v2  ;;  %v2565_v32 = vsel %vm2533_vm7, %v2528_v17, %v8660_v38 }
 0x27a   : > { %v2710_v62 = vsel %vm2681_vm11, %v2673_v47, %v8664_v52  ;;  %v2711_v6 = vsel %vm2681_vm11, %v2674_v21, %v8665_v30  ;;  %v8680_v30 = vunpack.i.h.bf16 %v11933_v56  ;;  %v8679_v52 = vunpack.i.l.bf16 %v11933_v56 }
 0x27b   : > { %v12016_v19 = vpack.c.bf16 %v3644_v60, %v3643_v23  ;;  %v8695_v2 = vunpack.i.h.bf16 %v11953_v57 }
 0x27c   : > { %v2601_v47 = vsel %vm2570_vm8, %v2564_v31, %v8679_v52  ;;  %v2602_v21 = vsel %vm2570_vm8, %v2565_v32, %v8680_v30  ;;  %v8694_v31 = vunpack.i.l.bf16 %v11953_v57 }
 0x27e   : > { %v8668_v9 = vpop.permute.xlu1 %8667 }
 0x27f   : > { %v8670_v1 = vunpack.i.h.bf16 %v8668_v9  ;;  %v8669_v20 = vunpack.i.l.bf16 %v8668_v9  ;;  %v12031_v29 = vpop.permute.xlu2 %8722  ;;  %v3094_v9 = vmul.f32 %v3058_v3, %v12011_v25 }
 0x280   : > { %v8683_v27 = vpop.permute.xlu0 %8682  ;;  %v2957_v55 = vpop.f32.mrf.mxu1 }
 0x281   : > { %v2747_v28 = vsel %vm2718_vm12, %v2710_v62, %v8669_v20  ;;  %v2748_v48 = vsel %vm2718_vm12, %v2711_v6, %v8670_v1  ;;  %v12003_v63 = vadd.f32 %v11786_v11, %v2957_v55  ;;  %v8685_v51 = vunpack.i.h.bf16 %v8683_v27 }
 0x282   : > { %v2784_v58 = vsel %vm2755_vm13, %v2747_v28, %v8674_v22  ;;  %v2785_v41 = vsel %vm2755_vm13, %v2748_v48, %v8675_v18  ;;  %v8684_v43 = vunpack.i.l.bf16 %v8683_v27  ;;  %v3129_v1 = vmul.f32 0.044715, %v3093_v54 }
 0x283   : > { %v2806_v42 = vpack.c.bf16 %v2785_v41, %v2784_v58  ;;  %v3059_v7 = vmul.f32 %v12003_v63, %v12003_v63  ;;  %v2639_v27 = vsel %vm2607_vm9, %v2602_v21, %v8685_v51  ;;  %v8705_v62 = vunpack.i.h.bf16 %v11983_v53 }
 0x284   : > { %v2638_v20 = vsel %vm2607_vm9, %v2601_v47, %v8684_v43  ;;  %v8704_v6 = vunpack.i.l.bf16 %v11983_v53  ;;  %v3130_v23 = vmul.f32 0.044715, %v3094_v9  ;;  %v3165_v53 = vadd.f32 %v3129_v1, %v11988_v49  ;;  %v14116_v1 = vld [vmem:[#allocation14_spill] sm:$0xff] }
 0x285   : > { %7311 = vmatmul.msk.bf16.gmra.mxu1 %vm2850_vm14, %v2806_v42  ;;  %v3095_v18 = vmul.f32 %v3059_v7, %v12003_v63 }
 0x286   : > { %v8688_v12 = vpop.permute.xlu1 %8687  ;;  %v3166_v32 = vadd.f32 %v3130_v23, %v12011_v25 }
 0x287   : > { %v8690_v16 = vunpack.i.h.bf16 %v8688_v12  ;;  %v8689_v45 = vunpack.i.l.bf16 %v8688_v12  ;;  %v3131_v26 = vmul.f32 0.044715, %v3095_v18  ;;  %v12058_v24 = vpop.permute.xlu2 %8742 }
 0x288   : > { %v12020_v5 = vpop.permute.xlu0 %8697  ;;  %v2959_v61 = vpop.f32.mrf.mxu1 }
 0x289   : > { %v12037_v22 = vadd.f32 %v11786_v11, %v2959_v61  ;;  %v2675_v44 = vsel %vm2644_vm10, %v2638_v20, %v8689_v45  ;;  %v2676_v28 = vsel %vm2644_vm10, %v2639_v27, %v8690_v16  ;;  %v3167_v54 = vadd.f32 %v3131_v26, %v12003_v63  ;;  %v14117_v27 = vld [vmem:[#allocation13_spill] sm:$0xff] }
 0x28a   : > { %v2712_v37 = vsel %vm2681_vm11, %v2675_v44, %v8704_v6  ;;  %v2713_v38 = vsel %vm2681_vm11, %v2676_v28, %v8705_v62  ;;  %v8700_v30 = vunpack.i.h.bf16 %v12020_v5  ;;  %v8699_v52 = vunpack.i.l.bf16 %v12020_v5 }
 0x28b   : > { %v3060_v56 = vmul.f32 %v12037_v22, %v12037_v22  ;;  %v3201_v45 = vmul.f32 0.7978846, %v3165_v53  ;;  %v3203_v9 = vmul.f32 0.7978846, %v3167_v54  ;;  %v2530_v20 = vsel %vm954_vm1, %v14116_v1, %v8695_v2 }
 0x28c   : > { %v3202_v62 = vmul.f32 0.7978846, %v3166_v32  ;;  %v2567_v6 = vsel %vm2533_vm7, %v2530_v20, %v8700_v30  ;;  %v8744_v54 = vunpack.i.l.bf16 %v12058_v24 }
 0x28d   : > { %v3096_v55 = vmul.f32 %v3060_v56, %v12037_v22  ;;  %v2529_v56 = vsel %vm954_vm1, %v14117_v27, %v8694_v31 }
 0x28e   : > { %v2566_v44 = vsel %vm2533_vm7, %v2529_v56, %v8699_v52  ;;  %v3024_v56 = vmul.f32 0.5, %v12037_v22 }
 0x28f   : > { %v8713_v48 = vpop.permute.xlu1 %8712  ;;  %v3132_v50 = vmul.f32 0.044715, %v3096_v55  ;;  %v8725_v55 = vunpack.i.h.bf16 %v12031_v29 }
 0x290   : > { %v8715_v58 = vunpack.i.h.bf16 %v8713_v48  ;;  %v8714_v41 = vunpack.i.l.bf16 %v8713_v48  ;;  %v8708_v42 = vpop.permute.xlu0 %8707 }
 0x291   : > { %v8710_v60 = vunpack.i.h.bf16 %v8708_v42  ;;  %v8709_v36 = vunpack.i.l.bf16 %v8708_v42  ;;  %v3168_v17 = vadd.f32 %v3132_v50, %v12037_v22 }
 0x292   : > { %v2962_v33 = vpop.f32.mrf.mxu1 }
 0x293   : > { %v2749_v12 = vsel %vm2718_vm12, %v2712_v37, %v8709_v36  ;;  %v2750_v7 = vsel %vm2718_vm12, %v2713_v38, %v8710_v60  ;;  %v12066_v51 = vadd.f32 %v11786_v11, %v2962_v33  ;;  %v3204_v16 = vmul.f32 0.7978846, %v3168_v17  ;;  %v12088_v60 = vpop.permute.xlu2 %8747 }
 0x294   : > { %v2786_v10 = vsel %vm2755_vm13, %v2749_v12, %v8714_v41  ;;  %v2787_v3 = vsel %vm2755_vm13, %v2750_v7, %v8715_v58  ;;  %v8724_v58 = vunpack.i.l.bf16 %v12031_v29  ;;  %v8745_v7 = vunpack.i.h.bf16 %v12058_v24 }
 0x295   : > { %v2807_v43 = vpack.c.bf16 %v2787_v3, %v2786_v10  ;;  %v3061_v61 = vmul.f32 %v12066_v51, %v12066_v51  ;;  %9268 = vtanh.f32 %v3204_v16 }
 0x296   : > { %9270 = vtanh.f32 %v3201_v45 }
 0x297   : > { %7312 = vmatmul.msk.bf16.gmra.mxu1 %vm2850_vm14, %v2807_v43  ;;  %v8718_v18 = vpop.permute.xlu1 %8717  ;;  %v3097_v5 = vmul.f32 %v3061_v61, %v12066_v51  ;;  %9272 = vtanh.f32 %v3203_v9 }
 0x298   : > { %v8720_v57 = vunpack.i.h.bf16 %v8718_v18  ;;  %v8719_v47 = vunpack.i.l.bf16 %v8718_v18  ;;  %v8728_v21 = vpop.permute.xlu0 %8727  ;;  %9274 = vtanh.f32 %v3202_v62 }
 0x299   : > { %v3133_v28 = vmul.f32 0.044715, %v3097_v5  ;;  %v8730_v38 = vunpack.i.h.bf16 %v8728_v21  ;;  %v8729_v53 = vunpack.i.l.bf16 %v8728_v21 }
 0x29a   : > { %v2603_v48 = vsel %vm2570_vm8, %v2566_v44, %v8719_v47  ;;  %v2604_v26 = vsel %vm2570_vm8, %v2567_v6, %v8720_v57  ;;  %v2964_v41 = vpop.f32.mrf.mxu1  ;;  %v3021_v6 = vmul.f32 0.5, %v11988_v49 }
 0x29b   : > { %v3169_v42 = vadd.f32 %v3133_v28, %v12066_v51  ;;  %v12086_v23 = vadd.f32 %v11786_v11, %v2964_v41  ;;  %v2640_v36 = vsel %vm2607_vm9, %v2603_v48, %v8724_v58  ;;  %v2641_v50 = vsel %vm2607_vm9, %v2604_v26, %v8725_v55  ;;  %v9269_v12 = vpop.eup %9268 }
 0x29c   : > { %v9271_v3 = vpop.eup %9270  ;;  %v2677_v31 = vsel %vm2644_vm10, %v2640_v36, %v8729_v53  ;;  %v2678_v32 = vsel %vm2644_vm10, %v2641_v50, %v8730_v38  ;;  %v3276_v24 = vadd.f32 1.0, %v9269_v12  ;;  %v3023_v48 = vmul.f32 0.5, %v12003_v63  ;;  %v8768_v36 = vpop.permute.xlu2 %8767 }
 0x29d   : > { %v3205_v37 = vmul.f32 0.7978846, %v3169_v42  ;;  %v3062_v29 = vmul.f32 %v12086_v23, %v12086_v23  ;;  %v9273_v30 = vpop.eup %9272  ;;  %v3273_v20 = vadd.f32 1.0, %v9271_v3  ;;  %v3022_v58 = vmul.f32 0.5, %v12011_v25 }
 0x29e   : > { %v9275_v18 = vpop.eup %9274  ;;  %v3275_v27 = vadd.f32 1.0, %v9273_v30  ;;  %v12111_v41 = vmul.f32 %v3276_v24, %v3024_v56  ;;  %v3025_v42 = vmul.f32 0.5, %v12066_v51 }
 0x29f   : > { %v8733_v2 = vpop.permute.xlu1 %8732  ;;  %9276 = vtanh.f32 %v3205_v37  ;;  %v3098_v43 = vmul.f32 %v3062_v29, %v12086_v23  ;;  %v3274_v44 = vadd.f32 1.0, %v9275_v18  ;;  %v3309_v49 = vmul.f32 %v3273_v20, %v3021_v6 }
 0x2a0   : > { %v8735_v17 = vunpack.i.h.bf16 %v8733_v2  ;;  %v8734_v33 = vunpack.i.l.bf16 %v8733_v2  ;;  %v3311_v38 = vmul.f32 %v3275_v27, %v3023_v48  ;;  %v3394_v2 = vrot.slane %v12111_v41, 2 }
 0x2a1   : > { %v8753_v10 = vpop.permute.xlu0 %8752  ;;  %v3134_v9 = vmul.f32 0.044715, %v3098_v43  ;;  %v3310_v29 = vmul.f32 %v3274_v44, %v3022_v58  ;;  %v8769_v6 = vunpack.i.l.bf16 %v8768_v36 }
 0x2a2   : > { %v2714_v52 = vsel %vm2681_vm11, %v2677_v31, %v8734_v33  ;;  %v2715_v16 = vsel %vm2681_vm11, %v2678_v32, %v8735_v17  ;;  %v8755_v45 = vunpack.i.h.bf16 %v8753_v10  ;;  %v8754_v61 = vunpack.i.l.bf16 %v8753_v10 }
 0x2a3   : > { %v2751_v57 = vsel %vm2718_vm12, %v2714_v52, %v8744_v54  ;;  %v2752_v47 = vsel %vm2718_vm12, %v2715_v16, %v8745_v7  ;;  %v3170_v5 = vadd.f32 %v3134_v9, %v12086_v23  ;;  %v8750_v7 = vunpack.i.h.bf16 %v12088_v60 }
 0x2a4   : > { %v2788_v21 = vsel %vm2755_vm13, %v2751_v57, %v8754_v61  ;;  %v2789_v1 = vsel %vm2755_vm13, %v2752_v47, %v8755_v45  ;;  %v8749_v54 = vunpack.i.l.bf16 %v12088_v60  ;;  %v3388_v17 = vrot.slane %v3309_v49, 2  ;;  %v8783_v57 = vpop.permute.xlu2 %8782 }
 0x2a5   : > { %v2808_v62 = vpack.c.bf16 %v2789_v1, %v2788_v21  ;;  %v9277_v28 = vpop.eup %9276  ;;  %v3206_v26 = vmul.f32 0.7978846, %v3170_v5  ;;  %v3392_v33 = vrot.slane %v3311_v38, 2  ;;  %v3026_v10 = vmul.f32 0.5, %v12086_v23 }
 0x2a6   : > { %v3277_v22 = vadd.f32 1.0, %v9277_v28  ;;  %v3390_v3 = vrot.slane %v3310_v29, 2  ;;  %v3389_v23 = vsel %vm1360_vm3, %v3386_v8, %v3388_v17  ;;  %v8785_v48 = vunpack.i.h.bf16 %v8783_v57 }
 0x2a7   : > { %v8738_v55 = vpop.permute.xlu1 %8737  ;;  %7313 = vmatmul.msk.bf16.gmra.mxu1 %vm2850_vm14, %v2808_v62  ;;  %9278 = vtanh.f32 %v3206_v26  ;;  %v3395_v52 = vsel %vm1360_vm3, %v3392_v33, %v3394_v2  ;;  %v8770_v62 = vunpack.i.h.bf16 %v8768_v36  ;;  %v3477_v58 = vmax.f32 %v11907_v13, %v3389_v23 }
 0x2a8   : > { %v8740_v50 = vunpack.i.h.bf16 %v8738_v55  ;;  %v8739_v37 = vunpack.i.l.bf16 %v8738_v55  ;;  %v12114_v53 = vmul.f32 %v3277_v22, %v3025_v42  ;;  %v3393_v24 = vsel %vm1360_vm3, %v3390_v3, %v3392_v33 }
 0x2a9   : > { %v8758_v63 = vpop.permute.xlu0 %8757  ;;  %v3391_v1 = vsel %vm1360_vm3, %v3388_v17, %v3390_v3  ;;  %v3480_v5 = vmax.f32 %v3309_v49, %v3395_v52  ;;  %v3479_v28 = vmax.f32 %v11951_v34, %v3393_v24  ;;  %v8784_v42 = vunpack.i.l.bf16 %v8783_v57 }
 0x2aa   : > { %v2532_v25 = vsel %vm954_vm1, %v11150_v40, %v8740_v50  ;;  %v2531_v12 = vsel %vm954_vm1, %v10998_v39, %v8739_v37  ;;  %v3396_v51 = vrot.slane %v12114_v53, 2  ;;  %v8760_v30 = vunpack.i.h.bf16 %v8758_v63 }
 0x2ab   : > { %v2568_v43 = vsel %vm2533_vm7, %v2531_v12, %v8749_v54  ;;  %v2569_v40 = vsel %vm2533_vm7, %v2532_v25, %v8750_v7  ;;  %v8759_v45 = vunpack.i.l.bf16 %v8758_v63  ;;  %v2967_v20 = vpop.f32.mrf.mxu1  ;;  %v3478_v55 = vmax.f32 %v11940_v59, %v3391_v1 }
 0x2ac   : > { %v3397_v31 = vsel %vm1360_vm3, %v3394_v2, %v3396_v51  ;;  %v2606_v47 = vsel %vm2570_vm8, %v2569_v40, %v8760_v30  ;;  %v3561_v34 = vrot.slane %v3480_v5, 1  ;;  %v2968_v2 = vadd.f32 %v11786_v11, %v2967_v20 }
 0x2ad   : > { %v9279_v32 = vpop.eup %9278  ;;  %v3481_v18 = vmax.f32 %v3310_v29, %v3397_v31  ;;  %v2605_v21 = vsel %vm2570_vm8, %v2568_v43, %v8759_v45  ;;  %v3559_v13 = vrot.slane %v3479_v28, 1  ;;  %v3555_v45 = vrot.slane %v3477_v58, 1 }
 0x2ae   : > { %v3278_v16 = vadd.f32 1.0, %v9279_v32  ;;  %v3063_v43 = vmul.f32 %v2968_v2, %v2968_v2 }
 0x2af   : > { %v8763_v39 = vpop.permute.xlu1 %8762  ;;  %v3563_v26 = vrot.slane %v3481_v18, 1  ;;  %v3562_v32 = vsel %vm1178_vm2, %v3559_v13, %v3561_v34 }
 0x2b0   : > { %v8765_v61 = vunpack.i.h.bf16 %v8763_v39  ;;  %v8764_v60 = vunpack.i.l.bf16 %v8763_v39  ;;  %v12133_v9 = vmul.f32 %v3278_v16, %v3026_v10  ;;  %v3099_v23 = vmul.f32 %v3063_v43, %v2968_v2 }
 0x2b1   : > { %v8773_v8 = vpop.permute.xlu0 %8772  ;;  %v3564_v54 = vsel %vm1178_vm2, %v3561_v34, %v3563_v26 }
 0x2b2   : > { %v2642_v27 = vsel %vm2607_vm9, %v2605_v21, %v8764_v60  ;;  %v2643_v56 = vsel %vm2607_vm9, %v2606_v47, %v8765_v61  ;;  %v3398_v44 = vrot.slane %v12133_v9, 2  ;;  %v8775_v37 = vunpack.i.h.bf16 %v8773_v8 }
 0x2b3   : > { %v2679_v22 = vsel %vm2644_vm10, %v2642_v27, %v8769_v6  ;;  %v2680_v50 = vsel %vm2644_vm10, %v2643_v56, %v8770_v62  ;;  %v8774_v49 = vunpack.i.l.bf16 %v8773_v8  ;;  %v3649_v30 = vmax.f32 %v3480_v5, %v3564_v54  ;;  %v2969_v52 = vpop.f32.mrf.mxu1 }
 0x2b4   : > { %v3399_v36 = vsel %vm1360_vm3, %v3396_v51, %v3398_v44  ;;  %v2717_v7 = vsel %vm2681_vm11, %v2680_v50, %v8775_v37  ;;  %v3648_v60 = vmax.f32 %v3479_v28, %v3562_v32  ;;  %v2970_v57 = vadd.f32 %v11786_v11, %v2969_v52 }
 0x2b5   : > { %v12149_v29 = vmax.f32 %v3311_v38, %v3399_v36  ;;  %v2716_v12 = vsel %vm2681_vm11, %v2679_v22, %v8774_v49  ;;  %v3557_v38 = vrot.slane %v3478_v55, 1  ;;  %v3556_v21 = vsel %vm1178_vm2, %v3553_v0, %v3555_v45 }
 0x2b6   : > { %v3135_v20 = vmul.f32 0.044715, %v3099_v23  ;;  %v3064_v27 = vmul.f32 %v2970_v57, %v2970_v57  ;;  %v3645_v56 = vmax.f32 %v11975_v4, %v3556_v21  ;;  %v3027_v36 = vmul.f32 0.5, %v2968_v2 }
 0x2b7   : > { %v8778_v63 = vpop.permute.xlu1 %8777  ;;  %v3565_v17 = vrot.slane %v12149_v29, 1  ;;  %v3560_v16 = vsel %vm1178_vm2, %v3557_v38, %v3559_v13  ;;  %v3558_v24 = vsel %vm1178_vm2, %v3555_v45, %v3557_v38 }
 0x2b8   : > { %v8780_v59 = vunpack.i.h.bf16 %v8778_v63  ;;  %v8779_v25 = vunpack.i.l.bf16 %v8778_v63  ;;  %v3647_v47 = vmax.f32 %v3478_v55, %v3560_v16  ;;  %v3646_v1 = vmax.f32 %v3477_v58, %v3558_v24 }
 0x2b9   : > { %v3566_v31 = vsel %vm1178_vm2, %v3563_v26, %v3565_v17  ;;  %v3171_v6 = vadd.f32 %v3135_v20, %v2968_v2  ;;  %v3100_v8 = vmul.f32 %v3064_v27, %v2970_v57 }
 0x2ba   : > { %v2753_v51 = vsel %vm2718_vm12, %v2716_v12, %v8779_v25  ;;  %v2754_v33 = vsel %vm2718_vm12, %v2717_v7, %v8780_v59  ;;  %v3650_v39 = vmax.f32 %v3481_v18, %v3566_v31  ;;  %v3703_v18 = vpack.c.bf16 %v3648_v60, %v3647_v47 }
 0x2bb   : > { %v2790_v10 = vsel %vm2755_vm13, %v2753_v51, %v8784_v42  ;;  %v2791_v3 = vsel %vm2755_vm13, %v2754_v33, %v8785_v48  ;;  %v3702_v62 = vpack.c.bf16 %v3646_v1, %v3645_v56  ;;  %v3207_v28 = vmul.f32 0.7978846, %v3171_v6 }
 0x2bc   : > { %v2809_v40 = vpack.c.bf16 %v2791_v3, %v2790_v10  ;;  %v3704_v61 = vpack.c.bf16 %v3650_v39, %v3649_v30  ;;  %v3136_v48 = vmul.f32 0.044715, %v3100_v8  ;;  %v3028_v12 = vmul.f32 0.5, %v2970_v57 }
 0x2bd   : > { %9280 = vtanh.f32 %v3207_v28 }
 0x2be   : > { %7314 = vmatmul.msk.bf16.gmra.mxu1 %vm2850_vm14, %v2809_v40  ;;  %3846 = vmatpush.bf16.msra.mxu2 %v3704_v61  ;;  %v3172_v0 = vadd.f32 %v3136_v48, %v2970_v57 }
 0x2c0   : > { %v3208_v42 = vmul.f32 0.7978846, %v3172_v0 }
 0x2c2   : > { %3847 = vmatpush.bf16.msra.mxu2 %v3703_v18  ;;  %9282 = vtanh.f32 %v3208_v42 }
 0x2c3   : > { %v9281_v4 = vpop.eup %9280 }
 0x2c4   : > { %v2972_v5 = vpop.f32.mrf.mxu1 }
 0x2c5   : > { %v2973_v26 = vadd.f32 %v11786_v11, %v2972_v5 }
 0x2c6   : > { %3848 = vmatpush.bf16.msra.mxu2 %v3702_v62  ;;  %v12211_v62 = vld [vmem:[%s14059_s4] ss:$0 sm:$0xff]  ;;  %s14125_s4 = sld [smem:[#allocation28_spill]] }
 0x2c7   : > { %v3065_v58 = vmul.f32 %v2973_v26, %v2973_v26  ;;  %v3029_v23 = vmul.f32 0.5, %v2973_v26 }
 0x2c8   : > { %v9283_v59 = vpop.eup %9282 }
 0x2c9   : > { %v3101_v22 = vmul.f32 %v3065_v58, %v2973_v26  ;;  %v3280_v7 = vadd.f32 1.0, %v9283_v59  ;;  %v7909_v59 = vld [vmem:[%s14118_s0 + $0x8] sm:$0xf0] }
 0x2ca   : > { %3849 = vmatpush.bf16.msra.mxu2 %v12016_v19  ;;  %v3279_v19 = vadd.f32 1.0, %v9281_v4 }
 0x2cb   : > { %v3137_v37 = vmul.f32 0.044715, %v3101_v22 }
 0x2cc   : > { %v2974_v55 = vpop.f32.mrf.mxu1  ;;  %v12178_v34 = vmul.f32 %v3279_v19, %v3027_v36 }
 0x2cd   : > { %v2975_v50 = vadd.f32 %v11786_v11, %v2974_v55 }
 0x2ce   : > { %3850 = vmatpush.bf16.msra.mxu2 %v11943_v35  ;;  %v3400_v35 = vrot.slane %v12178_v34, 2 }
 0x2cf   : > { %v3066_v63 = vmul.f32 %v2975_v50, %v2975_v50  ;;  %v3030_v8 = vmul.f32 0.5, %v2975_v50 }
 0x2d1   : > { %v3102_v25 = vmul.f32 %v3066_v63, %v2975_v50 }
 0x2d2   : > { %3851 = vmatpush.bf16.msra.mxu2 %v11882_v14  ;;  %v3173_v14 = vadd.f32 %v3137_v37, %v2973_v26 }
 0x2d3   : > { %v3138_v33 = vmul.f32 0.044715, %v3102_v25 }
 0x2d4   : > { %v2977_v49 = vpop.f32.mrf.mxu1  ;;  %v3209_v54 = vmul.f32 0.7978846, %v3173_v14 }
 0x2d5   : > { %v2978_v13 = vadd.f32 %v11786_v11, %v2977_v49 }
 0x2d6   : > { %3852 = vmatpush.bf16.msra.mxu2 %v11808_v46  ;;  %v3401_v46 = vsel %vm1360_vm3, %v3398_v44, %v3400_v35  ;;  %9284 = vtanh.f32 %v3209_v54  ;;  %v3174_v44 = vadd.f32 %v3138_v33, %v2975_v50 }
 0x2d7   : > { %v3483_v2 = vmax.f32 %v12111_v41, %v3401_v46  ;;  %v3067_v38 = vmul.f32 %v2978_v13, %v2978_v13  ;;  %v3031_v37 = vmul.f32 0.5, %v2978_v13 }
 0x2d8   : > { %v3210_v52 = vmul.f32 0.7978846, %v3174_v44 }
 0x2d9   : > { %v3567_v51 = vrot.slane %v3483_v2, 1  ;;  %v3103_v41 = vmul.f32 %v3067_v38, %v2978_v13 }
 0x2da   : > { %3853 = vmatpush.bf16.msra.mxu2 %v11839_v15  ;;  %v12187_v15 = vmul.f32 %v3280_v7, %v3028_v12  ;;  %9286 = vtanh.f32 %v3210_v52 }
 0x2db   : > { %v3568_v3 = vsel %vm1178_vm2, %v3565_v17, %v3567_v51  ;;  %v3139_v16 = vmul.f32 0.044715, %v3103_v41 }
 0x2dc   : > { %v2979_v10 = vpop.f32.mrf.mxu1  ;;  %v3402_v31 = vrot.slane %v12187_v15, 2  ;;  %v3651_v32 = vmax.f32 %v12149_v29, %v3568_v3  ;;  %v9285_v45 = vpop.eup %9284 }
 0x2dd   : > { %v12195_v43 = vadd.f32 %v11786_v11, %v2979_v10  ;;  %v3175_v60 = vadd.f32 %v3139_v16, %v2978_v13  ;;  %v3281_v57 = vadd.f32 1.0, %v9285_v45 }
 0x2de   : > { %v3403_v40 = vsel %vm1360_vm3, %v3400_v35, %v3402_v31  ;;  %v7317_v35 = vld [vmem:[%s14118_s0] sm:$0xf] }
 0x2df   : > { %v3484_v30 = vmax.f32 %v12114_v53, %v3403_v40  ;;  %v3068_v17 = vmul.f32 %v12195_v43, %v12195_v43  ;;  %v3317_v53 = vmul.f32 %v3281_v57, %v3029_v23  ;;  %v3211_v21 = vmul.f32 0.7978846, %v3175_v60 }
 0x2e0   : > { %v9287_v20 = vpop.eup %9286  ;;  %v7318_v25 = vor.u32 %v7909_v59, %v7317_v35 }
 0x2e1   : > { %v3569_v39 = vrot.slane %v3484_v30, 1  ;;  %v3104_v24 = vmul.f32 %v3068_v17, %v12195_v43  ;;  %v3404_v1 = vrot.slane %v3317_v53, 2  ;;  %9288 = vtanh.f32 %v3211_v21 }
 0x2e2   : > { %v3282_v28 = vadd.f32 1.0, %v9287_v20  ;;  %3854 = vmatmul.bf16.vlgmr.msra.gmra.mxu2 %v7318_v25 }
 0x2e3   : > { %v3570_v61 = vsel %vm1178_vm2, %v3567_v51, %v3569_v39  ;;  %v3140_v18 = vmul.f32 0.044715, %v3104_v24  ;;  %v3405_v27 = vsel %vm1360_vm3, %v3402_v31, %v3404_v1 }
 0x2e4   : > { %v3652_v29 = vmax.f32 %v3483_v2, %v3570_v61  ;;  %v3485_v5 = vmax.f32 %v12133_v9, %v3405_v27  ;;  %v12214_v26 = vmul.f32 %v3282_v28, %v3030_v8  ;;  %v7912_v8 = vld [vmem:[%s14118_s0 + $0x20] sm:$0xf0] }
 0x2e5   : > { %v3176_v56 = vadd.f32 %v3140_v18, %v12195_v43 }
 0x2e6   : > { %v12203_v11 = vpack.c.bf16 %v3652_v29, %v3651_v32  ;;  %v3571_v48 = vrot.slane %v3485_v5, 1  ;;  %v3406_v4 = vrot.slane %v12214_v26, 2  ;;  %v3032_v32 = vmul.f32 0.5, %v12195_v43 }
 0x2e7   : > { %v3212_v0 = vmul.f32 0.7978846, %v3176_v56  ;;  %v9289_v22 = vpop.eup %9288 }
 0x2e8   : > { %v3572_v58 = vsel %vm1178_vm2, %v3569_v39, %v3571_v48  ;;  %v3407_v36 = vsel %vm1360_vm3, %v3404_v1, %v3406_v4  ;;  %v3283_v63 = vadd.f32 1.0, %v9289_v22 }
 0x2e9   : > { %v3653_v9 = vmax.f32 %v3484_v30, %v3572_v58  ;;  %9290 = vtanh.f32 %v3212_v0  ;;  %v3486_v19 = vmax.f32 %v12178_v34, %v3407_v36 }
 0x2ea   : > { %v12227_v46 = vmul.f32 %v3283_v63, %v3031_v37 }
 0x2eb   : > { %v2982_v47 = vpop.f32.mrf.mxu1  ;;  %v3573_v14 = vrot.slane %v3486_v19, 1 }
 0x2ec   : > { %v2983_v6 = vadd.f32 %v12211_v62, %v2982_v47  ;;  %v3408_v7 = vrot.slane %v12227_v46, 2 }
 0x2ed   : > { %v3574_v34 = vsel %vm1178_vm2, %v3571_v48, %v3573_v14 }
 0x2ee   : > { %v3069_v42 = vmul.f32 %v2983_v6, %v2983_v6  ;;  %v3654_v54 = vmax.f32 %v3485_v5, %v3574_v34  ;;  %v3409_v33 = vsel %vm1360_vm3, %v3406_v4, %v3408_v7  ;;  %v3033_v56 = vmul.f32 0.5, %v2983_v6  ;;  %v7329_v5 = vld [vmem:[%s14118_s0 + $0x18] sm:$0xf] }
 0x2ef   : > { %v9291_v51 = vpop.eup %9290  ;;  %v3487_v10 = vmax.f32 %v12187_v15, %v3409_v33  ;;  %v7330_v0 = vor.u32 %v7912_v8, %v7329_v5 }
 0x2f0   : > { %v3105_v50 = vmul.f32 %v3069_v42, %v2983_v6  ;;  %v12232_v38 = vpack.c.bf16 %v3654_v54, %v3653_v9  ;;  %v3284_v44 = vadd.f32 1.0, %v9291_v51 }
 0x2f1   : > { %v3575_v41 = vrot.slane %v3487_v10, 1 }
 0x2f2   : > { %v3141_v13 = vmul.f32 0.044715, %v3105_v50  ;;  %v12236_v40 = vmul.f32 %v3284_v44, %v3032_v32  ;;  %3859 = vmatmul.bf16.gmra.mxu2 %v7330_v0 }
 0x2f3   : > { %v2984_v55 = vpop.f32.mrf.mxu1  ;;  %v3576_v39 = vsel %vm1178_vm2, %v3573_v14, %v3575_v41 }
 0x2f4   : > { %v2985_v49 = vadd.f32 %v12211_v62, %v2984_v55  ;;  %v3177_v3 = vadd.f32 %v3141_v13, %v2983_v6  ;;  %v3410_v17 = vrot.slane %v12236_v40, 2  ;;  %v3655_v45 = vmax.f32 %v3486_v19, %v3576_v39  ;;  %v7341_v13 = vld [vmem:[%s14118_s0 + $0x30] sm:$0xf] }
 0x2f6   : > { %v3070_v12 = vmul.f32 %v2985_v49, %v2985_v49  ;;  %v3213_v52 = vmul.f32 0.7978846, %v3177_v3  ;;  %v3411_v61 = vsel %vm1360_vm3, %v3408_v7, %v3410_v17  ;;  %v3034_v19 = vmul.f32 0.5, %v2985_v49 }
 0x2f7   : > { %v12242_v29 = vmax.f32 %v3317_v53, %v3411_v61 }
 0x2f8   : > { %v3106_v31 = vmul.f32 %v3070_v12, %v2985_v49  ;;  %9292 = vtanh.f32 %v3213_v52 }
 0x2f9   : > { %v3577_v60 = vrot.slane %v12242_v29, 1 }
 0x2fa   : > { %v3142_v16 = vmul.f32 0.044715, %v3106_v31 }
 0x2fb   : > { %v3578_v23 = vsel %vm1178_vm2, %v3575_v41, %v3577_v60 }
 0x2fc   : > { %v3178_v43 = vadd.f32 %v3142_v16, %v2985_v49  ;;  %v3656_v21 = vmax.f32 %v3487_v10, %v3578_v23 }
 0x2fe   : > { %v3214_v57 = vmul.f32 0.7978846, %v3178_v43  ;;  %v9293_v18 = vpop.eup %9292  ;;  %v12246_v1 = vpack.c.bf16 %v3656_v21, %v3655_v45 }
 0x2ff   : > { %v3285_v53 = vadd.f32 1.0, %v9293_v18 }
 0x300   : > { %9294 = vtanh.f32 %v3214_v57 }
 0x301   : > { %v12255_v55 = vmul.f32 %v3285_v53, %v3033_v56 }
 0x302   : > { %v2987_v2 = vpop.f32.mrf.mxu1 }
 0x303   : > { %v2988_v15 = vadd.f32 %v12211_v62, %v2987_v2  ;;  %v3412_v42 = vrot.slane %v12255_v55, 2 }
 0x305   : > { %v3071_v24 = vmul.f32 %v2988_v15, %v2988_v15  ;;  %v3413_v22 = vsel %vm1360_vm3, %v3410_v17, %v3412_v42  ;;  %v3035_v52 = vmul.f32 0.5, %v2988_v15 }
 0x306   : > { %v9295_v4 = vpop.eup %9294  ;;  %v3489_v36 = vmax.f32 %v12214_v26, %v3413_v22  ;;  %v7915_v26 = vld [vmem:[%s14118_s0 + $0x38] sm:$0xf0] }
 0x307   : > { %v3107_v20 = vmul.f32 %v3071_v24, %v2988_v15  ;;  %v3286_v37 = vadd.f32 1.0, %v9295_v4  ;;  %v7342_v54 = vor.u32 %v7915_v26, %v7341_v13 }
 0x308   : > { %v3579_v50 = vrot.slane %v3489_v36, 1 }
 0x309   : > { %v3143_v28 = vmul.f32 0.044715, %v3107_v20  ;;  %v12260_v59 = vmul.f32 %v3286_v37, %v3034_v19  ;;  %3864 = vmatmul.bf16.gmra.mxu2 %v7342_v54 }
 0x30a   : > { %v2989_v30 = vpop.f32.mrf.mxu1  ;;  %v3580_v25 = vsel %vm1178_vm2, %v3577_v60, %v3579_v50 }
 0x30b   : > { %v2990_v27 = vadd.f32 %v12211_v62, %v2989_v30  ;;  %v3179_v6 = vadd.f32 %v3143_v28, %v2988_v15  ;;  %v3414_v2 = vrot.slane %v12260_v59, 2  ;;  %v3657_v34 = vmax.f32 %v12242_v29, %v3580_v25 }
 0x30d   : > { %v3072_v48 = vmul.f32 %v2990_v27, %v2990_v27  ;;  %v3215_v63 = vmul.f32 0.7978846, %v3179_v6  ;;  %v3415_v12 = vsel %vm1360_vm3, %v3412_v42, %v3414_v2  ;;  %v3036_v20 = vmul.f32 0.5, %v2990_v27  ;;  %v7918_v42 = vld [vmem:[%s14118_s0 + $0x50] sm:$0xf0] }
 0x30e   : > { %v12273_v7 = vmax.f32 %v12227_v46, %v3415_v12 }
 0x30f   : > { %v3108_v9 = vmul.f32 %v3072_v48, %v2990_v27  ;;  %9296 = vtanh.f32 %v3215_v63 }
 0x310   : > { %v3581_v51 = vrot.slane %v12273_v7, 1 }
 0x311   : > { %v3144_v35 = vmul.f32 0.044715, %v3108_v9 }
 0x312   : > { %v3582_v31 = vsel %vm1178_vm2, %v3579_v50, %v3581_v51 }
 0x313   : > { %v3180_v49 = vadd.f32 %v3144_v35, %v2990_v27  ;;  %v3658_v41 = vmax.f32 %v3489_v36, %v3582_v31 }
 0x314   : > { %v2992_v47 = vpop.f32.mrf.mxu1 }
 0x315   : > { %v3216_v33 = vmul.f32 0.7978846, %v3180_v49  ;;  %v9297_v32 = vpop.eup %9296  ;;  %v12289_v30 = vadd.f32 %v12211_v62, %v2992_v47  ;;  %v12295_v45 = vpack.c.bf16 %v3658_v41, %v3657_v34  ;;  %v7365_v41 = vld [vmem:[%s14118_s0 + $0x60] sm:$0xf] }
 0x316   : > { %v3287_v17 = vadd.f32 1.0, %v9297_v32 }
 0x317   : > { %9298 = vtanh.f32 %v3216_v33  ;;  %v3073_v60 = vmul.f32 %v12289_v30, %v12289_v30 }
 0x318   : > { %v12300_v43 = vmul.f32 %v3287_v17, %v3035_v52 }
 0x319   : > { %v3109_v21 = vmul.f32 %v3073_v60, %v12289_v30 }
 0x31a   : > { %v3416_v47 = vrot.slane %v12300_v43, 2 }
 0x31b   : > { %v3145_v48 = vmul.f32 0.044715, %v3109_v21 }
 0x31c   : > { %v2994_v58 = vpop.f32.mrf.mxu1  ;;  %v3417_v28 = vsel %vm1360_vm3, %v3414_v2, %v3416_v47 }
 0x31d   : > { %v12286_v46 = vadd.f32 %v12211_v62, %v2994_v58  ;;  %v9299_v23 = vpop.eup %9298  ;;  %v7353_v58 = vld [vmem:[%s14118_s0 + $0x48] sm:$0xf]  ;;  %v3491_v22 = vmax.f32 %v12236_v40, %v3417_v28  ;;  %v3181_v50 = vadd.f32 %v3145_v48, %v12289_v30 }
 0x31e   : > { %v3288_v56 = vadd.f32 1.0, %v9299_v23  ;;  %v7354_v6 = vor.u32 %v7918_v42, %v7353_v58  ;;  %v3037_v42 = vmul.f32 0.5, %v12289_v30  ;;  %v7924_v30 = vld [vmem:[%s14118_s0 + $0x80] sm:$0xf0] }
 0x31f   : > { %v3074_v61 = vmul.f32 %v12286_v46, %v12286_v46  ;;  %v3583_v2 = vrot.slane %v3491_v22, 1  ;;  %v3217_v26 = vmul.f32 0.7978846, %v3181_v50  ;;  %v3038_v48 = vmul.f32 0.5, %v12286_v46 }
 0x320   : > { %v12309_v8 = vmul.f32 %v3288_v56, %v3036_v20  ;;  %3869 = vmatmul.bf16.gmra.mxu2 %v7354_v6 }
 0x321   : > { %v3110_v15 = vmul.f32 %v3074_v61, %v12286_v46 }
 0x322   : > { %v3418_v9 = vrot.slane %v12309_v8, 2 }
 0x323   : > { %v3146_v53 = vmul.f32 0.044715, %v3110_v15 }
 0x324   : > { %v2997_v14 = vpop.f32.mrf.mxu1  ;;  %v3419_v63 = vsel %vm1360_vm3, %v3416_v47, %v3418_v9 }
 0x325   : > { %v12277_v10 = vadd.f32 %v12211_v62, %v2997_v14  ;;  %v3182_v36 = vadd.f32 %v3146_v53, %v12286_v46  ;;  %v12328_v25 = vmax.f32 %v12255_v55, %v3419_v63  ;;  %v3584_v55 = vsel %vm1178_vm2, %v3581_v51, %v3583_v2  ;;  %v7377_v46 = vld [vmem:[%s14118_s0 + $0x78] sm:$0xf] }
 0x327   : > { %v3075_v16 = vmul.f32 %v12277_v10, %v12277_v10  ;;  %v3218_v40 = vmul.f32 0.7978846, %v3182_v36  ;;  %v3585_v13 = vrot.slane %v12328_v25, 1 }
 0x329   : > { %v3111_v24 = vmul.f32 %v3075_v16, %v12277_v10  ;;  %v3586_v33 = vsel %vm1178_vm2, %v3583_v2, %v3585_v13  ;;  %v3659_v16 = vmax.f32 %v12273_v7, %v3584_v55 }
 0x32a   : > { %v3660_v32 = vmax.f32 %v3491_v22, %v3586_v33 }
 0x32b   : > { %v3147_v18 = vmul.f32 0.044715, %v3111_v24 }
 0x32c   : > { %v2999_v3 = vpop.f32.mrf.mxu1 }
 0x32d   : > { %v12283_v44 = vadd.f32 %v12211_v62, %v2999_v3  ;;  %v3183_v27 = vadd.f32 %v3147_v18, %v12277_v10  ;;  %v3039_v18 = vmul.f32 0.5, %v12277_v10 }
 0x32f   : > { %v3076_v39 = vmul.f32 %v12283_v44, %v12283_v44  ;;  %v3219_v35 = vmul.f32 0.7978846, %v3183_v27  ;;  %v3040_v47 = vmul.f32 0.5, %v12283_v44 }
 0x331   : > { %v3112_v29 = vmul.f32 %v3076_v39, %v12283_v44 }
 0x333   : > { %v3148_v57 = vmul.f32 0.044715, %v3112_v29  ;;  %v12345_v29 = vpack.c.bf16 %v3660_v32, %v3659_v16 }
 0x335   : > { %v3184_v5 = vadd.f32 %v3148_v57, %v12283_v44 }
 0x337   : > { %v3220_v19 = vmul.f32 0.7978846, %v3184_v5 }
 0x339   : > { %9300 = vtanh.f32 %v3220_v19 }
 0x33a   : > { %9302 = vtanh.f32 %v3219_v35 }
 0x33b   : > { %v3002_v0 = vpop.f32.mrf.mxu1  ;;  %9304 = vtanh.f32 %v3218_v40 }
 0x33c   : > { %v3003_v4 = vadd.f32 %v12211_v62, %v3002_v0  ;;  %9306 = vtanh.f32 %v3217_v26  ;;  %v7378_v26 = vor.u32 %v7924_v30, %v7377_v46  ;;  %v7349_v46 = vld [vmem:[%s14118_s0 + $0x38] sm:$0xf]  ;;  %v7916_v30 = vld [vmem:[%s14118_s0 + $0x40] sm:$0xf0] }
 0x33e   : > { %v3077_v37 = vmul.f32 %v3003_v4, %v3003_v4  ;;  %v3041_v53 = vmul.f32 0.5, %v3003_v4 }
 0x33f   : > { %v9301_v39 = vpop.eup %9300 }
 0x340   : > { %v3113_v14 = vmul.f32 %v3077_v37, %v3003_v4  ;;  %v9303_v17 = vpop.eup %9302  ;;  %v3292_v60 = vadd.f32 1.0, %v9301_v39 }
 0x341   : > { %v9305_v24 = vpop.eup %9304  ;;  %v3291_v57 = vadd.f32 1.0, %v9303_v17 }
 0x342   : > { %v3149_v34 = vmul.f32 0.044715, %v3113_v14  ;;  %v9307_v15 = vpop.eup %9306  ;;  %v3328_v56 = vmul.f32 %v3292_v60, %v3040_v47  ;;  %v3290_v5 = vadd.f32 1.0, %v9305_v24 }
 0x343   : > { %v3004_v49 = vpop.f32.mrf.mxu1  ;;  %v3327_v28 = vmul.f32 %v3291_v57, %v3039_v18  ;;  %v3289_v0 = vadd.f32 1.0, %v9307_v15 }
 0x344   : > { %v3185_v12 = vadd.f32 %v3149_v34, %v3003_v4  ;;  %v3005_v54 = vadd.f32 %v12211_v62, %v3004_v49  ;;  %v7921_v62 = vld [vmem:[%s14118_s0 + $0x68] sm:$0xf0]  ;;  %v3326_v27 = vmul.f32 %v3290_v5, %v3038_v48  ;;  %v3426_v6 = vrot.slane %v3328_v56, 2  ;;  %v7389_v48 = vld [vmem:[%s14118_s0 + $0x90] sm:$0xf] }
 0x345   : > { %v7366_v61 = vor.u32 %v7921_v62, %v7365_v41  ;;  %v3325_v22 = vmul.f32 %v3289_v0, %v3037_v42  ;;  %v3424_v36 = vrot.slane %v3327_v28, 2  ;;  %v7927_v0 = vld [vmem:[%s14118_s0 + $0x98] sm:$0x70] }
 0x346   : > { %v3221_v3 = vmul.f32 0.7978846, %v3185_v12  ;;  %v3078_v31 = vmul.f32 %v3005_v54, %v3005_v54  ;;  %v3042_v37 = vmul.f32 0.5, %v3005_v54  ;;  %v3422_v50 = vrot.slane %v3326_v27, 2 }
 0x347   : > { %3874 = vmatmul.bf16.gmra.mxu2 %v7366_v61  ;;  %v3427_v63 = vsel %vm1360_vm3, %v3424_v36, %v3426_v6  ;;  %v3420_v2 = vrot.slane %v3325_v22, 2  ;;  %v9388_v61 = vmov 65535  }
 0x348   : > { %9308 = vtanh.f32 %v3221_v3  ;;  %v3114_v52 = vmul.f32 %v3078_v31, %v3005_v54  ;;  %v3425_v34 = vsel %vm1360_vm3, %v3422_v50, %v3424_v36  ;;  %v3496_v40 = vmax.f32 %v3325_v22, %v3427_v63  ;;  %v7325_v36 = vld [vmem:[%s14118_s0 + $0x8] sm:$0xf] }
 0x349   : > { %v3423_v12 = vsel %vm1360_vm3, %v3420_v2, %v3422_v50  ;;  %v3495_v33 = vmax.f32 %v12309_v8, %v3425_v34  ;;  %v3421_v31 = vsel %vm1360_vm3, %v3418_v9, %v3420_v2  ;;  %v3841_v60 = vsel %vm1360_vm3, 4294967295, %v9388_v61  ;;  %v7343_v2 = vld [vmem:[%s14118_s0 + $0x3c] sm:$0xf0] }
 0x34a   : > { %v3150_v51 = vmul.f32 0.044715, %v3114_v52  ;;  %v3593_v41 = vrot.slane %v3496_v40, 1  ;;  %v3494_v62 = vmax.f32 %v12300_v43, %v3423_v12 }
 0x34b   : > { %v3591_v17 = vrot.slane %v3495_v33, 1 }
 0x34c   : > { %v3186_v23 = vadd.f32 %v3150_v51, %v3005_v54  ;;  %v3493_v51 = vmax.f32 %v12260_v59, %v3421_v31  ;;  %v3589_v24 = vrot.slane %v3494_v62, 1 }
 0x34e   : > { %v9309_v21 = vpop.eup %9308  ;;  %v3222_v20 = vmul.f32 0.7978846, %v3186_v23  ;;  %v3594_v23 = vsel %vm1178_vm2, %v3591_v17, %v3593_v41  ;;  %v3592_v18 = vsel %vm1178_vm2, %v3589_v24, %v3591_v17  ;;  %v3587_v59 = vrot.slane %v3493_v51, 1 }
 0x34f   : > { %v3293_v7 = vadd.f32 1.0, %v9309_v21  ;;  %v3842_v21 = vsel %vm1178_vm2, %v3841_v60, 0  ;;  %v7385_v60 = vld [vmem:[%s14118_s0 + $0x80] sm:$0xf] }
 0x350   : > { %9310 = vtanh.f32 %v3222_v20 }
 0x351   : > { %v3329_v58 = vmul.f32 %v3293_v7, %v3041_v53  ;;  %v3664_v53 = vmax.f32 %v3495_v33, %v3594_v23  ;;  %v3590_v7 = vsel %vm1178_vm2, %v3587_v59, %v3589_v24  ;;  %v7917_v33 = vld [vmem:[%s14118_s0 + $0x4c] sm:$0xf]  ;;  %v7923_v23 = vld [vmem:[%s14118_s0 + $0x7c] sm:$0xf] }
 0x353   : > { %v3428_v44 = vrot.slane %v3329_v58, 2  ;;  %v3588_v58 = vsel %vm1178_vm2, %v3585_v13, %v3587_v59  ;;  %v7910_v13 = vld [vmem:[%s14118_s0 + $0x10] sm:$0xf0] }
 0x355   : > { %v3429_v10 = vsel %vm1360_vm3, %v3426_v6, %v3428_v44  ;;  %v7390_v6 = vor.u32 %v7927_v0, %v7389_v48 }
 0x356   : > { %v9311_v19 = vpop.eup %9310  ;;  %v3497_v35 = vmax.f32 %v3326_v27, %v3429_v10  ;;  %v3662_v27 = vmax.f32 %v3493_v51, %v3590_v7  ;;  %v7326_v10 = vor.u32 %v7910_v13, %v7325_v36 }
 0x357   : > { %v3294_v4 = vadd.f32 1.0, %v9311_v19  ;;  %3879 = vmatmul.bf16.gmra.mxu2 %v7378_v26  ;;  %v7361_v26 = vld [vmem:[%s14118_s0 + $0x50] sm:$0xf] }
 0x358   : > { %v3595_v54 = vrot.slane %v3497_v35, 1 }
 0x359   : > { %v3330_v14 = vmul.f32 %v3294_v4, %v3042_v37  ;;  %v7911_v4 = vld [vmem:[%s14118_s0 + $0x1c] sm:$0xf] }
 0x35a   : > { %v3596_v52 = vsel %vm1178_vm2, %v3593_v41, %v3595_v54  ;;  %v7922_v41 = vld [vmem:[%s14118_s0 + $0x70] sm:$0xf0] }
 0x35b   : > { %v3430_v49 = vrot.slane %v3330_v14, 2  ;;  %v3665_v15 = vmax.f32 %v3496_v40, %v3596_v52  ;;  %v7914_v14 = vld [vmem:[%s14118_s0 + $0x34] sm:$0xf]  ;;  %v7920_v52 = vld [vmem:[%s14118_s0 + $0x64] sm:$0xf] }
 0x35c   : > { %v7346_v40 = vor.u32 %v7914_v14, %v7343_v2 }
 0x35d   : > { %v3431_v55 = vsel %vm1360_vm3, %v3428_v44, %v3430_v49  ;;  %v3499_v3 = vmax.f32 %v3328_v56, %v3430_v49  ;;  %v3661_v44 = vmax.f32 %v12328_v25, %v3588_v58  ;;  %v7319_v25 = vld [vmem:[%s14118_s0 + $0xc] sm:$0xf0]  ;;  %v7919_v49 = vld [vmem:[%s14118_s0 + $0x58] sm:$0xf0] }
 0x35e   : > { %v3498_v32 = vmax.f32 %v3327_v28, %v3431_v55  ;;  %v3663_v28 = vmax.f32 %v3494_v62, %v3592_v18  ;;  %v7355_v55 = vld [vmem:[%s14118_s0 + $0x54] sm:$0xf0] }
 0x35f   : > { %v3599_v39 = vrot.slane %v3499_v3, 1  ;;  %v3710_v22 = vpack.c.bf16 %v3662_v27, %v3661_v44  ;;  %v7358_v31 = vor.u32 %v7917_v33, %v7355_v55 }
 0x360   : > { %v3597_v16 = vrot.slane %v3498_v32, 1  ;;  %v3711_v42 = vpack.c.bf16 %v3664_v53, %v3663_v28 }
 0x361   : > { %v3668_v47 = vmax.f32 %v3499_v3, %v3599_v39 }
 0x362   : > { %v3598_v8 = vsel %vm1178_vm2, %v3595_v54, %v3597_v16  ;;  %v3600_v9 = vsel %vm1178_vm2, %v3597_v16, %v3599_v39  ;;  %v7362_v54 = vor.u32 %v7919_v49, %v7361_v26  ;;  %v7367_v16 = vld [vmem:[%s14118_s0 + $0x6c] sm:$0xf0] }
 0x363   : > { %v3666_v43 = vmax.f32 %v3497_v35, %v3598_v8  ;;  %v3667_v57 = vmax.f32 %v3498_v32, %v3600_v9  ;;  %v7350_v35 = vor.u32 %v7916_v30, %v7349_v46  ;;  %v7373_v32 = vld [vmem:[%s14118_s0 + $0x68] sm:$0xf]  ;;  %v7370_v51 = vor.u32 %v7920_v52, %v7367_v16  ;;  %v7925_v8 = vld [vmem:[%s14118_s0 + $0x88] sm:$0xf0] }
 0x364   : > { %v7374_v39 = vor.u32 %v7922_v41, %v7373_v32  ;;  %v7386_v24 = vor.u32 %v7925_v8, %v7385_v60 }
 0x365   : > { %v3712_v20 = vpack.c.bf16 %v3666_v43, %v3665_v15  ;;  %v3713_v56 = vpack.c.bf16 %v3668_v47, %v3667_v57  ;;  %v12411_v37 = vpop.f32.mrf.mxu2  ;;  %v7379_v15 = vld [vmem:[%s14118_s0 + $0x84] sm:$0xf0]  ;;  %v7397_v47 = vld [vmem:[%s14118_s0 + $0x98] sm:$0xf] }
 0x366   : > { %v7382_v57 = vor.u32 %v7923_v23, %v7379_v15 }
 0x367   : > { %3889 = vmatpush.bf16.msra.mxu3 %v3712_v20  ;;  %v3844_v5 = vand.u32 %v3842_v21, %v3713_v56  ;;  %3884 = vmatmul.bf16.gmra.mxu2 %v7390_v6  ;;  %v7928_v21 = vld [vmem:[%s14118_s0 + $0xa0] sm:$0x70]  ;;  %v7926_v20 = vld [vmem:[%s14118_s0 + $0x94] sm:$0xf]  ;;  %v7391_v56 = vld [vmem:[%s14118_s0 + $0x9c] sm:$0x70] }
 0x368   : > { %v7398_v59 = vor.u32 %v7928_v21, %v7397_v47  ;;  %v7394_v7 = vor.u32 %v7926_v20, %v7391_v56 }
 0x369   : > { %3939 = vmatpush.bf16.msrb.mxu2 %v3844_v5 }
 0x36b   : > { %3890 = vmatpush.bf16.msra.mxu3 %v3711_v42 }
 0x36d   : > { %v3857_v63 = vpop.f32.mrf.mxu2 }
 0x36f   : > { %3891 = vmatpush.bf16.msra.mxu3 %v3710_v22 }
 0x373   : > { %3892 = vmatpush.bf16.msra.mxu3 %v12345_v29 }
 0x375   : > { %v3860_v34 = vpop.f32.mrf.mxu2 }
 0x377   : > { %3893 = vmatpush.bf16.msra.mxu3 %v12295_v45  ;;  %7399 = vmatmul.msk.bf16.vlgmr.msrb.gmra.mxu2 %vm3819_vm15, %v7326_v10  ;;  %v7908_v45 = vld [vmem:[%s14118_s0 + $0x4] sm:$0xf] }
 0x378   : > { %v7322_v29 = vor.u32 %v7908_v45, %v7319_v25 }
 0x37b   : > { %3894 = vmatpush.bf16.msra.mxu3 %v12246_v1  ;;  %v7337_v1 = vld [vmem:[%s14118_s0 + $0x20] sm:$0xf] }
 0x37d   : > { %v12439_v12 = vpop.f32.mrf.mxu2 }
 0x37f   : > { %3895 = vmatpush.bf16.msra.mxu3 %v12232_v38  ;;  %v7913_v38 = vld [vmem:[%s14118_s0 + $0x28] sm:$0xf0] }
 0x380   : > { %v7338_v19 = vor.u32 %v7913_v38, %v7337_v1 }
 0x383   : > { %3896 = vmatpush.bf16.msra.mxu3 %v12203_v11  ;;  %v7331_v11 = vld [vmem:[%s14118_s0 + $0x24] sm:$0xf0]  ;;  %s14131_s0 = sld [smem:[#allocation31_spill]] }
 0x384   : > { %v7334_v50 = vor.u32 %v7911_v4, %v7331_v11 }
 0x386   : > { %3897 = vmatmul.bf16.vlgmr.msra.gmra.mxu3 %v7322_v29 }
 0x387   : > { %7400 = vmatmul.msk.bf16.gmra.mxu2 %vm3819_vm15, %v7338_v19 }
 0x38c   : > { %v12448_v3 = vpop.f32.mrf.mxu2 }
 0x394   : > { %v12456_v62 = vpop.f32.mrf.mxu2 }
 0x396   : > { %3902 = vmatmul.bf16.gmra.mxu3 %v7334_v50 }
 0x397   : > { %7401 = vmatmul.msk.bf16.gmra.mxu2 %vm3819_vm15, %v7350_v35 }
 0x3a3   : > { %v12465_v17 = vpop.f32.mrf.mxu2 }
 0x3a6   : > { %3907 = vmatmul.bf16.gmra.mxu3 %v7346_v40 }
 0x3a7   : > { %7402 = vmatmul.msk.bf16.gmra.mxu2 %vm3819_vm15, %v7362_v54 }
 0x3ab   : > { %v12473_v9 = vpop.f32.mrf.mxu2 }
 0x3b6   : > { %3912 = vmatmul.bf16.gmra.mxu3 %v7358_v31 }
 0x3b7   : > { %7403 = vmatmul.msk.bf16.gmra.mxu2 %vm3819_vm15, %v7374_v39 }
 0x3c6   : > { %3917 = vmatmul.bf16.gmra.mxu3 %v7370_v51 }
 0x3c7   : > { %7404 = vmatmul.msk.bf16.gmra.mxu2 %vm3819_vm15, %v7386_v24 }
 0x3ca   : > { %v12482_v43 = vpop.f32.mrf.mxu2 }
 0x3d2   : > { %v12490_v18 = vpop.f32.mrf.mxu2 }
 0x3d6   : > { %3922 = vmatmul.bf16.gmra.mxu3 %v7382_v57 }
 0x3d7   : > { %7405 = vmatmul.msk.bf16.gmra.mxu2 %vm3819_vm15, %v7398_v59  ;;  %vm5642_vm15 = vcmask 1040384  }
 0x3da   : > { %v12499_v53 = vpop.f32.mrf.mxu2 }
 0x3e2   : > { %v12501_v5 = vpop.f32.mrf.mxu2 }
 0x3e6   : > { %3927 = vmatmul.bf16.gmra.mxu3 %v7394_v7 }
 0x3ea   : > { %v12503_v28 = vpop.f32.mrf.mxu2 }
 0x3f2   : > { %v3887_v48 = vpop.f32.mrf.mxu2 }
 0x3fa   : > { %v3941_v0 = vpop.f32.mrf.mxu2 }
 0x402   : > { %v3943_v42 = vpop.f32.mrf.mxu2 }
 0x409   : > { %v3898_v58 = vpop.f32.mrf.mxu3 }
 0x40a   : > { %v3946_v6 = vpop.f32.mrf.mxu2  ;;  %v3899_v22 = vadd.f32 %v3898_v58, %v12411_v37 }
 0x40c   : > { %v12508_v45 = vadd.f32 %v3941_v0, %v3899_v22 }
 0x40e   : > { %v3986_v19 = vrot.slane %v12508_v45, 1  ;;  %v4037_v4 = vrot.slane %v12508_v45, 2 }
 0x411   : > { %v3900_v27 = vpop.f32.mrf.mxu3 }
 0x412   : > { %v3901_v44 = vadd.f32 %v3900_v27, %v3857_v63  ;;  %v3948_v10 = vpop.f32.mrf.mxu2 }
 0x414   : > { %v12506_v36 = vadd.f32 %v3943_v42, %v3901_v44 }
 0x416   : > { %v4038_v1 = vrot.slane %v12506_v36, 2  ;;  %v3987_v38 = vrot.slane %v12506_v36, 1  ;;  %v4172_v33 = vrot.slane %v12506_v36, 4  ;;  %v4121_v32 = vrot.slane %v12506_v36, 3 }
 0x418   : > { %v4039_v50 = vsel %vm1360_vm3, %v4037_v4, %v4038_v1  ;;  %v3988_v46 = vsel %vm1178_vm2, %v3986_v19, %v3987_v38 }
 0x419   : > { %v3903_v13 = vpop.f32.mrf.mxu3 }
 0x41a   : > { %v3904_v25 = vadd.f32 %v3903_v13, %v3860_v34  ;;  %v3951_v34 = vpop.f32.mrf.mxu2 }
 0x41c   : > { %v12510_v29 = vadd.f32 %v3946_v6, %v3904_v25 }
 0x41e   : > { %v4040_v11 = vrot.slane %v12510_v29, 2  ;;  %v3989_v37 = vrot.slane %v12510_v29, 1  ;;  %v4173_v26 = vrot.slane %v12510_v29, 4  ;;  %v4122_v54 = vrot.slane %v12510_v29, 3 }
 0x41f   : > { %v4307_v20 = vrot.slane %v12510_v29, 6 }
 0x420   : > { %v4041_v63 = vsel %vm1360_vm3, %v4038_v1, %v4040_v11  ;;  %v3990_v30 = vsel %vm1178_vm2, %v3987_v38, %v3989_v37  ;;  %v4174_v41 = vsel %vm1021_vm0, %v4172_v33, %v4173_v26  ;;  %v4123_v16 = vsel %vm1656_vm4, %v4121_v32, %v4122_v54 }
 0x421   : > { %v3905_v35 = vpop.f32.mrf.mxu3  ;;  %v8791_v14 = vpack.i.bf16 %v4041_v63, %v4039_v50  ;;  %v8786_v2 = vpack.i.bf16 %v3990_v30, %v3988_v46 }
 0x422   : > { %v3906_v40 = vadd.f32 %v3905_v35, %v12439_v12  ;;  %v3953_v15 = vpop.f32.mrf.mxu2 }
 0x423   : > { %8792 = vrot.lane.b32.xlu1 %v8791_v14, %s14044_s29  ;;  %8787 = vrot.lane.b32.xlu0 %v8786_v2, %s14043_s3 }
 0x424   : > { %v12528_v49 = vadd.f32 %v3948_v10, %v3906_v40 }
 0x426   : > { %v4042_v55 = vrot.slane %v12528_v49, 2  ;;  %v4175_v31 = vrot.slane %v12528_v49, 4  ;;  %v4124_v12 = vrot.slane %v12528_v49, 3  ;;  %v4308_v47 = vrot.slane %v12528_v49, 6 }
 0x427   : > { %v4257_v59 = vrot.slane %v12528_v49, 5 }
 0x428   : > { %v4043_v39 = vsel %vm1360_vm3, %v4040_v11, %v4042_v55  ;;  %v4176_v52 = vsel %vm1021_vm0, %v4173_v26, %v4175_v31  ;;  %v4125_v51 = vsel %vm1656_vm4, %v4122_v54, %v4124_v12  ;;  %v4309_v0 = vsel %vm2315_vm5, %v4307_v20, %v4308_v47 }
 0x429   : > { %v3908_v60 = vpop.f32.mrf.mxu3  ;;  %v8796_v8 = vpack.i.bf16 %v4043_v39, %v4041_v63  ;;  %v8806_v24 = vpack.i.bf16 %v4176_v52, %v4174_v41  ;;  %v8801_v23 = vpack.i.bf16 %v4125_v51, %v4123_v16  ;;  %v3991_v11 = vrot.slane %v12528_v49, 1 }
 0x42a   : > { %v3909_v57 = vadd.f32 %v3908_v60, %v12448_v3  ;;  %v4256_v3 = vrot.slane %v12510_v29, 5  ;;  %v3956_v25 = vpop.f32.mrf.mxu2 }
 0x42b   : > { %8797 = vrot.lane.b32.xlu2 %v8796_v8, %s14045_s5  ;;  %8807 = vrot.lane.b32.xlu1 %v8806_v24, %s14042_s6  ;;  %v3992_v46 = vsel %vm1178_vm2, %v3989_v37, %v3991_v11 }
 0x42c   : > { %v12547_v21 = vadd.f32 %v3951_v34, %v3909_v57  ;;  %8802 = vrot.lane.b32.xlu0 %v8801_v23, %s14046_s12  ;;  %v4258_v27 = vsel %vm2133_vm6, %v4256_v3, %v4257_v59 }
 0x42e   : > { %v4177_v56 = vrot.slane %v12547_v21, 4  ;;  %v4310_v7 = vrot.slane %v12547_v21, 6  ;;  %v4259_v48 = vrot.slane %v12547_v21, 5  ;;  %v3993_v38 = vrot.slane %v12547_v21, 1 }
 0x42f   : > { %v4044_v19 = vrot.slane %v12547_v21, 2 }
 0x430   : > { %v4178_v58 = vsel %vm1021_vm0, %v4175_v31, %v4177_v56  ;;  %v4311_v42 = vsel %vm2315_vm5, %v4308_v47, %v4310_v7  ;;  %v4260_v6 = vsel %vm2133_vm6, %v4257_v59, %v4259_v48  ;;  %v3994_v50 = vsel %vm1178_vm2, %v3991_v11, %v3993_v38 }
 0x431   : > { %v3910_v44 = vpop.f32.mrf.mxu3  ;;  %v8811_v22 = vpack.i.bf16 %v4178_v58, %v4176_v52  ;;  %v8821_v13 = vpack.i.bf16 %v4311_v42, %v4309_v0  ;;  %v8816_v10 = vpack.i.bf16 %v4260_v6, %v4258_v27  ;;  %v8826_v14 = vpack.i.bf16 %v3994_v50, %v3992_v46 }
 0x432   : > { %v3911_v1 = vadd.f32 %v3910_v44, %v12456_v62  ;;  %v4045_v62 = vsel %vm1360_vm3, %v4042_v55, %v4044_v19  ;;  %v3958_v34 = vpop.f32.mrf.mxu2  ;;  %v4126_v55 = vrot.slane %v12547_v21, 3 }
 0x433   : > { %8812 = vrot.lane.b32.xlu2 %v8811_v22, %s14048_s11  ;;  %8822 = vrot.lane.b32.xlu1 %v8821_v13, %s14047_s10  ;;  %v8831_v40 = vpack.i.bf16 %v4045_v62, %v4043_v39 }
 0x434   : > { %v12568_v4 = vadd.f32 %v3953_v15, %v3911_v1  ;;  %8817 = vrot.lane.b32.xlu0 %v8816_v10, %s14049_s7  ;;  %v4127_v41 = vsel %vm1656_vm4, %v4124_v12, %v4126_v55 }
 0x436   : > { %v4046_v63 = vrot.slane %v12568_v4, 2  ;;  %v4128_v54 = vrot.slane %v12568_v4, 3  ;;  %v4179_v33 = vrot.slane %v12568_v4, 4  ;;  %v4261_v57 = vrot.slane %v12568_v4, 5 }
 0x437   : > { %v3995_v47 = vrot.slane %v12568_v4, 1  ;;  %v4312_v59 = vrot.slane %v12568_v4, 6 }
 0x438   : > { %v12579_v30 = vsel %vm1360_vm3, %v4044_v19, %v4046_v63  ;;  %v4129_v31 = vsel %vm1656_vm4, %v4126_v55, %v4128_v54  ;;  %v4262_v0 = vsel %vm2133_vm6, %v4259_v48, %v4261_v57 }
 0x439   : > { %v3913_v35 = vpop.f32.mrf.mxu3  ;;  %v8836_v2 = vpack.i.bf16 %v12579_v30, %v4045_v62  ;;  %v8841_v16 = vpack.i.bf16 %v4129_v31, %v4127_v41  ;;  %v4313_v44 = vsel %vm2315_vm5, %v4310_v7, %v4312_v59 }
 0x43a   : > { %v3914_v26 = vadd.f32 %v3913_v35, %v12465_v17  ;;  %v4180_v17 = vsel %vm1021_vm0, %v4177_v56, %v4179_v33  ;;  %v3961_v60 = vpop.f32.mrf.mxu2 }
 0x43b   : > { %8827 = vrot.lane.b32.xlu2 %v8826_v14, %s14043_s3  ;;  %8837 = vrot.lane.b32.xlu1 %v8836_v2, %s14045_s5  ;;  %v8846_v24 = vpack.i.bf16 %v4180_v17, %v4178_v58  ;;  %v3996_v58 = vsel %vm1178_vm2, %v3993_v38, %v3995_v47 }
 0x43c   : > { %v12587_v37 = vadd.f32 %v3956_v25, %v3914_v26  ;;  %8832 = vrot.lane.b32.xlu0 %v8831_v40, %s14044_s29 }
 0x43e   : > { %v4181_v32 = vrot.slane %v12587_v37, 4  ;;  %v4263_v23 = vrot.slane %v12587_v37, 5  ;;  %v3997_v15 = vrot.slane %v12587_v37, 1  ;;  %v4314_v12 = vrot.slane %v12587_v37, 6 }
 0x43f   : > { %v4048_v25 = vrot.slane %v12587_v37, 2  ;;  %v4130_v38 = vrot.slane %v12587_v37, 3 }
 0x440   : > { %v12598_v39 = vsel %vm1021_vm0, %v4179_v33, %v4181_v32  ;;  %v4264_v20 = vsel %vm2133_vm6, %v4261_v57, %v4263_v23  ;;  %v3998_v56 = vsel %vm1178_vm2, %v3995_v47, %v3997_v15  ;;  %v4315_v3 = vsel %vm2315_vm5, %v4312_v59, %v4314_v12 }
 0x441   : > { %v3915_v52 = vpop.f32.mrf.mxu3  ;;  %v8851_v51 = vpack.i.bf16 %v12598_v39, %v4180_v17  ;;  %v8856_v27 = vpack.i.bf16 %v4264_v20, %v4262_v0  ;;  %v8866_v6 = vpack.i.bf16 %v3998_v56, %v3996_v58  ;;  %v8861_v10 = vpack.i.bf16 %v4315_v3, %v4313_v44 }
 0x442   : > { %v3916_v8 = vadd.f32 %v3915_v52, %v12473_v9  ;;  %v3963_v22 = vpop.f32.mrf.mxu2  ;;  %v4049_v7 = vsel %vm1360_vm3, %v4046_v63, %v4048_v25  ;;  %v4131_v50 = vsel %vm1656_vm4, %v4128_v54, %v4130_v38 }
 0x443   : > { %8842 = vrot.lane.b32.xlu2 %v8841_v16, %s14046_s12  ;;  %8852 = vrot.lane.b32.xlu1 %v8851_v51, %s14048_s11  ;;  %v8871_v46 = vpack.i.bf16 %v4049_v7, %v12579_v30 }
 0x444   : > { %8847 = vrot.lane.b32.xlu0 %v8846_v24, %s14042_s6  ;;  %v12611_v9 = vadd.f32 %v3958_v34, %v3916_v8 }
 0x446   : > { %v4132_v1 = vrot.slane %v12611_v9, 3  ;;  %v4050_v48 = vrot.slane %v12611_v9, 2  ;;  %v4183_v34 = vrot.slane %v12611_v9, 4  ;;  %v4265_v26 = vrot.slane %v12611_v9, 5 }
 0x447   : > { %v4316_v24 = vrot.slane %v12611_v9, 6 }
 0x448   : > { %v4051_v11 = vsel %vm1360_vm3, %v4048_v25, %v4050_v48  ;;  %v4184_v54 = vsel %vm1021_vm0, %v4181_v32, %v4183_v34  ;;  %v4266_v55 = vsel %vm2133_vm6, %v4263_v23, %v4265_v26 }
 0x449   : > { %v3918_v42 = vpop.f32.mrf.mxu3  ;;  %v8876_v2 = vpack.i.bf16 %v4051_v11, %v4049_v7  ;;  %v8886_v17 = vpack.i.bf16 %v4184_v54, %v12598_v39  ;;  %v3999_v39 = vrot.slane %v12611_v9, 1  ;;  %v4317_v59 = vsel %vm2315_vm5, %v4314_v12, %v4316_v24 }
 0x44a   : > { %v3919_v13 = vadd.f32 %v3918_v42, %v12482_v43  ;;  %v4133_v43 = vsel %vm1656_vm4, %v4130_v38, %v4132_v1  ;;  %v3966_v14 = vpop.f32.mrf.mxu2 }
 0x44b   : > { %8857 = vrot.lane.b32.xlu2 %v8856_v27, %s14049_s7  ;;  %8867 = vrot.lane.b32.xlu1 %v8866_v6, %s14043_s3  ;;  %v8881_v35 = vpack.i.bf16 %v4133_v43, %v4131_v50  ;;  %v4000_v0 = vsel %vm1178_vm2, %v3997_v15, %v3999_v39 }
 0x44c   : > { %8862 = vrot.lane.b32.xlu0 %v8861_v10, %s14047_s10  ;;  %v12633_v19 = vadd.f32 %v3961_v60, %v3919_v13 }
 0x44e   : > { %v4267_v40 = vrot.slane %v12633_v19, 5  ;;  %v4185_v63 = vrot.slane %v12633_v19, 4  ;;  %v4318_v60 = vrot.slane %v12633_v19, 6  ;;  %v4052_v32 = vrot.slane %v12633_v19, 2 }
 0x44f   : > { %v4001_v8 = vrot.slane %v12633_v19, 1 }
 0x450   : > { %v4268_v30 = vsel %vm2133_vm6, %v4265_v26, %v4267_v40  ;;  %v4186_v33 = vsel %vm1021_vm0, %v4183_v34, %v4185_v63  ;;  %v4053_v57 = vsel %vm1360_vm3, %v4050_v48, %v4052_v32 }
 0x451   : > { %v3920_v62 = vpop.f32.mrf.mxu3  ;;  %v8896_v41 = vpack.i.bf16 %v4268_v30, %v4266_v55  ;;  %v8891_v51 = vpack.i.bf16 %v4186_v33, %v4184_v54  ;;  %v4002_v47 = vsel %vm1178_vm2, %v3999_v39, %v4001_v8  ;;  %v8911_v3 = vpack.i.bf16 %v4053_v57, %v4051_v11 }
 0x452   : > { %v3968_v52 = vpop.f32.mrf.mxu2  ;;  %v3921_v16 = vadd.f32 %v3920_v62, %v12490_v18  ;;  %v4319_v18 = vsel %vm2315_vm5, %v4316_v24, %v4318_v60  ;;  %v8906_v27 = vpack.i.bf16 %v4002_v47, %v4000_v0 }
 0x453   : > { %8872 = vrot.lane.b32.xlu2 %v8871_v46, %s14044_s29  ;;  %8882 = vrot.lane.b32.xlu1 %v8881_v35, %s14046_s12  ;;  %v8901_v56 = vpack.i.bf16 %v4319_v18, %v4317_v59 }
 0x454   : > { %8877 = vrot.lane.b32.xlu0 %v8876_v2, %s14045_s5  ;;  %v12665_v23 = vadd.f32 %v3963_v22, %v3921_v16  ;;  %v4134_v22 = vrot.slane %v12633_v19, 3 }
 0x456   : > { %v4054_v6 = vrot.slane %v12665_v23, 2  ;;  %v4187_v44 = vrot.slane %v12665_v23, 4  ;;  %v4136_v12 = vrot.slane %v12665_v23, 3  ;;  %v4135_v7 = vsel %vm1656_vm4, %v4132_v1, %v4134_v22 }
 0x457   : > { %v4269_v1 = vrot.slane %v12665_v23, 5 }
 0x458   : > { %v4055_v15 = vsel %vm1360_vm3, %v4052_v32, %v4054_v6  ;;  %v4137_v10 = vsel %vm1656_vm4, %v4134_v22, %v4136_v12  ;;  %v7932_v22 = vld [vmem:[%s14119_s8 + $0x18] sm:$0xff] }
 0x459   : > { %v3923_v31 = vpop.f32.mrf.mxu3  ;;  %v8916_v48 = vpack.i.bf16 %v4055_v15, %v4053_v57  ;;  %v8921_v50 = vpack.i.bf16 %v4137_v10, %v4135_v7 }
 0x45a   : > { %v3971_v58 = vpop.f32.mrf.mxu2  ;;  %v3924_v42 = vadd.f32 %v3923_v31, %v12499_v53  ;;  %v4188_v53 = vsel %vm1021_vm0, %v4185_v63, %v4187_v44 }
 0x45b   : > { %8887 = vrot.lane.b32.xlu2 %v8886_v17, %s14042_s6  ;;  %8897 = vrot.lane.b32.xlu1 %v8896_v41, %s14049_s7  ;;  %v8926_v38 = vpack.i.bf16 %v4188_v53, %v4186_v33  ;;  %v4270_v33 = vsel %vm2133_vm6, %v4267_v40, %v4269_v1 }
 0x45c   : > { %8892 = vrot.lane.b32.xlu0 %v8891_v51, %s14048_s11  ;;  %v12686_v13 = vadd.f32 %v3966_v14, %v3924_v42  ;;  %v4320_v14 = vrot.slane %v12665_v23, 6  ;;  %v4003_v51 = vrot.slane %v12665_v23, 1 }
 0x45e   : > { %v4189_v62 = vrot.slane %v12686_v13, 4  ;;  %v4322_v46 = vrot.slane %v12686_v13, 6  ;;  %v4271_v35 = vrot.slane %v12686_v13, 5  ;;  %v4321_v26 = vsel %vm2315_vm5, %v4318_v60, %v4320_v14 }
 0x45f   : > { %v4005_v41 = vrot.slane %v12686_v13, 1  ;;  %v4056_v16 = vrot.slane %v12686_v13, 2  ;;  %v4004_v24 = vsel %vm1178_vm2, %v4001_v8, %v4003_v51  ;;  %v4138_v8 = vrot.slane %v12686_v13, 3 }
 0x460   : > { %v4323_v34 = vsel %vm2315_vm5, %v4320_v14, %v4322_v46  ;;  %v4272_v63 = vsel %vm2133_vm6, %v4269_v1, %v4271_v35  ;;  %v7930_v14 = vld [vmem:[%s14119_s8 + $0x8] sm:$0xff] }
 0x461   : > { %v3925_v20 = vpop.f32.mrf.mxu3  ;;  %v8941_v30 = vpack.i.bf16 %v4323_v34, %v4321_v26  ;;  %v8936_v17 = vpack.i.bf16 %v4272_v63, %v4270_v33  ;;  %v4006_v40 = vsel %vm1178_vm2, %v4003_v51, %v4005_v41  ;;  %v4057_v32 = vsel %vm1360_vm3, %v4054_v6, %v4056_v16 }
 0x462   : > { %v3973_v43 = vpop.f32.mrf.mxu2  ;;  %v3926_v11 = vadd.f32 %v3925_v20, %v12501_v5  ;;  %v4190_v5 = vsel %vm1021_vm0, %v4187_v44, %v4189_v62  ;;  %v8946_v39 = vpack.i.bf16 %v4006_v40, %v4004_v24  ;;  %v8951_v47 = vpack.i.bf16 %v4057_v32, %v4055_v15  ;;  %v4451_v20 = vld [vmem:[%s14119_s8 + $0x20] sm:$0xf] }
 0x463   : > { %8902 = vrot.lane.b32.xlu2 %v8901_v56, %s14047_s10  ;;  %8912 = vrot.lane.b32.xlu1 %v8911_v3, %s14044_s29  ;;  %v8931_v54 = vpack.i.bf16 %v4190_v5, %v4188_v53  ;;  %v4473_v3 = vunpack.c.l.b16 %v4451_v20  ;;  %v4139_v44 = vsel %vm1656_vm4, %v4136_v12, %v4138_v8  ;;  %v7931_v12 = vld [vmem:[%s14119_s8 + $0x10] sm:$0xff] }
 0x464   : > { %8907 = vrot.lane.b32.xlu0 %v8906_v27, %s14043_s3  ;;  %v12705_v2 = vadd.f32 %v3968_v52, %v3926_v11 }
 0x465   : > { %v4478_v0 = vpack.c.b16 %v4473_v3, %v4473_v3 }
 0x466   : > { %v4089_v52 = vrot.slane %v12705_v2, 2  ;;  %v4140_v59 = vrot.slane %v12705_v2, 3  ;;  %v4191_v56 = vrot.slane %v12705_v2, 4  ;;  %v4324_v43 = vrot.slane %v12705_v2, 6 }
 0x467   : > { %v4499_v6 = vsel %vm1021_vm0, %v4478_v0, 0 }
 0x468   : > { %v4192_v27 = vsel %vm1021_vm0, %v4189_v62, %v4191_v56  ;;  %4504 = vmatpush.bf16.msrb.mxu3 %v4499_v6 }
 0x469   : > { %v3928_v25 = vpop.f32.mrf.mxu3 }
 0x46a   : > { %v3929_v31 = vadd.f32 %v3928_v25, %v12503_v28  ;;  %v4090_v28 = vsel %vm1360_vm3, %v4056_v16, %v4089_v52  ;;  %v8966_v25 = vpack.i.bf16 %v4192_v27, %v4190_v5  ;;  %v4325_v5 = vsel %vm2315_vm5, %v4322_v46, %v4324_v43 }
 0x46b   : > { %8917 = vrot.lane.b32.xlu2 %v8916_v48, %s14045_s5  ;;  %8927 = vrot.lane.b32.xlu1 %v8926_v38, %s14042_s6  ;;  %v8956_v18 = vpack.i.bf16 %v4090_v28, %v4057_v32  ;;  %v4273_v38 = vrot.slane %v12705_v2, 5 }
 0x46c   : > { %8922 = vrot.lane.b32.xlu0 %v8921_v50, %s14046_s12  ;;  %v3972_v60 = vadd.f32 %v3971_v58, %v3929_v31  ;;  %v4141_v58 = vsel %vm1656_vm4, %v4138_v8, %v4140_v59  ;;  %4505 = vmatpush.bf16.msrb.mxu3 %v7932_v22 }
 0x46d   : > { %v8961_v15 = vpack.i.bf16 %v4141_v58, %v4139_v44  ;;  %v4274_v62 = vsel %vm2133_vm6, %v4271_v35, %v4273_v38  ;;  %v7929_v35 = vld [vmem:[%s14119_s8] sm:$0xff] }
 0x46e   : > { %v4224_v57 = vrot.slane %v3972_v60, 4  ;;  %v4275_v10 = vrot.slane %v3972_v60, 5  ;;  %v4326_v48 = vrot.slane %v3972_v60, 6 }
 0x470   : > { %v4225_v42 = vsel %vm1021_vm0, %v4191_v56, %v4224_v57  ;;  %v4276_v11 = vsel %vm2133_vm6, %v4273_v38, %v4275_v10  ;;  %v4327_v50 = vsel %vm2315_vm5, %v4324_v43, %v4326_v48  ;;  %4506 = vmatpush.bf16.msrb.mxu3 %v7931_v12 }
 0x471   : > { %v3930_v55 = vpop.f32.mrf.mxu3  ;;  %v8971_v53 = vpack.i.bf16 %v4225_v42, %v4192_v27  ;;  %v8976_v1 = vpack.i.bf16 %v4276_v11, %v4274_v62  ;;  %v8981_v34 = vpack.i.bf16 %v4327_v50, %v4325_v5 }
 0x473   : > { %8932 = vrot.lane.b32.xlu2 %v8931_v54, %s14048_s11  ;;  %8942 = vrot.lane.b32.xlu1 %v8941_v30, %s14047_s10 }
 0x474   : > { %8937 = vrot.lane.b32.xlu0 %v8936_v17, %s14049_s7  ;;  %4507 = vmatpush.bf16.msrb.mxu3 %v7930_v14 }
 0x478   : > { %4508 = vmatpush.bf16.msrb.mxu3 %v7929_v35 }
 0x47b   : > { %8947 = vrot.lane.b32.xlu2 %v8946_v39, %s14043_s3  ;;  %8957 = vrot.lane.b32.xlu1 %v8956_v18, %s14045_s5  ;;  %s14016_s3 = smov 112   ;;  %s14014_s5 = smov 96  }
 0x47c   : > { %8952 = vrot.lane.b32.xlu0 %v8951_v47, %s14044_s29 }
 0x483   : > { %8962 = vrot.lane.b32.xlu2 %v8961_v15, %s14046_s12  ;;  %8972 = vrot.lane.b32.xlu1 %v8971_v53, %s14048_s11 }
 0x484   : > { %8967 = vrot.lane.b32.xlu0 %v8966_v25, %s14042_s6 }
 0x485   : > { %v8798_v7 = vpop.permute.xlu2 %8797 }
 0x486   : > { %v8800_v51 = vunpack.i.h.bf16 %v8798_v7  ;;  %v8799_v60 = vunpack.i.l.bf16 %v8798_v7 }
 0x48b   : > { %8977 = vrot.lane.b32.xlu2 %v8976_v1, %s14049_s7  ;;  %s14123_s7 = sld [smem:[#allocation27_spill]] }
 0x48c   : > { %8982 = vrot.lane.b32.xlu0 %v8981_v34, %s14047_s10 }
 0x48d   : > { %v8813_v2 = vpop.permute.xlu2 %8812 }
 0x48e   : > { %v8815_v56 = vunpack.i.h.bf16 %v8813_v2  ;;  %v8814_v3 = vunpack.i.l.bf16 %v8813_v2 }
 0x495   : > { %v8793_v63 = vpop.permute.xlu1 %8792  ;;  %v8788_v26 = vpop.permute.xlu0 %8787 }
 0x496   : > { %v8828_v54 = vpop.permute.xlu2 %8827  ;;  %v8790_v30 = vunpack.i.h.bf16 %v8788_v26  ;;  %v8789_v33 = vunpack.i.l.bf16 %v8788_v26  ;;  %v8795_v13 = vunpack.i.h.bf16 %v8793_v63  ;;  %v8794_v55 = vunpack.i.l.bf16 %v8793_v63 }
 0x497   : > { %v8830_v12 = vunpack.i.h.bf16 %v8828_v54  ;;  %v8829_v7 = vunpack.i.l.bf16 %v8828_v54 }
 0x498   : > { %v4359_v46 = vsel %vm954_vm1, %v12506_v36, %v8790_v30  ;;  %v4358_v31 = vsel %vm954_vm1, %v12508_v45, %v8789_v33 }
 0x499   : > { %v4369_v41 = vsel %vm2533_vm7, %v4359_v46, %v8795_v13  ;;  %v4368_v52 = vsel %vm2533_vm7, %v4358_v31, %v8794_v55  ;;  %v4361_v62 = vsel %vm954_vm1, %v12528_v49, %v8830_v12  ;;  %v4360_v14 = vsel %vm954_vm1, %v12510_v29, %v8829_v7 }
 0x49a   : > { %v4378_v18 = vsel %vm2570_vm8, %v4368_v52, %v8799_v60  ;;  %v4379_v36 = vsel %vm2570_vm8, %v4369_v41, %v8800_v51 }
 0x49d   : > { %v8808_v17 = vpop.permute.xlu1 %8807 }
 0x49e   : > { %v8803_v16 = vpop.permute.xlu0 %8802  ;;  %v8843_v32 = vpop.permute.xlu2 %8842  ;;  %v8810_v24 = vunpack.i.h.bf16 %v8808_v17  ;;  %v8809_v39 = vunpack.i.l.bf16 %v8808_v17 }
 0x49f   : > { %v8805_v40 = vunpack.i.h.bf16 %v8803_v16  ;;  %v8804_v28 = vunpack.i.l.bf16 %v8803_v16  ;;  %v8845_v33 = vunpack.i.h.bf16 %v8843_v32  ;;  %v8844_v13 = vunpack.i.l.bf16 %v8843_v32 }
 0x4a1   : > { %v4388_v57 = vsel %vm2607_vm9, %v4378_v18, %v8804_v28  ;;  %v4389_v45 = vsel %vm2607_vm9, %v4379_v36, %v8805_v40 }
 0x4a2   : > { %v4398_v47 = vsel %vm2644_vm10, %v4388_v57, %v8809_v39  ;;  %v4399_v59 = vsel %vm2644_vm10, %v4389_v45, %v8810_v24 }
 0x4a3   : > { %v4408_v6 = vsel %vm2681_vm11, %v4398_v47, %v8814_v3  ;;  %v4409_v44 = vsel %vm2681_vm11, %v4399_v59, %v8815_v56 }
 0x4a5   : > { %v8823_v20 = vpop.permute.xlu1 %8822 }
 0x4a6   : > { %v8825_v8 = vunpack.i.h.bf16 %v8823_v20  ;;  %v8824_v0 = vunpack.i.l.bf16 %v8823_v20  ;;  %v8818_v58 = vpop.permute.xlu0 %8817  ;;  %v8858_v25 = vpop.permute.xlu2 %8857 }
 0x4a7   : > { %v8820_v42 = vunpack.i.h.bf16 %v8818_v58  ;;  %v8819_v27 = vunpack.i.l.bf16 %v8818_v58  ;;  %v8860_v40 = vunpack.i.h.bf16 %v8858_v25  ;;  %v8859_v28 = vunpack.i.l.bf16 %v8858_v25 }
 0x4a9   : > { %v4418_v22 = vsel %vm2718_vm12, %v4408_v6, %v8819_v27  ;;  %v4419_v15 = vsel %vm2718_vm12, %v4409_v44, %v8820_v42 }
 0x4aa   : > { %v4428_v53 = vsel %vm2755_vm13, %v4418_v22, %v8824_v0  ;;  %v4429_v10 = vsel %vm2755_vm13, %v4419_v15, %v8825_v8 }
 0x4ab   : > { %v4438_v48 = vpack.c.bf16 %v4429_v10, %v4428_v53 }
 0x4ad   : > { %7422 = vmatmul.msk.bf16.vlgmr.msrb.gmra.mxu3 %vm2850_vm14, %v4438_v48  ;;  %v8838_v38 = vpop.permute.xlu1 %8837 }
 0x4ae   : > { %v8833_v43 = vpop.permute.xlu0 %8832  ;;  %v8840_v1 = vunpack.i.h.bf16 %v8838_v38  ;;  %v8839_v5 = vunpack.i.l.bf16 %v8838_v38  ;;  %v8873_v2 = vpop.permute.xlu2 %8872 }
 0x4af   : > { %v8835_v11 = vunpack.i.h.bf16 %v8833_v43  ;;  %v8834_v50 = vunpack.i.l.bf16 %v8833_v43  ;;  %v8875_v42 = vunpack.i.h.bf16 %v8873_v2  ;;  %v8874_v27 = vunpack.i.l.bf16 %v8873_v2 }
 0x4b1   : > { %v4371_v34 = vsel %vm2533_vm7, %v4361_v62, %v8835_v11  ;;  %v4370_v35 = vsel %vm2533_vm7, %v4360_v14, %v8834_v50 }
 0x4b2   : > { %v4381_v26 = vsel %vm2570_vm8, %v4371_v34, %v8840_v1  ;;  %v4380_v54 = vsel %vm2570_vm8, %v4370_v35, %v8839_v5 }
 0x4b3   : > { %v4390_v29 = vsel %vm2607_vm9, %v4380_v54, %v8844_v13  ;;  %v4391_v17 = vsel %vm2607_vm9, %v4381_v26, %v8845_v33 }
 0x4b5   : > { %v8853_v63 = vpop.permute.xlu1 %8852 }
 0x4b6   : > { %v8848_v30 = vpop.permute.xlu0 %8847  ;;  %v8855_v46 = vunpack.i.h.bf16 %v8853_v63  ;;  %v8854_v31 = vunpack.i.l.bf16 %v8853_v63  ;;  %v8888_v24 = vpop.permute.xlu2 %8887 }
 0x4b7   : > { %v8850_v55 = vunpack.i.h.bf16 %v8848_v30  ;;  %v8849_v49 = vunpack.i.l.bf16 %v8848_v30  ;;  %v8890_v7 = vunpack.i.h.bf16 %v8888_v24  ;;  %v8889_v43 = vunpack.i.l.bf16 %v8888_v24 }
 0x4b9   : > { %v4400_v41 = vsel %vm2644_vm10, %v4390_v29, %v8849_v49  ;;  %v4401_v52 = vsel %vm2644_vm10, %v4391_v17, %v8850_v55 }
 0x4ba   : > { %v4410_v16 = vsel %vm2681_vm11, %v4400_v41, %v8854_v31  ;;  %v4411_v51 = vsel %vm2681_vm11, %v4401_v52, %v8855_v46 }
 0x4bb   : > { %v4420_v36 = vsel %vm2718_vm12, %v4410_v16, %v8859_v28  ;;  %v4421_v57 = vsel %vm2718_vm12, %v4411_v51, %v8860_v40 }
 0x4bd   : > { %v8868_v60 = vpop.permute.xlu1 %8867 }
 0x4be   : > { %v8863_v32 = vpop.permute.xlu0 %8862  ;;  %v8870_v59 = vunpack.i.h.bf16 %v8868_v60  ;;  %v8869_v20 = vunpack.i.l.bf16 %v8868_v60  ;;  %v8903_v22 = vpop.permute.xlu2 %8902 }
 0x4bf   : > { %v8865_v39 = vunpack.i.h.bf16 %v8863_v32  ;;  %v8864_v18 = vunpack.i.l.bf16 %v8863_v32  ;;  %v8905_v35 = vunpack.i.h.bf16 %v8903_v22  ;;  %v8904_v2 = vunpack.i.l.bf16 %v8903_v22 }
 0x4c0   : > { %v4363_v8 = vsel %vm954_vm1, %v12568_v4, %v8870_v59  ;;  %v4362_v0 = vsel %vm954_vm1, %v12547_v21, %v8869_v20 }
 0x4c1   : > { %v4430_v45 = vsel %vm2755_vm13, %v4420_v36, %v8864_v18  ;;  %v4431_v47 = vsel %vm2755_vm13, %v4421_v57, %v8865_v39  ;;  %v4372_v10 = vsel %vm2533_vm7, %v4362_v0, %v8874_v27  ;;  %v4373_v25 = vsel %vm2533_vm7, %v4363_v8, %v8875_v42 }
 0x4c2   : > { %v4439_v56 = vpack.c.bf16 %v4431_v47, %v4430_v45 }
 0x4c4   : > { %7423 = vmatmul.msk.bf16.gmra.mxu3 %vm2850_vm14, %v4439_v56 }
 0x4c5   : > { %v8883_v3 = vpop.permute.xlu1 %8882 }
 0x4c6   : > { %v8878_v58 = vpop.permute.xlu0 %8877  ;;  %v8885_v15 = vunpack.i.h.bf16 %v8883_v3  ;;  %v8884_v53 = vunpack.i.l.bf16 %v8883_v3  ;;  %v8918_v33 = vpop.permute.xlu2 %8917 }
 0x4c7   : > { %v8880_v6 = vunpack.i.h.bf16 %v8878_v58  ;;  %v8879_v44 = vunpack.i.l.bf16 %v8878_v58  ;;  %v8920_v39 = vunpack.i.h.bf16 %v8918_v33  ;;  %v8919_v18 = vunpack.i.l.bf16 %v8918_v33 }
 0x4c9   : > { %v4383_v48 = vsel %vm2570_vm8, %v4373_v25, %v8880_v6  ;;  %v4382_v38 = vsel %vm2570_vm8, %v4372_v10, %v8879_v44 }
 0x4ca   : > { %v4393_v4 = vsel %vm2607_vm9, %v4383_v48, %v8885_v15  ;;  %v4392_v21 = vsel %vm2607_vm9, %v4382_v38, %v8884_v53 }
 0x4cb   : > { %v4402_v5 = vsel %vm2644_vm10, %v4392_v21, %v8889_v43  ;;  %v4403_v34 = vsel %vm2644_vm10, %v4393_v4, %v8890_v7 }
 0x4cd   : > { %v8898_v12 = vpop.permute.xlu1 %8897 }
 0x4ce   : > { %v8900_v11 = vunpack.i.h.bf16 %v8898_v12  ;;  %v8899_v50 = vunpack.i.l.bf16 %v8898_v12  ;;  %v8893_v62 = vpop.permute.xlu0 %8892  ;;  %v8933_v60 = vpop.permute.xlu2 %8932 }
 0x4cf   : > { %v8895_v14 = vunpack.i.h.bf16 %v8893_v62  ;;  %v8894_v1 = vunpack.i.l.bf16 %v8893_v62  ;;  %v8935_v0 = vunpack.i.h.bf16 %v8933_v60  ;;  %v8934_v58 = vunpack.i.l.bf16 %v8933_v60 }
 0x4d1   : > { %v4412_v63 = vsel %vm2681_vm11, %v4402_v5, %v8894_v1  ;;  %v4413_v26 = vsel %vm2681_vm11, %v4403_v34, %v8895_v14 }
 0x4d2   : > { %v4422_v54 = vsel %vm2718_vm12, %v4412_v63, %v8899_v50  ;;  %v4423_v30 = vsel %vm2718_vm12, %v4413_v26, %v8900_v11 }
 0x4d3   : > { %v4432_v13 = vsel %vm2755_vm13, %v4422_v54, %v8904_v2  ;;  %v4433_v55 = vsel %vm2755_vm13, %v4423_v30, %v8905_v35 }
 0x4d4   : > { %v4440_v49 = vpack.c.bf16 %v4433_v55, %v4432_v13 }
 0x4d5   : > { %v8913_v46 = vpop.permute.xlu1 %8912 }
 0x4d6   : > { %v8908_v31 = vpop.permute.xlu0 %8907  ;;  %7424 = vmatmul.msk.bf16.gmra.mxu3 %vm2850_vm14, %v4440_v49  ;;  %v8915_v41 = vunpack.i.h.bf16 %v8913_v46  ;;  %v8914_v52 = vunpack.i.l.bf16 %v8913_v46  ;;  %v8948_v44 = vpop.permute.xlu2 %8947 }
 0x4d7   : > { %v8910_v29 = vunpack.i.h.bf16 %v8908_v31  ;;  %v8909_v17 = vunpack.i.l.bf16 %v8908_v31  ;;  %v8950_v7 = vunpack.i.h.bf16 %v8948_v44  ;;  %v8949_v43 = vunpack.i.l.bf16 %v8948_v44 }
 0x4d9   : > { %v4365_v16 = vsel %vm954_vm1, %v12611_v9, %v8910_v29  ;;  %v4364_v51 = vsel %vm954_vm1, %v12587_v37, %v8909_v17  ;;  %v4367_v1 = vsel %vm954_vm1, %v12665_v23, %v8950_v7  ;;  %v4366_v5 = vsel %vm954_vm1, %v12633_v19, %v8949_v43 }
 0x4da   : > { %v4375_v28 = vsel %vm2533_vm7, %v4365_v16, %v8915_v41  ;;  %v4374_v32 = vsel %vm2533_vm7, %v4364_v51, %v8914_v52 }
 0x4db   : > { %v4384_v59 = vsel %vm2570_vm8, %v4374_v32, %v8919_v18  ;;  %v4385_v9 = vsel %vm2570_vm8, %v4375_v28, %v8920_v39 }
 0x4dd   : > { %v8928_v40 = vpop.permute.xlu1 %8927 }
 0x4de   : > { %v8923_v24 = vpop.permute.xlu0 %8922  ;;  %v8930_v45 = vunpack.i.h.bf16 %v8928_v40  ;;  %v8929_v47 = vunpack.i.l.bf16 %v8928_v40  ;;  %v8963_v14 = vpop.permute.xlu2 %8962 }
 0x4df   : > { %v8925_v36 = vunpack.i.h.bf16 %v8923_v24  ;;  %v8924_v57 = vunpack.i.l.bf16 %v8923_v24  ;;  %v8965_v13 = vunpack.i.h.bf16 %v8963_v14  ;;  %v8964_v55 = vunpack.i.l.bf16 %v8963_v14 }
 0x4e1   : > { %v4394_v20 = vsel %vm2607_vm9, %v4384_v59, %v8924_v57  ;;  %v4395_v37 = vsel %vm2607_vm9, %v4385_v9, %v8925_v36 }
 0x4e2   : > { %v4404_v56 = vsel %vm2644_vm10, %v4394_v20, %v8929_v47  ;;  %v4405_v3 = vsel %vm2644_vm10, %v4395_v37, %v8930_v45 }
 0x4e3   : > { %v4414_v53 = vsel %vm2681_vm11, %v4404_v56, %v8934_v58  ;;  %v4415_v10 = vsel %vm2681_vm11, %v4405_v3, %v8935_v0  ;;  %v9232_v0 = vld [vmem:[%s14120_s9] ss:$0 sm:$0xff]  ;;  %s14018_s9 = smov 80  }
 0x4e5   : > { %v8943_v8 = vpop.permute.xlu1 %8942 }
 0x4e6   : > { %v8945_v42 = vunpack.i.h.bf16 %v8943_v8  ;;  %v8944_v27 = vunpack.i.l.bf16 %v8943_v8  ;;  %v8938_v6 = vpop.permute.xlu0 %8937  ;;  %v8978_v52 = vpop.permute.xlu2 %8977 }
 0x4e7   : > { %v8940_v22 = vunpack.i.h.bf16 %v8938_v6  ;;  %v8939_v15 = vunpack.i.l.bf16 %v8938_v6  ;;  %v8980_v60 = vunpack.i.h.bf16 %v8978_v52  ;;  %v8979_v40 = vunpack.i.l.bf16 %v8978_v52 }
 0x4e9   : > { %v4424_v25 = vsel %vm2718_vm12, %v4414_v53, %v8939_v15  ;;  %v4425_v48 = vsel %vm2718_vm12, %v4415_v10, %v8940_v22 }
 0x4ea   : > { %v4434_v38 = vsel %vm2755_vm13, %v4424_v25, %v8944_v27  ;;  %v4435_v4 = vsel %vm2755_vm13, %v4425_v48, %v8945_v42 }
 0x4eb   : > { %v4441_v21 = vpack.c.bf16 %v4435_v4, %v4434_v38 }
 0x4ed   : > { %7425 = vmatmul.msk.bf16.gmra.mxu3 %vm2850_vm14, %v4441_v21  ;;  %v8958_v12 = vpop.permute.xlu1 %8957 }
 0x4ee   : > { %v8953_v11 = vpop.permute.xlu0 %8952  ;;  %v8960_v34 = vunpack.i.h.bf16 %v8958_v12  ;;  %v8959_v35 = vunpack.i.l.bf16 %v8958_v12 }
 0x4ef   : > { %v8955_v50 = vunpack.i.h.bf16 %v8953_v11  ;;  %v8954_v62 = vunpack.i.l.bf16 %v8953_v11 }
 0x4f1   : > { %v4377_v2 = vsel %vm2533_vm7, %v4367_v1, %v8955_v50  ;;  %v4376_v63 = vsel %vm2533_vm7, %v4366_v5, %v8954_v62 }
 0x4f2   : > { %v4387_v26 = vsel %vm2570_vm8, %v4377_v2, %v8960_v34  ;;  %v4386_v54 = vsel %vm2570_vm8, %v4376_v63, %v8959_v35 }
 0x4f3   : > { %v4396_v19 = vsel %vm2607_vm9, %v4386_v54, %v8964_v55  ;;  %v4397_v29 = vsel %vm2607_vm9, %v4387_v26, %v8965_v13 }
 0x4f5   : > { %v8973_v30 = vpop.permute.xlu1 %8972 }
 0x4f6   : > { %v8968_v33 = vpop.permute.xlu0 %8967  ;;  %v8975_v23 = vunpack.i.h.bf16 %v8973_v30  ;;  %v8974_v31 = vunpack.i.l.bf16 %v8973_v30 }
 0x4f7   : > { %v8970_v49 = vunpack.i.h.bf16 %v8968_v33  ;;  %v8969_v46 = vunpack.i.l.bf16 %v8968_v33 }
 0x4f9   : > { %v4406_v17 = vsel %vm2644_vm10, %v4396_v19, %v8969_v46  ;;  %v4407_v41 = vsel %vm2644_vm10, %v4397_v29, %v8970_v49  ;;  %vm4679_vm10 = vcmask 654336  }
 0x4fa   : > { %v4416_v16 = vsel %vm2681_vm11, %v4406_v17, %v8974_v31  ;;  %v4417_v51 = vsel %vm2681_vm11, %v4407_v41, %v8975_v23 }
 0x4fb   : > { %v4426_v39 = vsel %vm2718_vm12, %v4416_v16, %v8979_v40  ;;  %v4427_v18 = vsel %vm2718_vm12, %v4417_v51, %v8980_v60  ;;  %vm5168_vm12 = vcmask 916480  }
 0x4fe   : > { %v8983_v28 = vpop.permute.xlu0 %8982 }
 0x4ff   : > { %v8985_v32 = vunpack.i.h.bf16 %v8983_v28  ;;  %v8984_v24 = vunpack.i.l.bf16 %v8983_v28 }
 0x501   : > { %v4436_v36 = vsel %vm2755_vm13, %v4426_v39, %v8984_v24  ;;  %v4437_v57 = vsel %vm2755_vm13, %v4427_v18, %v8985_v32 }
 0x502   : > { %v4442_v45 = vpack.c.bf16 %v4437_v57, %v4436_v36 }
 0x504   : > { %7426 = vmatmul.msk.bf16.gmra.mxu3 %vm2850_vm14, %v4442_v45  ;;  %vm5552_vm14 = vcmask 564224  }
 0x530   : > { %v4510_v47 = vpop.f32.mrf.mxu3 }
 0x531   : > { %v12905_v1 = vadd.f32 %v9232_v0, %v4510_v47 }
 0x533   : > { %v4545_v49 = vmul.f32 %v12905_v1, %v12905_v1 }
 0x535   : > { %v4555_v60 = vmul.f32 %v4545_v49, %v12905_v1 }
 0x537   : > { %v4565_v45 = vmul.f32 0.044715, %v4555_v60  ;;  %v4535_v60 = vmul.f32 0.5, %v12905_v1 }
 0x538   : > { %v4512_v59 = vpop.f32.mrf.mxu3 }
 0x539   : > { %v12900_v43 = vadd.f32 %v9232_v0, %v4512_v59 }
 0x53b   : > { %v4546_v54 = vmul.f32 %v12900_v43, %v12900_v43 }
 0x53d   : > { %v4556_v17 = vmul.f32 %v4546_v54, %v12900_v43 }
 0x53f   : > { %v4566_v39 = vmul.f32 0.044715, %v4556_v17 }
 0x547   : > { %v4515_v9 = vpop.f32.mrf.mxu3 }
 0x548   : > { %v12895_v21 = vadd.f32 %v9232_v0, %v4515_v9 }
 0x54a   : > { %v4547_v35 = vmul.f32 %v12895_v21, %v12895_v21  ;;  %v4537_v17 = vmul.f32 0.5, %v12895_v21 }
 0x54c   : > { %v4557_v23 = vmul.f32 %v4547_v35, %v12895_v21 }
 0x54e   : > { %v4567_v28 = vmul.f32 0.044715, %v4557_v23 }
 0x54f   : > { %v4517_v20 = vpop.f32.mrf.mxu3 }
 0x550   : > { %v12887_v10 = vadd.f32 %v9232_v0, %v4517_v20  ;;  %v4577_v47 = vadd.f32 %v4567_v28, %v12895_v21  ;;  %v4576_v20 = vadd.f32 %v4566_v39, %v12900_v43  ;;  %v7934_v21 = vld [vmem:[%s14121_s27 + $0x8] sm:$0xff]  ;;  %v7948_v39 = vld [vmem:[%s14122_s28 + $0x40] sm:$0xff] }
 0x551   : > { %5321 = vmatpush.bf16.msrb.mxu1 %v7948_v39 }
 0x552   : > { %v4548_v11 = vmul.f32 %v12887_v10, %v12887_v10 }
 0x554   : > { %v4558_v30 = vmul.f32 %v4548_v11, %v12887_v10 }
 0x556   : > { %v4568_v41 = vmul.f32 0.044715, %v4558_v30 }
 0x558   : > { %v4578_v18 = vadd.f32 %v4568_v41, %v12887_v10 }
 0x559   : > { %v4520_v37 = vpop.f32.mrf.mxu3 }
 0x55a   : > { %v12883_v15 = vadd.f32 %v9232_v0, %v4520_v37  ;;  %v4588_v37 = vmul.f32 0.7978846, %v4578_v18  ;;  %v7938_v18 = vld [vmem:[%s14121_s27 + $0x28] sm:$0xff] }
 0x55c   : > { %v4549_v12 = vmul.f32 %v12883_v15, %v12883_v15 }
 0x55e   : > { %v4559_v2 = vmul.f32 %v4549_v12, %v12883_v15 }
 0x560   : > { %v4569_v31 = vmul.f32 0.044715, %v4559_v2 }
 0x561   : > { %v4522_v56 = vpop.f32.mrf.mxu3 }
 0x562   : > { %v12877_v27 = vadd.f32 %v9232_v0, %v4522_v56  ;;  %v4579_v32 = vadd.f32 %v4569_v31, %v12883_v15 }
 0x564   : > { %v4550_v25 = vmul.f32 %v12877_v27, %v12877_v27  ;;  %v4589_v59 = vmul.f32 0.7978846, %v4579_v32 }
 0x566   : > { %v4560_v50 = vmul.f32 %v4550_v25, %v12877_v27 }
 0x568   : > { %v4570_v33 = vmul.f32 0.044715, %v4560_v50 }
 0x56a   : > { %v4580_v52 = vadd.f32 %v4570_v33, %v12877_v27 }
 0x56c   : > { %v4590_v57 = vmul.f32 0.7978846, %v4580_v52 }
 0x570   : > { %v4525_v3 = vpop.f32.mrf.mxu3 }
 0x571   : > { %v12875_v42 = vadd.f32 %v9232_v0, %v4525_v3  ;;  %v4575_v3 = vadd.f32 %v4565_v45, %v12905_v1  ;;  %v7936_v1 = vld [vmem:[%s14121_s27 + $0x18] sm:$0xff] }
 0x573   : > { %v4551_v44 = vmul.f32 %v12875_v42, %v12875_v42  ;;  %v4541_v35 = vmul.f32 0.5, %v12875_v42 }
 0x575   : > { %v4561_v4 = vmul.f32 %v4551_v44, %v12875_v42 }
 0x577   : > { %v4571_v5 = vmul.f32 0.044715, %v4561_v4 }
 0x578   : > { %v4527_v8 = vpop.f32.mrf.mxu3 }
 0x579   : > { %v12873_v58 = vadd.f32 %v9232_v0, %v4527_v8  ;;  %v4581_v46 = vadd.f32 %v4571_v5, %v12875_v42  ;;  %v4587_v8 = vmul.f32 0.7978846, %v4577_v47  ;;  %v4538_v42 = vmul.f32 0.5, %v12887_v10  ;;  %v7933_v10 = vld [vmem:[%s14121_s27] sm:$0xff] }
 0x57b   : > { %v4552_v6 = vmul.f32 %v12873_v58, %v12873_v58  ;;  %v4591_v40 = vmul.f32 0.7978846, %v4581_v46 }
 0x57d   : > { %v4562_v48 = vmul.f32 %v4552_v6, %v12873_v58 }
 0x57f   : > { %v4572_v62 = vmul.f32 0.044715, %v4562_v48 }
 0x581   : > { %v4582_v13 = vadd.f32 %v4572_v62, %v12873_v58  ;;  %v4542_v62 = vmul.f32 0.5, %v12873_v58 }
 0x583   : > { %v4592_v51 = vmul.f32 0.7978846, %v4582_v13 }
 0x587   : > { %v4530_v22 = vpop.f32.mrf.mxu3 }
 0x588   : > { %v12885_v53 = vadd.f32 %v9232_v0, %v4530_v22  ;;  %v4586_v22 = vmul.f32 0.7978846, %v4576_v20 }
 0x58a   : > { %v4553_v38 = vmul.f32 %v12885_v53, %v12885_v53  ;;  %v4543_v25 = vmul.f32 0.5, %v12885_v53 }
 0x58c   : > { %v4563_v7 = vmul.f32 %v4553_v38, %v12885_v53 }
 0x58e   : > { %v4573_v14 = vmul.f32 0.044715, %v4563_v7  ;;  %v4585_v7 = vmul.f32 0.7978846, %v4575_v3 }
 0x58f   : > { %v4532_v34 = vpop.f32.mrf.mxu3 }
 0x590   : > { %v4583_v63 = vadd.f32 %v4573_v14, %v12885_v53  ;;  %v4533_v26 = vadd.f32 %v9232_v0, %v4532_v34 }
 0x592   : > { %v4554_v55 = vmul.f32 %v4533_v26, %v4533_v26  ;;  %v4593_v19 = vmul.f32 0.7978846, %v4583_v63  ;;  %v4544_v48 = vmul.f32 0.5, %v4533_v26 }
 0x594   : > { %v4564_v29 = vmul.f32 %v4554_v55, %v4533_v26  ;;  %9312 = vtanh.f32 %v4593_v19  ;;  %v4539_v55 = vmul.f32 0.5, %v12883_v15 }
 0x595   : > { %9314 = vtanh.f32 %v4592_v51 }
 0x596   : > { %v4574_v16 = vmul.f32 0.044715, %v4564_v29  ;;  %9316 = vtanh.f32 %v4591_v40 }
 0x598   : > { %v4584_v24 = vadd.f32 %v4574_v16, %v4533_v26  ;;  %v4540_v26 = vmul.f32 0.5, %v12877_v27  ;;  %v4536_v16 = vmul.f32 0.5, %v12900_v43  ;;  %v7935_v43 = vld [vmem:[%s14121_s27 + $0x10] sm:$0xff] }
 0x59a   : > { %v4594_v36 = vmul.f32 0.7978846, %v4584_v24  ;;  %v9313_v9 = vpop.eup %9312  ;;  %v7937_v24 = vld [vmem:[%s14121_s27 + $0x20] sm:$0xff] }
 0x59b   : > { %v9315_v56 = vpop.eup %9314  ;;  %v4613_v6 = vadd.f32 1.0, %v9313_v9 }
 0x59c   : > { %9318 = vtanh.f32 %v4594_v36  ;;  %v9317_v0 = vpop.eup %9316  ;;  %v4612_v4 = vadd.f32 1.0, %v9315_v56  ;;  %v7453_v36 = vld [vmem:[%s14121_s27 + $0x30] sm:$0xf] }
 0x59d   : > { %9320 = vtanh.f32 %v4590_v57  ;;  %v4623_v11 = vmul.f32 %v4613_v6, %v4543_v25  ;;  %v4611_v14 = vadd.f32 1.0, %v9317_v0  ;;  %v7939_v57 = vld [vmem:[%s14121_s27 + $0x30] sm:$0x70] }
 0x59e   : > { %9322 = vtanh.f32 %v4589_v59  ;;  %v4622_v2 = vmul.f32 %v4612_v4, %v4542_v62  ;;  %v7454_v45 = vor.u32 %v7939_v57, %v7453_v36 }
 0x59f   : > { %9324 = vtanh.f32 %v4588_v37  ;;  %v4621_v53 = vmul.f32 %v4611_v14, %v4541_v35 }
 0x5a0   : > { %9326 = vtanh.f32 %v4587_v8 }
 0x5a1   : > { %9328 = vtanh.f32 %v4586_v22  ;;  %v4642_v13 = vpack.c.bf16 %v4622_v2, %v4621_v53 }
 0x5a2   : > { %v9319_v44 = vpop.eup %9318  ;;  %9330 = vtanh.f32 %v4585_v7 }
 0x5a3   : > { %v4614_v38 = vadd.f32 1.0, %v9319_v44  ;;  %v9321_v12 = vpop.eup %9320 }
 0x5a4   : > { %v9323_v5 = vpop.eup %9322  ;;  %v4610_v63 = vadd.f32 1.0, %v9321_v12 }
 0x5a5   : > { %v4624_v50 = vmul.f32 %v4614_v38, %v4544_v48  ;;  %v9325_v54 = vpop.eup %9324  ;;  %v4609_v30 = vadd.f32 1.0, %v9323_v5 }
 0x5a6   : > { %v9327_v33 = vpop.eup %9326  ;;  %v4620_v58 = vmul.f32 %v4610_v63, %v4540_v26  ;;  %v4608_v49 = vadd.f32 1.0, %v9325_v54 }
 0x5a7   : > { %v4643_v34 = vpack.c.bf16 %v4624_v50, %v4623_v11  ;;  %v9329_v46 = vpop.eup %9328  ;;  %v4619_v23 = vmul.f32 %v4609_v30, %v4539_v55  ;;  %v4607_v31 = vadd.f32 1.0, %v9327_v33 }
 0x5a8   : > { %v9331_v19 = vpop.eup %9330  ;;  %v4618_v41 = vmul.f32 %v4608_v49, %v4538_v42  ;;  %v4606_v52 = vadd.f32 1.0, %v9329_v46 }
 0x5a9   : > { %4704 = vmatpush.bf16.msra.mxu3 %v4643_v34  ;;  %v4641_v29 = vpack.c.bf16 %v4620_v58, %v4619_v23  ;;  %v4617_v27 = vmul.f32 %v4607_v31, %v4537_v17  ;;  %v4605_v51 = vadd.f32 1.0, %v9331_v19 }
 0x5aa   : > { %v4616_v40 = vmul.f32 %v4606_v52, %v4536_v16 }
 0x5ab   : > { %v4640_v15 = vpack.c.bf16 %v4618_v41, %v4617_v27  ;;  %v4615_v28 = vmul.f32 %v4605_v51, %v4535_v60 }
 0x5ad   : > { %4705 = vmatpush.bf16.msra.mxu3 %v4642_v13  ;;  %v4639_v32 = vpack.c.bf16 %v4616_v40, %v4615_v28 }
 0x5b1   : > { %4706 = vmatpush.bf16.msra.mxu3 %v4641_v29 }
 0x5b5   : > { %4707 = vmatpush.bf16.msra.mxu3 %v4640_v15 }
 0x5b9   : > { %4708 = vmatpush.bf16.msra.mxu3 %v4639_v32 }
 0x5bc   : > { %7455 = vmatmul.msk.bf16.vlgmr.msra.gmra.mxu3 %vm4679_vm10, %v7933_v10 }
 0x5cc   : > { %7456 = vmatmul.msk.bf16.gmra.mxu3 %vm4679_vm10, %v7934_v21 }
 0x5dc   : > { %7457 = vmatmul.msk.bf16.gmra.mxu3 %vm4679_vm10, %v7935_v43 }
 0x5ec   : > { %7458 = vmatmul.msk.bf16.gmra.mxu3 %vm4679_vm10, %v7936_v1 }
 0x5fc   : > { %7459 = vmatmul.msk.bf16.gmra.mxu3 %vm4679_vm10, %v7937_v24 }
 0x60c   : > { %7460 = vmatmul.msk.bf16.gmra.mxu3 %vm4679_vm10, %v7938_v18 }
 0x61c   : > { %7461 = vmatmul.msk.bf16.gmra.mxu3 %vm4679_vm10, %v7454_v45 }
 0x63f   : > { %v12970_v47 = vpop.f32.mrf.mxu3 }
 0x640   : > { %v4755_v56 = vrot.slane %v12970_v47, 1  ;;  %v4806_v3 = vrot.slane %v12970_v47, 2 }
 0x647   : > { %v12972_v59 = vpop.f32.mrf.mxu3 }
 0x648   : > { %v4756_v9 = vrot.slane %v12972_v59, 1  ;;  %v4807_v20 = vrot.slane %v12972_v59, 2  ;;  %v4941_v7 = vrot.slane %v12972_v59, 4  ;;  %v4890_v50 = vrot.slane %v12972_v59, 3 }
 0x64a   : > { %v4808_v6 = vsel %vm1360_vm3, %v4806_v3, %v4807_v20  ;;  %v4757_v22 = vsel %vm1178_vm2, %v4755_v56, %v4756_v9 }
 0x64f   : > { %v12976_v37 = vpop.f32.mrf.mxu3 }
 0x650   : > { %v4809_v8 = vrot.slane %v12976_v37, 2  ;;  %v4758_v0 = vrot.slane %v12976_v37, 1  ;;  %v4942_v4 = vrot.slane %v12976_v37, 4  ;;  %v4891_v12 = vrot.slane %v12976_v37, 3 }
 0x651   : > { %v5076_v58 = vrot.slane %v12976_v37, 6  ;;  %v5025_v46 = vrot.slane %v12976_v37, 5 }
 0x652   : > { %v4810_v44 = vsel %vm1360_vm3, %v4807_v20, %v4809_v8  ;;  %v4759_v25 = vsel %vm1178_vm2, %v4756_v9, %v4758_v0  ;;  %v4943_v34 = vsel %vm1021_vm0, %v4941_v7, %v4942_v4  ;;  %v4892_v2 = vsel %vm1656_vm4, %v4890_v50, %v4891_v12 }
 0x653   : > { %v8991_v48 = vpack.i.bf16 %v4810_v44, %v4808_v6  ;;  %v8986_v38 = vpack.i.bf16 %v4759_v25, %v4757_v22 }
 0x655   : > { %8992 = vrot.lane.b32.xlu2 %v8991_v48, %s14046_s12  ;;  %8987 = vrot.lane.b32.xlu1 %v8986_v38, %s14044_s29 }
 0x657   : > { %v12991_v11 = vpop.f32.mrf.mxu3 }
 0x658   : > { %v4944_v62 = vrot.slane %v12991_v11, 4  ;;  %v4893_v14 = vrot.slane %v12991_v11, 3  ;;  %v4811_v5 = vrot.slane %v12991_v11, 2  ;;  %v5077_v33 = vrot.slane %v12991_v11, 6 }
 0x659   : > { %v5026_v13 = vrot.slane %v12991_v11, 5  ;;  %v4760_v55 = vrot.slane %v12991_v11, 1 }
 0x65a   : > { %v4945_v35 = vsel %vm1021_vm0, %v4942_v4, %v4944_v62  ;;  %v4894_v63 = vsel %vm1656_vm4, %v4891_v12, %v4893_v14  ;;  %v4812_v54 = vsel %vm1360_vm3, %v4809_v8, %v4811_v5  ;;  %v5078_v29 = vsel %vm2315_vm5, %v5076_v58, %v5077_v33 }
 0x65b   : > { %v9006_v53 = vpack.i.bf16 %v4945_v35, %v4943_v34  ;;  %v9001_v26 = vpack.i.bf16 %v4894_v63, %v4892_v2  ;;  %v8996_v30 = vpack.i.bf16 %v4812_v54, %v4810_v44  ;;  %v5027_v17 = vsel %vm2133_vm6, %v5025_v46, %v5026_v13 }
 0x65c   : > { %v4761_v41 = vsel %vm1178_vm2, %v4758_v0, %v4760_v55 }
 0x65d   : > { %9007 = vrot.lane.b32.xlu2 %v9006_v53, %s14018_s9  ;;  %9002 = vrot.lane.b32.xlu1 %v9001_v26, %s14047_s10 }
 0x65e   : > { %8997 = vrot.lane.b32.xlu0 %v8996_v30, %s14048_s11 }
 0x65f   : > { %v13009_v49 = vpop.f32.mrf.mxu3 }
 0x660   : > { %v5079_v23 = vrot.slane %v13009_v49, 6  ;;  %v5028_v42 = vrot.slane %v13009_v49, 5  ;;  %v4946_v31 = vrot.slane %v13009_v49, 4  ;;  %v4762_v19 = vrot.slane %v13009_v49, 1 }
 0x661   : > { %v4813_v32 = vrot.slane %v13009_v49, 2  ;;  %v4895_v10 = vrot.slane %v13009_v49, 3 }
 0x662   : > { %v5080_v52 = vsel %vm2315_vm5, %v5077_v33, %v5079_v23  ;;  %v5029_v27 = vsel %vm2133_vm6, %v5026_v13, %v5028_v42  ;;  %v4947_v16 = vsel %vm1021_vm0, %v4944_v62, %v4946_v31  ;;  %v4763_v51 = vsel %vm1178_vm2, %v4760_v55, %v4762_v19 }
 0x663   : > { %v5180_v15 = vpack.c.bf16 %v5080_v52, %v5078_v29  ;;  %v9016_v60 = vpack.i.bf16 %v5029_v27, %v5027_v17  ;;  %v9011_v40 = vpack.i.bf16 %v4947_v16, %v4945_v35  ;;  %v9021_v28 = vpack.i.bf16 %v4763_v51, %v4761_v41 }
 0x664   : > { %v4814_v24 = vsel %vm1360_vm3, %v4811_v5, %v4813_v32  ;;  %v4896_v39 = vsel %vm1656_vm4, %v4893_v14, %v4895_v10 }
 0x665   : > { %7498 = vmatmul.msk.bf16.vlgmr.msrb.gmra.mxu1 %vm2533_vm7, %v5180_v15  ;;  %9017 = vrot.lane.b32.xlu1 %v9016_v60, %s14016_s3  ;;  %v9026_v9 = vpack.i.bf16 %v4814_v24, %v4812_v54 }
 0x666   : > { %9012 = vrot.lane.b32.xlu0 %v9011_v40, %s14014_s5  ;;  %9022 = vrot.lane.b32.xlu2 %v9021_v28, %s14044_s29 }
 0x667   : > { %v13031_v21 = vpop.f32.mrf.mxu3 }
 0x668   : > { %v4897_v43 = vrot.slane %v13031_v21, 3  ;;  %v4815_v1 = vrot.slane %v13031_v21, 2  ;;  %v4948_v20 = vrot.slane %v13031_v21, 4  ;;  %v5081_v56 = vrot.slane %v13031_v21, 6 }
 0x669   : > { %v5030_v3 = vrot.slane %v13031_v21, 5  ;;  %v4764_v2 = vrot.slane %v13031_v21, 1 }
 0x66a   : > { %v4898_v18 = vsel %vm1656_vm4, %v4895_v10, %v4897_v43  ;;  %v4816_v36 = vsel %vm1360_vm3, %v4813_v32, %v4815_v1  ;;  %v4949_v22 = vsel %vm1021_vm0, %v4946_v31, %v4948_v20  ;;  %v5082_v25 = vsel %vm2315_vm5, %v5079_v23, %v5081_v56 }
 0x66b   : > { %v9036_v57 = vpack.i.bf16 %v4898_v18, %v4896_v39  ;;  %v9031_v45 = vpack.i.bf16 %v4816_v36, %v4814_v24  ;;  %v5031_v38 = vsel %vm2133_vm6, %v5028_v42, %v5030_v3  ;;  %v9041_v14 = vpack.i.bf16 %v4949_v22, %v4947_v16 }
 0x66c   : > { %v4765_v33 = vsel %vm1178_vm2, %v4762_v19, %v4764_v2 }
 0x66d   : > { %9032 = vrot.lane.b32.xlu1 %v9031_v45, %s14048_s11 }
 0x66e   : > { %9027 = vrot.lane.b32.xlu0 %v9026_v9, %s14046_s12  ;;  %9037 = vrot.lane.b32.xlu2 %v9036_v57, %s14047_s10 }
 0x66f   : > { %v13045_v8 = vpop.f32.mrf.mxu3 }
 0x670   : > { %v5083_v0 = vrot.slane %v13045_v8, 6  ;;  %v5032_v6 = vrot.slane %v13045_v8, 5  ;;  %v4950_v44 = vrot.slane %v13045_v8, 4  ;;  %v4817_v5 = vrot.slane %v13045_v8, 2 }
 0x671   : > { %v4766_v34 = vrot.slane %v13045_v8, 1  ;;  %v4899_v31 = vrot.slane %v13045_v8, 3 }
 0x672   : > { %v5084_v48 = vsel %vm2315_vm5, %v5081_v56, %v5083_v0  ;;  %v5033_v4 = vsel %vm2133_vm6, %v5030_v3, %v5032_v6  ;;  %v4951_v12 = vsel %vm1021_vm0, %v4948_v20, %v4950_v44  ;;  %v4818_v63 = vsel %vm1360_vm3, %v4815_v1, %v4817_v5 }
 0x673   : > { %v5182_v7 = vpack.c.bf16 %v5084_v48, %v5082_v25  ;;  %v9051_v50 = vpack.i.bf16 %v5033_v4, %v5031_v38  ;;  %v9046_v62 = vpack.i.bf16 %v4951_v12, %v4949_v22  ;;  %v4767_v53 = vsel %vm1178_vm2, %v4764_v2, %v4766_v34 }
 0x674   : > { %v9061_v30 = vpack.i.bf16 %v4818_v63, %v4816_v36  ;;  %v9056_v55 = vpack.i.bf16 %v4767_v53, %v4765_v33  ;;  %v4900_v15 = vsel %vm1656_vm4, %v4897_v43, %v4899_v31 }
 0x675   : > { %7499 = vmatmul.msk.bf16.gmra.mxu1 %vm2533_vm7, %v5182_v7  ;;  %9047 = vrot.lane.b32.xlu1 %v9046_v62, %s14014_s5 }
 0x676   : > { %9042 = vrot.lane.b32.xlu0 %v9041_v14, %s14018_s9  ;;  %9052 = vrot.lane.b32.xlu2 %v9051_v50, %s14016_s3 }
 0x677   : > { %v13064_v35 = vpop.f32.mrf.mxu3 }
 0x678   : > { %v4819_v54 = vrot.slane %v13064_v35, 2  ;;  %v4952_v58 = vrot.slane %v13064_v35, 4  ;;  %v4901_v46 = vrot.slane %v13064_v35, 3  ;;  %v5085_v23 = vrot.slane %v13064_v35, 6 }
 0x679   : > { %v4768_v24 = vrot.slane %v13064_v35, 1  ;;  %v5034_v39 = vrot.slane %v13064_v35, 5 }
 0x67a   : > { %v4820_v26 = vsel %vm1360_vm3, %v4817_v5, %v4819_v54  ;;  %v4953_v19 = vsel %vm1021_vm0, %v4950_v44, %v4952_v58  ;;  %v4902_v41 = vsel %vm1656_vm4, %v4899_v31, %v4901_v46  ;;  %v5086_v52 = vsel %vm2315_vm5, %v5083_v0, %v5085_v23 }
 0x67b   : > { %v9066_v13 = vpack.i.bf16 %v4820_v26, %v4818_v63  ;;  %v9076_v51 = vpack.i.bf16 %v4953_v19, %v4951_v12  ;;  %v9071_v28 = vpack.i.bf16 %v4902_v41, %v4900_v15  ;;  %v4769_v45 = vsel %vm1178_vm2, %v4766_v34, %v4768_v24 }
 0x67c   : > { %v5035_v9 = vsel %vm2133_vm6, %v5032_v6, %v5034_v39 }
 0x67d   : > { %9062 = vrot.lane.b32.xlu1 %v9061_v30, %s14046_s12 }
 0x67e   : > { %9057 = vrot.lane.b32.xlu0 %v9056_v55, %s14044_s29  ;;  %9067 = vrot.lane.b32.xlu2 %v9066_v13, %s14048_s11 }
 0x67f   : > { %v13080_v42 = vpop.f32.mrf.mxu3 }
 0x680   : > { %v5087_v29 = vrot.slane %v13080_v42, 6  ;;  %v4954_v17 = vrot.slane %v13080_v42, 4  ;;  %v4770_v32 = vrot.slane %v13080_v42, 1  ;;  %v5036_v10 = vrot.slane %v13080_v42, 5 }
 0x681   : > { %v4821_v1 = vrot.slane %v13080_v42, 2  ;;  %v4903_v25 = vrot.slane %v13080_v42, 3 }
 0x682   : > { %v5088_v27 = vsel %vm2315_vm5, %v5085_v23, %v5087_v29  ;;  %v4955_v16 = vsel %vm1021_vm0, %v4952_v58, %v4954_v17  ;;  %v4771_v18 = vsel %vm1178_vm2, %v4768_v24, %v4770_v32  ;;  %v5037_v36 = vsel %vm2133_vm6, %v5034_v39, %v5036_v10  ;;  %v7947_v58 = vld [vmem:[%s14122_s28 + $0x38] sm:$0xff] }
 0x683   : > { %v5184_v60 = vpack.c.bf16 %v5088_v27, %v5086_v52  ;;  %v9081_v40 = vpack.i.bf16 %v4955_v16, %v4953_v19  ;;  %v4822_v57 = vsel %vm1360_vm3, %v4819_v54, %v4821_v1  ;;  %v9091_v20 = vpack.i.bf16 %v4771_v18, %v4769_v45  ;;  %5280 = vmatpush.bf16.msra.mxu2 %v7947_v58 }
 0x684   : > { %v9086_v56 = vpack.i.bf16 %v5037_v36, %v5035_v9  ;;  %v9096_v3 = vpack.i.bf16 %v4822_v57, %v4820_v26  ;;  %v4904_v50 = vsel %vm1656_vm4, %v4901_v46, %v4903_v25 }
 0x685   : > { %9077 = vrot.lane.b32.xlu1 %v9076_v51, %s14018_s9  ;;  %7500 = vmatmul.msk.bf16.gmra.mxu1 %vm2533_vm7, %v5184_v60 }
 0x686   : > { %9072 = vrot.lane.b32.xlu0 %v9071_v28, %s14047_s10  ;;  %9082 = vrot.lane.b32.xlu2 %v9081_v40, %s14014_s5 }
 0x687   : > { %v13099_v43 = vpop.f32.mrf.mxu3 }
 0x688   : > { %v4905_v0 = vrot.slane %v13099_v43, 3  ;;  %v4956_v44 = vrot.slane %v13099_v43, 4  ;;  %v4823_v22 = vrot.slane %v13099_v43, 2  ;;  %v5089_v6 = vrot.slane %v13099_v43, 6 }
 0x689   : > { %v5038_v30 = vrot.slane %v13099_v43, 5  ;;  %v4772_v13 = vrot.slane %v13099_v43, 1 }
 0x68a   : > { %v4906_v38 = vsel %vm1656_vm4, %v4903_v25, %v4905_v0  ;;  %v4957_v12 = vsel %vm1021_vm0, %v4954_v17, %v4956_v44  ;;  %v4824_v7 = vsel %vm1360_vm3, %v4821_v1, %v4823_v22  ;;  %v5090_v14 = vsel %vm2315_vm5, %v5087_v29, %v5089_v6 }
 0x68b   : > { %v9106_v62 = vpack.i.bf16 %v4906_v38, %v4904_v50  ;;  %v9111_v2 = vpack.i.bf16 %v4957_v12, %v4955_v16  ;;  %v9101_v63 = vpack.i.bf16 %v4824_v7, %v4822_v57  ;;  %v5039_v31 = vsel %vm2133_vm6, %v5036_v10, %v5038_v30  ;;  %v7946_v57 = vld [vmem:[%s14122_s28 + $0x30] sm:$0xff]  ;;  %v7944_v38 = vld [vmem:[%s14122_s28 + $0x20] sm:$0xff] }
 0x68c   : > { %v4773_v29 = vsel %vm1178_vm2, %v4770_v32, %v4772_v13  ;;  %5281 = vmatpush.bf16.msra.mxu2 %v7946_v57 }
 0x68d   : > { %9092 = vrot.lane.b32.xlu1 %v9091_v20, %s14044_s29 }
 0x68e   : > { %9087 = vrot.lane.b32.xlu0 %v9086_v56, %s14016_s3  ;;  %9097 = vrot.lane.b32.xlu2 %v9096_v3, %s14046_s12 }
 0x68f   : > { %v13116_v48 = vpop.f32.mrf.mxu3 }
 0x690   : > { %v5091_v4 = vrot.slane %v13116_v48, 6  ;;  %v5040_v34 = vrot.slane %v13116_v48, 5  ;;  %v4774_v53 = vrot.slane %v13116_v48, 1  ;;  %v4958_v26 = vrot.slane %v13116_v48, 4 }
 0x691   : > { %v4825_v27 = vrot.slane %v13116_v48, 2  ;;  %v4907_v15 = vrot.slane %v13116_v48, 3 }
 0x692   : > { %v5092_v5 = vsel %vm2315_vm5, %v5089_v6, %v5091_v4  ;;  %v5041_v55 = vsel %vm2133_vm6, %v5038_v30, %v5040_v34  ;;  %v4959_v46 = vsel %vm1021_vm0, %v4956_v44, %v4958_v26  ;;  %v4775_v23 = vsel %vm1178_vm2, %v4772_v13, %v4774_v53  ;;  %v7945_v44 = vld [vmem:[%s14122_s28 + $0x28] sm:$0xff] }
 0x693   : > { %v5186_v54 = vpack.c.bf16 %v5092_v5, %v5090_v14  ;;  %v9121_v19 = vpack.i.bf16 %v5041_v55, %v5039_v31  ;;  %v9116_v41 = vpack.i.bf16 %v4959_v46, %v4957_v12  ;;  %v9126_v52 = vpack.i.bf16 %v4775_v23, %v4773_v29  ;;  %5282 = vmatpush.bf16.msra.mxu2 %v7945_v44  ;;  %v7942_v5 = vld [vmem:[%s14122_s28 + $0x10] sm:$0xff] }
 0x694   : > { %v4826_v32 = vsel %vm1360_vm3, %v4823_v22, %v4825_v27  ;;  %v4908_v39 = vsel %vm1656_vm4, %v4905_v0, %v4907_v15 }
 0x695   : > { %9107 = vrot.lane.b32.xlu1 %v9106_v62, %s14047_s10  ;;  %7501 = vmatmul.msk.bf16.gmra.mxu1 %vm2533_vm7, %v5186_v54  ;;  %v9131_v9 = vpack.i.bf16 %v4826_v32, %v4824_v7  ;;  %v7943_v62 = vld [vmem:[%s14122_s28 + $0x18] sm:$0xff] }
 0x696   : > { %9112 = vrot.lane.b32.xlu2 %v9111_v2, %s14018_s9  ;;  %9102 = vrot.lane.b32.xlu0 %v9101_v63, %s14048_s11  ;;  %v7940_v63 = vld [vmem:[%s14122_s28] sm:$0xff] }
 0x697   : > { %v4737_v33 = vpop.f32.mrf.mxu3  ;;  %5283 = vmatpush.bf16.msra.mxu2 %v7944_v38 }
 0x698   : > { %v4858_v17 = vrot.slane %v4737_v33, 2  ;;  %v4909_v16 = vrot.slane %v4737_v33, 3  ;;  %v5093_v51 = vrot.slane %v4737_v33, 6  ;;  %v4960_v56 = vrot.slane %v4737_v33, 4 }
 0x699   : > { %v5042_v0 = vrot.slane %v4737_v33, 5 }
 0x69a   : > { %v4859_v28 = vsel %vm1360_vm3, %v4825_v27, %v4858_v17  ;;  %v4910_v10 = vsel %vm1656_vm4, %v4907_v15, %v4909_v16  ;;  %v5094_v24 = vsel %vm2315_vm5, %v5091_v4, %v5093_v51  ;;  %v4961_v6 = vsel %vm1021_vm0, %v4958_v26, %v4960_v56 }
 0x69b   : > { %v9136_v18 = vpack.i.bf16 %v4859_v28, %v4826_v32  ;;  %v9141_v20 = vpack.i.bf16 %v4910_v10, %v4908_v39  ;;  %v5043_v12 = vsel %vm2133_vm6, %v5040_v34, %v5042_v0  ;;  %v9146_v7 = vpack.i.bf16 %v4961_v6, %v4959_v46  ;;  %5284 = vmatpush.bf16.msra.mxu2 %v7943_v62  ;;  %v7941_v34 = vld [vmem:[%s14122_s28 + $0x8] sm:$0xff] }
 0x69c   : > { %vm5157_vm4 = vcmask 785408  }
 0x69d   : > { %9122 = vrot.lane.b32.xlu1 %v9121_v19, %s14016_s3 }
 0x69e   : > { %9117 = vrot.lane.b32.xlu0 %v9116_v41, %s14014_s5  ;;  %9127 = vrot.lane.b32.xlu2 %v9126_v52, %s14044_s29 }
 0x69f   : > { %v4740_v60 = vpop.f32.mrf.mxu3  ;;  %5285 = vmatpush.bf16.msra.mxu2 %v7942_v5 }
 0x6a0   : > { %v5095_v40 = vrot.slane %v4740_v60, 6  ;;  %v4993_v45 = vrot.slane %v4740_v60, 4  ;;  %v5044_v3 = vrot.slane %v4740_v60, 5 }
 0x6a2   : > { %v5096_v1 = vsel %vm2315_vm5, %v5093_v51, %v5095_v40  ;;  %v4994_v25 = vsel %vm1021_vm0, %v4960_v56, %v4993_v45  ;;  %v5045_v48 = vsel %vm2133_vm6, %v5042_v0, %v5044_v3 }
 0x6a3   : > { %v5188_v36 = vpack.c.bf16 %v5096_v1, %v5094_v24  ;;  %v9151_v4 = vpack.i.bf16 %v4994_v25, %v4961_v6  ;;  %v9156_v50 = vpack.i.bf16 %v5045_v48, %v5043_v12  ;;  %5286 = vmatpush.bf16.msra.mxu2 %v7941_v34 }
 0x6a5   : > { %9137 = vrot.lane.b32.xlu1 %v9136_v18, %s14048_s11  ;;  %7502 = vmatmul.msk.bf16.gmra.mxu1 %vm2533_vm7, %v5188_v36 }
 0x6a6   : > { %9132 = vrot.lane.b32.xlu0 %v9131_v9, %s14046_s12  ;;  %9142 = vrot.lane.b32.xlu2 %v9141_v20, %s14047_s10 }
 0x6a7   : > { %v4742_v22 = vpop.f32.mrf.mxu3  ;;  %5287 = vmatpush.bf16.msra.mxu2 %v7940_v63 }
 0x6ad   : > { %9152 = vrot.lane.b32.xlu1 %v9151_v4, %s14014_s5  ;;  %s14127_s5 = smov 96  }
 0x6ae   : > { %9147 = vrot.lane.b32.xlu0 %v9146_v7, %s14018_s9  ;;  %9157 = vrot.lane.b32.xlu2 %v9156_v50, %s14016_s3 }
 0x6af   : > { %v8993_v14 = vpop.permute.xlu2 %8992 }
 0x6b0   : > { %v8995_v23 = vunpack.i.h.bf16 %v8993_v14  ;;  %v8994_v31 = vunpack.i.l.bf16 %v8993_v14 }
 0x6b7   : > { %v9008_v2 = vpop.permute.xlu2 %9007 }
 0x6b8   : > { %v9009_v40 = vunpack.i.l.bf16 %v9008_v2 }
 0x6c0   : > { %v9023_v54 = vpop.permute.xlu2 %9022 }
 0x6c1   : > { %v9025_v3 = vunpack.i.h.bf16 %v9023_v54  ;;  %v9024_v44 = vunpack.i.l.bf16 %v9023_v54 }
 0x6c3   : > { %v5110_v6 = vsel %vm2533_vm7, %v12991_v11, %v9025_v3  ;;  %v5109_v38 = vsel %vm2533_vm7, %v12976_v37, %v9024_v44 }
 0x6c7   : > { %v8988_v53 = vpop.permute.xlu1 %8987 }
 0x6c8   : > { %v8990_v26 = vunpack.i.h.bf16 %v8988_v53  ;;  %v8989_v30 = vunpack.i.l.bf16 %v8988_v53  ;;  %v9038_v58 = vpop.permute.xlu2 %9037 }
 0x6c9   : > { %v9039_v63 = vunpack.i.l.bf16 %v9038_v58 }
 0x6ca   : > { %v5108_v13 = vsel %vm2533_vm7, %v12972_v59, %v8990_v26  ;;  %v5107_v55 = vsel %vm2533_vm7, %v12970_v47, %v8989_v30  ;;  %v9010_v59 = vunpack.i.h.bf16 %v9008_v2  ;;  %v9040_v2 = vunpack.i.h.bf16 %v9038_v58 }
 0x6cb   : > { %v5117_v52 = vsel %vm2607_vm9, %v5107_v55, %v8994_v31  ;;  %v5118_v27 = vsel %vm2607_vm9, %v5108_v13, %v8995_v23 }
 0x6cf   : > { %v9003_v33 = vpop.permute.xlu1 %9002 }
 0x6d0   : > { %v8998_v46 = vpop.permute.xlu0 %8997  ;;  %v9005_v17 = vunpack.i.h.bf16 %v9003_v33  ;;  %v9004_v41 = vunpack.i.l.bf16 %v9003_v33  ;;  %v9053_v39 = vpop.permute.xlu2 %9052 }
 0x6d1   : > { %v9000_v19 = vunpack.i.h.bf16 %v8998_v46  ;;  %v8999_v29 = vunpack.i.l.bf16 %v8998_v46  ;;  %v9055_v13 = vunpack.i.h.bf16 %v9053_v39  ;;  %v9054_v55 = vunpack.i.l.bf16 %v9053_v39 }
 0x6d3   : > { %v5128_v16 = vsel %vm2681_vm11, %v5118_v27, %v9000_v19  ;;  %v5127_v51 = vsel %vm2681_vm11, %v5117_v52, %v8999_v29 }
 0x6d4   : > { %v5138_v15 = vsel %vm2755_vm13, %v5128_v16, %v9005_v17  ;;  %v5137_v47 = vsel %vm2755_vm13, %v5127_v51, %v9004_v41 }
 0x6d5   : > { %v5147_v18 = vsel %vm4679_vm10, %v5137_v47, %v9009_v40  ;;  %v5148_v36 = vsel %vm4679_vm10, %v5138_v15, %v9010_v59 }
 0x6d7   : > { %v9018_v60 = vpop.permute.xlu1 %9017 }
 0x6d8   : > { %v9020_v28 = vunpack.i.h.bf16 %v9018_v60  ;;  %v9019_v32 = vunpack.i.l.bf16 %v9018_v60  ;;  %v9013_v10 = vpop.permute.xlu0 %9012  ;;  %v9068_v7 = vpop.permute.xlu2 %9067 }
 0x6d9   : > { %v9015_v1 = vunpack.i.h.bf16 %v9013_v10  ;;  %v9014_v24 = vunpack.i.l.bf16 %v9013_v10  ;;  %v9069_v39 = vunpack.i.l.bf16 %v9068_v7 }
 0x6db   : > { %v5159_v57 = vsel %vm5157_vm4, %v5148_v36, %v9015_v1  ;;  %v5158_v45 = vsel %vm5157_vm4, %v5147_v18, %v9014_v24  ;;  %v9070_v24 = vunpack.i.h.bf16 %v9068_v7 }
 0x6dc   : > { %v5170_v9 = vsel %vm5168_vm12, %v5159_v57, %v9020_v28  ;;  %v5169_v20 = vsel %vm5168_vm12, %v5158_v45, %v9019_v32 }
 0x6dd   : > { %v5179_v56 = vpack.c.bf16 %v5170_v9, %v5169_v20 }
 0x6df   : > { %5288 = vmatmul.bf16.vlgmr.msra.gmra.mxu2 %v5179_v56  ;;  %v9033_v0 = vpop.permute.xlu1 %9032 }
 0x6e0   : > { %v9028_v22 = vpop.permute.xlu0 %9027  ;;  %v9035_v4 = vunpack.i.h.bf16 %v9033_v0  ;;  %v9034_v12 = vunpack.i.l.bf16 %v9033_v0  ;;  %v9083_v17 = vpop.permute.xlu2 %9082 }
 0x6e1   : > { %v9030_v25 = vunpack.i.h.bf16 %v9028_v22  ;;  %v9029_v48 = vunpack.i.l.bf16 %v9028_v22  ;;  %v9085_v0 = vunpack.i.h.bf16 %v9083_v17  ;;  %v9084_v22 = vunpack.i.l.bf16 %v9083_v17 }
 0x6e3   : > { %v5119_v50 = vsel %vm2607_vm9, %v5109_v38, %v9029_v48  ;;  %v5120_v62 = vsel %vm2607_vm9, %v5110_v6, %v9030_v25 }
 0x6e4   : > { %v5130_v14 = vsel %vm2681_vm11, %v5120_v62, %v9035_v4  ;;  %v5129_v5 = vsel %vm2681_vm11, %v5119_v50, %v9034_v12 }
 0x6e5   : > { %v5139_v37 = vsel %vm2755_vm13, %v5129_v5, %v9039_v63  ;;  %v5140_v33 = vsel %vm2755_vm13, %v5130_v14, %v9040_v2 }
 0x6e7   : > { %v9048_v34 = vpop.permute.xlu1 %9047 }
 0x6e8   : > { %v9043_v54 = vpop.permute.xlu0 %9042  ;;  %v9050_v53 = vunpack.i.h.bf16 %v9048_v34  ;;  %v9049_v11 = vunpack.i.l.bf16 %v9048_v34  ;;  %v9098_v28 = vpop.permute.xlu2 %9097 }
 0x6e9   : > { %v9045_v26 = vunpack.i.h.bf16 %v9043_v54  ;;  %v9044_v30 = vunpack.i.l.bf16 %v9043_v54 }
 0x6eb   : > { %v5149_v46 = vsel %vm4679_vm10, %v5139_v37, %v9044_v30  ;;  %v5150_v23 = vsel %vm4679_vm10, %v5140_v33, %v9045_v26 }
 0x6ec   : > { %v5161_v31 = vsel %vm5157_vm4, %v5150_v23, %v9050_v53  ;;  %v5160_v19 = vsel %vm5157_vm4, %v5149_v46, %v9049_v11  ;;  %v9100_v53 = vunpack.i.h.bf16 %v9098_v28  ;;  %v9099_v11 = vunpack.i.l.bf16 %v9098_v28 }
 0x6ed   : > { %v5171_v58 = vsel %vm5168_vm12, %v5160_v19, %v9054_v55  ;;  %v5172_v29 = vsel %vm5168_vm12, %v5161_v31, %v9055_v13 }
 0x6ee   : > { %v5181_v41 = vpack.c.bf16 %v5172_v29, %v5171_v58 }
 0x6ef   : > { %v9063_v52 = vpop.permute.xlu1 %9062 }
 0x6f0   : > { %5293 = vmatmul.bf16.gmra.mxu2 %v5181_v41  ;;  %v9058_v27 = vpop.permute.xlu0 %9057  ;;  %v9065_v59 = vunpack.i.h.bf16 %v9063_v52  ;;  %v9064_v15 = vunpack.i.l.bf16 %v9063_v52  ;;  %v9113_v38 = vpop.permute.xlu2 %9112 }
 0x6f1   : > { %v9060_v16 = vunpack.i.h.bf16 %v9058_v27  ;;  %v9059_v51 = vunpack.i.l.bf16 %v9058_v27  ;;  %v9115_v58 = vunpack.i.h.bf16 %v9113_v38  ;;  %v9114_v29 = vunpack.i.l.bf16 %v9113_v38 }
 0x6f3   : > { %v5112_v47 = vsel %vm2533_vm7, %v13031_v21, %v9060_v16  ;;  %v5111_v60 = vsel %vm2533_vm7, %v13009_v49, %v9059_v51 }
 0x6f4   : > { %v5122_v32 = vsel %vm2607_vm9, %v5112_v47, %v9065_v59  ;;  %v5121_v10 = vsel %vm2607_vm9, %v5111_v60, %v9064_v15 }
 0x6f5   : > { %v5131_v9 = vsel %vm2681_vm11, %v5121_v10, %v9069_v39  ;;  %v5132_v21 = vsel %vm2681_vm11, %v5122_v32, %v9070_v24 }
 0x6f7   : > { %v9078_v40 = vpop.permute.xlu1 %9077 }
 0x6f8   : > { %v9073_v1 = vpop.permute.xlu0 %9072  ;;  %v9080_v57 = vunpack.i.h.bf16 %v9078_v40  ;;  %v9079_v45 = vunpack.i.l.bf16 %v9078_v40  ;;  %v9128_v46 = vpop.permute.xlu2 %9127 }
 0x6f9   : > { %v9075_v18 = vunpack.i.h.bf16 %v9073_v1  ;;  %v9074_v36 = vunpack.i.l.bf16 %v9073_v1  ;;  %v9130_v10 = vunpack.i.h.bf16 %v9128_v46  ;;  %v9129_v1 = vunpack.i.l.bf16 %v9128_v46 }
 0x6fb   : > { %v5141_v20 = vsel %vm2755_vm13, %v5131_v9, %v9074_v36  ;;  %v5142_v49 = vsel %vm2755_vm13, %v5132_v21, %v9075_v18 }
 0x6fc   : > { %v5151_v56 = vsel %vm4679_vm10, %v5141_v20, %v9079_v45  ;;  %v5152_v3 = vsel %vm4679_vm10, %v5142_v49, %v9080_v57  ;;  %v5116_v57 = vsel %vm2533_vm7, %v13099_v43, %v9130_v10  ;;  %v5115_v45 = vsel %vm2533_vm7, %v13080_v42, %v9129_v1 }
 0x6fd   : > { %v5162_v4 = vsel %vm5157_vm4, %v5151_v56, %v9084_v22  ;;  %v5163_v12 = vsel %vm5157_vm4, %v5152_v3, %v9085_v0 }
 0x6ff   : > { %v9093_v44 = vpop.permute.xlu1 %9092 }
 0x700   : > { %v9088_v25 = vpop.permute.xlu0 %9087  ;;  %v9095_v62 = vunpack.i.h.bf16 %v9093_v44  ;;  %v9094_v14 = vunpack.i.l.bf16 %v9093_v44  ;;  %v9143_v32 = vpop.permute.xlu2 %9142 }
 0x701   : > { %v9090_v48 = vunpack.i.h.bf16 %v9088_v25  ;;  %v9089_v6 = vunpack.i.l.bf16 %v9088_v25  ;;  %v9145_v0 = vunpack.i.h.bf16 %v9143_v32  ;;  %v9144_v22 = vunpack.i.l.bf16 %v9143_v32 }
 0x702   : > { %v5114_v2 = vsel %vm2533_vm7, %v13064_v35, %v9095_v62  ;;  %v5113_v63 = vsel %vm2533_vm7, %v13045_v8, %v9094_v14 }
 0x703   : > { %v5173_v7 = vsel %vm5168_vm12, %v5162_v4, %v9089_v6  ;;  %v5174_v50 = vsel %vm5168_vm12, %v5163_v12, %v9090_v48  ;;  %v5123_v13 = vsel %vm2607_vm9, %v5113_v63, %v9099_v11  ;;  %v5124_v55 = vsel %vm2607_vm9, %v5114_v2, %v9100_v53  ;;  %v5323_v53 = vpop.f32.mrf.mxu1 }
 0x704   : > { %v5183_v5 = vpack.c.bf16 %v5174_v50, %v5173_v7 }
 0x706   : > { %5298 = vmatmul.bf16.gmra.mxu2 %v5183_v5 }
 0x707   : > { %v9108_v34 = vpop.permute.xlu1 %9107 }
 0x708   : > { %v9103_v54 = vpop.permute.xlu0 %9102  ;;  %v9110_v37 = vunpack.i.h.bf16 %v9108_v34  ;;  %v9109_v33 = vunpack.i.l.bf16 %v9108_v34  ;;  %v9158_v25 = vpop.permute.xlu2 %9157 }
 0x709   : > { %v9105_v26 = vunpack.i.h.bf16 %v9103_v54  ;;  %v9104_v30 = vunpack.i.l.bf16 %v9103_v54  ;;  %v9160_v7 = vunpack.i.h.bf16 %v9158_v25  ;;  %v9159_v50 = vunpack.i.l.bf16 %v9158_v25 }
 0x70b   : > { %v5134_v23 = vsel %vm2681_vm11, %v5124_v55, %v9105_v26  ;;  %v5133_v31 = vsel %vm2681_vm11, %v5123_v13, %v9104_v30  ;;  %v5325_v26 = vpop.f32.mrf.mxu1 }
 0x70c   : > { %v5144_v35 = vsel %vm2755_vm13, %v5134_v23, %v9110_v37  ;;  %v5143_v8 = vsel %vm2755_vm13, %v5133_v31, %v9109_v33  ;;  %v13269_v33 = vld [vmem:[%s14123_s7] ss:$0 sm:$0xff]  ;;  %s14128_s7 = smov 112  }
 0x70d   : > { %v5153_v51 = vsel %vm4679_vm10, %v5143_v8, %v9114_v29  ;;  %v5154_v59 = vsel %vm4679_vm10, %v5144_v35, %v9115_v58 }
 0x70f   : > { %v9123_v19 = vpop.permute.xlu1 %9122 }
 0x710   : > { %v9125_v17 = vunpack.i.h.bf16 %v9123_v19  ;;  %v9124_v41 = vunpack.i.l.bf16 %v9123_v19  ;;  %v9118_v52 = vpop.permute.xlu0 %9117 }
 0x711   : > { %v9120_v27 = vunpack.i.h.bf16 %v9118_v52  ;;  %v9119_v16 = vunpack.i.l.bf16 %v9118_v52 }
 0x713   : > { %v5165_v15 = vsel %vm5157_vm4, %v5154_v59, %v9120_v27  ;;  %v5164_v47 = vsel %vm5157_vm4, %v5153_v51, %v9119_v16  ;;  %v5328_v37 = vpop.f32.mrf.mxu1 }
 0x714   : > { %v5175_v60 = vsel %vm5168_vm12, %v5164_v47, %v9124_v41  ;;  %v5176_v40 = vsel %vm5168_vm12, %v5165_v15, %v9125_v17 }
 0x715   : > { %v5185_v28 = vpack.c.bf16 %v5176_v40, %v5175_v60 }
 0x717   : > { %5303 = vmatmul.bf16.gmra.mxu2 %v5185_v28  ;;  %v9138_v24 = vpop.permute.xlu1 %9137 }
 0x718   : > { %v9133_v39 = vpop.permute.xlu0 %9132  ;;  %v9140_v9 = vunpack.i.h.bf16 %v9138_v24  ;;  %v9139_v21 = vunpack.i.l.bf16 %v9138_v24 }
 0x719   : > { %v9135_v18 = vunpack.i.h.bf16 %v9133_v39  ;;  %v9134_v36 = vunpack.i.l.bf16 %v9133_v39 }
 0x71b   : > { %v5125_v20 = vsel %vm2607_vm9, %v5115_v45, %v9134_v36  ;;  %v5126_v49 = vsel %vm2607_vm9, %v5116_v57, %v9135_v18  ;;  %v5330_v31 = vpop.f32.mrf.mxu1 }
 0x71c   : > { %v5136_v56 = vsel %vm2681_vm11, %v5126_v49, %v9140_v9  ;;  %v5135_v3 = vsel %vm2681_vm11, %v5125_v20, %v9139_v21 }
 0x71d   : > { %v5145_v42 = vsel %vm2755_vm13, %v5135_v3, %v9144_v22  ;;  %v5146_v12 = vsel %vm2755_vm13, %v5136_v56, %v9145_v0 }
 0x71f   : > { %v9153_v44 = vpop.permute.xlu1 %9152 }
 0x720   : > { %v9148_v48 = vpop.permute.xlu0 %9147  ;;  %v9155_v6 = vunpack.i.h.bf16 %v9153_v44  ;;  %v9154_v43 = vunpack.i.l.bf16 %v9153_v44 }
 0x721   : > { %v9150_v38 = vunpack.i.h.bf16 %v9148_v48  ;;  %v9149_v4 = vunpack.i.l.bf16 %v9148_v48 }
 0x723   : > { %v5155_v62 = vsel %vm4679_vm10, %v5145_v42, %v9149_v4  ;;  %v5156_v14 = vsel %vm4679_vm10, %v5146_v12, %v9150_v38  ;;  %v5333_v17 = vpop.f32.mrf.mxu1 }
 0x724   : > { %v5167_v5 = vsel %vm5157_vm4, %v5156_v14, %v9155_v6  ;;  %v5166_v34 = vsel %vm5157_vm4, %v5155_v62, %v9154_v43 }
 0x725   : > { %v5177_v2 = vsel %vm5168_vm12, %v5166_v34, %v9159_v50  ;;  %v5178_v63 = vsel %vm5168_vm12, %v5167_v5, %v9160_v7 }
 0x726   : > { %v5187_v54 = vpack.c.bf16 %v5178_v63, %v5177_v2 }
 0x728   : > { %5308 = vmatmul.bf16.gmra.mxu2 %v5187_v54 }
 0x72b   : > { %v5335_v1 = vpop.f32.mrf.mxu1 }
 0x733   : > { %v5338_v56 = vpop.f32.mrf.mxu1 }
 0x73b   : > { %v5340_v62 = vpop.f32.mrf.mxu1 }
 0x762   : > { %v5289_v11 = vpop.f32.mrf.mxu2 }
 0x763   : > { %v5290_v8 = vadd.f32 %v13269_v33, %v5289_v11 }
 0x765   : > { %v5324_v58 = vadd.f32 %v5323_v53, %v5290_v8 }
 0x767   : > { %v5358_v16 = vmul.f32 %v5324_v58, %v5324_v58  ;;  %v5348_v54 = vmul.f32 0.5, %v5324_v58 }
 0x769   : > { %v5368_v47 = vmul.f32 %v5358_v16, %v5324_v58  ;;  %v5343_v16 = vpop.f32.mrf.mxu1 }
 0x76a   : > { %v5291_v30 = vpop.f32.mrf.mxu2 }
 0x76b   : > { %v5292_v23 = vadd.f32 %v13269_v33, %v5291_v30  ;;  %v5378_v10 = vmul.f32 0.044715, %v5368_v47 }
 0x76d   : > { %v5326_v35 = vadd.f32 %v5325_v26, %v5292_v23  ;;  %v5388_v36 = vadd.f32 %v5378_v10, %v5324_v58 }
 0x76f   : > { %v5359_v19 = vmul.f32 %v5326_v35, %v5326_v35  ;;  %v5398_v20 = vmul.f32 0.7978846, %v5388_v36  ;;  %v5349_v4 = vmul.f32 0.5, %v5326_v35 }
 0x771   : > { %v5369_v41 = vmul.f32 %v5359_v19, %v5326_v35 }
 0x773   : > { %v5294_v13 = vpop.f32.mrf.mxu2  ;;  %v5379_v51 = vmul.f32 0.044715, %v5369_v41 }
 0x774   : > { %v5295_v55 = vadd.f32 %v13269_v33, %v5294_v13 }
 0x775   : > { %v5389_v40 = vadd.f32 %v5379_v51, %v5326_v35 }
 0x776   : > { %v5329_v46 = vadd.f32 %v5328_v37, %v5295_v55 }
 0x777   : > { %v5399_v24 = vmul.f32 0.7978846, %v5389_v40 }
 0x778   : > { %v5360_v52 = vmul.f32 %v5329_v46, %v5329_v46  ;;  %v5350_v12 = vmul.f32 0.5, %v5329_v46 }
 0x779   : > { %9332 = vtanh.f32 %v5399_v24 }
 0x77a   : > { %v5370_v59 = vmul.f32 %v5360_v52, %v5329_v46 }
 0x77b   : > { %v5296_v29 = vpop.f32.mrf.mxu2 }
 0x77c   : > { %v5297_v27 = vadd.f32 %v13269_v33, %v5296_v29  ;;  %v5380_v28 = vmul.f32 0.044715, %v5370_v59 }
 0x77e   : > { %v5331_v15 = vadd.f32 %v5330_v31, %v5297_v27  ;;  %v5390_v39 = vadd.f32 %v5380_v28, %v5329_v46 }
 0x77f   : > { %v9333_v44 = vpop.eup %9332 }
 0x780   : > { %v5361_v32 = vmul.f32 %v5331_v15, %v5331_v15  ;;  %v5400_v9 = vmul.f32 0.7978846, %v5390_v39  ;;  %v5419_v48 = vadd.f32 1.0, %v9333_v44  ;;  %v5351_v58 = vmul.f32 0.5, %v5331_v15 }
 0x782   : > { %v5371_v18 = vmul.f32 %v5361_v32, %v5331_v15  ;;  %9334 = vtanh.f32 %v5400_v9  ;;  %v5429_v50 = vmul.f32 %v5419_v48, %v5349_v4 }
 0x783   : > { %9336 = vtanh.f32 %v5398_v20 }
 0x784   : > { %v5381_v21 = vmul.f32 0.044715, %v5371_v18  ;;  %v5447_v30 = vrot.slane %v5429_v50, 2 }
 0x786   : > { %v5391_v3 = vadd.f32 %v5381_v21, %v5331_v15 }
 0x788   : > { %v5401_v25 = vmul.f32 0.7978846, %v5391_v3  ;;  %v9335_v6 = vpop.eup %9334 }
 0x789   : > { %v5299_v60 = vpop.f32.mrf.mxu2  ;;  %v9337_v38 = vpop.eup %9336  ;;  %v5420_v7 = vadd.f32 1.0, %v9335_v6 }
 0x78a   : > { %v5300_v57 = vadd.f32 %v13269_v33, %v5299_v60  ;;  %9338 = vtanh.f32 %v5401_v25  ;;  %v5418_v5 = vadd.f32 1.0, %v9337_v38  ;;  %v5345_v25 = vpop.f32.mrf.mxu1 }
 0x78b   : > { %v13283_v63 = vmul.f32 %v5420_v7, %v5350_v12 }
 0x78c   : > { %v13276_v49 = vadd.f32 %v5333_v17, %v5300_v57  ;;  %v5428_v46 = vmul.f32 %v5418_v5, %v5348_v54 }
 0x78d   : > { %v5448_v26 = vrot.slane %v13283_v63, 2 }
 0x78e   : > { %v5362_v0 = vmul.f32 %v13276_v49, %v13276_v49  ;;  %v5352_v48 = vmul.f32 0.5, %v13276_v49 }
 0x78f   : > { %v5449_v31 = vsel %vm1360_vm3, %v5447_v30, %v5448_v26 }
 0x790   : > { %v5372_v43 = vmul.f32 %v5362_v0, %v13276_v49  ;;  %v9339_v37 = vpop.eup %9338  ;;  %v13299_v19 = vmax.f32 %v5428_v46, %v5449_v31 }
 0x791   : > { %v5301_v45 = vpop.f32.mrf.mxu2  ;;  %v5421_v29 = vadd.f32 1.0, %v9339_v37 }
 0x792   : > { %v5382_v14 = vmul.f32 0.044715, %v5372_v43  ;;  %v5302_v34 = vadd.f32 %v13269_v33, %v5301_v45  ;;  %v5491_v18 = vrot.slane %v13299_v19, 1 }
 0x793   : > { %v13304_v27 = vmul.f32 %v5421_v29, %v5351_v58 }
 0x794   : > { %v5392_v13 = vadd.f32 %v5382_v14, %v13276_v49  ;;  %v13292_v23 = vadd.f32 %v5335_v1, %v5302_v34 }
 0x795   : > { %v5450_v40 = vrot.slane %v13304_v27, 2 }
 0x796   : > { %v5402_v17 = vmul.f32 0.7978846, %v5392_v13  ;;  %v5363_v52 = vmul.f32 %v13292_v23, %v13292_v23 }
 0x797   : > { %v5451_v32 = vsel %vm1360_vm3, %v5448_v26, %v5450_v40 }
 0x798   : > { %9340 = vtanh.f32 %v5402_v17  ;;  %v5373_v15 = vmul.f32 %v5363_v52, %v13292_v23  ;;  %v5474_v1 = vmax.f32 %v5429_v50, %v5451_v32 }
 0x79a   : > { %v5304_v22 = vpop.f32.mrf.mxu2  ;;  %v5492_v36 = vrot.slane %v5474_v1, 1  ;;  %v5383_v57 = vmul.f32 0.044715, %v5373_v15 }
 0x79b   : > { %v5305_v42 = vadd.f32 %v13269_v33, %v5304_v22 }
 0x79c   : > { %v5393_v6 = vadd.f32 %v5383_v57, %v13292_v23 }
 0x79d   : > { %v13285_v53 = vadd.f32 %v5338_v56, %v5305_v42  ;;  %v5493_v56 = vsel %vm1178_vm2, %v5491_v18, %v5492_v36 }
 0x79e   : > { %v9341_v9 = vpop.eup %9340  ;;  %v5517_v22 = vmax.f32 %v13299_v19, %v5493_v56 }
 0x79f   : > { %v5364_v35 = vmul.f32 %v13285_v53, %v13285_v53  ;;  %v5422_v4 = vadd.f32 1.0, %v9341_v9  ;;  %v5354_v52 = vmul.f32 0.5, %v13285_v53 }
 0x7a1   : > { %v5374_v51 = vmul.f32 %v5364_v35, %v13285_v53  ;;  %v5432_v50 = vmul.f32 %v5422_v4, %v5352_v48 }
 0x7a2   : > { %v5306_v2 = vpop.f32.mrf.mxu2 }
 0x7a3   : > { %v5307_v11 = vadd.f32 %v13269_v33, %v5306_v2  ;;  %v5384_v10 = vmul.f32 0.044715, %v5374_v51  ;;  %v5452_v5 = vrot.slane %v5432_v50, 2 }
 0x7a5   : > { %v13290_v55 = vadd.f32 %v5340_v62, %v5307_v11  ;;  %v5394_v21 = vadd.f32 %v5384_v10, %v13285_v53  ;;  %v5403_v62 = vmul.f32 0.7978846, %v5393_v6  ;;  %v5453_v34 = vsel %vm1360_vm3, %v5450_v40, %v5452_v5 }
 0x7a6   : > { %v13321_v49 = vmax.f32 %v13283_v63, %v5453_v34 }
 0x7a7   : > { %v5365_v8 = vmul.f32 %v13290_v55, %v13290_v55  ;;  %v5404_v42 = vmul.f32 0.7978846, %v5394_v21  ;;  %v5355_v63 = vmul.f32 0.5, %v13290_v55 }
 0x7a8   : > { %v5494_v11 = vrot.slane %v13321_v49, 1 }
 0x7a9   : > { %v5375_v41 = vmul.f32 %v5365_v8, %v13290_v55 }
 0x7aa   : > { %v5495_v31 = vsel %vm1178_vm2, %v5492_v36, %v5494_v11 }
 0x7ab   : > { %v5309_v59 = vpop.f32.mrf.mxu2  ;;  %v5385_v47 = vmul.f32 0.044715, %v5375_v41  ;;  %v5518_v8 = vmax.f32 %v5474_v1, %v5495_v31  ;;  %v7513_v31 = vld [vmem:[%s14125_s4 + $0x10] sm:$0xf] }
 0x7ac   : > { %v5310_v60 = vadd.f32 %v13269_v33, %v5309_v59 }
 0x7ad   : > { %v5395_v24 = vadd.f32 %v5385_v47, %v13290_v55  ;;  %v5532_v29 = vpack.c.bf16 %v5518_v8, %v5517_v22  ;;  %v5353_v47 = vmul.f32 0.5, %v13292_v23  ;;  %v5562_v23 = vsel %vm2315_vm5, 4294967295, %v9388_v61 }
 0x7ae   : > { %v5344_v28 = vadd.f32 %v5343_v16, %v5310_v60  ;;  %v5563_v22 = vsel %vm2133_vm6, %v5562_v23, 0 }
 0x7af   : > { %v5405_v3 = vmul.f32 0.7978846, %v5395_v24 }
 0x7b0   : > { %v5366_v39 = vmul.f32 %v5344_v28, %v5344_v28  ;;  %v5356_v37 = vmul.f32 0.5, %v5344_v28 }
 0x7b1   : > { %9342 = vtanh.f32 %v5405_v3 }
 0x7b2   : > { %v5376_v45 = vmul.f32 %v5366_v39, %v5344_v28 }
 0x7b3   : > { %v5311_v20 = vpop.f32.mrf.mxu2 }
 0x7b4   : > { %v5386_v44 = vmul.f32 0.044715, %v5376_v45  ;;  %v5312_v0 = vadd.f32 %v13269_v33, %v5311_v20 }
 0x7b6   : > { %v5396_v43 = vadd.f32 %v5386_v44, %v5344_v28  ;;  %v5346_v38 = vadd.f32 %v5345_v25, %v5312_v0 }
 0x7b7   : > { %v9343_v2 = vpop.eup %9342 }
 0x7b8   : > { %v5406_v12 = vmul.f32 0.7978846, %v5396_v43  ;;  %v5367_v7 = vmul.f32 %v5346_v38, %v5346_v38  ;;  %v5425_v46 = vadd.f32 1.0, %v9343_v2  ;;  %v5357_v60 = vmul.f32 0.5, %v5346_v38 }
 0x7ba   : > { %9344 = vtanh.f32 %v5406_v12  ;;  %v5377_v14 = vmul.f32 %v5367_v7, %v5346_v38  ;;  %v5435_v41 = vmul.f32 %v5425_v46, %v5355_v63  ;;  %v7949_v46 = vld [vmem:[%s14125_s4] sm:$0xff]  ;;  %v889_v63 = vld [vmem:[%s9559_s2 + $0x150] sm:$0x3f]  ;;  %s14126_s2 = smov 80  }
 0x7bb   : > { %9346 = vtanh.f32 %v5404_v42 }
 0x7bc   : > { %v5387_v33 = vmul.f32 0.044715, %v5377_v14  ;;  %9348 = vtanh.f32 %v5403_v62  ;;  %v5458_v28 = vrot.slane %v5435_v41, 2 }
 0x7be   : > { %v5397_v54 = vadd.f32 %v5387_v33, %v5346_v38 }
 0x7c0   : > { %v9345_v26 = vpop.eup %9344  ;;  %v5407_v30 = vmul.f32 0.7978846, %v5397_v54 }
 0x7c1   : > { %v5426_v13 = vadd.f32 1.0, %v9345_v26  ;;  %v9347_v35 = vpop.eup %9346 }
 0x7c2   : > { %9350 = vtanh.f32 %v5407_v30  ;;  %v9349_v58 = vpop.eup %9348  ;;  %v5424_v17 = vadd.f32 1.0, %v9347_v35 }
 0x7c3   : > { %v5436_v19 = vmul.f32 %v5426_v13, %v5356_v37  ;;  %v5423_v51 = vadd.f32 1.0, %v9349_v58 }
 0x7c4   : > { %v5434_v15 = vmul.f32 %v5424_v17, %v5354_v52 }
 0x7c5   : > { %v5460_v16 = vrot.slane %v5436_v19, 2  ;;  %v5433_v55 = vmul.f32 %v5423_v51, %v5353_v47 }
 0x7c6   : > { %v5456_v24 = vrot.slane %v5434_v15, 2 }
 0x7c7   : > { %v5461_v10 = vsel %vm1360_vm3, %v5458_v28, %v5460_v16  ;;  %v5454_v53 = vrot.slane %v5433_v55, 2 }
 0x7c8   : > { %v9351_v59 = vpop.eup %9350  ;;  %v5479_v39 = vmax.f32 %v5434_v15, %v5461_v10  ;;  %v5459_v57 = vsel %vm1360_vm3, %v5456_v24, %v5458_v28 }
 0x7c9   : > { %v5427_v40 = vadd.f32 1.0, %v9351_v59  ;;  %v5457_v21 = vsel %vm1360_vm3, %v5454_v53, %v5456_v24  ;;  %v5478_v3 = vmax.f32 %v5433_v55, %v5459_v57  ;;  %v5455_v0 = vsel %vm1360_vm3, %v5452_v5, %v5454_v53 }
 0x7ca   : > { %v5502_v20 = vrot.slane %v5479_v39, 1  ;;  %v5477_v6 = vmax.f32 %v5432_v50, %v5457_v21  ;;  %v5476_v61 = vmax.f32 %v13304_v27, %v5455_v0  ;;  %v7960_v50 = vld [vmem:[%s14124_s25 + $0x40] sm:$0xff] }
 0x7cb   : > { %v5437_v32 = vmul.f32 %v5427_v40, %v5357_v60  ;;  %v5500_v38 = vrot.slane %v5478_v3, 1  ;;  %5838 = vmatpush.bf16.msrb.mxu0 %v7960_v50 }
 0x7cc   : > { %v5498_v7 = vrot.slane %v5477_v6, 1  ;;  %v5496_v5 = vrot.slane %v5476_v61, 1 }
 0x7cd   : > { %v5462_v1 = vrot.slane %v5437_v32, 2  ;;  %v5503_v62 = vsel %vm1178_vm2, %v5500_v38, %v5502_v20 }
 0x7ce   : > { %v5501_v14 = vsel %vm1178_vm2, %v5498_v7, %v5500_v38  ;;  %v5522_v34 = vmax.f32 %v5478_v3, %v5503_v62  ;;  %v5499_v2 = vsel %vm1178_vm2, %v5496_v5, %v5498_v7  ;;  %v5497_v54 = vsel %vm1178_vm2, %v5494_v11, %v5496_v5  ;;  %v7950_v11 = vld [vmem:[%s14125_s4 + $0x8] sm:$0xff] }
 0x7cf   : > { %v5481_v18 = vmax.f32 %v5436_v19, %v5462_v1  ;;  %v5463_v36 = vsel %vm1360_vm3, %v5460_v16, %v5462_v1  ;;  %v5521_v27 = vmax.f32 %v5477_v6, %v5501_v14  ;;  %v5520_v30 = vmax.f32 %v5476_v61, %v5499_v2 }
 0x7d0   : > { %v5480_v45 = vmax.f32 %v5435_v41, %v5463_v36  ;;  %v5519_v37 = vmax.f32 %v13321_v49, %v5497_v54  ;;  %v7951_v49 = vld [vmem:[%s14125_s4 + $0x10] sm:$0x10]  ;;  %v911_v19 = vpack.c.bf16 %v889_v63, %v889_v63  ;;  %v7959_v36 = vld [vmem:[%s14124_s25 + $0x38] sm:$0xff]  ;;  %v7956_v63 = vld [vmem:[%s14124_s25 + $0x20] sm:$0xff] }
 0x7d1   : > { %v5506_v9 = vrot.slane %v5481_v18, 1  ;;  %v5534_v26 = vpack.c.bf16 %v5522_v34, %v5521_v27  ;;  %v7514_v35 = vor.u32 %v7951_v49, %v7513_v31  ;;  %5813 = vmatpush.bf16.msrb.mxu3 %v7959_v36 }
 0x7d2   : > { %v5504_v56 = vrot.slane %v5480_v45, 1  ;;  %v5533_v13 = vpack.c.bf16 %v5520_v30, %v5519_v37  ;;  %7280 = vmatmul.msk.bf16.gmra.mxu0 %vm954_vm1, %v911_v19  ;;  %v7955_v19 = vld [vmem:[%s14124_s25 + $0x18] sm:$0xff] }
 0x7d3   : > { %v5525_v44 = vmax.f32 %v5481_v18, %v5506_v9 }
 0x7d4   : > { %v5505_v25 = vsel %vm1178_vm2, %v5502_v20, %v5504_v56  ;;  %v5507_v48 = vsel %vm1178_vm2, %v5504_v56, %v5506_v9  ;;  %v7958_v9 = vld [vmem:[%s14124_s25 + $0x30] sm:$0xff] }
 0x7d5   : > { %v5536_v43 = vpack.c.bf16 %v5525_v44, %v5525_v44  ;;  %v5523_v42 = vmax.f32 %v5479_v39, %v5505_v25  ;;  %v5524_v12 = vmax.f32 %v5480_v45, %v5507_v48  ;;  %5814 = vmatpush.bf16.msrb.mxu3 %v7958_v9 }
 0x7d7   : > { %v5565_v4 = vand.u32 %v5563_v22, %v5536_v43  ;;  %v5535_v33 = vpack.c.bf16 %v5524_v12, %v5523_v42 }
 0x7d9   : > { %5570 = vmatpush.bf16.msrb.mxu2 %v5565_v4 }
 0x7dd   : > { %5571 = vmatpush.bf16.msrb.mxu2 %v5535_v33 }
 0x7e1   : > { %5572 = vmatpush.bf16.msrb.mxu2 %v5534_v26 }
 0x7e5   : > { %5573 = vmatpush.bf16.msrb.mxu2 %v5533_v13 }
 0x7e9   : > { %5574 = vmatpush.bf16.msrb.mxu2 %v5532_v29 }
 0x7ec   : > { %7515 = vmatmul.msk.bf16.vlgmr.msrb.gmra.mxu2 %vm5552_vm14, %v7949_v46 }
 0x7fc   : > { %7516 = vmatmul.msk.bf16.gmra.mxu2 %vm5552_vm14, %v7950_v11 }
 0x80c   : > { %7517 = vmatmul.msk.bf16.gmra.mxu2 %vm5552_vm14, %v7514_v35  ;;  %v7957_v35 = vld [vmem:[%s14124_s25 + $0x28] sm:$0xff] }
 0x80d   : > { %5815 = vmatpush.bf16.msrb.mxu3 %v7957_v35 }
 0x811   : > { %5816 = vmatpush.bf16.msrb.mxu3 %v7956_v63 }
 0x815   : > { %5817 = vmatpush.bf16.msrb.mxu3 %v7955_v19 }
 0x86f   : > { %v13363_v8 = vpop.f32.mrf.mxu2 }
 0x870   : > { %v5594_v41 = vrot.slane %v13363_v8, 1  ;;  %v5626_v60 = vrot.slane %v13363_v8, 6  ;;  %v5610_v24 = vrot.slane %v13363_v8, 2  ;;  %v5643_v21 = vrot.slane %v13363_v8, 7 }
 0x877   : > { %v13367_v58 = vpop.f32.mrf.mxu2 }
 0x878   : > { %v5595_v29 = vrot.slane %v13367_v58, 1  ;;  %v5627_v51 = vrot.slane %v13367_v58, 6  ;;  %v5611_v32 = vrot.slane %v13367_v58, 2  ;;  %v5644_v53 = vrot.slane %v13367_v58, 7 }
 0x879   : > { %v5669_v44 = vrot.slane %v13367_v58, 4  ;;  %v5685_v62 = vrot.slane %v13367_v58, 5 }
 0x87a   : > { %v5596_v40 = vsel %vm1178_vm2, %v5594_v41, %v5595_v29  ;;  %v5628_v55 = vsel %vm2315_vm5, %v5626_v60, %v5627_v51  ;;  %v5612_v57 = vsel %vm1360_vm3, %v5610_v24, %v5611_v32  ;;  %v5645_v22 = vsel %vm5642_vm15, %v5643_v21, %v5644_v53  ;;  %v7953_v41 = vld [vmem:[%s14124_s25 + $0x8] sm:$0xff] }
 0x87f   : > { %v13370_v17 = vpop.f32.mrf.mxu2 }
 0x880   : > { %v9161_v52 = vpack.i.bf16 %v13370_v17, %v13367_v58  ;;  %v5597_v16 = vrot.slane %v13370_v17, 1  ;;  %v5613_v59 = vrot.slane %v13370_v17, 2  ;;  %v5629_v47 = vrot.slane %v13370_v17, 6 }
 0x881   : > { %v5646_v10 = vrot.slane %v13370_v17, 7  ;;  %v5670_v23 = vrot.slane %v13370_v17, 4  ;;  %v5686_v12 = vrot.slane %v13370_v17, 5 }
 0x882   : > { %9162 = vrot.lane.b32.xlu1 %v9161_v52, %s14126_s2  ;;  %v5598_v15 = vsel %vm1178_vm2, %v5595_v29, %v5597_v16  ;;  %v5630_v1 = vsel %vm2315_vm5, %v5627_v51, %v5629_v47  ;;  %v5614_v39 = vsel %vm1360_vm3, %v5611_v32, %v5613_v59  ;;  %v7954_v29 = vld [vmem:[%s14124_s25 + $0x10] sm:$0xff]  ;;  %v7952_v52 = vld [vmem:[%s14124_s25] sm:$0xff] }
 0x883   : > { %v9166_v28 = vpack.i.bf16 %v5598_v15, %v5596_v40  ;;  %v9176_v18 = vpack.i.bf16 %v5630_v1, %v5628_v55  ;;  %v9171_v20 = vpack.i.bf16 %v5614_v39, %v5612_v57  ;;  %v5647_v56 = vsel %vm5642_vm15, %v5644_v53, %v5646_v10  ;;  %5818 = vmatpush.bf16.msrb.mxu3 %v7954_v29 }
 0x884   : > { %v9181_v48 = vpack.i.bf16 %v5647_v56, %v5645_v22  ;;  %v5671_v43 = vsel %vm1021_vm0, %v5669_v44, %v5670_v23  ;;  %v5687_v33 = vsel %vm2133_vm6, %v5685_v62, %v5686_v12 }
 0x885   : > { %9167 = vrot.lane.b32.xlu0 %v9166_v28, %s14044_s29  ;;  %9177 = vrot.lane.b32.xlu2 %v9176_v18, %s14048_s11 }
 0x887   : > { %v5583_v45 = vpop.f32.mrf.mxu2  ;;  %5819 = vmatpush.bf16.msrb.mxu3 %v7953_v41 }
 0x888   : > { %v5631_v3 = vrot.slane %v5583_v45, 6  ;;  %v5672_v0 = vrot.slane %v5583_v45, 4  ;;  %v5688_v61 = vrot.slane %v5583_v45, 5  ;;  %v5599_v42 = vrot.slane %v5583_v45, 1 }
 0x889   : > { %v5615_v34 = vrot.slane %v5583_v45, 2  ;;  %v5648_v27 = vrot.slane %v5583_v45, 7 }
 0x88a   : > { %9172 = vrot.lane.b32.xlu1 %v9171_v20, %s14046_s12  ;;  %v5632_v25 = vsel %vm2315_vm5, %v5629_v47, %v5631_v3  ;;  %v5673_v38 = vsel %vm1021_vm0, %v5670_v23, %v5672_v0  ;;  %v5689_v14 = vsel %vm2133_vm6, %v5686_v12, %v5688_v61  ;;  %v5600_v5 = vsel %vm1178_vm2, %v5597_v16, %v5599_v42  ;;  %v1138_v16 = vpop.f32.mrf.mxu0 }
 0x88b   : > { %v5728_v6 = vpack.c.bf16 %v5632_v25, %v5630_v1  ;;  %v9186_v4 = vpack.i.bf16 %v5673_v38, %v5671_v43  ;;  %v9191_v2 = vpack.i.bf16 %v5689_v14, %v5687_v33  ;;  %v5616_v54 = vsel %vm1360_vm3, %v5613_v59, %v5615_v34  ;;  %5820 = vmatpush.bf16.msrb.mxu3 %v7952_v52 }
 0x88c   : > { %v5649_v37 = vsel %vm5642_vm15, %v5646_v10, %v5648_v27 }
 0x88d   : > { %9182 = vrot.lane.b32.xlu0 %v9181_v48, %s14047_s10  ;;  %7554 = vmatmul.msk.bf16.vlgmr.msrb.gmra.mxu0 %vm2533_vm7, %v5728_v6 }
 0x88e   : > { %9187 = vrot.lane.b32.xlu2 %v9186_v4, %s14127_s5 }
 0x88f   : > { %v5586_v7 = vpop.f32.mrf.mxu2 }
 0x890   : > { %v5701_v50 = vrot.slane %v5586_v7, 6  ;;  %v5690_v46 = vrot.slane %v5586_v7, 5  ;;  %v5674_v11 = vrot.slane %v5586_v7, 4 }
 0x892   : > { %5605 = vrot.lane.b32.xlu1 %v5600_v5, %s14044_s29  ;;  %v5702_v30 = vsel %vm2315_vm5, %v5631_v3, %v5701_v50  ;;  %v5691_v31 = vsel %vm2133_vm6, %v5688_v61, %v5690_v46  ;;  %v5675_v49 = vsel %vm1021_vm0, %v5672_v0, %v5674_v11  ;;  %v1139_v15 = vpop.f32.mrf.mxu0  ;;  %s14129_s29 = sld [smem:[#allocation30_spill]] }
 0x893   : > { %v5730_v13 = vpack.c.bf16 %v5702_v30, %v5702_v30 }
 0x895   : > { %9192 = vrot.lane.b32.xlu0 %v9191_v2, %s14128_s7 }
 0x896   : > { %5621 = vrot.lane.b32.xlu2 %v5616_v54, %s14046_s12 }
 0x897   : > { %v5588_v26 = vpop.f32.mrf.mxu2 }
 0x89a   : > { %5654 = vrot.lane.b32.xlu1 %v5649_v37, %s14047_s10 }
 0x89d   : > { %5637 = vrot.lane.b32.xlu0 %v5632_v25, %s14048_s11  ;;  %7555 = vmatmul.msk.bf16.gmra.mxu0 %vm2533_vm7, %v5730_v13  ;;  %s7258_s11 = sshll.u32 %s14130_s1, 2 }
 0x89e   : > { %5663 = vrot.lane.b32.xlu2 %v5583_v45, %s14126_s2 }
 0x8a2   : > { %5696 = vrot.lane.b32.xlu1 %v5691_v31, %s14128_s7 }
 0x8a5   : > { %5680 = vrot.lane.b32.xlu0 %v5675_v49, %s14127_s5  ;;  %v9234_v49 = vld [vmem:[%s13942_s13] ss:$0 sm:$0xff] }
 0x8df   : > { %v9178_v47 = vpop.permute.xlu2 %9177 }
 0x8e0   : > { %v9180_v55 = vunpack.i.h.bf16 %v9178_v47  ;;  %v9179_v1 = vunpack.i.l.bf16 %v9178_v47 }
 0x8e8   : > { %v9188_v21 = vpop.permute.xlu2 %9187 }
 0x8e9   : > { %v9190_v22 = vunpack.i.h.bf16 %v9188_v21  ;;  %v9189_v25 = vunpack.i.l.bf16 %v9188_v21 }
 0x8f0   : > { %v5622_v62 = vpop.permute.xlu2 %5621 }
 0x8f4   : > { %v9163_v51 = vpop.permute.xlu1 %9162 }
 0x8f5   : > { %v9164_v3 = vunpack.i.l.bf16 %v9163_v51 }
 0x8f7   : > { %v9168_v59 = vpop.permute.xlu0 %9167 }
 0x8f8   : > { %v9170_v60 = vunpack.i.h.bf16 %v9168_v59  ;;  %v9169_v40 = vunpack.i.l.bf16 %v9168_v59  ;;  %v5664_v54 = vpop.permute.xlu2 %5663 }
 0x8fa   : > { %v5707_v24 = vsel %vm2533_vm7, %v13367_v58, %v9170_v60  ;;  %v5706_v39 = vsel %vm2533_vm7, %v13363_v8, %v9169_v40  ;;  %v9165_v58 = vunpack.i.h.bf16 %v9163_v51 }
 0x8fc   : > { %v9173_v28 = vpop.permute.xlu1 %9172 }
 0x8fd   : > { %v9175_v32 = vunpack.i.h.bf16 %v9173_v28  ;;  %v9174_v10 = vunpack.i.l.bf16 %v9173_v28 }
 0x8ff   : > { %v5709_v18 = vsel %vm2607_vm9, %v5706_v39, %v9174_v10  ;;  %v5710_v36 = vsel %vm2607_vm9, %v5707_v24, %v9175_v32  ;;  %v9183_v53 = vpop.permute.xlu0 %9182 }
 0x900   : > { %v9185_v57 = vunpack.i.h.bf16 %v9183_v53  ;;  %v9184_v45 = vunpack.i.l.bf16 %v9183_v53  ;;  %v5712_v23 = vsel %vm2681_vm11, %v5709_v18, %v9179_v1  ;;  %v5713_v9 = vsel %vm2681_vm11, %v5710_v36, %v9180_v55 }
 0x902   : > { %v5715_v20 = vsel %vm2755_vm13, %v5712_v23, %v9184_v45  ;;  %v5716_v56 = vsel %vm2755_vm13, %v5713_v9, %v9185_v57 }
 0x903   : > { %v5718_v8 = vsel %vm4679_vm10, %v5715_v20, %v9164_v3  ;;  %v5719_v0 = vsel %vm4679_vm10, %v5716_v56, %v9165_v58 }
 0x904   : > { %v5606_v44 = vpop.permute.xlu1 %5605  ;;  %v5721_v38 = vsel %vm5157_vm4, %v5718_v8, %v9189_v25  ;;  %v5722_v61 = vsel %vm5157_vm4, %v5719_v0, %v9190_v22 }
 0x905   : > { %v5708_v14 = vsel %vm2533_vm7, %v13370_v17, %v5606_v44  ;;  %vm6343_vm7 = vcmask 138240  }
 0x906   : > { %v5711_v34 = vsel %vm2607_vm9, %v5708_v14, %v5622_v62 }
 0x907   : > { %v9193_v48 = vpop.permute.xlu0 %9192 }
 0x908   : > { %v9195_v6 = vunpack.i.h.bf16 %v9193_v48  ;;  %v9194_v43 = vunpack.i.l.bf16 %v9193_v48 }
 0x90a   : > { %v5724_v4 = vsel %vm5168_vm12, %v5721_v38, %v9194_v43  ;;  %v5725_v42 = vsel %vm5168_vm12, %v5722_v61, %v9195_v6  ;;  %v5840_v12 = vpop.f32.mrf.mxu0  ;;  %v7961_v38 = vld [vmem:[%s13943_s14] sm:$0xff]  ;;  %v7962_v61 = vld [vmem:[%s13943_s14 + $0x8] sm:$0xff] }
 0x90b   : > { %v5727_v7 = vpack.c.bf16 %v5725_v42, %v5724_v4  ;;  %v7566_v4 = vld [vmem:[%s13943_s14 + $0x10] sm:$0xf]  ;;  %v7963_v42 = vld [vmem:[%s13943_s14 + $0x10] sm:$0x10] }
 0x90c   : > { %v5655_v5 = vpop.permute.xlu1 %5654 }
 0x90d   : > { %5821 = vmatmul.bf16.vlgmr.msrb.gmra.mxu3 %v5727_v7 }
 0x90f   : > { %v5638_v33 = vpop.permute.xlu0 %5637 }
 0x910   : > { %v5714_v2 = vsel %vm2681_vm11, %v5711_v34, %v5638_v33  ;;  %v7981_v33 = vld [vmem:[%s13944_s15 + $0x88] sm:$0xff] }
 0x911   : > { %v5717_v27 = vsel %vm2755_vm13, %v5714_v2, %v5655_v5  ;;  %v7971_v2 = vld [vmem:[%s13944_s15 + $0x38] sm:$0xff]  ;;  %6263 = vmatpush.bf16.msra.mxu1 %v7981_v33  ;;  %v7974_v33 = vld [vmem:[%s13944_s15 + $0x50] sm:$0xff] }
 0x912   : > { %v5842_v50 = vpop.f32.mrf.mxu0  ;;  %v5720_v26 = vsel %vm4679_vm10, %v5717_v27, %v5664_v54  ;;  %6221 = vmatpush.bf16.msra.mxu2 %v7971_v2  ;;  %v7972_v2 = vld [vmem:[%s13944_s15 + $0x40] sm:$0xff] }
 0x914   : > { %v5697_v13 = vpop.permute.xlu1 %5696 }
 0x917   : > { %v5681_v30 = vpop.permute.xlu0 %5680 }
 0x918   : > { %v5723_v37 = vsel %vm5157_vm4, %v5720_v26, %v5681_v30  ;;  %v7980_v26 = vld [vmem:[%s13944_s15 + $0x80] sm:$0xff] }
 0x919   : > { %v5726_v46 = vsel %vm5168_vm12, %v5723_v37, %v5697_v13  ;;  %6264 = vmatpush.bf16.msra.mxu1 %v7980_v26 }
 0x91a   : > { %v5729_v17 = vpack.c.bf16 %v5726_v46, %v5726_v46  ;;  %v5845_v11 = vpop.f32.mrf.mxu0 }
 0x91d   : > { %5826 = vmatmul.bf16.gmra.mxu3 %v5729_v17 }
 0x922   : > { %v5847_v31 = vpop.f32.mrf.mxu0 }
 0x990   : > { %v5822_v35 = vpop.f32.mrf.mxu3 }
 0x991   : > { %v5823_v63 = vadd.f32 %v9234_v49, %v5822_v35 }
 0x993   : > { %v5841_v19 = vadd.f32 %v5840_v12, %v5823_v63  ;;  %v7567_v12 = vor.u32 %v7963_v42, %v7566_v4  ;;  %v7966_v4 = vld [vmem:[%s13944_s15 + $0x10] sm:$0xff]  ;;  %v7976_v42 = vld [vmem:[%s13944_s15 + $0x60] sm:$0xff] }
 0x995   : > { %v5852_v16 = vmul.f32 %v5841_v19, %v5841_v19  ;;  %v5849_v22 = vmul.f32 0.5, %v5841_v19 }
 0x997   : > { %v5855_v47 = vmul.f32 %v5852_v16, %v5841_v19 }
 0x998   : > { %v5824_v29 = vpop.f32.mrf.mxu3 }
 0x999   : > { %v5825_v41 = vadd.f32 %v9234_v49, %v5824_v29  ;;  %v5858_v32 = vmul.f32 0.044715, %v5855_v47 }
 0x99b   : > { %v5843_v52 = vadd.f32 %v5842_v50, %v5825_v41  ;;  %v5861_v24 = vadd.f32 %v5858_v32, %v5841_v19 }
 0x99d   : > { %v5853_v51 = vmul.f32 %v5843_v52, %v5843_v52  ;;  %v5864_v57 = vmul.f32 0.7978846, %v5861_v24  ;;  %v5850_v44 = vmul.f32 0.5, %v5843_v52 }
 0x99f   : > { %v5856_v59 = vmul.f32 %v5853_v51, %v5843_v52 }
 0x9a0   : > { %v5827_v60 = vpop.f32.mrf.mxu3 }
 0x9a1   : > { %v5828_v40 = vadd.f32 %v9234_v49, %v5827_v60  ;;  %v5859_v15 = vmul.f32 0.044715, %v5856_v59 }
 0x9a3   : > { %v5846_v28 = vadd.f32 %v5845_v11, %v5828_v40  ;;  %v5862_v55 = vadd.f32 %v5859_v15, %v5843_v52 }
 0x9a5   : > { %v5854_v10 = vmul.f32 %v5846_v28, %v5846_v28  ;;  %v5865_v36 = vmul.f32 0.7978846, %v5862_v55  ;;  %v5851_v20 = vmul.f32 0.5, %v5846_v28 }
 0x9a7   : > { %v5857_v1 = vmul.f32 %v5854_v10, %v5846_v28  ;;  %9352 = vtanh.f32 %v5865_v36 }
 0x9a8   : > { %v5829_v39 = vpop.f32.mrf.mxu3 }
 0x9a9   : > { %v5860_v18 = vmul.f32 0.044715, %v5857_v1 }
 0x9ab   : > { %v5863_v53 = vadd.f32 %v5860_v18, %v5846_v28 }
 0x9ad   : > { %v5866_v45 = vmul.f32 0.7978846, %v5863_v53  ;;  %v9353_v23 = vpop.eup %9352 }
 0x9ae   : > { %v5871_v58 = vadd.f32 1.0, %v9353_v23 }
 0x9af   : > { %9354 = vtanh.f32 %v5866_v45 }
 0x9b0   : > { %9356 = vtanh.f32 %v5864_v57  ;;  %v5874_v25 = vmul.f32 %v5871_v58, %v5850_v44 }
 0x9b5   : > { %v9355_v9 = vpop.eup %9354 }
 0x9b6   : > { %v9357_v21 = vpop.eup %9356  ;;  %v5872_v56 = vadd.f32 1.0, %v9355_v9 }
 0x9b7   : > { %v5870_v8 = vadd.f32 1.0, %v9357_v21 }
 0x9b8   : > { %v5875_v3 = vmul.f32 %v5872_v56, %v5851_v20 }
 0x9b9   : > { %v5873_v6 = vmul.f32 %v5870_v8, %v5849_v22  ;;  %v7970_v22 = vld [vmem:[%s13944_s15 + $0x30] sm:$0xff] }
 0x9ba   : > { %v5883_v0 = vpack.c.bf16 %v5875_v3, %v5875_v3  ;;  %6222 = vmatpush.bf16.msra.mxu2 %v7970_v22 }
 0x9bb   : > { %v5882_v43 = vpack.c.bf16 %v5874_v25, %v5873_v6  ;;  %v7979_v25 = vld [vmem:[%s13944_s15 + $0x78] sm:$0xff]  ;;  %v7968_v6 = vld [vmem:[%s13944_s15 + $0x20] sm:$0xff] }
 0x9bc   : > { %v5909_v48 = vsel %vm1021_vm0, %v5883_v0, 0  ;;  %6239 = vmatpush.bf16.msra.mxu0 %v7979_v25 }
 0x9bd   : > { %5917 = vmatpush.bf16.msra.mxu3 %v5909_v48  ;;  %v7969_v48 = vld [vmem:[%s13944_s15 + $0x28] sm:$0xff] }
 0x9be   : > { %6223 = vmatpush.bf16.msra.mxu2 %v7969_v48 }
 0x9c1   : > { %5918 = vmatpush.bf16.msra.mxu3 %v5882_v43  ;;  %v7978_v43 = vld [vmem:[%s13944_s15 + $0x70] sm:$0xff] }
 0x9c2   : > { %6224 = vmatpush.bf16.msra.mxu2 %v7968_v6  ;;  %6240 = vmatpush.bf16.msra.mxu0 %v7978_v43 }
 0x9c4   : > { %7568 = vmatmul.msk.bf16.vlgmr.msra.gmra.mxu3 %vm2570_vm8, %v7961_v38  ;;  %v7967_v38 = vld [vmem:[%s13944_s15 + $0x18] sm:$0xff] }
 0x9c6   : > { %6225 = vmatpush.bf16.msra.mxu2 %v7967_v38 }
 0x9ca   : > { %6226 = vmatpush.bf16.msra.mxu2 %v7966_v4 }
 0x9d4   : > { %7569 = vmatmul.msk.bf16.gmra.mxu3 %vm2570_vm8, %v7962_v61  ;;  %v7977_v61 = vld [vmem:[%s13944_s15 + $0x68] sm:$0xff] }
 0x9d5   : > { %6241 = vmatpush.bf16.msra.mxu0 %v7977_v61 }
 0x9d9   : > { %6242 = vmatpush.bf16.msra.mxu0 %v7976_v42 }
 0x9e4   : > { %7570 = vmatmul.msk.bf16.gmra.mxu3 %vm2570_vm8, %v7567_v12  ;;  %v7965_v12 = vld [vmem:[%s13944_s15 + $0x8] sm:$0xff] }
 0x9e5   : > { %6227 = vmatpush.bf16.msra.mxu2 %v7965_v12 }
 0xa47   : > { %v13491_v7 = vpop.f32.mrf.mxu3 }
 0xa48   : > { %v5938_v50 = vrot.slane %v13491_v7, 1  ;;  %v5954_v27 = vrot.slane %v13491_v7, 2  ;;  %v5970_v30 = vrot.slane %v13491_v7, 6 }
 0xa4f   : > { %v13493_v62 = vpop.f32.mrf.mxu3 }
 0xa50   : > { %v5955_v14 = vrot.slane %v13493_v62, 2  ;;  %v5939_v5 = vrot.slane %v13493_v62, 1  ;;  %v5971_v34 = vrot.slane %v13493_v62, 6  ;;  %v6006_v59 = vrot.slane %v13493_v62, 4 }
 0xa51   : > { %v6022_v60 = vrot.slane %v13493_v62, 5 }
 0xa52   : > { %v5956_v17 = vsel %vm1360_vm3, %v5954_v27, %v5955_v14  ;;  %v5940_v11 = vsel %vm1178_vm2, %v5938_v50, %v5939_v5  ;;  %v5972_v35 = vsel %vm2315_vm5, %v5970_v30, %v5971_v34 }
 0xa57   : > { %v13506_v54 = vpop.f32.mrf.mxu3 }
 0xa58   : > { %v5957_v37 = vrot.slane %v13506_v54, 2  ;;  %v5941_v13 = vrot.slane %v13506_v54, 1  ;;  %v5973_v46 = vrot.slane %v13506_v54, 6  ;;  %v6007_v52 = vrot.slane %v13506_v54, 4 }
 0xa59   : > { %v6023_v16 = vrot.slane %v13506_v54, 5  ;;  %v9201_v1 = vpack.i.bf16 %v13506_v54, %v13493_v62 }
 0xa5a   : > { %v5958_v31 = vsel %vm1360_vm3, %v5955_v14, %v5957_v37  ;;  %v5942_v49 = vsel %vm1178_vm2, %v5939_v5, %v5941_v13  ;;  %v5974_v63 = vsel %vm2315_vm5, %v5971_v34, %v5973_v46  ;;  %v6008_v28 = vsel %vm1021_vm0, %v6006_v59, %v6007_v52  ;;  %v7975_v14 = vld [vmem:[%s13944_s15 + $0x58] sm:$0xff]  ;;  %v7964_v5 = vld [vmem:[%s13944_s15] sm:$0xff]  ;;  %v7973_v34 = vld [vmem:[%s13944_s15 + $0x48] sm:$0xff] }
 0xa5b   : > { %v9206_v19 = vpack.i.bf16 %v5958_v31, %v5956_v17  ;;  %v9196_v29 = vpack.i.bf16 %v5942_v49, %v5940_v11  ;;  %v9211_v41 = vpack.i.bf16 %v5974_v63, %v5972_v35  ;;  %v6024_v10 = vsel %vm2133_vm6, %v6022_v60, %v6023_v16  ;;  %6243 = vmatpush.bf16.msra.mxu0 %v7975_v14 }
 0xa5c   : > { %6228 = vmatpush.bf16.msra.mxu2 %v7964_v5 }
 0xa5d   : > { %9207 = vrot.lane.b32.xlu0 %v9206_v19, %s14047_s10  ;;  %9197 = vrot.lane.b32.xlu2 %v9196_v29, %s14046_s12 }
 0xa5e   : > { %9212 = vrot.lane.b32.xlu1 %v9211_v41, %s14127_s5 }
 0xa5f   : > { %v13526_v51 = vpop.f32.mrf.mxu3  ;;  %6244 = vmatpush.bf16.msra.mxu0 %v7974_v33 }
 0xa60   : > { %v6009_v47 = vrot.slane %v13526_v51, 4  ;;  %v6025_v40 = vrot.slane %v13526_v51, 5  ;;  %v5975_v15 = vrot.slane %v13526_v51, 6  ;;  %v5959_v57 = vrot.slane %v13526_v51, 2 }
 0xa61   : > { %v5943_v45 = vrot.slane %v13526_v51, 1 }
 0xa62   : > { %v6010_v32 = vsel %vm1021_vm0, %v6007_v52, %v6009_v47  ;;  %v6026_v55 = vsel %vm2133_vm6, %v6023_v16, %v6025_v40  ;;  %v5976_v18 = vsel %vm2315_vm5, %v5973_v46, %v5975_v15  ;;  %v5960_v23 = vsel %vm1360_vm3, %v5957_v37, %v5959_v57 }
 0xa63   : > { %v9216_v24 = vpack.i.bf16 %v6010_v32, %v6008_v28  ;;  %v9221_v39 = vpack.i.bf16 %v6026_v55, %v6024_v10  ;;  %v6063_v36 = vpack.c.bf16 %v5976_v18, %v5974_v63  ;;  %v5944_v9 = vsel %vm1178_vm2, %v5941_v13, %v5943_v45  ;;  %6245 = vmatpush.bf16.msra.mxu0 %v7973_v34 }
 0xa64   : > { %v5987_v52 = vrot.slane %v13493_v62, 7  ;;  %v5989_v16 = vrot.slane %v13506_v54, 7 }
 0xa65   : > { %9202 = vrot.lane.b32.xlu2 %v9201_v1, %s14046_s12  ;;  %9217 = vrot.lane.b32.xlu0 %v9216_v24, %s14047_s10 }
 0xa66   : > { %9222 = vrot.lane.b32.xlu1 %v9221_v39, %s14127_s5  ;;  %7643 = vmatmul.msk.bf16.vlgmr.msra.gmra.mxu1 %vm2607_vm9, %v6063_v36  ;;  %v5990_v32 = vsel %vm5642_vm15, %v5987_v52, %v5989_v16 }
 0xa67   : > { %v5930_v53 = vpop.f32.mrf.mxu3  ;;  %6246 = vmatpush.bf16.msra.mxu0 %v7972_v2 }
 0xa68   : > { %v6038_v21 = vrot.slane %v5930_v53, 6  ;;  %v6011_v56 = vrot.slane %v5930_v53, 4  ;;  %v6027_v58 = vrot.slane %v5930_v53, 5 }
 0xa6a   : > { %v6039_v3 = vsel %vm2315_vm5, %v5975_v15, %v6038_v21  ;;  %v6012_v44 = vsel %vm1021_vm0, %v6009_v47, %v6011_v56  ;;  %v6028_v0 = vsel %vm2133_vm6, %v6025_v40, %v6027_v58  ;;  %v5986_v40 = vrot.slane %v13491_v7, 7 }
 0xa6b   : > { %v6066_v8 = vpack.c.bf16 %v6039_v3, %v6039_v3  ;;  %v5991_v3 = vrot.slane %v13526_v51, 7 }
 0xa6c   : > { %v5988_v28 = vsel %vm5642_vm15, %v5986_v40, %v5987_v52 }
 0xa6d   : > { %5965 = vrot.lane.b32.xlu0 %v5960_v23, %s14047_s10  ;;  %5949 = vrot.lane.b32.xlu2 %v5944_v9, %s14046_s12  ;;  %v5992_v22 = vsel %vm5642_vm15, %v5989_v16, %v5991_v3 }
 0xa6e   : > { %5981 = vrot.lane.b32.xlu1 %v5976_v18, %s14127_s5 }
 0xa6f   : > { %v5932_v20 = vpop.f32.mrf.mxu3 }
 0xa75   : > { %6000 = vrot.lane.b32.xlu2 %v13526_v51, %s14046_s12  ;;  %6017 = vrot.lane.b32.xlu0 %v6012_v44, %s14047_s10  ;;  %v9235_v51 = vld [vmem:[%s13945_s16] ss:$0 sm:$0xff] }
 0xa76   : > { %6033 = vrot.lane.b32.xlu1 %v6028_v0, %s14127_s5  ;;  %7644 = vmatmul.msk.bf16.gmra.mxu1 %vm2607_vm9, %v6066_v8 }
 0xab7   : > { %v9198_v50 = vpop.permute.xlu2 %9197 }
 0xab8   : > { %v9200_v27 = vunpack.i.h.bf16 %v9198_v50  ;;  %v9199_v26 = vunpack.i.l.bf16 %v9198_v50 }
 0xaba   : > { %v6044_v11 = vsel %vm2607_vm9, %v13493_v62, %v9200_v27  ;;  %v6043_v31 = vsel %vm2607_vm9, %v13491_v7, %v9199_v26 }
 0xabf   : > { %v9203_v37 = vpop.permute.xlu2 %9202 }
 0xac0   : > { %v9205_v47 = vunpack.i.h.bf16 %v9203_v37  ;;  %v9204_v60 = vunpack.i.l.bf16 %v9203_v37 }
 0xac2   : > { %v6053_v24 = vsel %vm2607_vm9, %v5990_v32, %v9205_v47  ;;  %v6052_v62 = vsel %vm2607_vm9, %v5988_v28, %v9204_v60 }
 0xac7   : > { %v5950_v36 = vpop.permute.xlu2 %5949 }
 0xac8   : > { %v6045_v9 = vsel %vm2607_vm9, %v13506_v54, %v5950_v36 }
 0xacf   : > { %v9208_v30 = vpop.permute.xlu0 %9207  ;;  %v6001_v8 = vpop.permute.xlu2 %6000 }
 0xad0   : > { %v9210_v13 = vunpack.i.h.bf16 %v9208_v30  ;;  %v9209_v46 = vunpack.i.l.bf16 %v9208_v30  ;;  %v9213_v17 = vpop.permute.xlu1 %9212  ;;  %v6054_v25 = vsel %vm2607_vm9, %v5992_v22, %v6001_v8 }
 0xad1   : > { %v9215_v49 = vunpack.i.h.bf16 %v9213_v17  ;;  %v9214_v35 = vunpack.i.l.bf16 %v9213_v17 }
 0xad2   : > { %v6046_v63 = vsel %vm2755_vm13, %v6043_v31, %v9209_v46  ;;  %v6047_v19 = vsel %vm2755_vm13, %v6044_v11, %v9210_v13 }
 0xad3   : > { %v6049_v29 = vsel %vm5157_vm4, %v6046_v63, %v9214_v35  ;;  %v6050_v41 = vsel %vm5157_vm4, %v6047_v19, %v9215_v49 }
 0xad4   : > { %v6061_v59 = vpack.c.bf16 %v6050_v41, %v6049_v29 }
 0xad6   : > { %6229 = vmatmul.bf16.vlgmr.msra.gmra.mxu2 %v6061_v59 }
 0xad7   : > { %v9218_v15 = vpop.permute.xlu0 %9217 }
 0xad8   : > { %v9220_v10 = vunpack.i.h.bf16 %v9218_v15  ;;  %v9219_v55 = vunpack.i.l.bf16 %v9218_v15  ;;  %v9223_v1 = vpop.permute.xlu1 %9222 }
 0xad9   : > { %v9225_v39 = vunpack.i.h.bf16 %v9223_v1  ;;  %v9224_v18 = vunpack.i.l.bf16 %v9223_v1 }
 0xada   : > { %v6056_v53 = vsel %vm2755_vm13, %v6053_v24, %v9220_v10  ;;  %v6055_v7 = vsel %vm2755_vm13, %v6052_v62, %v9219_v55 }
 0xadb   : > { %v6058_v57 = vsel %vm5157_vm4, %v6055_v7, %v9224_v18  ;;  %v6059_v45 = vsel %vm5157_vm4, %v6056_v53, %v9225_v39 }
 0xadc   : > { %v6062_v23 = vpack.c.bf16 %v6059_v45, %v6058_v57 }
 0xade   : > { %6247 = vmatmul.bf16.vlgmr.msra.gmra.mxu0 %v6062_v23 }
 0xadf   : > { %v5966_v21 = vpop.permute.xlu0 %5965 }
 0xae0   : > { %v6048_v20 = vsel %vm2755_vm13, %v6045_v9, %v5966_v21  ;;  %v5982_v56 = vpop.permute.xlu1 %5981 }
 0xae1   : > { %v6051_v58 = vsel %vm5157_vm4, %v6048_v20, %v5982_v56 }
 0xae2   : > { %v6064_v0 = vpack.c.bf16 %v6051_v58, %v6051_v58 }
 0xae3   : > { %v6266_v44 = vpop.f32.mrf.mxu1 }
 0xae6   : > { %6234 = vmatmul.bf16.gmra.mxu2 %v6064_v0 }
 0xae7   : > { %v6018_v48 = vpop.permute.xlu0 %6017 }
 0xae8   : > { %v6057_v6 = vsel %vm2755_vm13, %v6054_v25, %v6018_v48  ;;  %v6034_v54 = vpop.permute.xlu1 %6033 }
 0xae9   : > { %v6060_v43 = vsel %vm5157_vm4, %v6057_v6, %v6034_v54  ;;  %v9392_v6 = vmov 0  }
 0xaea   : > { %v6065_v61 = vpack.c.bf16 %v6060_v43, %v6060_v43  ;;  %v6351_v54 = vsel %vm5642_vm15, 65535, %v9392_v6 }
 0xaeb   : > { %v6268_v38 = vpop.f32.mrf.mxu1 }
 0xaee   : > { %6252 = vmatmul.bf16.gmra.mxu0 %v6065_v61 }
 0xaf3   : > { %v6271_v4 = vpop.f32.mrf.mxu1 }
 0xafb   : > { %v6273_v42 = vpop.f32.mrf.mxu1 }
 0xb59   : > { %v6230_v12 = vpop.f32.mrf.mxu2 }
 0xb5a   : > { %v6231_v14 = vadd.f32 %v9235_v51, %v6230_v12 }
 0xb5b   : > { %v6248_v5 = vpop.f32.mrf.mxu0 }
 0xb5c   : > { %v6249_v33 = vadd.f32 %v6248_v5, %v6231_v14  ;;  %v7982_v14 = vld [vmem:[%s13946_s17] sm:$0xff]  ;;  %v6332_v5 = vld [vmem:[%s13946_s17 + $0x8] sm:$0x3] }
 0xb5e   : > { %v6267_v34 = vadd.f32 %v6266_v44, %v6249_v33  ;;  %v6340_v33 = vunpack.c.l.b16 %v6332_v5 }
 0xb60   : > { %v6278_v2 = vmul.f32 %v6267_v34, %v6267_v34  ;;  %v6275_v18 = vmul.f32 0.5, %v6267_v34 }
 0xb61   : > { %v6232_v50 = vpop.f32.mrf.mxu2 }
 0xb62   : > { %v6281_v27 = vmul.f32 %v6278_v2, %v6267_v34  ;;  %v6233_v26 = vadd.f32 %v9235_v51, %v6232_v50  ;;  %v8000_v2 = vld [vmem:[%s13947_s18 + $0x88] sm:$0xff]  ;;  %v7999_v50 = vld [vmem:[%s13947_s18 + $0x80] sm:$0xff] }
 0xb63   : > { %v6250_v30 = vpop.f32.mrf.mxu0  ;;  %6607 = vmatpush.bf16.msrb.mxu1 %v8000_v2 }
 0xb64   : > { %v6284_v37 = vmul.f32 0.044715, %v6281_v27  ;;  %v6251_v13 = vadd.f32 %v6250_v30, %v6233_v26  ;;  %v7990_v27 = vld [vmem:[%s13947_s18 + $0x38] sm:$0xff] }
 0xb65   : > { %6575 = vmatpush.bf16.msrb.mxu3 %v7990_v27 }
 0xb66   : > { %v6269_v46 = vadd.f32 %v6268_v38, %v6251_v13  ;;  %v6287_v17 = vadd.f32 %v6284_v37, %v6267_v34  ;;  %v6342_v34 = vpack.c.b16 %v6340_v33, %v6340_v33 }
 0xb67   : > { %6608 = vmatpush.bf16.msrb.mxu1 %v7999_v50 }
 0xb68   : > { %v6279_v11 = vmul.f32 %v6269_v46, %v6269_v46  ;;  %v6290_v19 = vmul.f32 0.7978846, %v6287_v17  ;;  %v6276_v24 = vmul.f32 0.5, %v6269_v46 }
 0xb69   : > { %v6235_v31 = vpop.f32.mrf.mxu2 }
 0xb6a   : > { %v6282_v49 = vmul.f32 %v6279_v11, %v6269_v46  ;;  %v6236_v35 = vadd.f32 %v9235_v51, %v6235_v31  ;;  %9358 = vtanh.f32 %v6290_v19 }
 0xb6b   : > { %v6253_v63 = vpop.f32.mrf.mxu0 }
 0xb6c   : > { %v6285_v29 = vmul.f32 0.044715, %v6282_v49  ;;  %v6254_v41 = vadd.f32 %v6253_v63, %v6236_v35 }
 0xb6e   : > { %v6288_v52 = vadd.f32 %v6285_v29, %v6269_v46  ;;  %v6272_v16 = vadd.f32 %v6271_v4, %v6254_v41 }
 0xb70   : > { %v6291_v59 = vmul.f32 0.7978846, %v6288_v52  ;;  %v6280_v47 = vmul.f32 %v6272_v16, %v6272_v16  ;;  %v9359_v32 = vpop.eup %9358  ;;  %v6277_v45 = vmul.f32 0.5, %v6272_v16 }
 0xb71   : > { %v6237_v60 = vpop.f32.mrf.mxu2  ;;  %v6296_v62 = vadd.f32 1.0, %v9359_v32  ;;  %v7998_v32 = vld [vmem:[%s13947_s18 + $0x78] sm:$0xff] }
 0xb72   : > { %9360 = vtanh.f32 %v6291_v59  ;;  %v6283_v40 = vmul.f32 %v6280_v47, %v6272_v16  ;;  %6588 = vmatpush.bf16.msrb.mxu0 %v7998_v32 }
 0xb73   : > { %v6255_v15 = vpop.f32.mrf.mxu0  ;;  %v6299_v53 = vmul.f32 %v6296_v62, %v6275_v18  ;;  %v7996_v62 = vld [vmem:[%s13947_s18 + $0x68] sm:$0xff]  ;;  %v7995_v18 = vld [vmem:[%s13947_s18 + $0x60] sm:$0xff] }
 0xb74   : > { %v6286_v28 = vmul.f32 0.044715, %v6283_v40 }
 0xb75   : > { %v6305_v9 = vrot.slane %v6299_v53, 6 }
 0xb76   : > { %v6289_v10 = vadd.f32 %v6286_v28, %v6272_v16  ;;  %v7989_v28 = vld [vmem:[%s13947_s18 + $0x30] sm:$0xff] }
 0xb77   : > { %6576 = vmatpush.bf16.msrb.mxu3 %v7989_v28 }
 0xb78   : > { %v9361_v55 = vpop.eup %9360  ;;  %v6292_v1 = vmul.f32 0.7978846, %v6289_v10  ;;  %v7988_v10 = vld [vmem:[%s13947_s18 + $0x28] sm:$0xff] }
 0xb79   : > { %v6297_v39 = vadd.f32 1.0, %v9361_v55  ;;  %v7987_v55 = vld [vmem:[%s13947_s18 + $0x20] sm:$0xff] }
 0xb7a   : > { %9362 = vtanh.f32 %v6292_v1  ;;  %v7997_v1 = vld [vmem:[%s13947_s18 + $0x70] sm:$0xff] }
 0xb7b   : > { %v6300_v36 = vmul.f32 %v6297_v39, %v6276_v24  ;;  %6577 = vmatpush.bf16.msrb.mxu3 %v7988_v10  ;;  %6589 = vmatpush.bf16.msrb.mxu0 %v7997_v1  ;;  %v7986_v24 = vld [vmem:[%s13947_s18 + $0x18] sm:$0xff]  ;;  %v7985_v39 = vld [vmem:[%s13947_s18 + $0x10] sm:$0xff] }
 0xb7d   : > { %v6306_v7 = vrot.slane %v6300_v36, 6 }
 0xb7f   : > { %v6307_v20 = vsel %vm2315_vm5, %v6305_v9, %v6306_v7  ;;  %6578 = vmatpush.bf16.msrb.mxu3 %v7987_v55  ;;  %6590 = vmatpush.bf16.msrb.mxu0 %v7996_v62 }
 0xb80   : > { %v9363_v57 = vpop.eup %9362  ;;  %v6313_v58 = vmax.f32 %v6299_v53, %v6307_v20  ;;  %v7994_v53 = vld [vmem:[%s13947_s18 + $0x58] sm:$0xff] }
 0xb81   : > { %v6298_v23 = vadd.f32 1.0, %v9363_v57  ;;  %v7993_v57 = vld [vmem:[%s13947_s18 + $0x50] sm:$0xff] }
 0xb82   : > { %v6319_v22 = vrot.slane %v6313_v58, 1 }
 0xb83   : > { %v6301_v21 = vmul.f32 %v6298_v23, %v6277_v45  ;;  %6579 = vmatpush.bf16.msrb.mxu3 %v7986_v24  ;;  %6591 = vmatpush.bf16.msrb.mxu0 %v7995_v18  ;;  %v7992_v45 = vld [vmem:[%s13947_s18 + $0x48] sm:$0xff]  ;;  %v7991_v23 = vld [vmem:[%s13947_s18 + $0x40] sm:$0xff]  ;;  %v8004_v24 = vld [vmem:[%s13950_s21 + $0x10] sm:$0xff] }
 0xb84   : > { %v8003_v18 = vld [vmem:[%s13950_s21 + $0x8] sm:$0xff] }
 0xb85   : > { %v6308_v56 = vrot.slane %v6301_v21, 6 }
 0xb87   : > { %v6315_v3 = vmax.f32 %v6301_v21, %v6308_v56  ;;  %v6309_v44 = vsel %vm2315_vm5, %v6306_v7, %v6308_v56  ;;  %6580 = vmatpush.bf16.msrb.mxu3 %v7985_v39  ;;  %6592 = vmatpush.bf16.msrb.mxu0 %v7994_v53  ;;  %v7983_v7 = vld [vmem:[%s13947_s18] sm:$0xff] }
 0xb88   : > { %v6314_v8 = vmax.f32 %v6300_v36, %v6309_v44  ;;  %v7984_v36 = vld [vmem:[%s13947_s18 + $0x8] sm:$0xff] }
 0xb89   : > { %v6322_v0 = vrot.slane %v6315_v3, 1 }
 0xb8a   : > { %v6320_v25 = vrot.slane %v6314_v8, 1 }
 0xb8b   : > { %v6329_v48 = vmax.f32 %v6315_v3, %v6322_v0  ;;  %6581 = vmatpush.bf16.msrb.mxu3 %v7984_v36  ;;  %6593 = vmatpush.bf16.msrb.mxu0 %v7993_v57 }
 0xb8c   : > { %v6321_v43 = vsel %vm1178_vm2, %v6319_v22, %v6320_v25  ;;  %v6323_v38 = vsel %vm1178_vm2, %v6320_v25, %v6322_v0 }
 0xb8d   : > { %v6334_v61 = vpack.c.bf16 %v6329_v48, %v6329_v48  ;;  %v6327_v42 = vmax.f32 %v6313_v58, %v6321_v43  ;;  %v6328_v51 = vmax.f32 %v6314_v8, %v6323_v38 }
 0xb8f   : > { %v6353_v4 = vand.u32 %v6351_v54, %v6334_v61  ;;  %v6333_v12 = vpack.c.bf16 %v6328_v51, %v6327_v42  ;;  %6582 = vmatpush.bf16.msrb.mxu3 %v7983_v7  ;;  %6594 = vmatpush.bf16.msrb.mxu0 %v7992_v45  ;;  %v9236_v51 = vld [vmem:[%s13948_s19] ss:$0 sm:$0xff] }
 0xb91   : > { %6361 = vmatpush.bf16.msrb.mxu2 %v6353_v4 }
 0xb93   : > { %6595 = vmatpush.bf16.msrb.mxu0 %v7991_v23 }
 0xb95   : > { %6362 = vmatpush.bf16.msrb.mxu2 %v6333_v12 }
 0xb98   : > { %7649 = vmatmul.msk.bf16.vlgmr.msrb.gmra.mxu2 %vm6343_vm7, %v7982_v14 }
 0xba8   : > { %7650 = vmatmul.msk.bf16.gmra.mxu2 %vm6343_vm7, %v6342_v34 }
 0xc1b   : > { %v13655_v26 = vpop.f32.mrf.mxu2 }
 0xc1c   : > { %v6381_v37 = vrot.slane %v13655_v26, 2  ;;  %v6375_v13 = vrot.slane %v13655_v26, 1  ;;  %v6387_v11 = vrot.slane %v13655_v26, 4  ;;  %v6397_v16 = vrot.slane %v13655_v26, 6 }
 0xc1d   : > { %v6393_v0 = vrot.slane %v13655_v26, 5 }
 0xc23   : > { %v13657_v30 = vpop.f32.mrf.mxu2 }
 0xc24   : > { %v6382_v46 = vrot.slane %v13657_v30, 2  ;;  %v6376_v17 = vrot.slane %v13657_v30, 1  ;;  %v6388_v31 = vrot.slane %v13657_v30, 4  ;;  %v6398_v19 = vrot.slane %v13657_v30, 6 }
 0xc25   : > { %v6394_v44 = vrot.slane %v13657_v30, 5 }
 0xc26   : > { %v6383_v49 = vsel %vm1360_vm3, %v6381_v37, %v6382_v46  ;;  %v6377_v35 = vsel %vm1178_vm2, %v6375_v13, %v6376_v17  ;;  %v6389_v63 = vsel %vm1021_vm0, %v6387_v11, %v6388_v31  ;;  %v6399_v47 = vsel %vm2315_vm5, %v6397_v16, %v6398_v19  ;;  %v6625_v19 = vld [vmem:[%s13949_s20 + $0x8] sm:$0x3]  ;;  %v8008_v16 = vld [vmem:[%s13950_s21 + $0x30] sm:$0xff] }
 0xc27   : > { %6384 = vrot.lane.b32.xlu0 %v6383_v49, %s14047_s10  ;;  %6378 = vrot.lane.b32.xlu2 %v6377_v35, %s14046_s12  ;;  %v6395_v25 = vsel %vm2133_vm6, %v6393_v0, %v6394_v44  ;;  %v8017_v44 = vld [vmem:[%s13950_s21 + $0x78] sm:$0xff]  ;;  %v8036_v0 = vld [vmem:[%s13950_s21 + $0x110] sm:$0xff] }
 0xc28   : > { %6390 = vrot.lane.b32.xlu1 %v6389_v63, %s14127_s5  ;;  %v8001_v63 = vld [vmem:[%s13949_s20] sm:$0xff]  ;;  %7016 = vmatpush.bf16.msra.mxu0 %v8017_v44  ;;  %v8039_v44 = vld [vmem:[%s13953_s24 + $0x8] sm:$0xff] }
 0xc2b   : > { %v6369_v29 = vpop.f32.mrf.mxu2 }
 0xc2c   : > { %v6407_v41 = vrot.slane %v6369_v29, 1  ;;  %v6412_v52 = vrot.slane %v6369_v29, 2  ;;  %v6632_v29 = vunpack.c.l.b16 %v6625_v19 }
 0xc2e   : > { %v6413_v59 = vsel %vm1360_vm3, %v6382_v46, %v6412_v52  ;;  %v6408_v60 = vsel %vm1178_vm2, %v6376_v17, %v6407_v41  ;;  %v6634_v41 = vpack.c.b16 %v6632_v29, %v6632_v29  ;;  %v8009_v52 = vld [vmem:[%s13950_s21 + $0x38] sm:$0xff] }
 0xc2f   : > { %v6423_v40 = vpack.c.bf16 %v6413_v59, %v6413_v59  ;;  %6403 = vrot.lane.b32.xlu0 %v13657_v30, %s14047_s10  ;;  %6400 = vrot.lane.b32.xlu2 %v6399_v47, %s14046_s12  ;;  %v8025_v59 = vld [vmem:[%s13950_s21 + $0xb8] sm:$0xff]  ;;  %v8007_v47 = vld [vmem:[%s13950_s21 + $0x28] sm:$0xff]  ;;  %s845_s12 = scalar_lea.vmem %s14131_s0, %s7258_s11 }
 0xc30   : > { %6409 = vrot.lane.b32.xlu1 %v6408_v60, %s14127_s5  ;;  %7003 = vmatpush.bf16.msra.mxu2 %v8009_v52 }
 0xc31   : > { %7723 = vmatmul.msk.bf16.vlgmr.msrb.gmra.mxu1 %vm2607_vm9, %v6423_v40  ;;  %v8006_v40 = vld [vmem:[%s13950_s21 + $0x20] sm:$0xff] }
 0xc32   : > { %7029 = vmatpush.bf16.msra.mxu1 %v8025_v59 }
 0xc33   : > { %v6371_v15 = vpop.f32.mrf.mxu2 }
 0xc34   : > { %7004 = vmatpush.bf16.msra.mxu2 %v8008_v16  ;;  %v8005_v15 = vld [vmem:[%s13950_s21 + $0x18] sm:$0xff] }
 0xc38   : > { %7005 = vmatpush.bf16.msra.mxu2 %v8007_v47 }
 0xc3c   : > { %7006 = vmatpush.bf16.msra.mxu2 %v8006_v40 }
 0xc40   : > { %7007 = vmatpush.bf16.msra.mxu2 %v8005_v15 }
 0xc44   : > { %7008 = vmatpush.bf16.msra.mxu2 %v8004_v24 }
 0xc48   : > { %7009 = vmatpush.bf16.msra.mxu2 %v8003_v18 }
 0xc81   : > { %v6379_v9 = vpop.permute.xlu2 %6378 }
 0xc82   : > { %v6415_v21 = vsel %vm2607_vm9, %v13655_v26, %v6379_v9 }
 0xc89   : > { %v6401_v22 = vpop.permute.xlu2 %6400 }
 0xc8a   : > { %v6418_v48 = vsel %vm2607_vm9, %v6395_v25, %v6401_v22  ;;  %v8016_v22 = vld [vmem:[%s13950_s21 + $0x70] sm:$0xff] }
 0xc8b   : > { %v8032_v25 = vld [vmem:[%s13950_s21 + $0xf0] sm:$0xff]  ;;  %7017 = vmatpush.bf16.msra.mxu0 %v8016_v22 }
 0xc99   : > { %v6385_v20 = vpop.permute.xlu0 %6384 }
 0xc9a   : > { %v6416_v56 = vsel %vm2755_vm13, %v6415_v21, %v6385_v20  ;;  %v6391_v58 = vpop.permute.xlu1 %6390  ;;  %v8002_v20 = vld [vmem:[%s13950_s21] sm:$0xff] }
 0xc9b   : > { %v6417_v3 = vsel %vm5157_vm4, %v6416_v56, %v6391_v58  ;;  %v8024_v56 = vld [vmem:[%s13950_s21 + $0xb0] sm:$0xff]  ;;  %7010 = vmatpush.bf16.msra.mxu2 %v8002_v20  ;;  %v8023_v58 = vld [vmem:[%s13950_s21 + $0xa8] sm:$0xff] }
 0xc9c   : > { %v6421_v8 = vpack.c.bf16 %v6417_v3, %v6417_v3  ;;  %7030 = vmatpush.bf16.msra.mxu1 %v8024_v56  ;;  %v8037_v3 = vld [vmem:[%s13950_s21 + $0x118] sm:$0xff]  ;;  %v8040_v56 = vld [vmem:[%s13953_s24 + $0x10] sm:$0xff] }
 0xc9e   : > { %6583 = vmatmul.bf16.vlgmr.msrb.gmra.mxu3 %v6421_v8  ;;  %v8033_v8 = vld [vmem:[%s13950_s21 + $0xf8] sm:$0xff] }
 0xc9f   : > { %7059 = vmatpush.bf16.msrb.mxu2 %v8037_v3 }
 0xca0   : > { %7031 = vmatpush.bf16.msra.mxu1 %v8023_v58 }
 0xca1   : > { %v6404_v6 = vpop.permute.xlu0 %6403 }
 0xca2   : > { %v6419_v54 = vsel %vm2755_vm13, %v6418_v48, %v6404_v6  ;;  %v6410_v43 = vpop.permute.xlu1 %6409  ;;  %v8022_v48 = vld [vmem:[%s13950_s21 + $0xa0] sm:$0xff]  ;;  %v8035_v6 = vld [vmem:[%s13950_s21 + $0x108] sm:$0xff] }
 0xca3   : > { %v6420_v38 = vsel %vm5157_vm4, %v6419_v54, %v6410_v43  ;;  %7060 = vmatpush.bf16.msrb.mxu2 %v8036_v0  ;;  %v8015_v54 = vld [vmem:[%s13950_s21 + $0x68] sm:$0xff] }
 0xca4   : > { %v6422_v61 = vpack.c.bf16 %v6420_v38, %v6420_v38  ;;  %v8031_v43 = vld [vmem:[%s13950_s21 + $0xe8] sm:$0xff]  ;;  %7032 = vmatpush.bf16.msra.mxu1 %v8022_v48  ;;  %v8021_v38 = vld [vmem:[%s13950_s21 + $0x98] sm:$0xff]  ;;  %7018 = vmatpush.bf16.msra.mxu0 %v8015_v54 }
 0xca6   : > { %6596 = vmatmul.bf16.vlgmr.msrb.gmra.mxu0 %v6422_v61  ;;  %v8034_v61 = vld [vmem:[%s13950_s21 + $0x100] sm:$0xff] }
 0xca7   : > { %7061 = vmatpush.bf16.msrb.mxu2 %v8035_v6 }
 0xca8   : > { %7033 = vmatpush.bf16.msra.mxu1 %v8021_v38 }
 0xcab   : > { %7062 = vmatpush.bf16.msrb.mxu2 %v8034_v61 }
 0xcae   : > { %v6610_v4 = vpop.f32.mrf.mxu1 }
 0xcb6   : > { %v6612_v42 = vpop.f32.mrf.mxu1 }
 0xcb7   : > { %v8014_v42 = vld [vmem:[%s13950_s21 + $0x60] sm:$0xff] }
 0xcb8   : > { %7019 = vmatpush.bf16.msra.mxu0 %v8014_v42  ;;  %v7077_v42 = vld [vmem:[%s13952_s23] sm:$0x3] }
 0xd21   : > { %v6584_v12 = vpop.f32.mrf.mxu3 }
 0xd22   : > { %v6585_v14 = vadd.f32 %v9236_v51, %v6584_v12  ;;  %v8019_v51 = vld [vmem:[%s13950_s21 + $0x88] sm:$0xff]  ;;  %v8030_v12 = vld [vmem:[%s13950_s21 + $0xe0] sm:$0xff] }
 0xd23   : > { %v6597_v5 = vpop.f32.mrf.mxu0 }
 0xd24   : > { %v6598_v33 = vadd.f32 %v6597_v5, %v6585_v14  ;;  %v8013_v14 = vld [vmem:[%s13950_s21 + $0x58] sm:$0xff]  ;;  %v8018_v5 = vld [vmem:[%s13950_s21 + $0x80] sm:$0xff] }
 0xd25   : > { %7020 = vmatpush.bf16.msra.mxu0 %v8013_v14 }
 0xd26   : > { %v6611_v34 = vadd.f32 %v6610_v4, %v6598_v33  ;;  %v8020_v4 = vld [vmem:[%s13950_s21 + $0x90] sm:$0xff]  ;;  %v8029_v33 = vld [vmem:[%s13950_s21 + $0xd8] sm:$0xff] }
 0xd27   : > { %7034 = vmatpush.bf16.msra.mxu1 %v8020_v4 }
 0xd28   : > { %v6615_v2 = vmul.f32 %v6611_v34, %v6611_v34  ;;  %v6614_v17 = vmul.f32 0.5, %v6611_v34 }
 0xd29   : > { %v6586_v50 = vpop.f32.mrf.mxu3 }
 0xd2a   : > { %v6616_v27 = vmul.f32 %v6615_v2, %v6611_v34  ;;  %v8028_v2 = vld [vmem:[%s13950_s21 + $0xd0] sm:$0xff] }
 0xd2b   : > { %v6599_v26 = vpop.f32.mrf.mxu0  ;;  %7035 = vmatpush.bf16.msra.mxu1 %v8019_v51  ;;  %v8038_v51 = vld [vmem:[%s13953_s24] sm:$0xff] }
 0xd2c   : > { %v6617_v30 = vmul.f32 0.044715, %v6616_v27  ;;  %v8011_v27 = vld [vmem:[%s13950_s21 + $0x48] sm:$0xff] }
 0xd2e   : > { %v6618_v37 = vadd.f32 %v6617_v30, %v6611_v34  ;;  %v8012_v34 = vld [vmem:[%s13950_s21 + $0x50] sm:$0xff]  ;;  %v8027_v30 = vld [vmem:[%s13950_s21 + $0xc8] sm:$0xff] }
 0xd2f   : > { %7036 = vmatpush.bf16.msra.mxu1 %v8018_v5  ;;  %7021 = vmatpush.bf16.msra.mxu0 %v8012_v34  ;;  %v8042_v34 = vld [vmem:[%s13955_s26] sm:$0xff] }
 0xd30   : > { %v6619_v13 = vmul.f32 0.7978846, %v6618_v37 }
 0xd32   : > { %9364 = vtanh.f32 %v6619_v13  ;;  %v8010_v13 = vld [vmem:[%s13950_s21 + $0x40] sm:$0xff] }
 0xd33   : > { %7022 = vmatpush.bf16.msra.mxu0 %v8011_v27 }
 0xd37   : > { %7023 = vmatpush.bf16.msra.mxu0 %v8010_v13 }
 0xd38   : > { %v9365_v46 = vpop.eup %9364 }
 0xd39   : > { %v6621_v11 = vadd.f32 1.0, %v9365_v46  ;;  %v8026_v46 = vld [vmem:[%s13950_s21 + $0xc0] sm:$0xff] }
 0xd3b   : > { %v6622_v31 = vmul.f32 %v6621_v11, %v6614_v17 }
 0xd3d   : > { %v6626_v49 = vpack.c.bf16 %v6622_v31, %v6622_v31 }
 0xd3f   : > { %v6642_v35 = vsel %vm1021_vm0, %v6626_v49, 0 }
 0xd40   : > { %6651 = vmatpush.bf16.msra.mxu3 %v6642_v35 }
 0xd43   : > { %7728 = vmatmul.msk.bf16.vlgmr.msra.gmra.mxu3 %vm954_vm1, %v8001_v63 }
 0xd44   : > { %7042 = vmatpush.bf16.msrb.mxu3 %v8033_v8 }
 0xd48   : > { %7043 = vmatpush.bf16.msrb.mxu3 %v8032_v25 }
 0xd4c   : > { %7044 = vmatpush.bf16.msrb.mxu3 %v8031_v43 }
 0xd50   : > { %7045 = vmatpush.bf16.msrb.mxu3 %v8030_v12 }
 0xd53   : > { %7729 = vmatmul.msk.bf16.gmra.mxu3 %vm954_vm1, %v6634_v41 }
 0xd54   : > { %7046 = vmatpush.bf16.msrb.mxu3 %v8029_v33  ;;  %v8043_v33 = vld [vmem:[%s13955_s26 + $0x8] sm:$0xff] }
 0xd58   : > { %7047 = vmatpush.bf16.msrb.mxu3 %v8028_v2  ;;  %v9238_v2 = vld [vmem:[%s14129_s29] ss:$0 sm:$0xff] }
 0xd5c   : > { %7048 = vmatpush.bf16.msrb.mxu3 %v8027_v30 }
 0xd60   : > { %7049 = vmatpush.bf16.msrb.mxu3 %v8026_v46 }
 0xdc6   : > { %v13760_v60 = vpop.f32.mrf.mxu3 }
 0xdc7   : > { %v6684_v32 = vrot.slane %v13760_v60, 6  ;;  %v6664_v55 = vrot.slane %v13760_v60, 1  ;;  %v6674_v7 = vrot.slane %v13760_v60, 4  ;;  %v6680_v63 = vrot.slane %v13760_v60, 5 }
 0xdc8   : > { %v6670_v16 = vrot.slane %v13760_v60, 2 }
 0xdce   : > { %v13768_v28 = vpop.f32.mrf.mxu3 }
 0xdcf   : > { %v6685_v10 = vrot.slane %v13768_v28, 6  ;;  %v6665_v1 = vrot.slane %v13768_v28, 1  ;;  %v6675_v36 = vrot.slane %v13768_v28, 4  ;;  %v6671_v11 = vrot.slane %v13768_v28, 2 }
 0xdd0   : > { %v6681_v35 = vrot.slane %v13768_v28, 5 }
 0xdd1   : > { %v6686_v62 = vsel %vm2315_vm5, %v6684_v32, %v6685_v10  ;;  %v6666_v39 = vsel %vm1178_vm2, %v6664_v55, %v6665_v1  ;;  %v6676_v45 = vsel %vm1021_vm0, %v6674_v7, %v6675_v36  ;;  %v6672_v15 = vsel %vm1360_vm3, %v6670_v16, %v6671_v11 }
 0xdd2   : > { %6687 = vrot.lane.b32.xlu1 %v6686_v62, %s14047_s10  ;;  %6667 = vrot.lane.b32.xlu2 %v6666_v39, %s14047_s10  ;;  %v6682_v29 = vsel %vm2133_vm6, %v6680_v63, %v6681_v35 }
 0xdd6   : > { %v13785_v53 = vpop.f32.mrf.mxu3 }
 0xdd7   : > { %v6691_v57 = vrot.slane %v13785_v53, 1  ;;  %v6696_v17 = vrot.slane %v13785_v53, 2 }
 0xdd9   : > { %v6692_v23 = vsel %vm1178_vm2, %v6665_v1, %v6691_v57  ;;  %v6697_v31 = vsel %vm1360_vm3, %v6671_v11, %v6696_v17 }
 0xdda   : > { %v9226_v9 = vpack.i.bf16 %v6676_v45, %v6692_v23  ;;  %v6707_v49 = vpack.c.bf16 %v6697_v31, %v6697_v31 }
 0xddc   : > { %9227 = vrot.lane.b32.xlu0 %v9226_v9, %s14047_s10 }
 0xdde   : > { %v6660_v21 = vpop.f32.mrf.mxu3 }
 0xe2c   : > { %v6668_v50 = vpop.permute.xlu2 %6667 }
 0xe2d   : > { %v6699_v26 = vsel %vm2755_vm13, %v13760_v60, %v6668_v50  ;;  %v9237_v60 = vld [vmem:[%s13951_s22] ss:$0 sm:$0xff] }
 0xe2e   : > { %v6703_v37 = vpack.c.bf16 %v6699_v26, %v6699_v26 }
 0xe30   : > { %7011 = vmatmul.bf16.vlgmr.msra.gmra.mxu2 %v6703_v37 }
 0xe31   : > { %7190 = vmatpush.bf16.msra.mxu2 %v8043_v33 }
 0xe35   : > { %7191 = vmatpush.bf16.msra.mxu2 %v8042_v34 }
 0xe40   : > { %7874 = vmatmul.msk.bf16.vlgmr.msrb.gmra.mxu2 %vm2755_vm13, %v6707_v49 }
 0xe44   : > { %v6688_v19 = vpop.permute.xlu1 %6687 }
 0xe45   : > { %v6701_v41 = vsel %vm2755_vm13, %v6682_v29, %v6688_v19  ;;  %v9239_v19 = vld [vmem:[#allocation2] ss:$0 sm:$0xff] }
 0xe46   : > { %v6705_v52 = vpack.c.bf16 %v6701_v41, %v6701_v41 }
 0xe48   : > { %7037 = vmatmul.bf16.vlgmr.msra.gmra.mxu1 %v6705_v52 }
 0xe4e   : > { %v9228_v59 = vpop.permute.xlu0 %9227 }
 0xe4f   : > { %v9230_v47 = vunpack.i.h.bf16 %v9228_v59  ;;  %v9229_v40 = vunpack.i.l.bf16 %v9228_v59 }
 0xe51   : > { %v6700_v32 = vsel %vm2755_vm13, %v6672_v15, %v9230_v47  ;;  %v6702_v10 = vsel %vm2755_vm13, %v13768_v28, %v9229_v40  ;;  %v8041_v28 = vld [vmem:[%s13953_s24 + $0x18] sm:$0xff] }
 0xe52   : > { %v6704_v55 = vpack.c.bf16 %v6700_v32, %v6700_v32  ;;  %v6706_v1 = vpack.c.bf16 %v6702_v10, %v6702_v10  ;;  %7142 = vmatpush.bf16.msrb.mxu1 %v8041_v28 }
 0xe54   : > { %7024 = vmatmul.bf16.vlgmr.msra.gmra.mxu0 %v6704_v55  ;;  %7050 = vmatmul.bf16.vlgmr.msrb.gmra.mxu3 %v6706_v1 }
 0xe56   : > { %7143 = vmatpush.bf16.msrb.mxu1 %v8040_v56 }
 0xe5a   : > { %7144 = vmatpush.bf16.msrb.mxu1 %v8039_v44 }
 0xe5e   : > { %7145 = vmatpush.bf16.msrb.mxu1 %v8038_v51 }
 0xeb3   : > { %v7012_v24 = vpop.f32.mrf.mxu2 }
 0xeb4   : > { %v7013_v7 = vadd.f32 %v9237_v60, %v7012_v24 }
 0xebb   : > { %v7014_v62 = vpop.f32.mrf.mxu2 }
 0xec3   : > { %v7064_v39 = vpop.f32.mrf.mxu2 }
 0xec5   : > { %v7038_v18 = vpop.f32.mrf.mxu1 }
 0xecb   : > { %v7066_v36 = vpop.f32.mrf.mxu2 }
 0xecd   : > { %v7040_v53 = vpop.f32.mrf.mxu1 }
 0xed1   : > { %v7025_v57 = vpop.f32.mrf.mxu0 }
 0xed2   : > { %v7026_v45 = vadd.f32 %v7025_v57, %v7013_v7 }
 0xed4   : > { %v7039_v23 = vadd.f32 %v7038_v18, %v7026_v45 }
 0xed7   : > { %v7051_v9 = vpop.f32.mrf.mxu3 }
 0xed8   : > { %v7052_v21 = vadd.f32 %v7051_v9, %v7039_v23 }
 0xed9   : > { %v7027_v20 = vpop.f32.mrf.mxu0 }
 0xeda   : > { %v7065_v58 = vadd.f32 %v7064_v39, %v7052_v21 }
 0xedc   : > { %v7069_v3 = vmul.f32 %v7065_v58, %v7065_v58  ;;  %v7068_v54 = vmul.f32 0.5, %v7065_v58 }
 0xede   : > { %v7070_v8 = vmul.f32 %v7069_v3, %v7065_v58 }
 0xedf   : > { %v7053_v0 = vpop.f32.mrf.mxu3 }
 0xee0   : > { %v7071_v22 = vmul.f32 0.044715, %v7070_v8 }
 0xee2   : > { %v7072_v25 = vadd.f32 %v7071_v22, %v7065_v58 }
 0xee4   : > { %v7073_v48 = vmul.f32 0.7978846, %v7072_v25 }
 0xee6   : > { %9366 = vtanh.f32 %v7073_v48 }
 0xeec   : > { %v9367_v6 = vpop.eup %9366 }
 0xeed   : > { %v7075_v43 = vadd.f32 1.0, %v9367_v6 }
 0xeef   : > { %v7076_v38 = vmul.f32 %v7075_v43, %v7068_v54 }
 0xef1   : > { %v7078_v61 = vpack.c.bf16 %v7076_v38, %v7076_v38 }
 0xef3   : > { %v7083_v4 = vsel %vm1021_vm0, %v7078_v61, 0  ;;  %vm7197_vm0 = vcmask 3072  }
 0xef4   : > { %7092 = vmatpush.bf16.msrb.mxu0 %v7083_v4 }
 0xef7   : > { %7875 = vmatmul.msk.bf16.vlgmr.msrb.gmra.mxu0 %vm954_vm1, %v7077_v42 }
 0xf74   : > { %v7094_v12 = vpop.f32.mrf.mxu0 }
 0xf75   : > { %v7098_v14 = vpack.c.bf16 %v7094_v12, %v7094_v12 }
 0xf77   : > { %7892 = vmatmul.msk.bf16.vlgmr.msrb.gmra.mxu1 %vm2755_vm13, %v7098_v14 }
 0xf7c   : > { %v7096_v5 = vpop.f32.mrf.mxu0 }
 0xff4   : > { %v7147_v50 = vpop.f32.mrf.mxu1 }
 0xff5   : > { %v7148_v27 = vadd.f32 %v9238_v2, %v7147_v50 }
 0xff7   : > { %v7152_v26 = vmul.f32 %v7148_v27, %v7148_v27  ;;  %v7151_v31 = vmul.f32 0.5, %v7148_v27 }
 0xff9   : > { %v7153_v30 = vmul.f32 %v7152_v26, %v7148_v27 }
 0xffb   : > { %v7154_v37 = vmul.f32 0.044715, %v7153_v30 }
 0xffc   : > { %v7149_v13 = vpop.f32.mrf.mxu1 }
 0xffd   : > { %v7155_v46 = vadd.f32 %v7154_v37, %v7148_v27 }
 0xfff   : > { %v7156_v17 = vmul.f32 0.7978846, %v7155_v46 }
0x1001   : > { %9368 = vtanh.f32 %v7156_v17 }
0x1007   : > { %v9369_v11 = vpop.eup %9368 }
0x1008   : > { %v7158_v49 = vadd.f32 1.0, %v9369_v11 }
0x100a   : > { %v7159_v35 = vmul.f32 %v7158_v49, %v7151_v31 }
0x100c   : > { %v7160_v63 = vpack.c.bf16 %v7159_v35, %v7159_v35 }
0x100e   : > { %7901 = vmatmul.msk.bf16.vlgmr.msra.gmra.mxu2 %vm2607_vm9, %v7160_v63 }
0x1091   : > { %v7193_v29 = vpop.f32.mrf.mxu2 }
0x1092   : > { %v7194_v41 = vadd.f32 %v9239_v19, %v7193_v29 }
0x1094   : > { %7198 = vst.msk [vmem:[%s845_s12] sm:$0xf] %vm7197_vm0, %v7194_v41 }
0x1099   : > { %v7195_v52 = vpop.f32.mrf.mxu2 }
0x109a PF: > { %s14132_s5 = sld [smem:[#allocation3_spill]] }
0x10a0   : > { %s40_s9 = sadd.s32 1, %s14132_s5  }
0x10a1   : > { %p37_p4 = scmp.ge.s32.totalorder %s40_s9, 4  }
0x10a3   :  { %39 = sbr.rel (!%p37_p4) target bundleno = 16 (0x10), region = 162 }

</bundles_post_ra>
